<compile_context>
chip_gen: v5e
topology: v5e:2x2
jax: 0.10.0
libtpu: 0.0.40
codegen_flags: <defaults>
</compile_context>

<pallas_src>
import functools

import jax
import jax.numpy as jnp
from jax.experimental import pallas as pl
from jax.experimental.pallas import tpu as pltpu

# ----------------------------- configuration --------------------------------
B = 2                 # batch
D_MODEL = 32          # cfgs.D_MODEL
FF = 64               # DIM_FEEDFORWARD
SEQ = 3               # sequence length
T = SEQ - 1           # past frames -> IDANet branches / IGANet gates
N_LEVELS = 2          # SCALE_LEVEL
N_HEADS = 4           # NUM_HEAD
N_POINTS = 2          # NUM_SAMPLING_POINTS
HEAD_DIM = D_MODEL // N_HEADS
ENC_C = D_MODEL // N_LEVELS          # FPMNet encode_channel (n_levels == 2)
SHAPES = [(8, 8), (4, 4)]            # MOTION_FEATURE_SCALE_LIST / SPATIAL_SIZE
LEVEL_START = [0, 64]                # level_start_idx
LQ = sum(h * w for h, w in SHAPES)   # 80 tokens total


# --------------------------- BlockSpec helpers ------------------------------
def _bspec(shape2d):
    """Stacked operand: leading grid axis (squeezed), full 2-D tile per step."""
    return pl.BlockSpec((None,) + tuple(shape2d),
                        lambda t: (t,) + (0,) * len(shape2d))


def _shared_spec(shape2d):
    """Operand shared by every grid step (constant index_map, stays resident)."""
    return pl.BlockSpec(tuple(shape2d), lambda t: (0,) * len(shape2d))


_PARALLEL = pltpu.CompilerParams(dimension_semantics=("parallel",))


def _bf16(x):
    return x.astype(jnp.bfloat16)


# --------------------------- in-kernel math ----------------------------------
def _sigmoid(y):
    # numerically stable sigmoid (exp on EUP, no inf intermediates), f32.
    ey = jnp.exp(-jnp.abs(y))
    return jnp.where(y >= 0.0, 1.0 / (1.0 + ey), ey / (1.0 + ey))


def _apply_act(y, act):
    if act == "relu":
        return jnp.maximum(y, 0.0)
    if act == "sigmoid":
        return _sigmoid(y)
    return y


def _ln(s, g, b):
    mu = jnp.mean(s, axis=-1, keepdims=True)
    var = jnp.mean(jnp.square(s - mu), axis=-1, keepdims=True)
    return (s - mu) * jax.lax.rsqrt(var + 1e-5) * g + b


# ----------------------------- Pallas kernels -------------------------------
def _multi_gemm_kernel(*refs, n, acts):
    # n independent fused GEMMs (bf16 MXU operands, f32 accumulate) per step.
    for i in range(n):
        x_ref, w_ref, b_ref = refs[3 * i: 3 * i + 3]
        o_ref = refs[3 * n + i]
        y = jnp.dot(x_ref[...], w_ref[...],
                    preferred_element_type=jnp.float32) + b_ref[...]
        o_ref[...] = _apply_act(y, acts[i])


def multi_gemm(triples, acts):
    """N independent GEMMs in ONE launch, grid over the stacked leading axis.

    triples: list of (x, w, b) with x:(G,M,K) bf16, w:(G,K,N) bf16, b:(G,1,N) f32.
    Returns list of (G,M,N) float32 outputs.
    """
    n = len(triples)
    g = triples[0][0].shape[0]
    args, in_specs, out_shapes, out_specs = [], [], [], []
    for x, w, b in triples:
        args += [x, w, b]
        in_specs += [_bspec(x.shape[1:]), _bspec(w.shape[1:]), _bspec(b.shape[1:])]
        out_shapes.append(jax.ShapeDtypeStruct((g, x.shape[1], w.shape[2]),
                                               jnp.float32))
        out_specs.append(_bspec((x.shape[1], w.shape[2])))
    outs = pl.pallas_call(
        functools.partial(_multi_gemm_kernel, n=n, acts=tuple(acts)),
        out_shape=tuple(out_shapes), grid=(g,),
        in_specs=in_specs, out_specs=tuple(out_specs),
        compiler_params=_PARALLEL,
    )(*args)
    return list(outs)


def _fpm_enc_kernel(cols_ref, we_ref, be_ref, wu_ref, bu_ref, m_ref, up_ref, *,
                    rows1):
    # shared-weight 3x3 encode conv over both pyramid levels (im2col rows
    # concatenated) + the 2x2-stride-2 transposed-conv GEMM on the level-1
    # rows, without the level-1 motion features ever leaving VMEM.
    m = jnp.dot(cols_ref[...], we_ref[...],
                preferred_element_type=jnp.float32) + be_ref[...]
    m_ref[...] = m
    m1 = m[m.shape[0] - rows1:, :].astype(jnp.bfloat16)
    up_ref[...] = jnp.dot(m1, wu_ref[...],
                          preferred_element_type=jnp.float32) + bu_ref[...]


def _gate_mix_kernel(c0_ref, wg0_ref, bg0_ref, cur0_ref, p0_ref,
                     c1_ref, wg1_ref, bg1_ref, cur1_ref, p1_ref,
                     o0_ref, o1_ref):
    # IGANet gate for BOTH levels, one frame per grid step.  Gate (Cout=1) is
    # a VPU broadcast-multiply + lane reduction (no 1-column MXU pass);
    # sigmoid + g*cur+(1-g)*prev fused, the gate never leaves VMEM.
    def mix(cols_ref, wg_ref, bg_ref, cur_ref, prev_ref, o_ref):
        cols = cols_ref[...].astype(jnp.float32)             # (M, 576) f32 VPU
        logit = jnp.sum(cols * wg_ref[...], axis=-1, keepdims=True) + bg_ref[...]
        g = _sigmoid(logit)
        o_ref[...] = g * cur_ref[...] + (1.0 - g) * prev_ref[...]

    mix(c0_ref, wg0_ref, bg0_ref, cur0_ref, p0_ref, o0_ref)
    mix(c1_ref, wg1_ref, bg1_ref, cur1_ref, p1_ref, o1_ref)


def _idanet_tail_kernel(samp_ref, keys_ref, wo_ref, bo_ref, g1_ref, be1_ref,
                        w1_ref, bb1_ref, w2_ref, bb2_ref, g2_ref, be2_ref,
                        o_ref):
    # output-proj GEMM + residual+LN1 + FFN (lin1+relu, lin2) + residual+LN2.
    attn = jnp.dot(samp_ref[...], wo_ref[...],
                   preferred_element_type=jnp.float32) + bo_ref[...]
    x = _ln(keys_ref[...] + attn, g1_ref[...], be1_ref[...])
    h = jnp.maximum(
        jnp.dot(x.astype(jnp.bfloat16), w1_ref[...],
                preferred_element_type=jnp.float32) + bb1_ref[...], 0.0)
    h2 = jnp.dot(h.astype(jnp.bfloat16), w2_ref[...],
                 preferred_element_type=jnp.float32) + bb2_ref[...]
    o_ref[...] = _ln(x + h2, g2_ref[...], be2_ref[...])


# ------------------------- conv helpers (layout glue) ------------------------
def im2col3x3(x):
    """3x3 / stride 1 / pad 1 patch extraction. (B,H,W,C) -> (B*H*W, 9*C)."""
    Bn, H, W, C = x.shape
    xp = jnp.pad(x, ((0, 0), (1, 1), (1, 1), (0, 0)))
    cols = jnp.concatenate(
        [xp[:, di:di + H, dj:dj + W, :] for di in range(3) for dj in range(3)],
        axis=-1)
    return cols.reshape(Bn * H * W, 9 * C)


# ------------------------------ FPMNet (2 levels) ----------------------------
def fpmnet_forward_batched(fpm, target, pasts):
    """Both IDANet branches' FPMNet in two launches (grid over branches)."""
    Bn = target["spatialAttn_result_2x"].shape[0]
    H0, W0 = SHAPES[0]
    H1, W1 = SHAPES[1]
    rows1 = Bn * H1 * W1

    cols_list = []
    for t in range(T):
        lvl_cols = []
        for lvl, (H, W) in enumerate(SHAPES):
            scale = 2 ** (lvl + 1)
            diff = (target[f"spatialAttn_result_{scale}x"]
                    - pasts[t][f"temporalAttn_result_{scale}x"]
                    ).reshape(Bn, H, W, D_MODEL)
            lvl_cols.append(im2col3x3(diff))
        cols_list.append(jnp.concatenate(lvl_cols, axis=0))
    cols = _bf16(jnp.stack(cols_list, axis=0))                # (T, 160, 288)
    rows = cols.shape[1]

    enc_w = _bf16(fpm["enc_w"].reshape(T, 9 * D_MODEL, ENC_C))
    enc_b = fpm["enc_b"].reshape(T, 1, ENC_C)
    up_w = _bf16(fpm["inc2x_w"].reshape(T, ENC_C, 4 * ENC_C))
    up_b = jnp.tile(fpm["inc2x_b"], (1, 4)).reshape(T, 1, 4 * ENC_C)

    motion, upflat = pl.pallas_call(
        functools.partial(_fpm_enc_kernel, rows1=rows1),
        out_shape=(jax.ShapeDtypeStruct((T, rows, ENC_C), jnp.float32),
                   jax.ShapeDtypeStruct((T, rows1, 4 * ENC_C), jnp.float32)),
        grid=(T,),
        in_specs=[_bspec((rows, 9 * D_MODEL)), _bspec((9 * D_MODEL, ENC_C)),
                  _bspec((1, ENC_C)), _bspec((ENC_C, 4 * ENC_C)),
                  _bspec((1, 4 * ENC_C))],
        out_specs=(_bspec((rows, ENC_C)), _bspec((rows1, 4 * ENC_C))),
        compiler_params=_PARALLEL,
    )(cols, enc_w, enc_b, up_w, up_b)

    # ConvTranspose2d(k=2,s=2) pixel-shuffle + 2x2 max-pool: XLA layout glue.
    motion0 = motion[:, :Bn * H0 * W0].reshape(T, Bn, H0, W0, ENC_C)
    motion1 = motion[:, Bn * H0 * W0:].reshape(T, Bn, H1, W1, ENC_C)
    up1 = upflat.reshape(T, Bn, H1, W1, 2, 2, ENC_C).transpose(
        0, 1, 2, 4, 3, 5, 6).reshape(T, Bn, H0, W0, ENC_C)
    dn0 = motion0.reshape(T, Bn, H1, 2, W1, 2, ENC_C).max(axis=(3, 5))

    cat0 = _bf16(jnp.concatenate([motion0, up1], axis=-1)
                 .reshape(T, Bn * H0 * W0, 2 * ENC_C))
    cat1 = _bf16(jnp.concatenate([dn0, motion1], axis=-1)
                 .reshape(T, Bn * H1 * W1, 2 * ENC_C))
    f0, f1 = multi_gemm(
        [(cat0, _bf16(fpm["agg0_w"]), fpm["agg0_b"].reshape(T, 1, D_MODEL)),
         (cat1, _bf16(fpm["agg1_w"]), fpm["agg1_b"].reshape(T, 1, D_MODEL))],
        acts=("none", "none"))
    return (f0.reshape(T, Bn, H0 * W0, D_MODEL),
            f1.reshape(T, Bn, H1 * W1, D_MODEL))


# --------------------------- MSDeformAttn sampling ---------------------------
def deform_sample(value, ref_points, off, aw):
    """Bilinear deformable sampling (grid_sample, zeros padding, align=False),
    as dense one-hot weights + tiny batched einsum (no gathers).  XLA glue."""
    Bn, Lq = off.shape[0], off.shape[1]
    normalizer = jnp.array([[w, h] for (h, w) in SHAPES], jnp.float32)  # [W,H]
    loc = (ref_points[:, :, None, :, None, :]
           + off / normalizer[None, None, None, :, None, :])
    out = jnp.zeros((Bn, Lq, N_HEADS, HEAD_DIM), jnp.float32)
    for lid, (Hl, Wl) in enumerate(SHAPES):
        s = LEVEL_START[lid]
        v_l = value[:, s:s + Hl * Wl]                        # (B, Nl, M, hd)
        g = 2.0 * loc[:, :, :, lid] - 1.0                    # (B, Lq, M, P, 2)
        x = ((g[..., 0] + 1.0) * Wl - 1.0) / 2.0
        y = ((g[..., 1] + 1.0) * Hl - 1.0) / 2.0
        x0, y0 = jnp.floor(x), jnp.floor(y)
        wx1, wy1 = x - x0, y - y0
        corners = ((x0, y0, (1 - wx1) * (1 - wy1)),
                   (x0 + 1.0, y0, wx1 * (1 - wy1)),
                   (x0, y0 + 1.0, (1 - wx1) * wy1),
                   (x0 + 1.0, y0 + 1.0, wx1 * wy1))
        ar = jnp.arange(Hl * Wl, dtype=jnp.int32)
        S = jnp.zeros((Bn, Lq, N_HEADS, Hl * Wl), jnp.float32)
        for xi, yi, wgt in corners:
            valid = ((xi >= 0) & (xi <= Wl - 1) &
                     (yi >= 0) & (yi <= Hl - 1)).astype(jnp.float32)
            xc = jnp.clip(xi, 0, Wl - 1).astype(jnp.int32)
            yc = jnp.clip(yi, 0, Hl - 1).astype(jnp.int32)
            idx = yc * Wl + xc                                # (B, Lq, M, P)
            w_all = wgt * valid * aw[:, :, :, lid]            # (B, Lq, M, P)
            onehot = (idx[..., None] == ar).astype(jnp.float32)
            S = S + jnp.sum(w_all[..., None] * onehot, axis=3)
        out = out + jnp.einsum('bqhn,bnhd->bqhd', S, v_l)
    return out.reshape(Bn, Lq, D_MODEL)


# -------------------------------- IDANet ------------------------------------
def idanet_forward_batched(params, feature_dict_list, ref_points):
    """Both IDANet branches batched over a parallel grid axis: 4 launches."""
    target = feature_dict_list[-1]
    pasts = feature_dict_list[:T]
    Bn = target["spatialAttn_result_2x"].shape[0]

    f0, f1 = fpmnet_forward_batched(params["fpm"], target, pasts)
    dq = jnp.concatenate([f0, f1], axis=2).reshape(T, Bn * LQ, D_MODEL)

    keys = jnp.stack(
        [jnp.concatenate([pasts[t][f"temporalAttn_result_{2 ** (l + 1)}x"]
                          for l in range(N_LEVELS)], axis=1) for t in range(T)],
        axis=0)                                               # (T, B, LQ, D)
    keys2 = keys.reshape(T, Bn * LQ, D_MODEL)

    ap = params["attn"]
    wq = jnp.concatenate([ap["off_w"], ap["aw_w"]], axis=-1)  # (T, D, 48)
    bq = jnp.concatenate([ap["off_b"], ap["aw_b"]], axis=-1)  # (T, 48)
    qproj, vproj = multi_gemm(
        [(_bf16(dq), _bf16(wq), bq.reshape(T, 1, -1)),
         (_bf16(keys2), _bf16(ap["vproj_w"]),
          ap["vproj_b"].reshape(T, 1, D_MODEL))],
        acts=("none", "none"))

    # TODO(synk): fully in-kernel deformable sampling skipped; the softmax +
    # one-hot bilinear weights stay as jit-fused XLA glue between the two
    # Pallas launches, only the GEMMs use the MXU.
    n_off = N_HEADS * N_LEVELS * N_POINTS * 2
    off = qproj[:, :, :n_off].reshape(T, Bn, LQ, N_HEADS, N_LEVELS, N_POINTS, 2)
    aw = qproj[:, :, n_off:].reshape(T, Bn, LQ, N_HEADS, N_LEVELS * N_POINTS)
    aw = jax.nn.softmax(aw, axis=-1).reshape(T, Bn, LQ, N_HEADS, N_LEVELS,
                                             N_POINTS)
    value = vproj.reshape(T, Bn, LQ, N_HEADS, HEAD_DIM)
    ref_b = jnp.broadcast_to(ref_points, (T,) + ref_points.shape)
    sampled = jax.vmap(deform_sample)(value, ref_b, off, aw)  # (T, B, LQ, D)

    M = Bn * LQ
    out = pl.pallas_call(
        _idanet_tail_kernel,
        out_shape=jax.ShapeDtypeStruct((T, M, D_MODEL), jnp.float32),
        grid=(T,),
        in_specs=[_bspec((M, D_MODEL)), _bspec((M, D_MODEL)),
                  _bspec((D_MODEL, D_MODEL)), _bspec((1, D_MODEL)),
                  _bspec((1, D_MODEL)), _bspec((1, D_MODEL)),
                  _bspec((D_MODEL, FF)), _bspec((1, FF)),
                  _bspec((FF, D_MODEL)), _bspec((1, D_MODEL)),
                  _bspec((1, D_MODEL)), _bspec((1, D_MODEL))],
        out_specs=_bspec((M, D_MODEL)),
        compiler_params=_PARALLEL,
    )(_bf16(sampled.reshape(T, M, D_MODEL)), keys2,
      _bf16(ap["oproj_w"]), ap["oproj_b"].reshape(T, 1, D_MODEL),
      params["norm1_g"].reshape(T, 1, D_MODEL),
      params["norm1_b"].reshape(T, 1, D_MODEL),
      _bf16(params["lin1_w"]), params["lin1_b"].reshape(T, 1, FF),
      _bf16(params["lin2_w"]), params["lin2_b"].reshape(T, 1, D_MODEL),
      params["norm2_g"].reshape(T, 1, D_MODEL),
      params["norm2_b"].reshape(T, 1, D_MODEL))
    return out.reshape(T, Bn, LQ, D_MODEL)


# -------------------------------- IGANet ------------------------------------
def iganet_forward_batched(params_list, feature_dict_list):
    """Both IGANet levels: 3 launches total (gate-mix, fuse, aggregate)."""
    target = feature_dict_list[-1]
    Bn = target["spatialAttn_result_2x"].shape[0]

    cur2d, prev_st, cols_st, M_l = [], [], [], []
    for lvl, (s, _) in enumerate(SHAPES):
        scale = 2 ** (lvl + 1)
        cur = target[f"spatialAttn_result_{scale}x"].reshape(Bn, s, s, D_MODEL)
        prevs, cols = [], []
        for t in range(T):
            prev = feature_dict_list[t][f"temporalAttn_result_{scale}x"].reshape(
                Bn, s, s, D_MODEL)
            prevs.append(prev.reshape(Bn * s * s, D_MODEL))
            cols.append(im2col3x3(jnp.concatenate([prev, cur], axis=-1)))
        cur2d.append(cur)
        prev_st.append(jnp.stack(prevs, axis=0))              # (T, M, D)
        cols_st.append(_bf16(jnp.stack(cols, axis=0)))        # (T, M, 576)
        M_l.append(Bn * s * s)

    p0, p1 = params_list
    wg = [p["gate_w"].reshape(T, 1, 9 * 2 * D_MODEL) for p in (p0, p1)]
    bg = [p["gate_b"].reshape(T, 1, 1) for p in (p0, p1)]
    cur_flat = [cur2d[l].reshape(M_l[l], D_MODEL) for l in range(2)]

    mixed0, mixed1 = pl.pallas_call(
        _gate_mix_kernel,
        out_shape=(jax.ShapeDtypeStruct((T, M_l[0], D_MODEL), jnp.float32),
                   jax.ShapeDtypeStruct((T, M_l[1], D_MODEL), jnp.float32)),
        grid=(T,),
        in_specs=[_bspec((M_l[0], 9 * 2 * D_MODEL)), _bspec((1, 9 * 2 * D_MODEL)),
                  _bspec((1, 1)), _shared_spec((M_l[0], D_MODEL)),
                  _bspec((M_l[0], D_MODEL)),
                  _bspec((M_l[1], 9 * 2 * D_MODEL)), _bspec((1, 9 * 2 * D_MODEL)),
                  _bspec((1, 1)), _shared_spec((M_l[1], D_MODEL)),
                  _bspec((M_l[1], D_MODEL))],
        out_specs=(_bspec((M_l[0], D_MODEL)), _bspec((M_l[1], D_MODEL))),
        compiler_params=_PARALLEL,
    )(cols_st[0], wg[0], bg[0], cur_flat[0], prev_st[0],
      cols_st[1], wg[1], bg[1], cur_flat[1], prev_st[1])

    mixed = [mixed0, mixed1]
    fcols = []
    for lvl, (s, _) in enumerate(SHAPES):
        fcols.append(_bf16(jnp.stack(
            [im2col3x3(mixed[lvl][t].reshape(Bn, s, s, D_MODEL))
             for t in range(T)], axis=0)))                    # (T, M, 288)
    fw = [_bf16(p["fuse_w"].reshape(T, 9 * D_MODEL, D_MODEL)) for p in (p0, p1)]
    fb = [p["fuse_b"].reshape(T, 1, D_MODEL) for p in (p0, p1)]
    fused0, fused1 = multi_gemm(
        [(fcols[0], fw[0], fb[0]), (fcols[1], fw[1], fb[1])],
        acts=("relu", "relu"))

    fused = [fused0, fused1]
    acols, aww, abb = [], [], []
    for lvl, (s, _) in enumerate(SHAPES):
        p = params_list[lvl]
        cat = jnp.concatenate(
            [fused[lvl][t].reshape(Bn, s, s, D_MODEL) for t in range(T)], axis=-1)
        acols.append(_bf16(im2col3x3(cat))[None])             # (1, M, 9*T*D)
        aww.append(_bf16(p["agg_w"].reshape(9 * T * D_MODEL, D_MODEL))[None])
        abb.append(p["agg_b"].reshape(1, 1, D_MODEL))
    agg0, agg1 = multi_gemm(
        [(acols[0], aww[0], abb[0]), (acols[1], aww[1], abb[1])],
        acts=("relu", "relu"))
    return [agg0[0].reshape(Bn, SHAPES[0][0] ** 2, D_MODEL),
            agg1[0].reshape(Bn, SHAPES[1][0] ** 2, D_MODEL)]


# ----------------------------- CoAttn_Layer ----------------------------------
def coattn_forward(params, feature_dict_list, ref_points):
    feature_dict_list = [dict(d) for d in feature_dict_list]
    target = feature_dict_list[-1]

    # alignment: both IDANet branches batched; rewrite past temporal keys
    out = idanet_forward_batched(params["idanet"], feature_dict_list, ref_points)
    for t in range(T):
        past = feature_dict_list[t]
        for lvl in range(N_LEVELS):
            scale = 2 ** (lvl + 1)
            start = LEVEL_START[lvl]
            end = LEVEL_START[lvl + 1] if lvl != N_LEVELS - 1 else out.shape[2]
            past[f"temporalAttn_result_{scale}x"] = out[t, :, start:end, :]

    # aggregation: both IGANet levels; rewrite target spatial keys
    agg = iganet_forward_batched(params["iganet"], feature_dict_list)
    for lvl in range(N_LEVELS):
        scale = 2 ** (lvl + 1)
        target[f"spatialAttn_result_{scale}x"] = agg[lvl]
    return feature_dict_list


# ------------------------------ parameter init -------------------------------
def _w(key, shape, scale=0.1):
    return jax.random.normal(key, shape, jnp.float32) * scale


def init_idanet_params(key):
    """Per-branch weights pre-stacked along a leading T axis (grid-indexed)."""
    ks = iter(jax.random.split(key, 16))
    return {
        "fpm": {
            "enc_w": _w(next(ks), (T, 3, 3, D_MODEL, ENC_C)),
            "enc_b": jnp.zeros((T, ENC_C)),
            "inc2x_w": _w(next(ks), (T, ENC_C, 2, 2, ENC_C)),
            "inc2x_b": jnp.zeros((T, ENC_C)),
            "agg0_w": _w(next(ks), (T, ENC_C * N_LEVELS, D_MODEL)),
            "agg0_b": jnp.zeros((T, D_MODEL)),
            "agg1_w": _w(next(ks), (T, ENC_C * N_LEVELS, D_MODEL)),
            "agg1_b": jnp.zeros((T, D_MODEL)),
        },
        "attn": {
            "off_w": _w(next(ks), (T, D_MODEL, N_HEADS * N_LEVELS * N_POINTS * 2),
                        0.02),
            "off_b": _w(next(ks), (T, N_HEADS * N_LEVELS * N_POINTS * 2), 0.5),
            "aw_w": _w(next(ks), (T, D_MODEL, N_HEADS * N_LEVELS * N_POINTS)),
            "aw_b": jnp.zeros((T, N_HEADS * N_LEVELS * N_POINTS)),
            "vproj_w": _w(next(ks), (T, D_MODEL, D_MODEL)),
            "vproj_b": jnp.zeros((T, D_MODEL)),
            "oproj_w": _w(next(ks), (T, D_MODEL, D_MODEL)),
            "oproj_b": jnp.zeros((T, D_MODEL)),
        },
        "norm1_g": jnp.ones((T, D_MODEL)), "norm1_b": jnp.zeros((T, D_MODEL)),
        "lin1_w": _w(next(ks), (T, D_MODEL, FF)), "lin1_b": jnp.zeros((T, FF)),
        "lin2_w": _w(next(ks), (T, FF, D_MODEL)), "lin2_b": jnp.zeros((T, D_MODEL)),
        "norm2_g": jnp.ones((T, D_MODEL)), "norm2_b": jnp.zeros((T, D_MODEL)),
    }


def init_iganet_params(key):
    ks = iter(jax.random.split(key, 4))
    return {
        "gate_w": _w(next(ks), (T, 3, 3, 2 * D_MODEL, 1)),
        "gate_b": jnp.zeros((T, 1)),
        "fuse_w": _w(next(ks), (T, 3, 3, D_MODEL, D_MODEL)),
        "fuse_b": jnp.zeros((T, D_MODEL)),
        "agg_w": _w(next(ks), (3, 3, D_MODEL * T, D_MODEL)),
        "agg_b": jnp.zeros((D_MODEL,)),
    }


def init_params(key):
    k_ida, k_iga = jax.random.split(key)
    return {
        "idanet": init_idanet_params(k_ida),
        "iganet": [init_iganet_params(k) for k in jax.random.split(k_iga, N_LEVELS)],
    }


# ----------------------------------- main ------------------------------------
if __name__ == "__main__":
    key = jax.random.PRNGKey(0)
    k_feat, k_ref, k_param = jax.random.split(key, 3)

    fkeys = iter(jax.random.split(k_feat, SEQ * N_LEVELS * 2))
    feature_dict_list = []
    for _ in range(SEQ):
        d = {}
        for lvl, (H, W) in enumerate(SHAPES):
            scale = 2 ** (lvl + 1)
            d[f"spatialAttn_result_{scale}x"] = jax.random.normal(
                next(fkeys), (B, H * W, D_MODEL), jnp.float32)
            d[f"temporalAttn_result_{scale}x"] = jax.random.normal(
                next(fkeys), (B, H * W, D_MODEL), jnp.float32)
        feature_dict_list.append(d)

    ref_points = jax.random.uniform(k_ref, (B, LQ, N_LEVELS, 2), jnp.float32)
    params = init_params(k_param)

    # one jit over the whole forward: 7 Pallas launches, all layout glue
    # (im2col, pixel-shuffle, max-pool, softmax, bilinear weights) XLA-fused.
    coattn_jit = jax.jit(coattn_forward)
    result = coattn_jit(params, feature_dict_list, ref_points)

    for leaf in jax.tree_util.tree_leaves(result):
        jax.block_until_ready(leaf)
    print("KERNEL_OK")
</pallas_src>

<mosaic_0001>
module attributes {stable_mosaic.version = 11 : i64} {
  func.func @_fpm_enc_kernel(%arg0: i32, %arg1: memref<1x160x288xbf16, #tpu.memory_space<vmem>>, %arg2: memref<1x288x16xbf16, #tpu.memory_space<vmem>>, %arg3: memref<1x1x16xf32, #tpu.memory_space<vmem>>, %arg4: memref<1x16x64xbf16, #tpu.memory_space<vmem>>, %arg5: memref<1x1x64xf32, #tpu.memory_space<vmem>>, %arg6: memref<1x160x16xf32, #tpu.memory_space<vmem>>, %arg7: memref<1x32x64xf32, #tpu.memory_space<vmem>>) attributes {dimension_semantics = [#tpu.dimension_semantics<parallel>], iteration_bounds = array<i64: 2>, scalar_prefetch = 0 : i64, scratch_operands = 0 : i64, tpu.core_type = #tpu.core_type<tc>, window_params = [{transform_indices = @transform_0, window_bounds = array<i64: 1, 160, 288>}, {transform_indices = @transform_1, window_bounds = array<i64: 1, 288, 16>}, {transform_indices = @transform_2, window_bounds = array<i64: 1, 1, 16>}, {transform_indices = @transform_3, window_bounds = array<i64: 1, 16, 64>}, {transform_indices = @transform_4, window_bounds = array<i64: 1, 1, 64>}, {transform_indices = @transform_5, window_bounds = array<i64: 1, 160, 16>}, {transform_indices = @transform_6, window_bounds = array<i64: 1, 32, 64>}]} {
    %c0 = arith.constant 0 : index
    %c0_0 = arith.constant 0 : index
    %c0_1 = arith.constant 0 : index
    %0 = vector.load %arg1[%c0, %c0_0, %c0_1] : memref<1x160x288xbf16, #tpu.memory_space<vmem>>, vector<1x160x288xbf16>
    %1 = vector.shape_cast %0 : vector<1x160x288xbf16> to vector<160x288xbf16>
    %c0_2 = arith.constant 0 : index
    %c0_3 = arith.constant 0 : index
    %c0_4 = arith.constant 0 : index
    %2 = vector.load %arg2[%c0_2, %c0_3, %c0_4] : memref<1x288x16xbf16, #tpu.memory_space<vmem>>, vector<1x288x16xbf16>
    %3 = vector.shape_cast %2 : vector<1x288x16xbf16> to vector<288x16xbf16>
    %cst = arith.constant dense<0.000000e+00> : vector<160x16xf32>
    %4 = tpu.matmul %1, %3, %cst {dimension_numbers = #tpu.dot_dimension_numbers<[1], [0], [0], [1], [0, 0, 1, 1], [], []>} : vector<160x288xbf16>, vector<288x16xbf16>, vector<160x16xf32> -> vector<160x16xf32>
    %c0_5 = arith.constant 0 : index
    %c0_6 = arith.constant 0 : index
    %c0_7 = arith.constant 0 : index
    %5 = vector.load %arg3[%c0_5, %c0_6, %c0_7] : memref<1x1x16xf32, #tpu.memory_space<vmem>>, vector<1x1x16xf32>
    %6 = vector.shape_cast %5 : vector<1x1x16xf32> to vector<1x16xf32>
    %7 = vector.broadcast %6 : vector<1x16xf32> to vector<160x16xf32>
    %8 = arith.addf %4, %7 : vector<160x16xf32>
    %c0_8 = arith.constant 0 : index
    %c0_9 = arith.constant 0 : index
    %c0_10 = arith.constant 0 : index
    %9 = vector.load %arg6[%c0_8, %c0_9, %c0_10] : memref<1x160x16xf32, #tpu.memory_space<vmem>>, vector<1x160x16xf32>
    %10 = vector.shape_cast %9 : vector<1x160x16xf32> to vector<160x16xf32>
    %11 = vector.shape_cast %8 : vector<160x16xf32> to vector<1x160x16xf32>
    tpu.vector_store %arg6[%c0_8, %c0_9, %c0_10], %11 {strides = array<i32>} : memref<1x160x16xf32, #tpu.memory_space<vmem>>, vector<1x160x16xf32>,
    %12 = vector.extract_strided_slice %8 {offsets = [128, 0], sizes = [32, 16], strides = [1, 1]} : vector<160x16xf32> to vector<32x16xf32>
    %13 = arith.truncf %12 : vector<32x16xf32> to vector<32x16xbf16>
    %c0_11 = arith.constant 0 : index
    %c0_12 = arith.constant 0 : index
    %c0_13 = arith.constant 0 : index
    %14 = vector.load %arg4[%c0_11, %c0_12, %c0_13] : memref<1x16x64xbf16, #tpu.memory_space<vmem>>, vector<1x16x64xbf16>
    %15 = vector.shape_cast %14 : vector<1x16x64xbf16> to vector<16x64xbf16>
    %cst_14 = arith.constant dense<0.000000e+00> : vector<32x64xf32>
    %16 = tpu.matmul %13, %15, %cst_14 {dimension_numbers = #tpu.dot_dimension_numbers<[1], [0], [0], [1], [0, 0, 1, 1], [], []>} : vector<32x16xbf16>, vector<16x64xbf16>, vector<32x64xf32> -> vector<32x64xf32>
    %c0_15 = arith.constant 0 : index
    %c0_16 = arith.constant 0 : index
    %c0_17 = arith.constant 0 : index
    %17 = vector.load %arg5[%c0_15, %c0_16, %c0_17] : memref<1x1x64xf32, #tpu.memory_space<vmem>>, vector<1x1x64xf32>
    %18 = vector.shape_cast %17 : vector<1x1x64xf32> to vector<1x64xf32>
    %19 = vector.broadcast %18 : vector<1x64xf32> to vector<32x64xf32>
    %20 = arith.addf %16, %19 : vector<32x64xf32>
    %c0_18 = arith.constant 0 : index
    %c0_19 = arith.constant 0 : index
    %c0_20 = arith.constant 0 : index
    %21 = vector.load %arg7[%c0_18, %c0_19, %c0_20] : memref<1x32x64xf32, #tpu.memory_space<vmem>>, vector<1x32x64xf32>
    %22 = vector.shape_cast %21 : vector<1x32x64xf32> to vector<32x64xf32>
    %23 = vector.shape_cast %20 : vector<32x64xf32> to vector<1x32x64xf32>
    tpu.vector_store %arg7[%c0_18, %c0_19, %c0_20], %23 {strides = array<i32>} : memref<1x32x64xf32, #tpu.memory_space<vmem>>, vector<1x32x64xf32>,
    return
  }
  func.func @transform_0(%arg0: i32) -> (i32, i32, i32) {
    %c0_i32 = arith.constant 0 : i32
    %c0_i32_0 = arith.constant 0 : i32
    %c0_i32_1 = arith.constant 0 : i32
    return %arg0, %c0_i32, %c0_i32_0 : i32, i32, i32
  }
  func.func @transform_1(%arg0: i32) -> (i32, i32, i32) {
    %c0_i32 = arith.constant 0 : i32
    %c0_i32_0 = arith.constant 0 : i32
    %c0_i32_1 = arith.constant 0 : i32
    return %arg0, %c0_i32, %c0_i32_0 : i32, i32, i32
  }
  func.func @transform_2(%arg0: i32) -> (i32, i32, i32) {
    %c0_i32 = arith.constant 0 : i32
    %c0_i32_0 = arith.constant 0 : i32
    %c0_i32_1 = arith.constant 0 : i32
    return %arg0, %c0_i32, %c0_i32_0 : i32, i32, i32
  }
  func.func @transform_3(%arg0: i32) -> (i32, i32, i32) {
    %c0_i32 = arith.constant 0 : i32
    %c0_i32_0 = arith.constant 0 : i32
    %c0_i32_1 = arith.constant 0 : i32
    return %arg0, %c0_i32, %c0_i32_0 : i32, i32, i32
  }
  func.func @transform_4(%arg0: i32) -> (i32, i32, i32) {
    %c0_i32 = arith.constant 0 : i32
    %c0_i32_0 = arith.constant 0 : i32
    %c0_i32_1 = arith.constant 0 : i32
    return %arg0, %c0_i32, %c0_i32_0 : i32, i32, i32
  }
  func.func @transform_5(%arg0: i32) -> (i32, i32, i32) {
    %c0_i32 = arith.constant 0 : i32
    %c0_i32_0 = arith.constant 0 : i32
    %c0_i32_1 = arith.constant 0 : i32
    return %arg0, %c0_i32, %c0_i32_0 : i32, i32, i32
  }
  func.func @transform_6(%arg0: i32) -> (i32, i32, i32) {
    %c0_i32 = arith.constant 0 : i32
    %c0_i32_0 = arith.constant 0 : i32
    %c0_i32_1 = arith.constant 0 : i32
    return %arg0, %c0_i32, %c0_i32_0 : i32, i32, i32
  }
}

module attributes {stable_mosaic.version = 11 : i64} {
  func.func @_multi_gemm_kernel(%arg0: i32, %arg1: memref<1x128x32xbf16, #tpu.memory_space<vmem>>, %arg2: memref<1x32x32xbf16, #tpu.memory_space<vmem>>, %arg3: memref<1x1x32xf32, #tpu.memory_space<vmem>>, %arg4: memref<1x32x32xbf16, #tpu.memory_space<vmem>>, %arg5: memref<1x32x32xbf16, #tpu.memory_space<vmem>>, %arg6: memref<1x1x32xf32, #tpu.memory_space<vmem>>, %arg7: memref<1x128x32xf32, #tpu.memory_space<vmem>>, %arg8: memref<1x32x32xf32, #tpu.memory_space<vmem>>) attributes {dimension_semantics = [#tpu.dimension_semantics<parallel>], iteration_bounds = array<i64: 2>, scalar_prefetch = 0 : i64, scratch_operands = 0 : i64, tpu.core_type = #tpu.core_type<tc>, window_params = [{transform_indices = @transform_0, window_bounds = array<i64: 1, 128, 32>}, {transform_indices = @transform_1, window_bounds = array<i64: 1, 32, 32>}, {transform_indices = @transform_2, window_bounds = array<i64: 1, 1, 32>}, {transform_indices = @transform_3, window_bounds = array<i64: 1, 32, 32>}, {transform_indices = @transform_4, window_bounds = array<i64: 1, 32, 32>}, {transform_indices = @transform_5, window_bounds = array<i64: 1, 1, 32>}, {transform_indices = @transform_6, window_bounds = array<i64: 1, 128, 32>}, {transform_indices = @transform_7, window_bounds = array<i64: 1, 32, 32>}]} {
    %c0 = arith.constant 0 : index
    %c0_0 = arith.constant 0 : index
    %c0_1 = arith.constant 0 : index
    %0 = vector.load %arg1[%c0, %c0_0, %c0_1] : memref<1x128x32xbf16, #tpu.memory_space<vmem>>, vector<1x128x32xbf16>
    %1 = vector.shape_cast %0 : vector<1x128x32xbf16> to vector<128x32xbf16>
    %c0_2 = arith.constant 0 : index
    %c0_3 = arith.constant 0 : index
    %c0_4 = arith.constant 0 : index
    %2 = vector.load %arg2[%c0_2, %c0_3, %c0_4] : memref<1x32x32xbf16, #tpu.memory_space<vmem>>, vector<1x32x32xbf16>
    %3 = vector.shape_cast %2 : vector<1x32x32xbf16> to vector<32x32xbf16>
    %cst = arith.constant dense<0.000000e+00> : vector<128x32xf32>
    %4 = tpu.matmul %1, %3, %cst {dimension_numbers = #tpu.dot_dimension_numbers<[1], [0], [0], [1], [0, 0, 1, 1], [], []>} : vector<128x32xbf16>, vector<32x32xbf16>, vector<128x32xf32> -> vector<128x32xf32>
    %c0_5 = arith.constant 0 : index
    %c0_6 = arith.constant 0 : index
    %c0_7 = arith.constant 0 : index
    %5 = vector.load %arg3[%c0_5, %c0_6, %c0_7] : memref<1x1x32xf32, #tpu.memory_space<vmem>>, vector<1x1x32xf32>
    %6 = vector.shape_cast %5 : vector<1x1x32xf32> to vector<1x32xf32>
    %7 = vector.broadcast %6 : vector<1x32xf32> to vector<128x32xf32>
    %8 = arith.addf %4, %7 : vector<128x32xf32>
    %c0_8 = arith.constant 0 : index
    %c0_9 = arith.constant 0 : index
    %c0_10 = arith.constant 0 : index
    %9 = vector.load %arg7[%c0_8, %c0_9, %c0_10] : memref<1x128x32xf32, #tpu.memory_space<vmem>>, vector<1x128x32xf32>
    %10 = vector.shape_cast %9 : vector<1x128x32xf32> to vector<128x32xf32>
    %11 = vector.shape_cast %8 : vector<128x32xf32> to vector<1x128x32xf32>
    tpu.vector_store %arg7[%c0_8, %c0_9, %c0_10], %11 {strides = array<i32>} : memref<1x128x32xf32, #tpu.memory_space<vmem>>, vector<1x128x32xf32>,
    %c0_11 = arith.constant 0 : index
    %c0_12 = arith.constant 0 : index
    %c0_13 = arith.constant 0 : index
    %12 = vector.load %arg4[%c0_11, %c0_12, %c0_13] : memref<1x32x32xbf16, #tpu.memory_space<vmem>>, vector<1x32x32xbf16>
    %13 = vector.shape_cast %12 : vector<1x32x32xbf16> to vector<32x32xbf16>
    %c0_14 = arith.constant 0 : index
    %c0_15 = arith.constant 0 : index
    %c0_16 = arith.constant 0 : index
    %14 = vector.load %arg5[%c0_14, %c0_15, %c0_16] : memref<1x32x32xbf16, #tpu.memory_space<vmem>>, vector<1x32x32xbf16>
    %15 = vector.shape_cast %14 : vector<1x32x32xbf16> to vector<32x32xbf16>
    %cst_17 = arith.constant dense<0.000000e+00> : vector<32x32xf32>
    %16 = tpu.matmul %13, %15, %cst_17 {dimension_numbers = #tpu.dot_dimension_numbers<[1], [0], [0], [1], [0, 0, 1, 1], [], []>} : vector<32x32xbf16>, vector<32x32xbf16>, vector<32x32xf32> -> vector<32x32xf32>
    %c0_18 = arith.constant 0 : index
    %c0_19 = arith.constant 0 : index
    %c0_20 = arith.constant 0 : index
    %17 = vector.load %arg6[%c0_18, %c0_19, %c0_20] : memref<1x1x32xf32, #tpu.memory_space<vmem>>, vector<1x1x32xf32>
    %18 = vector.shape_cast %17 : vector<1x1x32xf32> to vector<1x32xf32>
    %19 = vector.broadcast %18 : vector<1x32xf32> to vector<32x32xf32>
    %20 = arith.addf %16, %19 : vector<32x32xf32>
    %c0_21 = arith.constant 0 : index
    %c0_22 = arith.constant 0 : index
    %c0_23 = arith.constant 0 : index
    %21 = vector.load %arg8[%c0_21, %c0_22, %c0_23] : memref<1x32x32xf32, #tpu.memory_space<vmem>>, vector<1x32x32xf32>
    %22 = vector.shape_cast %21 : vector<1x32x32xf32> to vector<32x32xf32>
    %23 = vector.shape_cast %20 : vector<32x32xf32> to vector<1x32x32xf32>
    tpu.vector_store %arg8[%c0_21, %c0_22, %c0_23], %23 {strides = array<i32>} : memref<1x32x32xf32, #tpu.memory_space<vmem>>, vector<1x32x32xf32>,
    return
  }
  func.func @transform_0(%arg0: i32) -> (i32, i32, i32) {
    %c0_i32 = arith.constant 0 : i32
    %c0_i32_0 = arith.constant 0 : i32
    %c0_i32_1 = arith.constant 0 : i32
    return %arg0, %c0_i32, %c0_i32_0 : i32, i32, i32
  }
  func.func @transform_1(%arg0: i32) -> (i32, i32, i32) {
    %c0_i32 = arith.constant 0 : i32
    %c0_i32_0 = arith.constant 0 : i32
    %c0_i32_1 = arith.constant 0 : i32
    return %arg0, %c0_i32, %c0_i32_0 : i32, i32, i32
  }
  func.func @transform_2(%arg0: i32) -> (i32, i32, i32) {
    %c0_i32 = arith.constant 0 : i32
    %c0_i32_0 = arith.constant 0 : i32
    %c0_i32_1 = arith.constant 0 : i32
    return %arg0, %c0_i32, %c0_i32_0 : i32, i32, i32
  }
  func.func @transform_3(%arg0: i32) -> (i32, i32, i32) {
    %c0_i32 = arith.constant 0 : i32
    %c0_i32_0 = arith.constant 0 : i32
    %c0_i32_1 = arith.constant 0 : i32
    return %arg0, %c0_i32, %c0_i32_0 : i32, i32, i32
  }
  func.func @transform_4(%arg0: i32) -> (i32, i32, i32) {
    %c0_i32 = arith.constant 0 : i32
    %c0_i32_0 = arith.constant 0 : i32
    %c0_i32_1 = arith.constant 0 : i32
    return %arg0, %c0_i32, %c0_i32_0 : i32, i32, i32
  }
  func.func @transform_5(%arg0: i32) -> (i32, i32, i32) {
    %c0_i32 = arith.constant 0 : i32
    %c0_i32_0 = arith.constant 0 : i32
    %c0_i32_1 = arith.constant 0 : i32
    return %arg0, %c0_i32, %c0_i32_0 : i32, i32, i32
  }
  func.func @transform_6(%arg0: i32) -> (i32, i32, i32) {
    %c0_i32 = arith.constant 0 : i32
    %c0_i32_0 = arith.constant 0 : i32
    %c0_i32_1 = arith.constant 0 : i32
    return %arg0, %c0_i32, %c0_i32_0 : i32, i32, i32
  }
  func.func @transform_7(%arg0: i32) -> (i32, i32, i32) {
    %c0_i32 = arith.constant 0 : i32
    %c0_i32_0 = arith.constant 0 : i32
    %c0_i32_1 = arith.constant 0 : i32
    return %arg0, %c0_i32, %c0_i32_0 : i32, i32, i32
  }
}

module attributes {stable_mosaic.version = 11 : i64} {
  func.func @_multi_gemm_kernel(%arg0: i32, %arg1: memref<1x160x32xbf16, #tpu.memory_space<vmem>>, %arg2: memref<1x32x48xbf16, #tpu.memory_space<vmem>>, %arg3: memref<1x1x48xf32, #tpu.memory_space<vmem>>, %arg4: memref<1x160x32xbf16, #tpu.memory_space<vmem>>, %arg5: memref<1x32x32xbf16, #tpu.memory_space<vmem>>, %arg6: memref<1x1x32xf32, #tpu.memory_space<vmem>>, %arg7: memref<1x160x48xf32, #tpu.memory_space<vmem>>, %arg8: memref<1x160x32xf32, #tpu.memory_space<vmem>>) attributes {dimension_semantics = [#tpu.dimension_semantics<parallel>], iteration_bounds = array<i64: 2>, scalar_prefetch = 0 : i64, scratch_operands = 0 : i64, tpu.core_type = #tpu.core_type<tc>, window_params = [{transform_indices = @transform_0, window_bounds = array<i64: 1, 160, 32>}, {transform_indices = @transform_1, window_bounds = array<i64: 1, 32, 48>}, {transform_indices = @transform_2, window_bounds = array<i64: 1, 1, 48>}, {transform_indices = @transform_3, window_bounds = array<i64: 1, 160, 32>}, {transform_indices = @transform_4, window_bounds = array<i64: 1, 32, 32>}, {transform_indices = @transform_5, window_bounds = array<i64: 1, 1, 32>}, {transform_indices = @transform_6, window_bounds = array<i64: 1, 160, 48>}, {transform_indices = @transform_7, window_bounds = array<i64: 1, 160, 32>}]} {
    %c0 = arith.constant 0 : index
    %c0_0 = arith.constant 0 : index
    %c0_1 = arith.constant 0 : index
    %0 = vector.load %arg1[%c0, %c0_0, %c0_1] : memref<1x160x32xbf16, #tpu.memory_space<vmem>>, vector<1x160x32xbf16>
    %1 = vector.shape_cast %0 : vector<1x160x32xbf16> to vector<160x32xbf16>
    %c0_2 = arith.constant 0 : index
    %c0_3 = arith.constant 0 : index
    %c0_4 = arith.constant 0 : index
    %2 = vector.load %arg2[%c0_2, %c0_3, %c0_4] : memref<1x32x48xbf16, #tpu.memory_space<vmem>>, vector<1x32x48xbf16>
    %3 = vector.shape_cast %2 : vector<1x32x48xbf16> to vector<32x48xbf16>
    %cst = arith.constant dense<0.000000e+00> : vector<160x48xf32>
    %4 = tpu.matmul %1, %3, %cst {dimension_numbers = #tpu.dot_dimension_numbers<[1], [0], [0], [1], [0, 0, 1, 1], [], []>} : vector<160x32xbf16>, vector<32x48xbf16>, vector<160x48xf32> -> vector<160x48xf32>
    %c0_5 = arith.constant 0 : index
    %c0_6 = arith.constant 0 : index
    %c0_7 = arith.constant 0 : index
    %5 = vector.load %arg3[%c0_5, %c0_6, %c0_7] : memref<1x1x48xf32, #tpu.memory_space<vmem>>, vector<1x1x48xf32>
    %6 = vector.shape_cast %5 : vector<1x1x48xf32> to vector<1x48xf32>
    %7 = vector.broadcast %6 : vector<1x48xf32> to vector<160x48xf32>
    %8 = arith.addf %4, %7 : vector<160x48xf32>
    %c0_8 = arith.constant 0 : index
    %c0_9 = arith.constant 0 : index
    %c0_10 = arith.constant 0 : index
    %9 = vector.load %arg7[%c0_8, %c0_9, %c0_10] : memref<1x160x48xf32, #tpu.memory_space<vmem>>, vector<1x160x48xf32>
    %10 = vector.shape_cast %9 : vector<1x160x48xf32> to vector<160x48xf32>
    %11 = vector.shape_cast %8 : vector<160x48xf32> to vector<1x160x48xf32>
    tpu.vector_store %arg7[%c0_8, %c0_9, %c0_10], %11 {strides = array<i32>} : memref<1x160x48xf32, #tpu.memory_space<vmem>>, vector<1x160x48xf32>,
    %c0_11 = arith.constant 0 : index
    %c0_12 = arith.constant 0 : index
    %c0_13 = arith.constant 0 : index
    %12 = vector.load %arg4[%c0_11, %c0_12, %c0_13] : memref<1x160x32xbf16, #tpu.memory_space<vmem>>, vector<1x160x32xbf16>
    %13 = vector.shape_cast %12 : vector<1x160x32xbf16> to vector<160x32xbf16>
    %c0_14 = arith.constant 0 : index
    %c0_15 = arith.constant 0 : index
    %c0_16 = arith.constant 0 : index
    %14 = vector.load %arg5[%c0_14, %c0_15, %c0_16] : memref<1x32x32xbf16, #tpu.memory_space<vmem>>, vector<1x32x32xbf16>
    %15 = vector.shape_cast %14 : vector<1x32x32xbf16> to vector<32x32xbf16>
    %cst_17 = arith.constant dense<0.000000e+00> : vector<160x32xf32>
    %16 = tpu.matmul %13, %15, %cst_17 {dimension_numbers = #tpu.dot_dimension_numbers<[1], [0], [0], [1], [0, 0, 1, 1], [], []>} : vector<160x32xbf16>, vector<32x32xbf16>, vector<160x32xf32> -> vector<160x32xf32>
    %c0_18 = arith.constant 0 : index
    %c0_19 = arith.constant 0 : index
    %c0_20 = arith.constant 0 : index
    %17 = vector.load %arg6[%c0_18, %c0_19, %c0_20] : memref<1x1x32xf32, #tpu.memory_space<vmem>>, vector<1x1x32xf32>
    %18 = vector.shape_cast %17 : vector<1x1x32xf32> to vector<1x32xf32>
    %19 = vector.broadcast %18 : vector<1x32xf32> to vector<160x32xf32>
    %20 = arith.addf %16, %19 : vector<160x32xf32>
    %c0_21 = arith.constant 0 : index
    %c0_22 = arith.constant 0 : index
    %c0_23 = arith.constant 0 : index
    %21 = vector.load %arg8[%c0_21, %c0_22, %c0_23] : memref<1x160x32xf32, #tpu.memory_space<vmem>>, vector<1x160x32xf32>
    %22 = vector.shape_cast %21 : vector<1x160x32xf32> to vector<160x32xf32>
    %23 = vector.shape_cast %20 : vector<160x32xf32> to vector<1x160x32xf32>
    tpu.vector_store %arg8[%c0_21, %c0_22, %c0_23], %23 {strides = array<i32>} : memref<1x160x32xf32, #tpu.memory_space<vmem>>, vector<1x160x32xf32>,
    return
  }
  func.func @transform_0(%arg0: i32) -> (i32, i32, i32) {
    %c0_i32 = arith.constant 0 : i32
    %c0_i32_0 = arith.constant 0 : i32
    %c0_i32_1 = arith.constant 0 : i32
    return %arg0, %c0_i32, %c0_i32_0 : i32, i32, i32
  }
  func.func @transform_1(%arg0: i32) -> (i32, i32, i32) {
    %c0_i32 = arith.constant 0 : i32
    %c0_i32_0 = arith.constant 0 : i32
    %c0_i32_1 = arith.constant 0 : i32
    return %arg0, %c0_i32, %c0_i32_0 : i32, i32, i32
  }
  func.func @transform_2(%arg0: i32) -> (i32, i32, i32) {
    %c0_i32 = arith.constant 0 : i32
    %c0_i32_0 = arith.constant 0 : i32
    %c0_i32_1 = arith.constant 0 : i32
    return %arg0, %c0_i32, %c0_i32_0 : i32, i32, i32
  }
  func.func @transform_3(%arg0: i32) -> (i32, i32, i32) {
    %c0_i32 = arith.constant 0 : i32
    %c0_i32_0 = arith.constant 0 : i32
    %c0_i32_1 = arith.constant 0 : i32
    return %arg0, %c0_i32, %c0_i32_0 : i32, i32, i32
  }
  func.func @transform_4(%arg0: i32) -> (i32, i32, i32) {
    %c0_i32 = arith.constant 0 : i32
    %c0_i32_0 = arith.constant 0 : i32
    %c0_i32_1 = arith.constant 0 : i32
    return %arg0, %c0_i32, %c0_i32_0 : i32, i32, i32
  }
  func.func @transform_5(%arg0: i32) -> (i32, i32, i32) {
    %c0_i32 = arith.constant 0 : i32
    %c0_i32_0 = arith.constant 0 : i32
    %c0_i32_1 = arith.constant 0 : i32
    return %arg0, %c0_i32, %c0_i32_0 : i32, i32, i32
  }
  func.func @transform_6(%arg0: i32) -> (i32, i32, i32) {
    %c0_i32 = arith.constant 0 : i32
    %c0_i32_0 = arith.constant 0 : i32
    %c0_i32_1 = arith.constant 0 : i32
    return %arg0, %c0_i32, %c0_i32_0 : i32, i32, i32
  }
  func.func @transform_7(%arg0: i32) -> (i32, i32, i32) {
    %c0_i32 = arith.constant 0 : i32
    %c0_i32_0 = arith.constant 0 : i32
    %c0_i32_1 = arith.constant 0 : i32
    return %arg0, %c0_i32, %c0_i32_0 : i32, i32, i32
  }
}

module attributes {stable_mosaic.version = 11 : i64} {
  func.func @_idanet_tail_kernel(%arg0: i32, %arg1: memref<1x160x32xbf16, #tpu.memory_space<vmem>>, %arg2: memref<1x160x32xf32, #tpu.memory_space<vmem>>, %arg3: memref<1x32x32xbf16, #tpu.memory_space<vmem>>, %arg4: memref<1x1x32xf32, #tpu.memory_space<vmem>>, %arg5: memref<1x1x32xf32, #tpu.memory_space<vmem>>, %arg6: memref<1x1x32xf32, #tpu.memory_space<vmem>>, %arg7: memref<1x32x64xbf16, #tpu.memory_space<vmem>>, %arg8: memref<1x1x64xf32, #tpu.memory_space<vmem>>, %arg9: memref<1x64x32xbf16, #tpu.memory_space<vmem>>, %arg10: memref<1x1x32xf32, #tpu.memory_space<vmem>>, %arg11: memref<1x1x32xf32, #tpu.memory_space<vmem>>, %arg12: memref<1x1x32xf32, #tpu.memory_space<vmem>>, %arg13: memref<1x160x32xf32, #tpu.memory_space<vmem>>) attributes {dimension_semantics = [#tpu.dimension_semantics<parallel>], iteration_bounds = array<i64: 2>, scalar_prefetch = 0 : i64, scratch_operands = 0 : i64, tpu.core_type = #tpu.core_type<tc>, window_params = [{transform_indices = @transform_0, window_bounds = array<i64: 1, 160, 32>}, {transform_indices = @transform_1, window_bounds = array<i64: 1, 160, 32>}, {transform_indices = @transform_2, window_bounds = array<i64: 1, 32, 32>}, {transform_indices = @transform_3, window_bounds = array<i64: 1, 1, 32>}, {transform_indices = @transform_4, window_bounds = array<i64: 1, 1, 32>}, {transform_indices = @transform_5, window_bounds = array<i64: 1, 1, 32>}, {transform_indices = @transform_6, window_bounds = array<i64: 1, 32, 64>}, {transform_indices = @transform_7, window_bounds = array<i64: 1, 1, 64>}, {transform_indices = @transform_8, window_bounds = array<i64: 1, 64, 32>}, {transform_indices = @transform_9, window_bounds = array<i64: 1, 1, 32>}, {transform_indices = @transform_10, window_bounds = array<i64: 1, 1, 32>}, {transform_indices = @transform_11, window_bounds = array<i64: 1, 1, 32>}, {transform_indices = @transform_12, window_bounds = array<i64: 1, 160, 32>}]} {
    %c0 = arith.constant 0 : index
    %c0_0 = arith.constant 0 : index
    %c0_1 = arith.constant 0 : index
    %0 = vector.load %arg1[%c0, %c0_0, %c0_1] : memref<1x160x32xbf16, #tpu.memory_space<vmem>>, vector<1x160x32xbf16>
    %1 = vector.shape_cast %0 : vector<1x160x32xbf16> to vector<160x32xbf16>
    %c0_2 = arith.constant 0 : index
    %c0_3 = arith.constant 0 : index
    %c0_4 = arith.constant 0 : index
    %2 = vector.load %arg3[%c0_2, %c0_3, %c0_4] : memref<1x32x32xbf16, #tpu.memory_space<vmem>>, vector<1x32x32xbf16>
    %3 = vector.shape_cast %2 : vector<1x32x32xbf16> to vector<32x32xbf16>
    %cst = arith.constant dense<0.000000e+00> : vector<160x32xf32>
    %4 = tpu.matmul %1, %3, %cst {dimension_numbers = #tpu.dot_dimension_numbers<[1], [0], [0], [1], [0, 0, 1, 1], [], []>} : vector<160x32xbf16>, vector<32x32xbf16>, vector<160x32xf32> -> vector<160x32xf32>
    %c0_5 = arith.constant 0 : index
    %c0_6 = arith.constant 0 : index
    %c0_7 = arith.constant 0 : index
    %5 = vector.load %arg4[%c0_5, %c0_6, %c0_7] : memref<1x1x32xf32, #tpu.memory_space<vmem>>, vector<1x1x32xf32>
    %6 = vector.shape_cast %5 : vector<1x1x32xf32> to vector<1x32xf32>
    %7 = vector.broadcast %6 : vector<1x32xf32> to vector<160x32xf32>
    %8 = arith.addf %4, %7 : vector<160x32xf32>
    %c0_8 = arith.constant 0 : index
    %c0_9 = arith.constant 0 : index
    %c0_10 = arith.constant 0 : index
    %9 = vector.load %arg2[%c0_8, %c0_9, %c0_10] : memref<1x160x32xf32, #tpu.memory_space<vmem>>, vector<1x160x32xf32>
    %10 = vector.shape_cast %9 : vector<1x160x32xf32> to vector<160x32xf32>
    %11 = arith.addf %10, %8 : vector<160x32xf32>
    %c0_11 = arith.constant 0 : index
    %c0_12 = arith.constant 0 : index
    %c0_13 = arith.constant 0 : index
    %12 = vector.load %arg5[%c0_11, %c0_12, %c0_13] : memref<1x1x32xf32, #tpu.memory_space<vmem>>, vector<1x1x32xf32>
    %13 = vector.shape_cast %12 : vector<1x1x32xf32> to vector<1x32xf32>
    %c0_14 = arith.constant 0 : index
    %c0_15 = arith.constant 0 : index
    %c0_16 = arith.constant 0 : index
    %14 = vector.load %arg6[%c0_14, %c0_15, %c0_16] : memref<1x1x32xf32, #tpu.memory_space<vmem>>, vector<1x1x32xf32>
    %15 = vector.shape_cast %14 : vector<1x1x32xf32> to vector<1x32xf32>
    %cst_17 = arith.constant dense<0.000000e+00> : vector<160xf32>
    %16 = vector.multi_reduction <add>, %11, %cst_17 [1] : vector<160x32xf32> to vector<160xf32>
    %17 = vector.shape_cast %16 : vector<160xf32> to vector<160x1xf32>
    %cst_18 = arith.constant 3.200000e+01 : f32
    %18 = vector.broadcast %cst_18 : f32 to vector<160x1xf32>
    %19 = arith.divf %17, %18 : vector<160x1xf32>
    %20 = vector.broadcast %19 : vector<160x1xf32> to vector<160x32xf32>
    %21 = arith.subf %11, %20 : vector<160x32xf32>
    %22 = arith.mulf %21, %21 : vector<160x32xf32>
    %cst_19 = arith.constant dense<0.000000e+00> : vector<160xf32>
    %23 = vector.multi_reduction <add>, %22, %cst_19 [1] : vector<160x32xf32> to vector<160xf32>
    %24 = vector.shape_cast %23 : vector<160xf32> to vector<160x1xf32>
    %cst_20 = arith.constant 3.200000e+01 : f32
    %25 = vector.broadcast %cst_20 : f32 to vector<160x1xf32>
    %26 = arith.divf %24, %25 : vector<160x1xf32>
    %27 = vector.broadcast %19 : vector<160x1xf32> to vector<160x32xf32>
    %28 = arith.subf %11, %27 : vector<160x32xf32>
    %cst_21 = arith.constant 9.99999974E-6 : f32
    %29 = vector.broadcast %cst_21 : f32 to vector<160x1xf32>
    %30 = arith.addf %26, %29 : vector<160x1xf32>
    %31 = math.rsqrt %30 : vector<160x1xf32>
    %32 = vector.broadcast %31 : vector<160x1xf32> to vector<160x32xf32>
    %33 = arith.mulf %28, %32 : vector<160x32xf32>
    %34 = vector.broadcast %13 : vector<1x32xf32> to vector<160x32xf32>
    %35 = arith.mulf %33, %34 : vector<160x32xf32>
    %36 = vector.broadcast %15 : vector<1x32xf32> to vector<160x32xf32>
    %37 = arith.addf %35, %36 : vector<160x32xf32>
    %38 = arith.truncf %37 : vector<160x32xf32> to vector<160x32xbf16>
    %c0_22 = arith.constant 0 : index
    %c0_23 = arith.constant 0 : index
    %c0_24 = arith.constant 0 : index
    %39 = vector.load %arg7[%c0_22, %c0_23, %c0_24] : memref<1x32x64xbf16, #tpu.memory_space<vmem>>, vector<1x32x64xbf16>
    %40 = vector.shape_cast %39 : vector<1x32x64xbf16> to vector<32x64xbf16>
    %cst_25 = arith.constant dense<0.000000e+00> : vector<160x64xf32>
    %41 = tpu.matmul %38, %40, %cst_25 {dimension_numbers = #tpu.dot_dimension_numbers<[1], [0], [0], [1], [0, 0, 1, 1], [], []>} : vector<160x32xbf16>, vector<32x64xbf16>, vector<160x64xf32> -> vector<160x64xf32>
    %c0_26 = arith.constant 0 : index
    %c0_27 = arith.constant 0 : index
    %c0_28 = arith.constant 0 : index
    %42 = vector.load %arg8[%c0_26, %c0_27, %c0_28] : memref<1x1x64xf32, #tpu.memory_space<vmem>>, vector<1x1x64xf32>
    %43 = vector.shape_cast %42 : vector<1x1x64xf32> to vector<1x64xf32>
    %44 = vector.broadcast %43 : vector<1x64xf32> to vector<160x64xf32>
    %45 = arith.addf %41, %44 : vector<160x64xf32>
    %cst_29 = arith.constant 0.000000e+00 : f32
    %46 = vector.broadcast %cst_29 : f32 to vector<160x64xf32>
    %47 = arith.maximumf %45, %46 : vector<160x64xf32>
    %48 = arith.truncf %47 : vector<160x64xf32> to vector<160x64xbf16>
    %c0_30 = arith.constant 0 : index
    %c0_31 = arith.constant 0 : index
    %c0_32 = arith.constant 0 : index
    %49 = vector.load %arg9[%c0_30, %c0_31, %c0_32] : memref<1x64x32xbf16, #tpu.memory_space<vmem>>, vector<1x64x32xbf16>
    %50 = vector.shape_cast %49 : vector<1x64x32xbf16> to vector<64x32xbf16>
    %cst_33 = arith.constant dense<0.000000e+00> : vector<160x32xf32>
    %51 = tpu.matmul %48, %50, %cst_33 {dimension_numbers = #tpu.dot_dimension_numbers<[1], [0], [0], [1], [0, 0, 1, 1], [], []>} : vector<160x64xbf16>, vector<64x32xbf16>, vector<160x32xf32> -> vector<160x32xf32>
    %c0_34 = arith.constant 0 : index
    %c0_35 = arith.constant 0 : index
    %c0_36 = arith.constant 0 : index
    %52 = vector.load %arg10[%c0_34, %c0_35, %c0_36] : memref<1x1x32xf32, #tpu.memory_space<vmem>>, vector<1x1x32xf32>
    %53 = vector.shape_cast %52 : vector<1x1x32xf32> to vector<1x32xf32>
    %54 = vector.broadcast %53 : vector<1x32xf32> to vector<160x32xf32>
    %55 = arith.addf %51, %54 : vector<160x32xf32>
    %56 = arith.addf %37, %55 : vector<160x32xf32>
    %c0_37 = arith.constant 0 : index
    %c0_38 = arith.constant 0 : index
    %c0_39 = arith.constant 0 : index
    %57 = vector.load %arg11[%c0_37, %c0_38, %c0_39] : memref<1x1x32xf32, #tpu.memory_space<vmem>>, vector<1x1x32xf32>
    %58 = vector.shape_cast %57 : vector<1x1x32xf32> to vector<1x32xf32>
    %c0_40 = arith.constant 0 : index
    %c0_41 = arith.constant 0 : index
    %c0_42 = arith.constant 0 : index
    %59 = vector.load %arg12[%c0_40, %c0_41, %c0_42] : memref<1x1x32xf32, #tpu.memory_space<vmem>>, vector<1x1x32xf32>
    %60 = vector.shape_cast %59 : vector<1x1x32xf32> to vector<1x32xf32>
    %cst_43 = arith.constant dense<0.000000e+00> : vector<160xf32>
    %61 = vector.multi_reduction <add>, %56, %cst_43 [1] : vector<160x32xf32> to vector<160xf32>
    %62 = vector.shape_cast %61 : vector<160xf32> to vector<160x1xf32>
    %cst_44 = arith.constant 3.200000e+01 : f32
    %63 = vector.broadcast %cst_44 : f32 to vector<160x1xf32>
    %64 = arith.divf %62, %63 : vector<160x1xf32>
    %65 = vector.broadcast %64 : vector<160x1xf32> to vector<160x32xf32>
    %66 = arith.subf %56, %65 : vector<160x32xf32>
    %67 = arith.mulf %66, %66 : vector<160x32xf32>
    %cst_45 = arith.constant dense<0.000000e+00> : vector<160xf32>
    %68 = vector.multi_reduction <add>, %67, %cst_45 [1] : vector<160x32xf32> to vector<160xf32>
    %69 = vector.shape_cast %68 : vector<160xf32> to vector<160x1xf32>
    %cst_46 = arith.constant 3.200000e+01 : f32
    %70 = vector.broadcast %cst_46 : f32 to vector<160x1xf32>
    %71 = arith.divf %69, %70 : vector<160x1xf32>
    %72 = vector.broadcast %64 : vector<160x1xf32> to vector<160x32xf32>
    %73 = arith.subf %56, %72 : vector<160x32xf32>
    %cst_47 = arith.constant 9.99999974E-6 : f32
    %74 = vector.broadcast %cst_47 : f32 to vector<160x1xf32>
    %75 = arith.addf %71, %74 : vector<160x1xf32>
    %76 = math.rsqrt %75 : vector<160x1xf32>
    %77 = vector.broadcast %76 : vector<160x1xf32> to vector<160x32xf32>
    %78 = arith.mulf %73, %77 : vector<160x32xf32>
    %79 = vector.broadcast %58 : vector<1x32xf32> to vector<160x32xf32>
    %80 = arith.mulf %78, %79 : vector<160x32xf32>
    %81 = vector.broadcast %60 : vector<1x32xf32> to vector<160x32xf32>
    %82 = arith.addf %80, %81 : vector<160x32xf32>
    %c0_48 = arith.constant 0 : index
    %c0_49 = arith.constant 0 : index
    %c0_50 = arith.constant 0 : index
    %83 = vector.load %arg13[%c0_48, %c0_49, %c0_50] : memref<1x160x32xf32, #tpu.memory_space<vmem>>, vector<1x160x32xf32>
    %84 = vector.shape_cast %83 : vector<1x160x32xf32> to vector<160x32xf32>
    %85 = vector.shape_cast %82 : vector<160x32xf32> to vector<1x160x32xf32>
    tpu.vector_store %arg13[%c0_48, %c0_49, %c0_50], %85 {strides = array<i32>} : memref<1x160x32xf32, #tpu.memory_space<vmem>>, vector<1x160x32xf32>,
    return
  }
  func.func @transform_0(%arg0: i32) -> (i32, i32, i32) {
    %c0_i32 = arith.constant 0 : i32
    %c0_i32_0 = arith.constant 0 : i32
    %c0_i32_1 = arith.constant 0 : i32
    return %arg0, %c0_i32, %c0_i32_0 : i32, i32, i32
  }
  func.func @transform_1(%arg0: i32) -> (i32, i32, i32) {
    %c0_i32 = arith.constant 0 : i32
    %c0_i32_0 = arith.constant 0 : i32
    %c0_i32_1 = arith.constant 0 : i32
    return %arg0, %c0_i32, %c0_i32_0 : i32, i32, i32
  }
  func.func @transform_2(%arg0: i32) -> (i32, i32, i32) {
    %c0_i32 = arith.constant 0 : i32
    %c0_i32_0 = arith.constant 0 : i32
    %c0_i32_1 = arith.constant 0 : i32
    return %arg0, %c0_i32, %c0_i32_0 : i32, i32, i32
  }
  func.func @transform_3(%arg0: i32) -> (i32, i32, i32) {
    %c0_i32 = arith.constant 0 : i32
    %c0_i32_0 = arith.constant 0 : i32
    %c0_i32_1 = arith.constant 0 : i32
    return %arg0, %c0_i32, %c0_i32_0 : i32, i32, i32
  }
  func.func @transform_4(%arg0: i32) -> (i32, i32, i32) {
    %c0_i32 = arith.constant 0 : i32
    %c0_i32_0 = arith.constant 0 : i32
    %c0_i32_1 = arith.constant 0 : i32
    return %arg0, %c0_i32, %c0_i32_0 : i32, i32, i32
  }
  func.func @transform_5(%arg0: i32) -> (i32, i32, i32) {
    %c0_i32 = arith.constant 0 : i32
    %c0_i32_0 = arith.constant 0 : i32
    %c0_i32_1 = arith.constant 0 : i32
    return %arg0, %c0_i32, %c0_i32_0 : i32, i32, i32
  }
  func.func @transform_6(%arg0: i32) -> (i32, i32, i32) {
    %c0_i32 = arith.constant 0 : i32
    %c0_i32_0 = arith.constant 0 : i32
    %c0_i32_1 = arith.constant 0 : i32
    return %arg0, %c0_i32, %c0_i32_0 : i32, i32, i32
  }
  func.func @transform_7(%arg0: i32) -> (i32, i32, i32) {
    %c0_i32 = arith.constant 0 : i32
    %c0_i32_0 = arith.constant 0 : i32
    %c0_i32_1 = arith.constant 0 : i32
    return %arg0, %c0_i32, %c0_i32_0 : i32, i32, i32
  }
  func.func @transform_8(%arg0: i32) -> (i32, i32, i32) {
    %c0_i32 = arith.constant 0 : i32
    %c0_i32_0 = arith.constant 0 : i32
    %c0_i32_1 = arith.constant 0 : i32
    return %arg0, %c0_i32, %c0_i32_0 : i32, i32, i32
  }
  func.func @transform_9(%arg0: i32) -> (i32, i32, i32) {
    %c0_i32 = arith.constant 0 : i32
    %c0_i32_0 = arith.constant 0 : i32
    %c0_i32_1 = arith.constant 0 : i32
    return %arg0, %c0_i32, %c0_i32_0 : i32, i32, i32
  }
  func.func @transform_10(%arg0: i32) -> (i32, i32, i32) {
    %c0_i32 = arith.constant 0 : i32
    %c0_i32_0 = arith.constant 0 : i32
    %c0_i32_1 = arith.constant 0 : i32
    return %arg0, %c0_i32, %c0_i32_0 : i32, i32, i32
  }
  func.func @transform_11(%arg0: i32) -> (i32, i32, i32) {
    %c0_i32 = arith.constant 0 : i32
    %c0_i32_0 = arith.constant 0 : i32
    %c0_i32_1 = arith.constant 0 : i32
    return %arg0, %c0_i32, %c0_i32_0 : i32, i32, i32
  }
  func.func @transform_12(%arg0: i32) -> (i32, i32, i32) {
    %c0_i32 = arith.constant 0 : i32
    %c0_i32_0 = arith.constant 0 : i32
    %c0_i32_1 = arith.constant 0 : i32
    return %arg0, %c0_i32, %c0_i32_0 : i32, i32, i32
  }
}

module attributes {stable_mosaic.version = 11 : i64} {
  func.func @_gate_mix_kernel(%arg0: i32, %arg1: memref<1x128x576xbf16, #tpu.memory_space<vmem>>, %arg2: memref<1x1x576xf32, #tpu.memory_space<vmem>>, %arg3: memref<1x1x1xf32, #tpu.memory_space<vmem>>, %arg4: memref<128x32xf32, #tpu.memory_space<vmem>>, %arg5: memref<1x128x32xf32, #tpu.memory_space<vmem>>, %arg6: memref<1x32x576xbf16, #tpu.memory_space<vmem>>, %arg7: memref<1x1x576xf32, #tpu.memory_space<vmem>>, %arg8: memref<1x1x1xf32, #tpu.memory_space<vmem>>, %arg9: memref<32x32xf32, #tpu.memory_space<vmem>>, %arg10: memref<1x32x32xf32, #tpu.memory_space<vmem>>, %arg11: memref<1x128x32xf32, #tpu.memory_space<vmem>>, %arg12: memref<1x32x32xf32, #tpu.memory_space<vmem>>) attributes {dimension_semantics = [#tpu.dimension_semantics<parallel>], iteration_bounds = array<i64: 2>, scalar_prefetch = 0 : i64, scratch_operands = 0 : i64, tpu.core_type = #tpu.core_type<tc>, window_params = [{transform_indices = @transform_0, window_bounds = array<i64: 1, 128, 576>}, {transform_indices = @transform_1, window_bounds = array<i64: 1, 1, 576>}, {transform_indices = @transform_2, window_bounds = array<i64: 1, 1, 1>}, {pipeline_mode = #tpu.pipeline_mode<synchronous>, transform_indices = @transform_3, window_bounds = array<i64: 128, 32>}, {transform_indices = @transform_4, window_bounds = array<i64: 1, 128, 32>}, {transform_indices = @transform_5, window_bounds = array<i64: 1, 32, 576>}, {transform_indices = @transform_6, window_bounds = array<i64: 1, 1, 576>}, {transform_indices = @transform_7, window_bounds = array<i64: 1, 1, 1>}, {pipeline_mode = #tpu.pipeline_mode<synchronous>, transform_indices = @transform_8, window_bounds = array<i64: 32, 32>}, {transform_indices = @transform_9, window_bounds = array<i64: 1, 32, 32>}, {transform_indices = @transform_10, window_bounds = array<i64: 1, 128, 32>}, {transform_indices = @transform_11, window_bounds = array<i64: 1, 32, 32>}]} {
    %c0 = arith.constant 0 : index
    %c0_0 = arith.constant 0 : index
    %c0_1 = arith.constant 0 : index
    %0 = vector.load %arg1[%c0, %c0_0, %c0_1] : memref<1x128x576xbf16, #tpu.memory_space<vmem>>, vector<1x128x576xbf16>
    %1 = vector.shape_cast %0 : vector<1x128x576xbf16> to vector<128x576xbf16>
    %2 = arith.extf %1 : vector<128x576xbf16> to vector<128x576xf32>
    %c0_2 = arith.constant 0 : index
    %c0_3 = arith.constant 0 : index
    %c0_4 = arith.constant 0 : index
    %3 = vector.load %arg2[%c0_2, %c0_3, %c0_4] : memref<1x1x576xf32, #tpu.memory_space<vmem>>, vector<1x1x576xf32>
    %4 = vector.shape_cast %3 : vector<1x1x576xf32> to vector<1x576xf32>
    %5 = vector.broadcast %4 : vector<1x576xf32> to vector<128x576xf32>
    %6 = arith.mulf %2, %5 : vector<128x576xf32>
    %cst = arith.constant dense<0.000000e+00> : vector<128xf32>
    %7 = vector.multi_reduction <add>, %6, %cst [1] : vector<128x576xf32> to vector<128xf32>
    %8 = vector.shape_cast %7 : vector<128xf32> to vector<128x1xf32>
    %c0_5 = arith.constant 0 : index
    %c0_6 = arith.constant 0 : index
    %c0_7 = arith.constant 0 : index
    %9 = vector.load %arg3[%c0_5, %c0_6, %c0_7] : memref<1x1x1xf32, #tpu.memory_space<vmem>>, vector<1x1x1xf32>
    %10 = vector.shape_cast %9 : vector<1x1x1xf32> to vector<1x1xf32>
    %11 = vector.broadcast %10 : vector<1x1xf32> to vector<128x1xf32>
    %12 = arith.addf %8, %11 : vector<128x1xf32>
    %13 = math.absf %12 : vector<128x1xf32>
    %cst_8 = arith.constant 0.000000e+00 : f32
    %14 = vector.broadcast %cst_8 : f32 to vector<128x1xf32>
    %15 = arith.subf %14, %13 : vector<128x1xf32>
    %16 = math.exp %15 : vector<128x1xf32>
    %cst_9 = arith.constant 0.000000e+00 : f32
    %17 = vector.broadcast %cst_9 : f32 to vector<128x1xf32>
    %18 = arith.cmpf oge, %12, %17 : vector<128x1xf32>
    %cst_10 = arith.constant 1.000000e+00 : f32
    %19 = vector.broadcast %cst_10 : f32 to vector<128x1xf32>
    %20 = arith.addf %19, %16 : vector<128x1xf32>
    %cst_11 = arith.constant 1.000000e+00 : f32
    %21 = vector.broadcast %cst_11 : f32 to vector<128x1xf32>
    %22 = arith.divf %21, %20 : vector<128x1xf32>
    %cst_12 = arith.constant 1.000000e+00 : f32
    %23 = vector.broadcast %cst_12 : f32 to vector<128x1xf32>
    %24 = arith.addf %23, %16 : vector<128x1xf32>
    %25 = arith.divf %16, %24 : vector<128x1xf32>
    %26 = arith.select %18, %22, %25 : vector<128x1xi1>, vector<128x1xf32>
    %c0_13 = arith.constant 0 : index
    %c0_14 = arith.constant 0 : index
    %27 = vector.load %arg4[%c0_13, %c0_14] : memref<128x32xf32, #tpu.memory_space<vmem>>, vector<128x32xf32>
    %28 = vector.broadcast %26 : vector<128x1xf32> to vector<128x32xf32>
    %29 = arith.mulf %28, %27 : vector<128x32xf32>
    %cst_15 = arith.constant 1.000000e+00 : f32
    %30 = vector.broadcast %cst_15 : f32 to vector<128x1xf32>
    %31 = arith.subf %30, %26 : vector<128x1xf32>
    %c0_16 = arith.constant 0 : index
    %c0_17 = arith.constant 0 : index
    %c0_18 = arith.constant 0 : index
    %32 = vector.load %arg5[%c0_16, %c0_17, %c0_18] : memref<1x128x32xf32, #tpu.memory_space<vmem>>, vector<1x128x32xf32>
    %33 = vector.shape_cast %32 : vector<1x128x32xf32> to vector<128x32xf32>
    %34 = vector.broadcast %31 : vector<128x1xf32> to vector<128x32xf32>
    %35 = arith.mulf %34, %33 : vector<128x32xf32>
    %36 = arith.addf %29, %35 : vector<128x32xf32>
    %c0_19 = arith.constant 0 : index
    %c0_20 = arith.constant 0 : index
    %c0_21 = arith.constant 0 : index
    %37 = vector.load %arg11[%c0_19, %c0_20, %c0_21] : memref<1x128x32xf32, #tpu.memory_space<vmem>>, vector<1x128x32xf32>
    %38 = vector.shape_cast %37 : vector<1x128x32xf32> to vector<128x32xf32>
    %39 = vector.shape_cast %36 : vector<128x32xf32> to vector<1x128x32xf32>
    tpu.vector_store %arg11[%c0_19, %c0_20, %c0_21], %39 {strides = array<i32>} : memref<1x128x32xf32, #tpu.memory_space<vmem>>, vector<1x128x32xf32>,
    %c0_22 = arith.constant 0 : index
    %c0_23 = arith.constant 0 : index
    %c0_24 = arith.constant 0 : index
    %40 = vector.load %arg6[%c0_22, %c0_23, %c0_24] : memref<1x32x576xbf16, #tpu.memory_space<vmem>>, vector<1x32x576xbf16>
    %41 = vector.shape_cast %40 : vector<1x32x576xbf16> to vector<32x576xbf16>
    %42 = arith.extf %41 : vector<32x576xbf16> to vector<32x576xf32>
    %c0_25 = arith.constant 0 : index
    %c0_26 = arith.constant 0 : index
    %c0_27 = arith.constant 0 : index
    %43 = vector.load %arg7[%c0_25, %c0_26, %c0_27] : memref<1x1x576xf32, #tpu.memory_space<vmem>>, vector<1x1x576xf32>
    %44 = vector.shape_cast %43 : vector<1x1x576xf32> to vector<1x576xf32>
    %45 = vector.broadcast %44 : vector<1x576xf32> to vector<32x576xf32>
    %46 = arith.mulf %42, %45 : vector<32x576xf32>
    %cst_28 = arith.constant dense<0.000000e+00> : vector<32xf32>
    %47 = vector.multi_reduction <add>, %46, %cst_28 [1] : vector<32x576xf32> to vector<32xf32>
    %48 = vector.shape_cast %47 : vector<32xf32> to vector<32x1xf32>
    %c0_29 = arith.constant 0 : index
    %c0_30 = arith.constant 0 : index
    %c0_31 = arith.constant 0 : index
    %49 = vector.load %arg8[%c0_29, %c0_30, %c0_31] : memref<1x1x1xf32, #tpu.memory_space<vmem>>, vector<1x1x1xf32>
    %50 = vector.shape_cast %49 : vector<1x1x1xf32> to vector<1x1xf32>
    %51 = vector.broadcast %50 : vector<1x1xf32> to vector<32x1xf32>
    %52 = arith.addf %48, %51 : vector<32x1xf32>
    %53 = math.absf %52 : vector<32x1xf32>
    %cst_32 = arith.constant 0.000000e+00 : f32
    %54 = vector.broadcast %cst_32 : f32 to vector<32x1xf32>
    %55 = arith.subf %54, %53 : vector<32x1xf32>
    %56 = math.exp %55 : vector<32x1xf32>
    %cst_33 = arith.constant 0.000000e+00 : f32
    %57 = vector.broadcast %cst_33 : f32 to vector<32x1xf32>
    %58 = arith.cmpf oge, %52, %57 : vector<32x1xf32>
    %cst_34 = arith.constant 1.000000e+00 : f32
    %59 = vector.broadcast %cst_34 : f32 to vector<32x1xf32>
    %60 = arith.addf %59, %56 : vector<32x1xf32>
    %cst_35 = arith.constant 1.000000e+00 : f32
    %61 = vector.broadcast %cst_35 : f32 to vector<32x1xf32>
    %62 = arith.divf %61, %60 : vector<32x1xf32>
    %cst_36 = arith.constant 1.000000e+00 : f32
    %63 = vector.broadcast %cst_36 : f32 to vector<32x1xf32>
    %64 = arith.addf %63, %56 : vector<32x1xf32>
    %65 = arith.divf %56, %64 : vector<32x1xf32>
    %66 = arith.select %58, %62, %65 : vector<32x1xi1>, vector<32x1xf32>
    %c0_37 = arith.constant 0 : index
    %c0_38 = arith.constant 0 : index
    %67 = vector.load %arg9[%c0_37, %c0_38] : memref<32x32xf32, #tpu.memory_space<vmem>>, vector<32x32xf32>
    %68 = vector.broadcast %66 : vector<32x1xf32> to vector<32x32xf32>
    %69 = arith.mulf %68, %67 : vector<32x32xf32>
    %cst_39 = arith.constant 1.000000e+00 : f32
    %70 = vector.broadcast %cst_39 : f32 to vector<32x1xf32>
    %71 = arith.subf %70, %66 : vector<32x1xf32>
    %c0_40 = arith.constant 0 : index
    %c0_41 = arith.constant 0 : index
    %c0_42 = arith.constant 0 : index
    %72 = vector.load %arg10[%c0_40, %c0_41, %c0_42] : memref<1x32x32xf32, #tpu.memory_space<vmem>>, vector<1x32x32xf32>
    %73 = vector.shape_cast %72 : vector<1x32x32xf32> to vector<32x32xf32>
    %74 = vector.broadcast %71 : vector<32x1xf32> to vector<32x32xf32>
    %75 = arith.mulf %74, %73 : vector<32x32xf32>
    %76 = arith.addf %69, %75 : vector<32x32xf32>
    %c0_43 = arith.constant 0 : index
    %c0_44 = arith.constant 0 : index
    %c0_45 = arith.constant 0 : index
    %77 = vector.load %arg12[%c0_43, %c0_44, %c0_45] : memref<1x32x32xf32, #tpu.memory_space<vmem>>, vector<1x32x32xf32>
    %78 = vector.shape_cast %77 : vector<1x32x32xf32> to vector<32x32xf32>
    %79 = vector.shape_cast %76 : vector<32x32xf32> to vector<1x32x32xf32>
    tpu.vector_store %arg12[%c0_43, %c0_44, %c0_45], %79 {strides = array<i32>} : memref<1x32x32xf32, #tpu.memory_space<vmem>>, vector<1x32x32xf32>,
    return
  }
  func.func @transform_0(%arg0: i32) -> (i32, i32, i32) {
    %c0_i32 = arith.constant 0 : i32
    %c0_i32_0 = arith.constant 0 : i32
    %c0_i32_1 = arith.constant 0 : i32
    return %arg0, %c0_i32, %c0_i32_0 : i32, i32, i32
  }
  func.func @transform_1(%arg0: i32) -> (i32, i32, i32) {
    %c0_i32 = arith.constant 0 : i32
    %c0_i32_0 = arith.constant 0 : i32
    %c0_i32_1 = arith.constant 0 : i32
    return %arg0, %c0_i32, %c0_i32_0 : i32, i32, i32
  }
  func.func @transform_2(%arg0: i32) -> (i32, i32, i32) {
    %c0_i32 = arith.constant 0 : i32
    %c0_i32_0 = arith.constant 0 : i32
    %c0_i32_1 = arith.constant 0 : i32
    return %arg0, %c0_i32, %c0_i32_0 : i32, i32, i32
  }
  func.func @transform_3(%arg0: i32) -> (i32, i32) {
    %c0_i32 = arith.constant 0 : i32
    %c0_i32_0 = arith.constant 0 : i32
    %c0_i32_1 = arith.constant 0 : i32
    return %c0_i32, %c0_i32_0 : i32, i32
  }
  func.func @transform_4(%arg0: i32) -> (i32, i32, i32) {
    %c0_i32 = arith.constant 0 : i32
    %c0_i32_0 = arith.constant 0 : i32
    %c0_i32_1 = arith.constant 0 : i32
    return %arg0, %c0_i32, %c0_i32_0 : i32, i32, i32
  }
  func.func @transform_5(%arg0: i32) -> (i32, i32, i32) {
    %c0_i32 = arith.constant 0 : i32
    %c0_i32_0 = arith.constant 0 : i32
    %c0_i32_1 = arith.constant 0 : i32
    return %arg0, %c0_i32, %c0_i32_0 : i32, i32, i32
  }
  func.func @transform_6(%arg0: i32) -> (i32, i32, i32) {
    %c0_i32 = arith.constant 0 : i32
    %c0_i32_0 = arith.constant 0 : i32
    %c0_i32_1 = arith.constant 0 : i32
    return %arg0, %c0_i32, %c0_i32_0 : i32, i32, i32
  }
  func.func @transform_7(%arg0: i32) -> (i32, i32, i32) {
    %c0_i32 = arith.constant 0 : i32
    %c0_i32_0 = arith.constant 0 : i32
    %c0_i32_1 = arith.constant 0 : i32
    return %arg0, %c0_i32, %c0_i32_0 : i32, i32, i32
  }
  func.func @transform_8(%arg0: i32) -> (i32, i32) {
    %c0_i32 = arith.constant 0 : i32
    %c0_i32_0 = arith.constant 0 : i32
    %c0_i32_1 = arith.constant 0 : i32
    return %c0_i32, %c0_i32_0 : i32, i32
  }
  func.func @transform_9(%arg0: i32) -> (i32, i32, i32) {
    %c0_i32 = arith.constant 0 : i32
    %c0_i32_0 = arith.constant 0 : i32
    %c0_i32_1 = arith.constant 0 : i32
    return %arg0, %c0_i32, %c0_i32_0 : i32, i32, i32
  }
  func.func @transform_10(%arg0: i32) -> (i32, i32, i32) {
    %c0_i32 = arith.constant 0 : i32
    %c0_i32_0 = arith.constant 0 : i32
    %c0_i32_1 = arith.constant 0 : i32
    return %arg0, %c0_i32, %c0_i32_0 : i32, i32, i32
  }
  func.func @transform_11(%arg0: i32) -> (i32, i32, i32) {
    %c0_i32 = arith.constant 0 : i32
    %c0_i32_0 = arith.constant 0 : i32
    %c0_i32_1 = arith.constant 0 : i32
    return %arg0, %c0_i32, %c0_i32_0 : i32, i32, i32
  }
}

module attributes {stable_mosaic.version = 11 : i64} {
  func.func @_multi_gemm_kernel(%arg0: i32, %arg1: memref<1x128x288xbf16, #tpu.memory_space<vmem>>, %arg2: memref<1x288x32xbf16, #tpu.memory_space<vmem>>, %arg3: memref<1x1x32xf32, #tpu.memory_space<vmem>>, %arg4: memref<1x32x288xbf16, #tpu.memory_space<vmem>>, %arg5: memref<1x288x32xbf16, #tpu.memory_space<vmem>>, %arg6: memref<1x1x32xf32, #tpu.memory_space<vmem>>, %arg7: memref<1x128x32xf32, #tpu.memory_space<vmem>>, %arg8: memref<1x32x32xf32, #tpu.memory_space<vmem>>) attributes {dimension_semantics = [#tpu.dimension_semantics<parallel>], iteration_bounds = array<i64: 2>, scalar_prefetch = 0 : i64, scratch_operands = 0 : i64, tpu.core_type = #tpu.core_type<tc>, window_params = [{transform_indices = @transform_0, window_bounds = array<i64: 1, 128, 288>}, {transform_indices = @transform_1, window_bounds = array<i64: 1, 288, 32>}, {transform_indices = @transform_2, window_bounds = array<i64: 1, 1, 32>}, {transform_indices = @transform_3, window_bounds = array<i64: 1, 32, 288>}, {transform_indices = @transform_4, window_bounds = array<i64: 1, 288, 32>}, {transform_indices = @transform_5, window_bounds = array<i64: 1, 1, 32>}, {transform_indices = @transform_6, window_bounds = array<i64: 1, 128, 32>}, {transform_indices = @transform_7, window_bounds = array<i64: 1, 32, 32>}]} {
    %c0 = arith.constant 0 : index
    %c0_0 = arith.constant 0 : index
    %c0_1 = arith.constant 0 : index
    %0 = vector.load %arg1[%c0, %c0_0, %c0_1] : memref<1x128x288xbf16, #tpu.memory_space<vmem>>, vector<1x128x288xbf16>
    %1 = vector.shape_cast %0 : vector<1x128x288xbf16> to vector<128x288xbf16>
    %c0_2 = arith.constant 0 : index
    %c0_3 = arith.constant 0 : index
    %c0_4 = arith.constant 0 : index
    %2 = vector.load %arg2[%c0_2, %c0_3, %c0_4] : memref<1x288x32xbf16, #tpu.memory_space<vmem>>, vector<1x288x32xbf16>
    %3 = vector.shape_cast %2 : vector<1x288x32xbf16> to vector<288x32xbf16>
    %cst = arith.constant dense<0.000000e+00> : vector<128x32xf32>
    %4 = tpu.matmul %1, %3, %cst {dimension_numbers = #tpu.dot_dimension_numbers<[1], [0], [0], [1], [0, 0, 1, 1], [], []>} : vector<128x288xbf16>, vector<288x32xbf16>, vector<128x32xf32> -> vector<128x32xf32>
    %c0_5 = arith.constant 0 : index
    %c0_6 = arith.constant 0 : index
    %c0_7 = arith.constant 0 : index
    %5 = vector.load %arg3[%c0_5, %c0_6, %c0_7] : memref<1x1x32xf32, #tpu.memory_space<vmem>>, vector<1x1x32xf32>
    %6 = vector.shape_cast %5 : vector<1x1x32xf32> to vector<1x32xf32>
    %7 = vector.broadcast %6 : vector<1x32xf32> to vector<128x32xf32>
    %8 = arith.addf %4, %7 : vector<128x32xf32>
    %cst_8 = arith.constant 0.000000e+00 : f32
    %9 = vector.broadcast %cst_8 : f32 to vector<128x32xf32>
    %10 = arith.maximumf %8, %9 : vector<128x32xf32>
    %c0_9 = arith.constant 0 : index
    %c0_10 = arith.constant 0 : index
    %c0_11 = arith.constant 0 : index
    %11 = vector.load %arg7[%c0_9, %c0_10, %c0_11] : memref<1x128x32xf32, #tpu.memory_space<vmem>>, vector<1x128x32xf32>
    %12 = vector.shape_cast %11 : vector<1x128x32xf32> to vector<128x32xf32>
    %13 = vector.shape_cast %10 : vector<128x32xf32> to vector<1x128x32xf32>
    tpu.vector_store %arg7[%c0_9, %c0_10, %c0_11], %13 {strides = array<i32>} : memref<1x128x32xf32, #tpu.memory_space<vmem>>, vector<1x128x32xf32>,
    %c0_12 = arith.constant 0 : index
    %c0_13 = arith.constant 0 : index
    %c0_14 = arith.constant 0 : index
    %14 = vector.load %arg4[%c0_12, %c0_13, %c0_14] : memref<1x32x288xbf16, #tpu.memory_space<vmem>>, vector<1x32x288xbf16>
    %15 = vector.shape_cast %14 : vector<1x32x288xbf16> to vector<32x288xbf16>
    %c0_15 = arith.constant 0 : index
    %c0_16 = arith.constant 0 : index
    %c0_17 = arith.constant 0 : index
    %16 = vector.load %arg5[%c0_15, %c0_16, %c0_17] : memref<1x288x32xbf16, #tpu.memory_space<vmem>>, vector<1x288x32xbf16>
    %17 = vector.shape_cast %16 : vector<1x288x32xbf16> to vector<288x32xbf16>
    %cst_18 = arith.constant dense<0.000000e+00> : vector<32x32xf32>
    %18 = tpu.matmul %15, %17, %cst_18 {dimension_numbers = #tpu.dot_dimension_numbers<[1], [0], [0], [1], [0, 0, 1, 1], [], []>} : vector<32x288xbf16>, vector<288x32xbf16>, vector<32x32xf32> -> vector<32x32xf32>
    %c0_19 = arith.constant 0 : index
    %c0_20 = arith.constant 0 : index
    %c0_21 = arith.constant 0 : index
    %19 = vector.load %arg6[%c0_19, %c0_20, %c0_21] : memref<1x1x32xf32, #tpu.memory_space<vmem>>, vector<1x1x32xf32>
    %20 = vector.shape_cast %19 : vector<1x1x32xf32> to vector<1x32xf32>
    %21 = vector.broadcast %20 : vector<1x32xf32> to vector<32x32xf32>
    %22 = arith.addf %18, %21 : vector<32x32xf32>
    %cst_22 = arith.constant 0.000000e+00 : f32
    %23 = vector.broadcast %cst_22 : f32 to vector<32x32xf32>
    %24 = arith.maximumf %22, %23 : vector<32x32xf32>
    %c0_23 = arith.constant 0 : index
    %c0_24 = arith.constant 0 : index
    %c0_25 = arith.constant 0 : index
    %25 = vector.load %arg8[%c0_23, %c0_24, %c0_25] : memref<1x32x32xf32, #tpu.memory_space<vmem>>, vector<1x32x32xf32>
    %26 = vector.shape_cast %25 : vector<1x32x32xf32> to vector<32x32xf32>
    %27 = vector.shape_cast %24 : vector<32x32xf32> to vector<1x32x32xf32>
    tpu.vector_store %arg8[%c0_23, %c0_24, %c0_25], %27 {strides = array<i32>} : memref<1x32x32xf32, #tpu.memory_space<vmem>>, vector<1x32x32xf32>,
    return
  }
  func.func @transform_0(%arg0: i32) -> (i32, i32, i32) {
    %c0_i32 = arith.constant 0 : i32
    %c0_i32_0 = arith.constant 0 : i32
    %c0_i32_1 = arith.constant 0 : i32
    return %arg0, %c0_i32, %c0_i32_0 : i32, i32, i32
  }
  func.func @transform_1(%arg0: i32) -> (i32, i32, i32) {
    %c0_i32 = arith.constant 0 : i32
    %c0_i32_0 = arith.constant 0 : i32
    %c0_i32_1 = arith.constant 0 : i32
    return %arg0, %c0_i32, %c0_i32_0 : i32, i32, i32
  }
  func.func @transform_2(%arg0: i32) -> (i32, i32, i32) {
    %c0_i32 = arith.constant 0 : i32
    %c0_i32_0 = arith.constant 0 : i32
    %c0_i32_1 = arith.constant 0 : i32
    return %arg0, %c0_i32, %c0_i32_0 : i32, i32, i32
  }
  func.func @transform_3(%arg0: i32) -> (i32, i32, i32) {
    %c0_i32 = arith.constant 0 : i32
    %c0_i32_0 = arith.constant 0 : i32
    %c0_i32_1 = arith.constant 0 : i32
    return %arg0, %c0_i32, %c0_i32_0 : i32, i32, i32
  }
  func.func @transform_4(%arg0: i32) -> (i32, i32, i32) {
    %c0_i32 = arith.constant 0 : i32
    %c0_i32_0 = arith.constant 0 : i32
    %c0_i32_1 = arith.constant 0 : i32
    return %arg0, %c0_i32, %c0_i32_0 : i32, i32, i32
  }
  func.func @transform_5(%arg0: i32) -> (i32, i32, i32) {
    %c0_i32 = arith.constant 0 : i32
    %c0_i32_0 = arith.constant 0 : i32
    %c0_i32_1 = arith.constant 0 : i32
    return %arg0, %c0_i32, %c0_i32_0 : i32, i32, i32
  }
  func.func @transform_6(%arg0: i32) -> (i32, i32, i32) {
    %c0_i32 = arith.constant 0 : i32
    %c0_i32_0 = arith.constant 0 : i32
    %c0_i32_1 = arith.constant 0 : i32
    return %arg0, %c0_i32, %c0_i32_0 : i32, i32, i32
  }
  func.func @transform_7(%arg0: i32) -> (i32, i32, i32) {
    %c0_i32 = arith.constant 0 : i32
    %c0_i32_0 = arith.constant 0 : i32
    %c0_i32_1 = arith.constant 0 : i32
    return %arg0, %c0_i32, %c0_i32_0 : i32, i32, i32
  }
}

module attributes {stable_mosaic.version = 11 : i64} {
  func.func @_multi_gemm_kernel(%arg0: i32, %arg1: memref<1x128x576xbf16, #tpu.memory_space<vmem>>, %arg2: memref<1x576x32xbf16, #tpu.memory_space<vmem>>, %arg3: memref<1x1x32xf32, #tpu.memory_space<vmem>>, %arg4: memref<1x32x576xbf16, #tpu.memory_space<vmem>>, %arg5: memref<1x576x32xbf16, #tpu.memory_space<vmem>>, %arg6: memref<1x1x32xf32, #tpu.memory_space<vmem>>, %arg7: memref<1x128x32xf32, #tpu.memory_space<vmem>>, %arg8: memref<1x32x32xf32, #tpu.memory_space<vmem>>) attributes {dimension_semantics = [#tpu.dimension_semantics<parallel>], iteration_bounds = array<i64: 1>, scalar_prefetch = 0 : i64, scratch_operands = 0 : i64, tpu.core_type = #tpu.core_type<tc>, window_params = [{transform_indices = @transform_0, window_bounds = array<i64: 1, 128, 576>}, {transform_indices = @transform_1, window_bounds = array<i64: 1, 576, 32>}, {transform_indices = @transform_2, window_bounds = array<i64: 1, 1, 32>}, {transform_indices = @transform_3, window_bounds = array<i64: 1, 32, 576>}, {transform_indices = @transform_4, window_bounds = array<i64: 1, 576, 32>}, {transform_indices = @transform_5, window_bounds = array<i64: 1, 1, 32>}, {transform_indices = @transform_6, window_bounds = array<i64: 1, 128, 32>}, {transform_indices = @transform_7, window_bounds = array<i64: 1, 32, 32>}]} {
    %c0 = arith.constant 0 : index
    %c0_0 = arith.constant 0 : index
    %c0_1 = arith.constant 0 : index
    %0 = vector.load %arg1[%c0, %c0_0, %c0_1] : memref<1x128x576xbf16, #tpu.memory_space<vmem>>, vector<1x128x576xbf16>
    %1 = vector.shape_cast %0 : vector<1x128x576xbf16> to vector<128x576xbf16>
    %c0_2 = arith.constant 0 : index
    %c0_3 = arith.constant 0 : index
    %c0_4 = arith.constant 0 : index
    %2 = vector.load %arg2[%c0_2, %c0_3, %c0_4] : memref<1x576x32xbf16, #tpu.memory_space<vmem>>, vector<1x576x32xbf16>
    %3 = vector.shape_cast %2 : vector<1x576x32xbf16> to vector<576x32xbf16>
    %cst = arith.constant dense<0.000000e+00> : vector<128x32xf32>
    %4 = tpu.matmul %1, %3, %cst {dimension_numbers = #tpu.dot_dimension_numbers<[1], [0], [0], [1], [0, 0, 1, 1], [], []>} : vector<128x576xbf16>, vector<576x32xbf16>, vector<128x32xf32> -> vector<128x32xf32>
    %c0_5 = arith.constant 0 : index
    %c0_6 = arith.constant 0 : index
    %c0_7 = arith.constant 0 : index
    %5 = vector.load %arg3[%c0_5, %c0_6, %c0_7] : memref<1x1x32xf32, #tpu.memory_space<vmem>>, vector<1x1x32xf32>
    %6 = vector.shape_cast %5 : vector<1x1x32xf32> to vector<1x32xf32>
    %7 = vector.broadcast %6 : vector<1x32xf32> to vector<128x32xf32>
    %8 = arith.addf %4, %7 : vector<128x32xf32>
    %cst_8 = arith.constant 0.000000e+00 : f32
    %9 = vector.broadcast %cst_8 : f32 to vector<128x32xf32>
    %10 = arith.maximumf %8, %9 : vector<128x32xf32>
    %c0_9 = arith.constant 0 : index
    %c0_10 = arith.constant 0 : index
    %c0_11 = arith.constant 0 : index
    %11 = vector.load %arg7[%c0_9, %c0_10, %c0_11] : memref<1x128x32xf32, #tpu.memory_space<vmem>>, vector<1x128x32xf32>
    %12 = vector.shape_cast %11 : vector<1x128x32xf32> to vector<128x32xf32>
    %13 = vector.shape_cast %10 : vector<128x32xf32> to vector<1x128x32xf32>
    tpu.vector_store %arg7[%c0_9, %c0_10, %c0_11], %13 {strides = array<i32>} : memref<1x128x32xf32, #tpu.memory_space<vmem>>, vector<1x128x32xf32>,
    %c0_12 = arith.constant 0 : index
    %c0_13 = arith.constant 0 : index
    %c0_14 = arith.constant 0 : index
    %14 = vector.load %arg4[%c0_12, %c0_13, %c0_14] : memref<1x32x576xbf16, #tpu.memory_space<vmem>>, vector<1x32x576xbf16>
    %15 = vector.shape_cast %14 : vector<1x32x576xbf16> to vector<32x576xbf16>
    %c0_15 = arith.constant 0 : index
    %c0_16 = arith.constant 0 : index
    %c0_17 = arith.constant 0 : index
    %16 = vector.load %arg5[%c0_15, %c0_16, %c0_17] : memref<1x576x32xbf16, #tpu.memory_space<vmem>>, vector<1x576x32xbf16>
    %17 = vector.shape_cast %16 : vector<1x576x32xbf16> to vector<576x32xbf16>
    %cst_18 = arith.constant dense<0.000000e+00> : vector<32x32xf32>
    %18 = tpu.matmul %15, %17, %cst_18 {dimension_numbers = #tpu.dot_dimension_numbers<[1], [0], [0], [1], [0, 0, 1, 1], [], []>} : vector<32x576xbf16>, vector<576x32xbf16>, vector<32x32xf32> -> vector<32x32xf32>
    %c0_19 = arith.constant 0 : index
    %c0_20 = arith.constant 0 : index
    %c0_21 = arith.constant 0 : index
    %19 = vector.load %arg6[%c0_19, %c0_20, %c0_21] : memref<1x1x32xf32, #tpu.memory_space<vmem>>, vector<1x1x32xf32>
    %20 = vector.shape_cast %19 : vector<1x1x32xf32> to vector<1x32xf32>
    %21 = vector.broadcast %20 : vector<1x32xf32> to vector<32x32xf32>
    %22 = arith.addf %18, %21 : vector<32x32xf32>
    %cst_22 = arith.constant 0.000000e+00 : f32
    %23 = vector.broadcast %cst_22 : f32 to vector<32x32xf32>
    %24 = arith.maximumf %22, %23 : vector<32x32xf32>
    %c0_23 = arith.constant 0 : index
    %c0_24 = arith.constant 0 : index
    %c0_25 = arith.constant 0 : index
    %25 = vector.load %arg8[%c0_23, %c0_24, %c0_25] : memref<1x32x32xf32, #tpu.memory_space<vmem>>, vector<1x32x32xf32>
    %26 = vector.shape_cast %25 : vector<1x32x32xf32> to vector<32x32xf32>
    %27 = vector.shape_cast %24 : vector<32x32xf32> to vector<1x32x32xf32>
    tpu.vector_store %arg8[%c0_23, %c0_24, %c0_25], %27 {strides = array<i32>} : memref<1x32x32xf32, #tpu.memory_space<vmem>>, vector<1x32x32xf32>,
    return
  }
  func.func @transform_0(%arg0: i32) -> (i32, i32, i32) {
    %c0_i32 = arith.constant 0 : i32
    %c0_i32_0 = arith.constant 0 : i32
    %c0_i32_1 = arith.constant 0 : i32
    return %arg0, %c0_i32, %c0_i32_0 : i32, i32, i32
  }
  func.func @transform_1(%arg0: i32) -> (i32, i32, i32) {
    %c0_i32 = arith.constant 0 : i32
    %c0_i32_0 = arith.constant 0 : i32
    %c0_i32_1 = arith.constant 0 : i32
    return %arg0, %c0_i32, %c0_i32_0 : i32, i32, i32
  }
  func.func @transform_2(%arg0: i32) -> (i32, i32, i32) {
    %c0_i32 = arith.constant 0 : i32
    %c0_i32_0 = arith.constant 0 : i32
    %c0_i32_1 = arith.constant 0 : i32
    return %arg0, %c0_i32, %c0_i32_0 : i32, i32, i32
  }
  func.func @transform_3(%arg0: i32) -> (i32, i32, i32) {
    %c0_i32 = arith.constant 0 : i32
    %c0_i32_0 = arith.constant 0 : i32
    %c0_i32_1 = arith.constant 0 : i32
    return %arg0, %c0_i32, %c0_i32_0 : i32, i32, i32
  }
  func.func @transform_4(%arg0: i32) -> (i32, i32, i32) {
    %c0_i32 = arith.constant 0 : i32
    %c0_i32_0 = arith.constant 0 : i32
    %c0_i32_1 = arith.constant 0 : i32
    return %arg0, %c0_i32, %c0_i32_0 : i32, i32, i32
  }
  func.func @transform_5(%arg0: i32) -> (i32, i32, i32) {
    %c0_i32 = arith.constant 0 : i32
    %c0_i32_0 = arith.constant 0 : i32
    %c0_i32_1 = arith.constant 0 : i32
    return %arg0, %c0_i32, %c0_i32_0 : i32, i32, i32
  }
  func.func @transform_6(%arg0: i32) -> (i32, i32, i32) {
    %c0_i32 = arith.constant 0 : i32
    %c0_i32_0 = arith.constant 0 : i32
    %c0_i32_1 = arith.constant 0 : i32
    return %arg0, %c0_i32, %c0_i32_0 : i32, i32, i32
  }
  func.func @transform_7(%arg0: i32) -> (i32, i32, i32) {
    %c0_i32 = arith.constant 0 : i32
    %c0_i32_0 = arith.constant 0 : i32
    %c0_i32_1 = arith.constant 0 : i32
    return %arg0, %c0_i32, %c0_i32_0 : i32, i32, i32
  }
}

</mosaic_0001>

<bundles_post_ra>
// kernel: coattn_forward.7
= control target key start
LH: loop header
LB: loop body
LE: loop exit
PB: predicated region body
PF: predicated region fallthrough
CT: control target
= control target key end

     0   :  { %s1420_s21 = smov 0   ;;  %s1629_s0 = inlined_call_operand.vmem [shape: bf16[2,160,288], index: 0, kind: input, shape index: {}]   ;;  %s1630_s1 = inlined_call_operand.vmem [shape: bf16[2,288,16], index: 1, kind: input, shape index: {}]   ;;  %s1631_s2 = inlined_call_operand.vmem [shape: f32[2,1,16], index: 2, kind: input, shape index: {}]   ;;  %s1632_s3 = inlined_call_operand.vmem [shape: bf16[2,16,64], index: 3, kind: input, shape index: {}]   ;;  %s1633_s4 = inlined_call_operand.vmem [shape: f32[2,1,64], index: 4, kind: input, shape index: {}]   ;;  %s1634_s5 = inlined_call_operand.vmem [shape: f32[2,160,16], index: 5, kind: output, shape index: {0}]   ;;  %s1635_s6 = inlined_call_operand.vmem [shape: f32[2,32,64], index: 6, kind: output, shape index: {1}]  }
   0x1 LB: > { %s1075_s22 = sadd.s32 4294967295, %s1383_s21   ;;  %p1079_p0 = scmp.ge.s32.totalorder %s1383_s21, 1  ;;  %s1383_s21 = sphi %s1420_s21, %s17_s21  }
   0x2   : > { %p251_p1 = scmp.lt.s32.totalorder %s1383_s21, 3 }
   0x4   : > { %p252_p2 = pnand %p1079_p0, %p251_p1 }
   0x5   : > { %p302_p3 = scmp.lt.s32.totalorder (!%p252_p2), %s1075_s22, 1 }
   0x6   : > { %255 = sbr.rel (%p252_p2) target bundleno = 454 (0x1c6), region = 40 }
   0xb   : > { %s1637_s22 = smov (!%p302_p3, %s1075_s22), 1  ;;  %vm672_vm0 = vcmask 261120   ;;  %vm880_vm1 = vcmask 130048   ;;  %vm940_vm2 = vcmask 523264  }
   0xc   : > { %s1365_s23 = smul.u32 144, %s1637_s22  ;;  %s314_s9 = scalar_lea.vmem %s1631_s2, %s1637_s22 }
   0xd   : > { %s1364_s24 = smul.u32 240, %s1637_s22  ;;  %s322_s18 = scalar_lea.vmem %s1633_s4, %s1637_s22 }
   0xe   : > { %s1435_s27 = scalar_lea.vmem %s1630_s1, %s1365_s23  ;;  %s1366_s12 = smul.u32 160, %s1637_s22 }
   0xf   : > { %v1336_v0 = vld [vmem:[%s1435_s27 + $0x38] sm:$0xff]  ;;  %v1346_v1 = vld [vmem:[%s1435_s27 + $0x88] sm:$0xff]  ;;  %s1443_s30 = scalar_lea.vmem %s1629_s0, %s1364_s24  ;;  %v1335_v3 = vld [vmem:[%s1435_s27 + $0x30] sm:$0xff]  ;;  %s1297_s19 = sshll.u32 %s1637_s22, 3 }
  0x10   : > { %v1344_v2 = vld [vmem:[%s1435_s27 + $0x78] sm:$0xff]  ;;  %703 = vmatpush.bf16.msra.mxu0 %v1336_v0  ;;  %827 = vmatpush.bf16.msra.mxu2 %v1346_v1  ;;  %v1345_v4 = vld [vmem:[%s1435_s27 + $0x80] sm:$0xff]  ;;  %v1097_v5 = vld [vmem:[%s1443_s30 + $0x8] sm:$0xf]  ;;  %s1546_s15 = scalar_lea.vmem %s1634_s5, %s1366_s12  ;;  %s319_s24 = scalar_lea.vmem %s1632_s3, %s1297_s19 }
  0x11   : > { %v1301_v6 = vld [vmem:[%s1443_s30 + $0x10] sm:$0xf0]  ;;  %762 = vmatpush.bf16.msra.mxu1 %v1344_v2  ;;  %1348 = vmatpush.bf16.msra.mxu3 %v1336_v0  ;;  %v1334_v9 = vld [vmem:[%s1435_s27 + $0x28] sm:$0xff]  ;;  %v1333_v11 = vld [vmem:[%s1435_s27 + $0x20] sm:$0xff]  ;;  %s1298_s25 = sshll.u32 %s1637_s22, 5 }
  0x12   : > { %v1343_v7 = vld [vmem:[%s1435_s27 + $0x70] sm:$0xff]  ;;  %v1098_v8 = vor.u32 %v1301_v6, %v1097_v5  ;;  %v1342_v10 = vld [vmem:[%s1435_s27 + $0x68] sm:$0xff]  ;;  %v1341_v12 = vld [vmem:[%s1435_s27 + $0x60] sm:$0xff] }
  0x13   : > { %v1332_v13 = vld [vmem:[%s1435_s27 + $0x18] sm:$0xff]  ;;  %v1331_v15 = vld [vmem:[%s1435_s27 + $0x10] sm:$0xff]  ;;  %v1109_v16 = vld [vmem:[%s1443_s30 + $0x20] sm:$0xf] }
  0x14   : > { %704 = vmatpush.bf16.msra.mxu0 %v1335_v3  ;;  %828 = vmatpush.bf16.msra.mxu2 %v1345_v4  ;;  %v1340_v14 = vld [vmem:[%s1435_s27 + $0x58] sm:$0xff]  ;;  %v1304_v17 = vld [vmem:[%s1443_s30 + $0x28] sm:$0xf0]  ;;  %v1339_v18 = vld [vmem:[%s1435_s27 + $0x50] sm:$0xff] }
  0x15   : > { %763 = vmatpush.bf16.msra.mxu1 %v1343_v7  ;;  %1349 = vmatpush.bf16.msra.mxu3 %v1335_v3  ;;  %v1110_v19 = vor.u32 %v1304_v17, %v1109_v16  ;;  %v1330_v20 = vld [vmem:[%s1435_s27 + $0x8] sm:$0xff]  ;;  %v1329_v22 = vld [vmem:[%s1435_s27] sm:$0xff]  ;;  %v1091_v27 = vld [vmem:[%s1443_s30 + $0xc] sm:$0xf0] }
  0x16   : > { %v1338_v21 = vld [vmem:[%s1435_s27 + $0x48] sm:$0xff]  ;;  %v1089_v23 = vld [vmem:[%s1443_s30] sm:$0xf]  ;;  %v1299_v26 = vld [vmem:[%s1443_s30 + $0x4] sm:$0xf] }
  0x17   : > { %1279 = vmatmul.msk.bf16.vlgmr.msra.gmra.mxu2 %vm672_vm0, %v1098_v8  ;;  %v1300_v24 = vld [vmem:[%s1443_s30 + $0x8] sm:$0xf0]  ;;  %v1337_v25 = vld [vmem:[%s1435_s27 + $0x40] sm:$0xff]  ;;  %v1094_v29 = vor.u32 %v1299_v26, %v1091_v27  ;;  %v1121_v33 = vld [vmem:[%s1443_s30 + $0x38] sm:$0xf] }
  0x18   : > { %705 = vmatpush.bf16.msra.mxu0 %v1334_v9  ;;  %v1090_v28 = vor.u32 %v1300_v24, %v1089_v23  ;;  %v1185_v30 = vld [vmem:[%s1443_s30 + $0xc0] sm:$0xf]  ;;  %v1324_v31 = vld [vmem:[%s1443_s30 + $0xc8] sm:$0xf0]  ;;  %v1307_v34 = vld [vmem:[%s1443_s30 + $0x40] sm:$0xf0] }
  0x19   : > { %764 = vmatpush.bf16.msra.mxu1 %v1342_v10  ;;  %1350 = vmatpush.bf16.msra.mxu3 %v1334_v9  ;;  %v1186_v32 = vor.u32 %v1324_v31, %v1185_v30  ;;  %v1122_v35 = vor.u32 %v1307_v34, %v1121_v33  ;;  %v1101_v36 = vld [vmem:[%s1443_s30 + $0x18] sm:$0xf]  ;;  %v1303_v37 = vld [vmem:[%s1443_s30 + $0x20] sm:$0xf0]  ;;  %v1302_v38 = vld [vmem:[%s1443_s30 + $0x1c] sm:$0xf] }
  0x1a   : > { %v1103_v39 = vld [vmem:[%s1443_s30 + $0x24] sm:$0xf0]  ;;  %v1102_v40 = vor.u32 %v1303_v37, %v1101_v36  ;;  %v1197_v42 = vld [vmem:[%s1443_s30 + $0xd8] sm:$0xf]  ;;  %v1327_v43 = vld [vmem:[%s1443_s30 + $0xe0] sm:$0xf0] }
  0x1b   : > { %v1106_v41 = vor.u32 %v1302_v38, %v1103_v39  ;;  %v1198_v44 = vor.u32 %v1327_v43, %v1197_v42  ;;  %v1133_v45 = vld [vmem:[%s1443_s30 + $0x50] sm:$0xf]  ;;  %v1310_v46 = vld [vmem:[%s1443_s30 + $0x58] sm:$0xf0]  ;;  %v1305_v50 = vld [vmem:[%s1443_s30 + $0x34] sm:$0xf] }
  0x1c   : > { %706 = vmatpush.bf16.msra.mxu0 %v1333_v11  ;;  %v1134_v47 = vor.u32 %v1310_v46, %v1133_v45  ;;  %v1113_v48 = vld [vmem:[%s1443_s30 + $0x30] sm:$0xf]  ;;  %v1306_v49 = vld [vmem:[%s1443_s30 + $0x38] sm:$0xf0]  ;;  %v1115_v51 = vld [vmem:[%s1443_s30 + $0x3c] sm:$0xf0] }
  0x1d   : > { %765 = vmatpush.bf16.msra.mxu1 %v1341_v12  ;;  %1351 = vmatpush.bf16.msra.mxu3 %v1333_v11  ;;  %v1114_v52 = vor.u32 %v1306_v49, %v1113_v48  ;;  %v1118_v53 = vor.u32 %v1305_v50, %v1115_v51  ;;  %v1323_v54 = vld [vmem:[%s1443_s30 + $0xc4] sm:$0xf]  ;;  %v1187_v55 = vld [vmem:[%s1443_s30 + $0xcc] sm:$0xf0]  ;;  %v1145_v57 = vld [vmem:[%s1443_s30 + $0x68] sm:$0xf] }
  0x1e   : > { %v1190_v56 = vor.u32 %v1323_v54, %v1187_v55  ;;  %v1313_v58 = vld [vmem:[%s1443_s30 + $0x70] sm:$0xf0]  ;;  %v1125_v60 = vld [vmem:[%s1443_s30 + $0x48] sm:$0xf]  ;;  %v1308_v62 = vld [vmem:[%s1443_s30 + $0x4c] sm:$0xf] }
  0x1f   : > { %v1146_v59 = vor.u32 %v1313_v58, %v1145_v57  ;;  %v1309_v61 = vld [vmem:[%s1443_s30 + $0x50] sm:$0xf0]  ;;  %v1127_v63 = vld [vmem:[%s1443_s30 + $0x54] sm:$0xf0]  ;;  %v1199_v3 = vld [vmem:[%s1443_s30 + $0xe4] sm:$0xf0] }
  0x20   : > { %707 = vmatpush.bf16.msra.mxu0 %v1332_v13  ;;  %v1126_v0 = vor.u32 %v1309_v61, %v1125_v60  ;;  %v1130_v1 = vor.u32 %v1308_v62, %v1127_v63  ;;  %v1157_v5 = vld [vmem:[%s1443_s30 + $0x80] sm:$0xf]  ;;  %v1316_v6 = vld [vmem:[%s1443_s30 + $0x88] sm:$0xf0]  ;;  %v1139_v11 = vld [vmem:[%s1443_s30 + $0x6c] sm:$0xf0] }
  0x21   : > { %766 = vmatpush.bf16.msra.mxu1 %v1340_v14  ;;  %1352 = vmatpush.bf16.msra.mxu3 %v1332_v13  ;;  %v1137_v8 = vld [vmem:[%s1443_s30 + $0x60] sm:$0xf]  ;;  %v1312_v9 = vld [vmem:[%s1443_s30 + $0x68] sm:$0xf0]  ;;  %v1149_v17 = vld [vmem:[%s1443_s30 + $0x78] sm:$0xf] }
  0x22   : > { %v1181_v23 = vld [vmem:[%s1443_s30 + $0xb0] sm:$0xf]  ;;  %v1322_v24 = vld [vmem:[%s1443_s30 + $0xb8] sm:$0xf0]  ;;  %v1325_v33 = vld [vmem:[%s1443_s30 + $0xd0] sm:$0xf0] }
  0x23   : > { %v1161_v26 = vld [vmem:[%s1443_s30 + $0x90] sm:$0xf]  ;;  %v1318_v27 = vld [vmem:[%s1443_s30 + $0x98] sm:$0xf0]  ;;  %v1321_v36 = vld [vmem:[%s1443_s30 + $0xb0] sm:$0xf0] }
  0x24   : > { %708 = vmatpush.bf16.msra.mxu0 %v1331_v15  ;;  %v1162_v30 = vor.u32 %v1318_v27, %v1161_v26  ;;  %v1320_v37 = vld [vmem:[%s1443_s30 + $0xac] sm:$0xf]  ;;  %v1175_v38 = vld [vmem:[%s1443_s30 + $0xb4] sm:$0xf0]  ;;  %v1205_v42 = vld [vmem:[%s1443_s30 + $0xe0] sm:$0xf] }
  0x25   : > { %767 = vmatpush.bf16.msra.mxu1 %v1339_v18  ;;  %1353 = vmatpush.bf16.msra.mxu3 %v1331_v15  ;;  %v1319_v15 = vld [vmem:[%s1443_s30 + $0xa0] sm:$0xf0]  ;;  %v1328_v43 = vld [vmem:[%s1443_s30 + $0xe8] sm:$0xf0]  ;;  %v1539_v46 = vld [vmem:[%s314_s9] ss:$0 sm:$0xff] }
  0x26   : > { %v1206_v45 = vor.u32 %v1328_v43, %v1205_v42 }
  0x27   : > { %1280 = vmatmul.msk.bf16.gmra.mxu2 %vm672_vm0, %v1110_v19  ;;  %v1314_v19 = vld [vmem:[%s1443_s30 + $0x7c] sm:$0xf] }
  0x28   : > { %709 = vmatpush.bf16.msra.mxu0 %v1330_v20 }
  0x29   : > { %768 = vmatpush.bf16.msra.mxu1 %v1338_v21  ;;  %1354 = vmatpush.bf16.msra.mxu3 %v1330_v20  ;;  %v1151_v20 = vld [vmem:[%s1443_s30 + $0x84] sm:$0xf0] }
  0x2c   : > { %710 = vmatpush.bf16.msra.mxu0 %v1329_v22 }
  0x2d   : > { %769 = vmatpush.bf16.msra.mxu1 %v1337_v25  ;;  %1355 = vmatpush.bf16.msra.mxu3 %v1329_v22  ;;  %v1154_v22 = vor.u32 %v1314_v19, %v1151_v20 }
  0x2f   : > { %711 = vmatmul.bf16.vlgmr.msra.gmra.mxu0 %v1090_v28  ;;  %v1317_v28 = vld [vmem:[%s1443_s30 + $0x94] sm:$0xf] }
  0x30   : > { %770 = vmatmul.bf16.vlgmr.msra.gmra.mxu1 %v1094_v29  ;;  %751 = vmatmul.bf16.vlgmr.msra.gmra.mxu3 %v1186_v32  ;;  %v1163_v29 = vld [vmem:[%s1443_s30 + $0x9c] sm:$0xf0]  ;;  %v1193_v32 = vld [vmem:[%s1443_s30 + $0xc8] sm:$0xf] }
  0x31   : > { %1356 = vmatpush.bf16.msrb.mxu3 %v1344_v2  ;;  %v1326_v2 = vld [vmem:[%s1443_s30 + $0xdc] sm:$0xf]  ;;  %v1166_v31 = vor.u32 %v1317_v28, %v1163_v29  ;;  %v1194_v34 = vor.u32 %v1325_v33, %v1193_v32  ;;  %v1347_v33 = vld [vmem:[%s319_s24] sm:$0xff] }
  0x32   : > { %v1202_v4 = vor.u32 %v1326_v2, %v1199_v3 }
  0x35   : > { %1357 = vmatpush.bf16.msrb.mxu3 %v1343_v7  ;;  %v1158_v7 = vor.u32 %v1316_v6, %v1157_v5 }
  0x37   : > { %1281 = vmatmul.msk.bf16.gmra.mxu2 %vm672_vm0, %v1122_v35  ;;  %v1173_v35 = vld [vmem:[%s1443_s30 + $0xa8] sm:$0xf] }
  0x39   : > { %1358 = vmatpush.bf16.msrb.mxu3 %v1342_v10  ;;  %v1311_v10 = vld [vmem:[%s1443_s30 + $0x64] sm:$0xf] }
  0x3a   : > { %v1142_v13 = vor.u32 %v1311_v10, %v1139_v11 }
  0x3d   : > { %1359 = vmatpush.bf16.msrb.mxu3 %v1341_v12  ;;  %v1138_v12 = vor.u32 %v1312_v9, %v1137_v8 }
  0x3f   : > { %716 = vmatmul.bf16.gmra.mxu0 %v1102_v40  ;;  %v1174_v40 = vor.u32 %v1321_v36, %v1173_v35 }
  0x40   : > { %775 = vmatmul.bf16.gmra.mxu1 %v1106_v41  ;;  %756 = vmatmul.bf16.gmra.mxu3 %v1198_v44  ;;  %v1178_v41 = vor.u32 %v1320_v37, %v1175_v38 }
  0x41   : > { %1360 = vmatpush.bf16.msrb.mxu3 %v1340_v14  ;;  %v1169_v14 = vld [vmem:[%s1443_s30 + $0x98] sm:$0xf] }
  0x42   : > { %v1170_v16 = vor.u32 %v1319_v15, %v1169_v14 }
  0x45   : > { %1361 = vmatpush.bf16.msrb.mxu3 %v1339_v18  ;;  %v1315_v18 = vld [vmem:[%s1443_s30 + $0x80] sm:$0xf0]  ;;  %s332_s30 = scalar_lea.vmem %s1635_s6, %s1298_s25 }
  0x47   : > { %1282 = vmatmul.msk.bf16.gmra.mxu2 %vm672_vm0, %v1134_v47 }
  0x49   : > { %1362 = vmatpush.bf16.msrb.mxu3 %v1338_v21  ;;  %v1150_v21 = vor.u32 %v1315_v18, %v1149_v17 }
  0x4d   : > { %1363 = vmatpush.bf16.msrb.mxu3 %v1337_v25  ;;  %v1182_v25 = vor.u32 %v1322_v24, %v1181_v23 }
  0x4f   : > { %721 = vmatmul.bf16.gmra.mxu0 %v1114_v52 }
  0x50   : > { %780 = vmatmul.bf16.gmra.mxu1 %v1118_v53  ;;  %810 = vmatmul.bf16.vlgmr.msrb.gmra.mxu3 %v1190_v56 }
  0x51   : > { %928 = vmatpush.bf16.msra.mxu3 %v1347_v33 }
  0x57   : > { %1283 = vmatmul.msk.bf16.gmra.mxu2 %vm672_vm0, %v1146_v59 }
  0x5f   : > { %726 = vmatmul.bf16.gmra.mxu0 %v1126_v0 }
  0x60   : > { %785 = vmatmul.bf16.gmra.mxu1 %v1130_v1  ;;  %815 = vmatmul.bf16.gmra.mxu3 %v1202_v4 }
  0x67   : > { %1284 = vmatmul.msk.bf16.gmra.mxu2 %vm672_vm0, %v1158_v7 }
  0x6f   : > { %731 = vmatmul.bf16.gmra.mxu0 %v1138_v12 }
  0x70   : > { %790 = vmatmul.bf16.gmra.mxu1 %v1142_v13 }
  0x77   : > { %1285 = vmatmul.msk.bf16.gmra.mxu2 %vm672_vm0, %v1170_v16 }
  0x7f   : > { %736 = vmatmul.bf16.gmra.mxu0 %v1150_v21 }
  0x80   : > { %795 = vmatmul.bf16.gmra.mxu1 %v1154_v22 }
  0x87   : > { %1286 = vmatmul.msk.bf16.gmra.mxu2 %vm672_vm0, %v1182_v25 }
  0x8f   : > { %741 = vmatmul.bf16.gmra.mxu0 %v1162_v30 }
  0x90   : > { %800 = vmatmul.bf16.gmra.mxu1 %v1166_v31 }
  0x97   : > { %1287 = vmatmul.msk.bf16.gmra.mxu2 %vm672_vm0, %v1194_v34 }
  0x9a   : > { %v830_v39 = vpop.f32.mrf.mxu2 }
  0x9f   : > { %746 = vmatmul.bf16.gmra.mxu0 %v1174_v40 }
  0xa0   : > { %805 = vmatmul.bf16.gmra.mxu1 %v1178_v41 }
  0xa2   : > { %v832_v44 = vpop.f32.mrf.mxu2 }
  0xa7   : > { %1288 = vmatmul.msk.bf16.gmra.mxu2 %vm672_vm0, %v1206_v45 }
  0xaa   : > { %v835_v47 = vpop.f32.mrf.mxu2 }
  0xac   : > { %v712_v48 = vpop.f32.mrf.mxu0 }
  0xad   : > { %v713_v49 = vadd.f32 %v1539_v46, %v712_v48  ;;  %v771_v50 = vpop.f32.mrf.mxu1 }
  0xaf   : > { %v772_v51 = vadd.f32 %v771_v50, %v713_v49 }
  0xb1   : > { %v831_v52 = vadd.f32 %v830_v39, %v772_v51 }
  0xb2   : > { %v837_v53 = vpop.f32.mrf.mxu2 }
  0xb3   : > { %881 = vst.msk [vmem:[%s1546_s15] sm:$0xff] %vm880_vm1, %v831_v52  ;;  %v752_v30 = vpop.f32.mrf.mxu3 }
  0xb4   : > { %v714_v54 = vpop.f32.mrf.mxu0 }
  0xb5   : > { %v715_v55 = vadd.f32 %v1539_v46, %v714_v54  ;;  %v773_v56 = vpop.f32.mrf.mxu1 }
  0xb7   : > { %v774_v57 = vadd.f32 %v773_v56, %v715_v55 }
  0xb9   : > { %v833_v58 = vadd.f32 %v832_v44, %v774_v57 }
  0xba   : > { %v840_v59 = vpop.f32.mrf.mxu2 }
  0xbb   : > { %882 = vst.msk [vmem:[%s1546_s15 + $0x8] sm:$0xff] %vm880_vm1, %v833_v58  ;;  %v754_v39 = vpop.f32.mrf.mxu3 }
  0xbc   : > { %v717_v60 = vpop.f32.mrf.mxu0 }
  0xbd   : > { %v718_v61 = vadd.f32 %v1539_v46, %v717_v60  ;;  %v776_v62 = vpop.f32.mrf.mxu1 }
  0xbf   : > { %v777_v63 = vadd.f32 %v776_v62, %v718_v61 }
  0xc1   : > { %v836_v0 = vadd.f32 %v835_v47, %v777_v63 }
  0xc2   : > { %v842_v1 = vpop.f32.mrf.mxu2 }
  0xc3   : > { %883 = vst.msk [vmem:[%s1546_s15 + $0x10] sm:$0xff] %vm880_vm1, %v836_v0  ;;  %v757_v48 = vpop.f32.mrf.mxu3 }
  0xc4   : > { %v719_v2 = vpop.f32.mrf.mxu0 }
  0xc5   : > { %v720_v3 = vadd.f32 %v1539_v46, %v719_v2  ;;  %v778_v4 = vpop.f32.mrf.mxu1 }
  0xc7   : > { %v779_v5 = vadd.f32 %v778_v4, %v720_v3 }
  0xc9   : > { %v838_v6 = vadd.f32 %v837_v53, %v779_v5 }
  0xca   : > { %v845_v7 = vpop.f32.mrf.mxu2 }
  0xcb   : > { %884 = vst.msk [vmem:[%s1546_s15 + $0x18] sm:$0xff] %vm880_vm1, %v838_v6  ;;  %v759_v58 = vpop.f32.mrf.mxu3  ;;  %v753_v6 = vadd.f32 %v1539_v46, %v752_v30 }
  0xcc   : > { %v722_v8 = vpop.f32.mrf.mxu0 }
  0xcd   : > { %v723_v9 = vadd.f32 %v1539_v46, %v722_v8  ;;  %v781_v10 = vpop.f32.mrf.mxu1 }
  0xcf   : > { %v782_v11 = vadd.f32 %v781_v10, %v723_v9 }
  0xd1   : > { %v841_v12 = vadd.f32 %v840_v59, %v782_v11 }
  0xd2   : > { %v847_v13 = vpop.f32.mrf.mxu2 }
  0xd3   : > { %885 = vst.msk [vmem:[%s1546_s15 + $0x20] sm:$0xff] %vm880_vm1, %v841_v12  ;;  %v811_v2 = vpop.f32.mrf.mxu3 }
  0xd4   : > { %v724_v14 = vpop.f32.mrf.mxu0  ;;  %v812_v10 = vadd.f32 %v811_v2, %v753_v6 }
  0xd5   : > { %v725_v15 = vadd.f32 %v1539_v46, %v724_v14  ;;  %v783_v16 = vpop.f32.mrf.mxu1 }
  0xd7   : > { %v784_v17 = vadd.f32 %v783_v16, %v725_v15  ;;  %v755_v16 = vadd.f32 %v1539_v46, %v754_v39 }
  0xd9   : > { %v843_v18 = vadd.f32 %v842_v1, %v784_v17 }
  0xda   : > { %v850_v19 = vpop.f32.mrf.mxu2 }
  0xdb   : > { %886 = vst.msk [vmem:[%s1546_s15 + $0x28] sm:$0xff] %vm880_vm1, %v843_v18  ;;  %v813_v12 = vpop.f32.mrf.mxu3 }
  0xdc   : > { %v727_v20 = vpop.f32.mrf.mxu0 }
  0xdd   : > { %v728_v21 = vadd.f32 %v1539_v46, %v727_v20  ;;  %v786_v22 = vpop.f32.mrf.mxu1  ;;  %v814_v20 = vadd.f32 %v813_v12, %v755_v16 }
  0xdf   : > { %v787_v23 = vadd.f32 %v786_v22, %v728_v21 }
  0xe1   : > { %v846_v24 = vadd.f32 %v845_v7, %v787_v23 }
  0xe2   : > { %v852_v25 = vpop.f32.mrf.mxu2 }
  0xe3   : > { %887 = vst.msk [vmem:[%s1546_s15 + $0x30] sm:$0xff] %vm880_vm1, %v846_v24  ;;  %v816_v24 = vpop.f32.mrf.mxu3 }
  0xe4   : > { %v729_v26 = vpop.f32.mrf.mxu0 }
  0xe5   : > { %v730_v27 = vadd.f32 %v1539_v46, %v729_v26  ;;  %v788_v28 = vpop.f32.mrf.mxu1  ;;  %v758_v26 = vadd.f32 %v1539_v46, %v757_v48 }
  0xe7   : > { %v789_v29 = vadd.f32 %v788_v28, %v730_v27 }
  0xe9   : > { %v848_v31 = vadd.f32 %v847_v13, %v789_v29 }
  0xea   : > { %v855_v32 = vpop.f32.mrf.mxu2 }
  0xeb   : > { %888 = vst.msk [vmem:[%s1546_s15 + $0x38] sm:$0xff] %vm880_vm1, %v848_v31  ;;  %v817_v31 = vadd.f32 %v816_v24, %v758_v26 }
  0xec   : > { %v732_v34 = vpop.f32.mrf.mxu0 }
  0xed   : > { %v733_v35 = vadd.f32 %v1539_v46, %v732_v34  ;;  %v791_v36 = vpop.f32.mrf.mxu1 }
  0xef   : > { %v792_v37 = vadd.f32 %v791_v36, %v733_v35  ;;  %v760_v35 = vadd.f32 %v1539_v46, %v759_v58  ;;  %v818_v36 = vpop.f32.mrf.mxu3 }
  0xf1   : > { %v851_v38 = vadd.f32 %v850_v19, %v792_v37  ;;  %v819_v37 = vadd.f32 %v818_v36, %v760_v35 }
  0xf2   : > { %v857_v40 = vpop.f32.mrf.mxu2 }
  0xf3   : > { %889 = vst.msk [vmem:[%s1546_s15 + $0x40] sm:$0xff] %vm880_vm1, %v851_v38 }
  0xf4   : > { %v734_v41 = vpop.f32.mrf.mxu0 }
  0xf5   : > { %v735_v42 = vadd.f32 %v1539_v46, %v734_v41  ;;  %v793_v43 = vpop.f32.mrf.mxu1  ;;  %v1376_v41 = vld [vmem:[%s322_s18] ss:$0 sm:$0xff] }
  0xf7   : > { %v794_v44 = vadd.f32 %v793_v43, %v735_v42 }
  0xf9   : > { %v853_v45 = vadd.f32 %v852_v25, %v794_v44 }
  0xfa   : > { %v860_v47 = vpop.f32.mrf.mxu2 }
  0xfb   : > { %890 = vst.msk [vmem:[%s1546_s15 + $0x48] sm:$0xff] %vm880_vm1, %v853_v45 }
  0xfc   : > { %v737_v49 = vpop.f32.mrf.mxu0 }
  0xfd   : > { %v738_v50 = vadd.f32 %v1539_v46, %v737_v49  ;;  %v796_v51 = vpop.f32.mrf.mxu1 }
  0xff   : > { %v797_v52 = vadd.f32 %v796_v51, %v738_v50 }
 0x101   : > { %v856_v53 = vadd.f32 %v855_v32, %v797_v52 }
 0x102   : > { %v862_v54 = vpop.f32.mrf.mxu2 }
 0x103   : > { %891 = vst.msk [vmem:[%s1546_s15 + $0x50] sm:$0xff] %vm880_vm1, %v856_v53 }
 0x104   : > { %v739_v55 = vpop.f32.mrf.mxu0 }
 0x105   : > { %v740_v56 = vadd.f32 %v1539_v46, %v739_v55  ;;  %v798_v57 = vpop.f32.mrf.mxu1 }
 0x107   : > { %v799_v59 = vadd.f32 %v798_v57, %v740_v56 }
 0x109   : > { %v858_v60 = vadd.f32 %v857_v40, %v799_v59 }
 0x10a   : > { %v865_v61 = vpop.f32.mrf.mxu2 }
 0x10b   : > { %892 = vst.msk [vmem:[%s1546_s15 + $0x58] sm:$0xff] %vm880_vm1, %v858_v60 }
 0x10c   : > { %v742_v62 = vpop.f32.mrf.mxu0 }
 0x10d   : > { %v743_v63 = vadd.f32 %v1539_v46, %v742_v62  ;;  %v801_v0 = vpop.f32.mrf.mxu1 }
 0x10f   : > { %v802_v1 = vadd.f32 %v801_v0, %v743_v63 }
 0x111   : > { %v861_v3 = vadd.f32 %v860_v47, %v802_v1 }
 0x112   : > { %v867_v4 = vpop.f32.mrf.mxu2 }
 0x113   : > { %893 = vst.msk [vmem:[%s1546_s15 + $0x60] sm:$0xff] %vm880_vm1, %v861_v3 }
 0x114   : > { %v744_v5 = vpop.f32.mrf.mxu0 }
 0x115   : > { %v745_v7 = vadd.f32 %v1539_v46, %v744_v5  ;;  %v803_v8 = vpop.f32.mrf.mxu1 }
 0x117   : > { %v804_v9 = vadd.f32 %v803_v8, %v745_v7 }
 0x119   : > { %v863_v11 = vadd.f32 %v862_v54, %v804_v9 }
 0x11a   : > { %v870_v13 = vpop.f32.mrf.mxu2 }
 0x11b   : > { %894 = vst.msk [vmem:[%s1546_s15 + $0x68] sm:$0xff] %vm880_vm1, %v863_v11  ;;  %v871_v14 = vadd.f32 %v870_v13, %v812_v10 }
 0x11c   : > { %v747_v15 = vpop.f32.mrf.mxu0 }
 0x11d   : > { %897 = vst.msk [vmem:[%s1546_s15 + $0x80] sm:$0xff] %vm880_vm1, %v871_v14  ;;  %v748_v17 = vadd.f32 %v1539_v46, %v747_v15  ;;  %v806_v18 = vpop.f32.mrf.mxu1 }
 0x11f   : > { %v807_v19 = vadd.f32 %v806_v18, %v748_v17 }
 0x121   : > { %v866_v21 = vadd.f32 %v865_v61, %v807_v19 }
 0x122   : > { %v872_v22 = vpop.f32.mrf.mxu2 }
 0x123   : > { %895 = vst.msk [vmem:[%s1546_s15 + $0x70] sm:$0xff] %vm880_vm1, %v866_v21  ;;  %v873_v23 = vadd.f32 %v872_v22, %v814_v20 }
 0x124   : > { %v749_v25 = vpop.f32.mrf.mxu0 }
 0x125   : > { %898 = vst.msk [vmem:[%s1546_s15 + $0x88] sm:$0xff] %vm880_vm1, %v873_v23  ;;  %v901_v27 = vpack.c.bf16 %v873_v23, %v871_v14  ;;  %v750_v28 = vadd.f32 %v1539_v46, %v749_v25  ;;  %v808_v29 = vpop.f32.mrf.mxu1 }
 0x127   : > { %v809_v30 = vadd.f32 %v808_v29, %v750_v28  ;;  %1293 = vmatmul.msk.bf16.vlgmr.msra.gmra.mxu3 %vm880_vm1, %v901_v27 }
 0x129   : > { %v868_v32 = vadd.f32 %v867_v4, %v809_v30 }
 0x12a   : > { %v875_v33 = vpop.f32.mrf.mxu2 }
 0x12b   : > { %896 = vst.msk [vmem:[%s1546_s15 + $0x78] sm:$0xff] %vm880_vm1, %v868_v32  ;;  %v876_v34 = vadd.f32 %v875_v33, %v817_v31 }
 0x12d   : > { %899 = vst.msk [vmem:[%s1546_s15 + $0x90] sm:$0xff] %vm880_vm1, %v876_v34 }
 0x132   : > { %v877_v38 = vpop.f32.mrf.mxu2 }
 0x133   : > { %v878_v39 = vadd.f32 %v877_v38, %v819_v37 }
 0x135   : > { %900 = vst.msk [vmem:[%s1546_s15 + $0x98] sm:$0xff] %vm880_vm1, %v878_v39  ;;  %v902_v40 = vpack.c.bf16 %v878_v39, %v876_v34 }
 0x137   : > { %1294 = vmatmul.msk.bf16.gmra.mxu3 %vm880_vm1, %v902_v40 }
 0x1aa   : > { %v930_v46 = vpop.f32.mrf.mxu3 }
 0x1ab   : > { %v931_v42 = vadd.f32 %v1376_v41, %v930_v46 }
 0x1ad   : > { %941 = vst.msk [vmem:[%s332_s30] sm:$0xff] %vm940_vm2, %v931_v42 }
 0x1b2   : > { %v932_v43 = vpop.f32.mrf.mxu3 }
 0x1b3   : > { %v933_v44 = vadd.f32 %v1376_v41, %v932_v43 }
 0x1b5   : > { %942 = vst.msk [vmem:[%s332_s30 + $0x8] sm:$0xff] %vm940_vm2, %v933_v44 }
 0x1ba   : > { %v935_v45 = vpop.f32.mrf.mxu3 }
 0x1bb   : > { %v936_v47 = vadd.f32 %v1376_v41, %v935_v45 }
 0x1bd   : > { %943 = vst.msk [vmem:[%s332_s30 + $0x10] sm:$0xff] %vm940_vm2, %v936_v47 }
 0x1c2   : > { %v937_v48 = vpop.f32.mrf.mxu3 }
 0x1c3   : > { %v938_v49 = vadd.f32 %v1376_v41, %v937_v48 }
 0x1c5   : > { %944 = vst.msk [vmem:[%s332_s30 + $0x18] sm:$0xff] %vm940_vm2, %v938_v49 }
 0x1c6 PF: > { %s17_s21 = sadd.s32 1, %s1383_s21  }
 0x1c7   : > { %p14_p4 = scmp.ge.s32.totalorder %s17_s21, 4  }
 0x1c9   :  { %16 = sbr.rel (!%p14_p4) target bundleno = 1 (0x1), region = 94 }

// kernel: coattn_forward.8
= control target key start
LH: loop header
LB: loop body
LE: loop exit
PB: predicated region body
PF: predicated region fallthrough
CT: control target
= control target key end

     0   :  { %s919_s24 = smov 0   ;;  %s1049_s0 = inlined_call_operand.vmem [shape: bf16[2,128,32], index: 0, kind: input, shape index: {}]   ;;  %s1050_s1 = inlined_call_operand.vmem [shape: bf16[2,32,32], index: 1, kind: input, shape index: {}]   ;;  %s1051_s2 = inlined_call_operand.vmem [shape: f32[2,1,32], index: 2, kind: input, shape index: {}]   ;;  %s1052_s3 = inlined_call_operand.vmem [shape: bf16[2,32,32], index: 3, kind: input, shape index: {}]   ;;  %s1053_s4 = inlined_call_operand.vmem [shape: bf16[2,32,32], index: 4, kind: input, shape index: {}]   ;;  %s1054_s5 = inlined_call_operand.vmem [shape: f32[2,1,32], index: 5, kind: input, shape index: {}]   ;;  %s1055_s6 = inlined_call_operand.vmem [shape: f32[2,128,32], index: 6, kind: output, shape index: {0}]   ;;  %s1056_s7 = inlined_call_operand.vmem [shape: f32[2,32,32], index: 7, kind: output, shape index: {1}]  }
   0x1 LB: > { %s752_s25 = sadd.s32 4294967295, %s877_s24   ;;  %p756_p0 = scmp.ge.s32.totalorder %s877_s24, 1  ;;  %s877_s24 = sphi %s919_s24, %s18_s24  }
   0x2   : > { %p286_p1 = scmp.lt.s32.totalorder %s877_s24, 3 }
   0x4   : > { %p287_p2 = pnand %p756_p0, %p286_p1 }
   0x5   : > { %p344_p3 = scmp.lt.s32.totalorder (!%p287_p2), %s752_s25, 1 }
   0x6   : > { %290 = sbr.rel (%p287_p2) target bundleno = 197 (0xc5), region = 44 }
   0xb   : > { %s1058_s25 = smov (!%p344_p3, %s752_s25), 1  ;;  %vm457_vm0 = vcmask 261120  }
   0xc   : > { %s838_s26 = sshll.u32 %s1058_s25, 4  ;;  %s837_s27 = sshll.u32 %s1058_s25, 6 }
   0xd   : > { %s353_s30 = scalar_lea.vmem %s1050_s1, %s838_s26  ;;  %s356_s10 = scalar_lea.vmem %s1051_s2, %s1058_s25 }
   0xe   : > { %v852_v0 = vld [vmem:[%s353_s30 + $0x8] sm:$0xff]  ;;  %s366_s13 = scalar_lea.vmem %s1053_s4, %s838_s26  ;;  %s944_s16 = scalar_lea.vmem %s1049_s0, %s837_s27  ;;  %v851_v1 = vld [vmem:[%s353_s30] sm:$0xff] }
   0xf   : > { %488 = vmatpush.bf16.msra.mxu0 %v852_v0  ;;  %857 = vmatpush.bf16.msra.mxu2 %v852_v0  ;;  %v856_v2 = vld [vmem:[%s366_s13 + $0x8] sm:$0xff]  ;;  %v855_v3 = vld [vmem:[%s366_s13] sm:$0xff]  ;;  %s361_s19 = scalar_lea.vmem %s1052_s3, %s838_s26  ;;  %v846_v5 = vld [vmem:[%s944_s16 + $0x18] sm:$0xff]  ;;  %s369_s22 = scalar_lea.vmem %s1054_s5, %s1058_s25 }
  0x10   : > { %858 = vmatpush.bf16.msra.mxu3 %v852_v0  ;;  %593 = vmatpush.bf16.msra.mxu1 %v856_v2  ;;  %v843_v4 = vld [vmem:[%s944_s16] sm:$0xff]  ;;  %v849_v6 = vld [vmem:[%s944_s16 + $0x30] sm:$0xff]  ;;  %v844_v8 = vld [vmem:[%s944_s16 + $0x8] sm:$0xff]  ;;  %s841_s23 = sshll.u32 %s1058_s25, 7  ;;  %s842_s28 = sshll.u32 %s1058_s25, 5 }
  0x11   : > { %v853_v7 = vld [vmem:[%s361_s19] sm:$0xff]  ;;  %v850_v10 = vld [vmem:[%s944_s16 + $0x38] sm:$0xff]  ;;  %v854_v11 = vld [vmem:[%s361_s19 + $0x8] sm:$0xff]  ;;  %s983_s8 = scalar_lea.vmem %s1055_s6, %s841_s23  ;;  %s989_s12 = scalar_lea.vmem %s1056_s7, %s842_s28 }
  0x12   : > { %v847_v9 = vld [vmem:[%s944_s16 + $0x20] sm:$0xff]  ;;  %v845_v12 = vld [vmem:[%s944_s16 + $0x10] sm:$0xff]  ;;  %v848_v13 = vld [vmem:[%s944_s16 + $0x28] sm:$0xff] }
  0x13   : > { %489 = vmatpush.bf16.msra.mxu0 %v851_v1  ;;  %859 = vmatpush.bf16.msra.mxu2 %v851_v1  ;;  %v977_v14 = vld [vmem:[%s356_s10] ss:$0 sm:$0xff] }
  0x14   : > { %860 = vmatpush.bf16.msra.mxu3 %v851_v1  ;;  %594 = vmatpush.bf16.msra.mxu1 %v855_v3  ;;  %v870_v15 = vld [vmem:[%s369_s22] ss:$0 sm:$0xff] }
  0x16   : > { %809 = vmatmul.msk.bf16.vlgmr.msra.gmra.mxu0 %vm457_vm0, %v843_v4  ;;  %812 = vmatmul.msk.bf16.vlgmr.msra.gmra.mxu2 %vm457_vm0, %v846_v5 }
  0x17   : > { %815 = vmatmul.msk.bf16.vlgmr.msra.gmra.mxu3 %vm457_vm0, %v849_v6  ;;  %833 = vmatmul.msk.bf16.vlgmr.msra.gmra.mxu1 %vm457_vm0, %v853_v7 }
  0x26   : > { %810 = vmatmul.msk.bf16.gmra.mxu0 %vm457_vm0, %v844_v8  ;;  %813 = vmatmul.msk.bf16.gmra.mxu2 %vm457_vm0, %v847_v9 }
  0x27   : > { %816 = vmatmul.msk.bf16.gmra.mxu3 %vm457_vm0, %v850_v10  ;;  %834 = vmatmul.msk.bf16.gmra.mxu1 %vm457_vm0, %v854_v11 }
  0x36   : > { %811 = vmatmul.msk.bf16.gmra.mxu0 %vm457_vm0, %v845_v12  ;;  %814 = vmatmul.msk.bf16.gmra.mxu2 %vm457_vm0, %v848_v13 }
  0x93   : > { %v491_v16 = vpop.f32.mrf.mxu0 }
  0x94   : > { %v492_v17 = vadd.f32 %v977_v14, %v491_v16  ;;  %v596_v18 = vpop.f32.mrf.mxu1 }
  0x95   : > { %v597_v19 = vadd.f32 %v870_v15, %v596_v18 }
  0x96   : > { %531 = vst.msk [vmem:[%s983_s8] sm:$0xff] %vm457_vm0, %v492_v17 }
  0x97   : > { %606 = vst.msk [vmem:[%s989_s12] sm:$0xff] %vm457_vm0, %v597_v19 }
  0x99   : > { %v506_v20 = vpop.f32.mrf.mxu2 }
  0x9a   : > { %v507_v21 = vadd.f32 %v977_v14, %v506_v20  ;;  %v521_v22 = vpop.f32.mrf.mxu3 }
  0x9b   : > { %v493_v23 = vpop.f32.mrf.mxu0  ;;  %v522_v24 = vadd.f32 %v977_v14, %v521_v22 }
  0x9c   : > { %537 = vst.msk [vmem:[%s983_s8 + $0x30] sm:$0xff] %vm457_vm0, %v507_v21  ;;  %v494_v25 = vadd.f32 %v977_v14, %v493_v23  ;;  %v598_v26 = vpop.f32.mrf.mxu1 }
  0x9d   : > { %543 = vst.msk [vmem:[%s983_s8 + $0x60] sm:$0xff] %vm457_vm0, %v522_v24  ;;  %v599_v27 = vadd.f32 %v870_v15, %v598_v26 }
  0x9e   : > { %532 = vst.msk [vmem:[%s983_s8 + $0x8] sm:$0xff] %vm457_vm0, %v494_v25 }
  0x9f   : > { %607 = vst.msk [vmem:[%s989_s12 + $0x8] sm:$0xff] %vm457_vm0, %v599_v27 }
  0xa1   : > { %v508_v28 = vpop.f32.mrf.mxu2 }
  0xa2   : > { %v509_v29 = vadd.f32 %v977_v14, %v508_v28  ;;  %v523_v30 = vpop.f32.mrf.mxu3 }
  0xa3   : > { %v496_v31 = vpop.f32.mrf.mxu0  ;;  %v524_v32 = vadd.f32 %v977_v14, %v523_v30 }
  0xa4   : > { %538 = vst.msk [vmem:[%s983_s8 + $0x38] sm:$0xff] %vm457_vm0, %v509_v29  ;;  %v497_v33 = vadd.f32 %v977_v14, %v496_v31  ;;  %v601_v34 = vpop.f32.mrf.mxu1 }
  0xa5   : > { %544 = vst.msk [vmem:[%s983_s8 + $0x68] sm:$0xff] %vm457_vm0, %v524_v32  ;;  %v602_v35 = vadd.f32 %v870_v15, %v601_v34 }
  0xa6   : > { %533 = vst.msk [vmem:[%s983_s8 + $0x10] sm:$0xff] %vm457_vm0, %v497_v33 }
  0xa7   : > { %608 = vst.msk [vmem:[%s989_s12 + $0x10] sm:$0xff] %vm457_vm0, %v602_v35 }
  0xa9   : > { %v511_v36 = vpop.f32.mrf.mxu2 }
  0xaa   : > { %v512_v37 = vadd.f32 %v977_v14, %v511_v36  ;;  %v526_v38 = vpop.f32.mrf.mxu3 }
  0xab   : > { %v498_v39 = vpop.f32.mrf.mxu0  ;;  %v527_v40 = vadd.f32 %v977_v14, %v526_v38 }
  0xac   : > { %539 = vst.msk [vmem:[%s983_s8 + $0x40] sm:$0xff] %vm457_vm0, %v512_v37  ;;  %v499_v41 = vadd.f32 %v977_v14, %v498_v39  ;;  %v603_v42 = vpop.f32.mrf.mxu1 }
  0xad   : > { %545 = vst.msk [vmem:[%s983_s8 + $0x70] sm:$0xff] %vm457_vm0, %v527_v40  ;;  %v604_v43 = vadd.f32 %v870_v15, %v603_v42 }
  0xae   : > { %534 = vst.msk [vmem:[%s983_s8 + $0x18] sm:$0xff] %vm457_vm0, %v499_v41 }
  0xaf   : > { %609 = vst.msk [vmem:[%s989_s12 + $0x18] sm:$0xff] %vm457_vm0, %v604_v43 }
  0xb1   : > { %v513_v44 = vpop.f32.mrf.mxu2 }
  0xb2   : > { %v514_v45 = vadd.f32 %v977_v14, %v513_v44  ;;  %v528_v46 = vpop.f32.mrf.mxu3 }
  0xb3   : > { %v501_v47 = vpop.f32.mrf.mxu0  ;;  %v529_v48 = vadd.f32 %v977_v14, %v528_v46 }
  0xb4   : > { %540 = vst.msk [vmem:[%s983_s8 + $0x48] sm:$0xff] %vm457_vm0, %v514_v45  ;;  %v502_v49 = vadd.f32 %v977_v14, %v501_v47 }
  0xb5   : > { %546 = vst.msk [vmem:[%s983_s8 + $0x78] sm:$0xff] %vm457_vm0, %v529_v48 }
  0xb6   : > { %535 = vst.msk [vmem:[%s983_s8 + $0x20] sm:$0xff] %vm457_vm0, %v502_v49 }
  0xb9   : > { %v516_v50 = vpop.f32.mrf.mxu2 }
  0xba   : > { %v517_v51 = vadd.f32 %v977_v14, %v516_v50 }
  0xbb   : > { %v503_v52 = vpop.f32.mrf.mxu0 }
  0xbc   : > { %541 = vst.msk [vmem:[%s983_s8 + $0x50] sm:$0xff] %vm457_vm0, %v517_v51  ;;  %v504_v53 = vadd.f32 %v977_v14, %v503_v52 }
  0xbe   : > { %536 = vst.msk [vmem:[%s983_s8 + $0x28] sm:$0xff] %vm457_vm0, %v504_v53 }
  0xc1   : > { %v518_v54 = vpop.f32.mrf.mxu2 }
  0xc2   : > { %v519_v55 = vadd.f32 %v977_v14, %v518_v54 }
  0xc4   : > { %542 = vst.msk [vmem:[%s983_s8 + $0x58] sm:$0xff] %vm457_vm0, %v519_v55 }
  0xc5 PF: > { %s18_s24 = sadd.s32 1, %s877_s24  }
  0xc6   : > { %p15_p4 = scmp.ge.s32.totalorder %s18_s24, 4  }
  0xc8   :  { %17 = sbr.rel (!%p15_p4) target bundleno = 1 (0x1), region = 101 }

// kernel: coattn_forward.9
= control target key start
LH: loop header
LB: loop body
LE: loop exit
PB: predicated region body
PF: predicated region fallthrough
CT: control target
= control target key end

     0   :  { %s1144_s24 = smov 0   ;;  %s1368_s0 = inlined_call_operand.vmem [shape: bf16[2,160,32], index: 0, kind: input, shape index: {}]   ;;  %s1369_s1 = inlined_call_operand.vmem [shape: bf16[2,32,48], index: 1, kind: input, shape index: {}]   ;;  %s1370_s2 = inlined_call_operand.vmem [shape: f32[2,1,48], index: 2, kind: input, shape index: {}]   ;;  %s1371_s3 = inlined_call_operand.vmem [shape: bf16[2,160,32], index: 3, kind: input, shape index: {}]   ;;  %s1372_s4 = inlined_call_operand.vmem [shape: bf16[2,32,32], index: 4, kind: input, shape index: {}]   ;;  %s1373_s5 = inlined_call_operand.vmem [shape: f32[2,1,32], index: 5, kind: input, shape index: {}]   ;;  %s1374_s6 = inlined_call_operand.vmem [shape: f32[2,160,48], index: 6, kind: output, shape index: {0}]   ;;  %s1375_s7 = inlined_call_operand.vmem [shape: f32[2,160,32], index: 7, kind: output, shape index: {1}]  }
   0x1 LB: > { %s923_s25 = sadd.s32 4294967295, %s1102_s24   ;;  %p927_p0 = scmp.ge.s32.totalorder %s1102_s24, 1  ;;  %s1102_s24 = sphi %s1144_s24, %s18_s24  }
   0x2   : > { %p286_p1 = scmp.lt.s32.totalorder %s1102_s24, 3 }
   0x4   : > { %p287_p2 = pnand %p927_p0, %p286_p1 }
   0x5   : > { %p344_p3 = scmp.lt.s32.totalorder (!%p287_p2), %s923_s25, 1 }
   0x6   : > { %290 = sbr.rel (%p287_p2) target bundleno = 230 (0xe6), region = 44 }
   0xb   : > { %s1377_s25 = smov (!%p344_p3, %s923_s25), 1  ;;  %vm471_vm0 = vcmask 261120   ;;  %vm561_vm1 = vcmask 392192  }
   0xc   : > { %s1054_s26 = sshll.u32 %s1377_s25, 4  ;;  %s1084_s27 = smul.u32 80, %s1377_s25 }
   0xd   : > { %s353_s30 = scalar_lea.vmem %s1369_s1, %s1054_s26  ;;  %s366_s10 = scalar_lea.vmem %s1372_s4, %s1054_s26 }
   0xe   : > { %v1067_v0 = vld [vmem:[%s353_s30 + $0x8] sm:$0xff]  ;;  %v1066_v2 = vld [vmem:[%s353_s30] sm:$0xff]  ;;  %s1165_s13 = scalar_lea.vmem %s1368_s0, %s1084_s27  ;;  %s1170_s16 = scalar_lea.vmem %s1371_s3, %s1084_s27 }
   0xf   : > { %v1079_v1 = vld [vmem:[%s366_s10 + $0x8] sm:$0xff]  ;;  %508 = vmatpush.bf16.msra.mxu0 %v1067_v0  ;;  %1080 = vmatpush.bf16.msra.mxu2 %v1067_v0  ;;  %v1078_v3 = vld [vmem:[%s366_s10] sm:$0xff]  ;;  %s356_s19 = scalar_lea.vmem %s1370_s2, %s1377_s25  ;;  %s369_s22 = scalar_lea.vmem %s1373_s5, %s1377_s25  ;;  %v1062_v9 = vld [vmem:[%s1165_s13 + $0x30] sm:$0xff] }
  0x10   : > { %708 = vmatpush.bf16.msra.mxu1 %v1079_v1  ;;  %1082 = vmatpush.bf16.msra.mxu3 %v1079_v1  ;;  %v1056_v4 = vld [vmem:[%s1165_s13] sm:$0xff]  ;;  %v1061_v5 = vld [vmem:[%s1165_s13 + $0x28] sm:$0xff]  ;;  %v1074_v11 = vld [vmem:[%s1170_s16 + $0x30] sm:$0xff]  ;;  %s1085_s23 = smul.u32 160, %s1377_s25 }
  0x11   : > { %v1068_v6 = vld [vmem:[%s1170_s16] sm:$0xff]  ;;  %v1073_v7 = vld [vmem:[%s1170_s16 + $0x28] sm:$0xff]  ;;  %v1058_v12 = vld [vmem:[%s1165_s13 + $0x10] sm:$0xff] }
  0x12   : > { %v1057_v8 = vld [vmem:[%s1165_s13 + $0x8] sm:$0xff]  ;;  %v1063_v13 = vld [vmem:[%s1165_s13 + $0x38] sm:$0xff]  ;;  %v1070_v14 = vld [vmem:[%s1170_s16 + $0x10] sm:$0xff]  ;;  %s1238_s9 = scalar_lea.vmem %s1374_s6, %s1085_s23  ;;  %s1244_s12 = scalar_lea.vmem %s1375_s7, %s1085_s23 }
  0x13   : > { %509 = vmatpush.bf16.msra.mxu0 %v1066_v2  ;;  %1081 = vmatpush.bf16.msra.mxu2 %v1066_v2  ;;  %v1069_v10 = vld [vmem:[%s1170_s16 + $0x8] sm:$0xff]  ;;  %v1075_v15 = vld [vmem:[%s1170_s16 + $0x38] sm:$0xff]  ;;  %v1064_v17 = vld [vmem:[%s1165_s13 + $0x40] sm:$0xff] }
  0x14   : > { %709 = vmatpush.bf16.msra.mxu1 %v1078_v3  ;;  %1083 = vmatpush.bf16.msra.mxu3 %v1078_v3  ;;  %v1059_v16 = vld [vmem:[%s1165_s13 + $0x18] sm:$0xff]  ;;  %v1076_v19 = vld [vmem:[%s1170_s16 + $0x40] sm:$0xff]  ;;  %v1065_v21 = vld [vmem:[%s1165_s13 + $0x48] sm:$0xff] }
  0x15   : > { %v1071_v18 = vld [vmem:[%s1170_s16 + $0x18] sm:$0xff]  ;;  %v1060_v20 = vld [vmem:[%s1165_s13 + $0x20] sm:$0xff]  ;;  %v1077_v23 = vld [vmem:[%s1170_s16 + $0x48] sm:$0xff] }
  0x16   : > { %984 = vmatmul.msk.bf16.vlgmr.msra.gmra.mxu0 %vm471_vm0, %v1056_v4  ;;  %989 = vmatmul.msk.bf16.vlgmr.msra.gmra.mxu2 %vm471_vm0, %v1061_v5  ;;  %v1072_v22 = vld [vmem:[%s1170_s16 + $0x20] sm:$0xff] }
  0x17   : > { %1042 = vmatmul.msk.bf16.vlgmr.msra.gmra.mxu1 %vm471_vm0, %v1068_v6  ;;  %1047 = vmatmul.msk.bf16.vlgmr.msra.gmra.mxu3 %vm471_vm0, %v1073_v7  ;;  %v1226_v24 = vld [vmem:[%s356_s19] ss:$0 sm:$0xff] }
  0x18   : > { %v1233_v25 = vld [vmem:[%s369_s22] ss:$0 sm:$0xff] }
  0x26   : > { %985 = vmatmul.msk.bf16.gmra.mxu0 %vm471_vm0, %v1057_v8  ;;  %990 = vmatmul.msk.bf16.gmra.mxu2 %vm471_vm0, %v1062_v9 }
  0x27   : > { %1043 = vmatmul.msk.bf16.gmra.mxu1 %vm471_vm0, %v1069_v10  ;;  %1048 = vmatmul.msk.bf16.gmra.mxu3 %vm471_vm0, %v1074_v11 }
  0x36   : > { %986 = vmatmul.msk.bf16.gmra.mxu0 %vm471_vm0, %v1058_v12  ;;  %991 = vmatmul.msk.bf16.gmra.mxu2 %vm471_vm0, %v1063_v13 }
  0x37   : > { %1044 = vmatmul.msk.bf16.gmra.mxu1 %vm471_vm0, %v1070_v14  ;;  %1049 = vmatmul.msk.bf16.gmra.mxu3 %vm471_vm0, %v1075_v15 }
  0x46   : > { %987 = vmatmul.msk.bf16.gmra.mxu0 %vm471_vm0, %v1059_v16  ;;  %992 = vmatmul.msk.bf16.gmra.mxu2 %vm471_vm0, %v1064_v17 }
  0x47   : > { %1045 = vmatmul.msk.bf16.gmra.mxu1 %vm471_vm0, %v1071_v18  ;;  %1050 = vmatmul.msk.bf16.gmra.mxu3 %vm471_vm0, %v1076_v19 }
  0x56   : > { %988 = vmatmul.msk.bf16.gmra.mxu0 %vm471_vm0, %v1060_v20  ;;  %993 = vmatmul.msk.bf16.gmra.mxu2 %vm471_vm0, %v1065_v21 }
  0x57   : > { %1046 = vmatmul.msk.bf16.gmra.mxu1 %vm471_vm0, %v1072_v22  ;;  %1051 = vmatmul.msk.bf16.gmra.mxu3 %vm471_vm0, %v1077_v23 }
  0x93   : > { %v511_v26 = vpop.f32.mrf.mxu0 }
  0x94   : > { %v512_v27 = vadd.f32 %v1226_v24, %v511_v26  ;;  %v711_v28 = vpop.f32.mrf.mxu1 }
  0x95   : > { %v712_v29 = vadd.f32 %v1233_v25, %v711_v28 }
  0x96   : > { %562 = vst.msk [vmem:[%s1238_s9] sm:$0xff] %vm561_vm1, %v512_v27 }
  0x97   : > { %761 = vst.msk [vmem:[%s1244_s12] sm:$0xff] %vm471_vm0, %v712_v29 }
  0x99   : > { %v536_v30 = vpop.f32.mrf.mxu2 }
  0x9a   : > { %v537_v31 = vadd.f32 %v1226_v24, %v536_v30  ;;  %v736_v32 = vpop.f32.mrf.mxu3 }
  0x9b   : > { %v737_v33 = vadd.f32 %v1233_v25, %v736_v32  ;;  %v513_v34 = vpop.f32.mrf.mxu0 }
  0x9c   : > { %572 = vst.msk [vmem:[%s1238_s9 + $0x50] sm:$0xff] %vm561_vm1, %v537_v31  ;;  %v514_v35 = vadd.f32 %v1226_v24, %v513_v34  ;;  %v713_v36 = vpop.f32.mrf.mxu1 }
  0x9d   : > { %771 = vst.msk [vmem:[%s1244_s12 + $0x50] sm:$0xff] %vm471_vm0, %v737_v33  ;;  %v714_v37 = vadd.f32 %v1233_v25, %v713_v36 }
  0x9e   : > { %563 = vst.msk [vmem:[%s1238_s9 + $0x8] sm:$0xff] %vm561_vm1, %v514_v35 }
  0x9f   : > { %762 = vst.msk [vmem:[%s1244_s12 + $0x8] sm:$0xff] %vm471_vm0, %v714_v37 }
  0xa1   : > { %v538_v38 = vpop.f32.mrf.mxu2 }
  0xa2   : > { %v539_v39 = vadd.f32 %v1226_v24, %v538_v38  ;;  %v738_v40 = vpop.f32.mrf.mxu3 }
  0xa3   : > { %v739_v41 = vadd.f32 %v1233_v25, %v738_v40  ;;  %v516_v42 = vpop.f32.mrf.mxu0 }
  0xa4   : > { %573 = vst.msk [vmem:[%s1238_s9 + $0x58] sm:$0xff] %vm561_vm1, %v539_v39  ;;  %v517_v43 = vadd.f32 %v1226_v24, %v516_v42  ;;  %v716_v44 = vpop.f32.mrf.mxu1 }
  0xa5   : > { %772 = vst.msk [vmem:[%s1244_s12 + $0x58] sm:$0xff] %vm471_vm0, %v739_v41  ;;  %v717_v45 = vadd.f32 %v1233_v25, %v716_v44 }
  0xa6   : > { %564 = vst.msk [vmem:[%s1238_s9 + $0x10] sm:$0xff] %vm561_vm1, %v517_v43 }
  0xa7   : > { %763 = vst.msk [vmem:[%s1244_s12 + $0x10] sm:$0xff] %vm471_vm0, %v717_v45 }
  0xa9   : > { %v541_v46 = vpop.f32.mrf.mxu2 }
  0xaa   : > { %v542_v47 = vadd.f32 %v1226_v24, %v541_v46  ;;  %v741_v48 = vpop.f32.mrf.mxu3 }
  0xab   : > { %v742_v49 = vadd.f32 %v1233_v25, %v741_v48  ;;  %v518_v50 = vpop.f32.mrf.mxu0 }
  0xac   : > { %574 = vst.msk [vmem:[%s1238_s9 + $0x60] sm:$0xff] %vm561_vm1, %v542_v47  ;;  %v519_v51 = vadd.f32 %v1226_v24, %v518_v50  ;;  %v718_v52 = vpop.f32.mrf.mxu1 }
  0xad   : > { %773 = vst.msk [vmem:[%s1244_s12 + $0x60] sm:$0xff] %vm471_vm0, %v742_v49  ;;  %v719_v53 = vadd.f32 %v1233_v25, %v718_v52 }
  0xae   : > { %565 = vst.msk [vmem:[%s1238_s9 + $0x18] sm:$0xff] %vm561_vm1, %v519_v51 }
  0xaf   : > { %764 = vst.msk [vmem:[%s1244_s12 + $0x18] sm:$0xff] %vm471_vm0, %v719_v53 }
  0xb1   : > { %v543_v54 = vpop.f32.mrf.mxu2 }
  0xb2   : > { %v544_v55 = vadd.f32 %v1226_v24, %v543_v54  ;;  %v743_v56 = vpop.f32.mrf.mxu3 }
  0xb3   : > { %v744_v57 = vadd.f32 %v1233_v25, %v743_v56  ;;  %v521_v58 = vpop.f32.mrf.mxu0 }
  0xb4   : > { %575 = vst.msk [vmem:[%s1238_s9 + $0x68] sm:$0xff] %vm561_vm1, %v544_v55  ;;  %v522_v59 = vadd.f32 %v1226_v24, %v521_v58  ;;  %v721_v60 = vpop.f32.mrf.mxu1 }
  0xb5   : > { %774 = vst.msk [vmem:[%s1244_s12 + $0x68] sm:$0xff] %vm471_vm0, %v744_v57  ;;  %v722_v61 = vadd.f32 %v1233_v25, %v721_v60 }
  0xb6   : > { %566 = vst.msk [vmem:[%s1238_s9 + $0x20] sm:$0xff] %vm561_vm1, %v522_v59 }
  0xb7   : > { %765 = vst.msk [vmem:[%s1244_s12 + $0x20] sm:$0xff] %vm471_vm0, %v722_v61 }
  0xb9   : > { %v546_v62 = vpop.f32.mrf.mxu2 }
  0xba   : > { %v547_v63 = vadd.f32 %v1226_v24, %v546_v62  ;;  %v746_v0 = vpop.f32.mrf.mxu3 }
  0xbb   : > { %v747_v1 = vadd.f32 %v1233_v25, %v746_v0  ;;  %v523_v2 = vpop.f32.mrf.mxu0 }
  0xbc   : > { %576 = vst.msk [vmem:[%s1238_s9 + $0x70] sm:$0xff] %vm561_vm1, %v547_v63  ;;  %v524_v3 = vadd.f32 %v1226_v24, %v523_v2  ;;  %v723_v4 = vpop.f32.mrf.mxu1 }
  0xbd   : > { %775 = vst.msk [vmem:[%s1244_s12 + $0x70] sm:$0xff] %vm471_vm0, %v747_v1  ;;  %v724_v5 = vadd.f32 %v1233_v25, %v723_v4 }
  0xbe   : > { %567 = vst.msk [vmem:[%s1238_s9 + $0x28] sm:$0xff] %vm561_vm1, %v524_v3 }
  0xbf   : > { %766 = vst.msk [vmem:[%s1244_s12 + $0x28] sm:$0xff] %vm471_vm0, %v724_v5 }
  0xc1   : > { %v548_v6 = vpop.f32.mrf.mxu2 }
  0xc2   : > { %v549_v7 = vadd.f32 %v1226_v24, %v548_v6  ;;  %v748_v8 = vpop.f32.mrf.mxu3 }
  0xc3   : > { %v749_v9 = vadd.f32 %v1233_v25, %v748_v8  ;;  %v526_v10 = vpop.f32.mrf.mxu0 }
  0xc4   : > { %577 = vst.msk [vmem:[%s1238_s9 + $0x78] sm:$0xff] %vm561_vm1, %v549_v7  ;;  %v527_v11 = vadd.f32 %v1226_v24, %v526_v10  ;;  %v726_v12 = vpop.f32.mrf.mxu1 }
  0xc5   : > { %776 = vst.msk [vmem:[%s1244_s12 + $0x78] sm:$0xff] %vm471_vm0, %v749_v9  ;;  %v727_v13 = vadd.f32 %v1233_v25, %v726_v12 }
  0xc6   : > { %568 = vst.msk [vmem:[%s1238_s9 + $0x30] sm:$0xff] %vm561_vm1, %v527_v11 }
  0xc7   : > { %767 = vst.msk [vmem:[%s1244_s12 + $0x30] sm:$0xff] %vm471_vm0, %v727_v13 }
  0xc9   : > { %v551_v14 = vpop.f32.mrf.mxu2 }
  0xca   : > { %v552_v15 = vadd.f32 %v1226_v24, %v551_v14  ;;  %v751_v16 = vpop.f32.mrf.mxu3 }
  0xcb   : > { %v752_v17 = vadd.f32 %v1233_v25, %v751_v16  ;;  %v528_v18 = vpop.f32.mrf.mxu0 }
  0xcc   : > { %578 = vst.msk [vmem:[%s1238_s9 + $0x80] sm:$0xff] %vm561_vm1, %v552_v15  ;;  %v529_v19 = vadd.f32 %v1226_v24, %v528_v18  ;;  %v728_v20 = vpop.f32.mrf.mxu1 }
  0xcd   : > { %777 = vst.msk [vmem:[%s1244_s12 + $0x80] sm:$0xff] %vm471_vm0, %v752_v17  ;;  %v729_v21 = vadd.f32 %v1233_v25, %v728_v20 }
  0xce   : > { %569 = vst.msk [vmem:[%s1238_s9 + $0x38] sm:$0xff] %vm561_vm1, %v529_v19 }
  0xcf   : > { %768 = vst.msk [vmem:[%s1244_s12 + $0x38] sm:$0xff] %vm471_vm0, %v729_v21 }
  0xd1   : > { %v553_v22 = vpop.f32.mrf.mxu2 }
  0xd2   : > { %v554_v23 = vadd.f32 %v1226_v24, %v553_v22  ;;  %v753_v26 = vpop.f32.mrf.mxu3 }
  0xd3   : > { %v754_v27 = vadd.f32 %v1233_v25, %v753_v26  ;;  %v531_v28 = vpop.f32.mrf.mxu0 }
  0xd4   : > { %579 = vst.msk [vmem:[%s1238_s9 + $0x88] sm:$0xff] %vm561_vm1, %v554_v23  ;;  %v532_v29 = vadd.f32 %v1226_v24, %v531_v28  ;;  %v731_v30 = vpop.f32.mrf.mxu1 }
  0xd5   : > { %778 = vst.msk [vmem:[%s1244_s12 + $0x88] sm:$0xff] %vm471_vm0, %v754_v27  ;;  %v732_v31 = vadd.f32 %v1233_v25, %v731_v30 }
  0xd6   : > { %570 = vst.msk [vmem:[%s1238_s9 + $0x40] sm:$0xff] %vm561_vm1, %v532_v29 }
  0xd7   : > { %769 = vst.msk [vmem:[%s1244_s12 + $0x40] sm:$0xff] %vm471_vm0, %v732_v31 }
  0xd9   : > { %v556_v32 = vpop.f32.mrf.mxu2 }
  0xda   : > { %v557_v33 = vadd.f32 %v1226_v24, %v556_v32  ;;  %v756_v34 = vpop.f32.mrf.mxu3 }
  0xdb   : > { %v757_v35 = vadd.f32 %v1233_v25, %v756_v34  ;;  %v533_v36 = vpop.f32.mrf.mxu0 }
  0xdc   : > { %580 = vst.msk [vmem:[%s1238_s9 + $0x90] sm:$0xff] %vm561_vm1, %v557_v33  ;;  %v534_v37 = vadd.f32 %v1226_v24, %v533_v36  ;;  %v733_v38 = vpop.f32.mrf.mxu1 }
  0xdd   : > { %779 = vst.msk [vmem:[%s1244_s12 + $0x90] sm:$0xff] %vm471_vm0, %v757_v35  ;;  %v734_v39 = vadd.f32 %v1233_v25, %v733_v38 }
  0xde   : > { %571 = vst.msk [vmem:[%s1238_s9 + $0x48] sm:$0xff] %vm561_vm1, %v534_v37 }
  0xdf   : > { %770 = vst.msk [vmem:[%s1244_s12 + $0x48] sm:$0xff] %vm471_vm0, %v734_v39 }
  0xe1   : > { %v558_v40 = vpop.f32.mrf.mxu2 }
  0xe2   : > { %v559_v41 = vadd.f32 %v1226_v24, %v558_v40  ;;  %v758_v42 = vpop.f32.mrf.mxu3 }
  0xe3   : > { %v759_v43 = vadd.f32 %v1233_v25, %v758_v42 }
  0xe4   : > { %581 = vst.msk [vmem:[%s1238_s9 + $0x98] sm:$0xff] %vm561_vm1, %v559_v41 }
  0xe5   : > { %780 = vst.msk [vmem:[%s1244_s12 + $0x98] sm:$0xff] %vm471_vm0, %v759_v43 }
  0xe6 PF: > { %s18_s24 = sadd.s32 1, %s1102_s24  }
  0xe7   : > { %p15_p4 = scmp.ge.s32.totalorder %s18_s24, 4  }
  0xe9   :  { %17 = sbr.rel (!%p15_p4) target bundleno = 1 (0x1), region = 101 }

// kernel: coattn_forward.10
= control target key start
LH: loop header
LB: loop body
LE: loop exit
PB: predicated region body
PF: predicated region fallthrough
CT: control target
= control target key end

     0   :  { %s2598_s21 = smov 0   ;;  %s3692_s0 = inlined_call_operand.vmem [shape: bf16[2,160,32], index: 0, kind: input, shape index: {}]   ;;  %s3693_s1 = inlined_call_operand.vmem [shape: f32[2,160,32], index: 1, kind: input, shape index: {}]   ;;  %s3694_s2 = inlined_call_operand.vmem [shape: bf16[2,32,32], index: 2, kind: input, shape index: {}]   ;;  %s3695_s3 = inlined_call_operand.vmem [shape: f32[2,1,32], index: 3, kind: input, shape index: {}]   ;;  %s3696_s4 = inlined_call_operand.vmem [shape: f32[2,1,32], index: 4, kind: input, shape index: {}]   ;;  %s3697_s5 = inlined_call_operand.vmem [shape: f32[2,1,32], index: 5, kind: input, shape index: {}]   ;;  %s3698_s6 = inlined_call_operand.vmem [shape: bf16[2,32,64], index: 6, kind: input, shape index: {}]   ;;  %s3699_s7 = inlined_call_operand.vmem [shape: f32[2,1,64], index: 7, kind: input, shape index: {}]   ;;  %s3700_s8 = inlined_call_operand.vmem [shape: bf16[2,64,32], index: 8, kind: input, shape index: {}]   ;;  %s3701_s9 = inlined_call_operand.vmem [shape: f32[2,1,32], index: 9, kind: input, shape index: {}]   ;;  %s3702_s10 = inlined_call_operand.vmem [shape: f32[2,1,32], index: 10, kind: input, shape index: {}]   ;;  %s3703_s11 = inlined_call_operand.vmem [shape: f32[2,1,32], index: 11, kind: input, shape index: {}]   ;;  %s3704_s12 = inlined_call_operand.vmem [shape: f32[2,160,32], index: 12, kind: output, shape index: {}]  }
   0x1 LB: > { %3707 = sst [smem:[#allocation2_spill]] %s2530_s21  ;;  %s2277_s22 = sadd.s32 4294967295, %s2530_s21   ;;  %s2530_s21 = sphi %s2598_s21, %s22_s21  }
   0x2   : > { %p2281_p0 = scmp.ge.s32.totalorder %s2530_s21, 1  ;;  %p458_p1 = scmp.lt.s32.totalorder %s2530_s21, 3 }
   0x4   : > { %p459_p2 = pnand %p2281_p0, %p458_p1 }
   0x5   : > { %p541_p3 = scmp.lt.s32.totalorder (!%p459_p2), %s2277_s22, 1 }
   0x6   : > { %462 = sbr.rel (%p459_p2) target bundleno = 1276 (0x4fc), region = 68 }
   0xb   : > { %s3716_s22 = smov (!%p541_p3, %s2277_s22), 1  ;;  %vm683_vm0 = vcmask 261120   ;;  %v2532_v48 = vmov 32.0  }
   0xc   : > { %s3706_s23 = sshll.u32 %s3716_s22, 4  ;;  %s561_s14 = scalar_lea.vmem %s3696_s4, %s3716_s22  ;;  %2442 = vrcp.f32 %v2532_v48 }
   0xd   : > { %s555_s29 = scalar_lea.vmem %s3694_s2, %s3706_s23  ;;  %s564_s17 = scalar_lea.vmem %s3697_s5, %s3716_s22 }
   0xe   : > { %s572_s20 = scalar_lea.vmem %s3699_s7, %s3716_s22  ;;  %v2409_v0 = vld [vmem:[%s555_s29 + $0x8] sm:$0xff]  ;;  %s580_s26 = scalar_lea.vmem %s3701_s9, %s3716_s22  ;;  %v2408_v1 = vld [vmem:[%s555_s29] sm:$0xff] }
   0xf   : > { %s583_s28 = scalar_lea.vmem %s3702_s10, %s3716_s22  ;;  %s586_s13 = scalar_lea.vmem %s3703_s11, %s3716_s22  ;;  %720 = vmatpush.bf16.msra.mxu0 %v2409_v0  ;;  %2416 = vmatpush.bf16.msra.mxu3 %v2409_v0 }
  0x10   : > { %s2424_s15 = smul.u32 80, %s3716_s22  ;;  %s3708_s24 = scalar_lea.vmem %s3695_s3, %s3716_s22 }
  0x11   : > { %s2425_s21 = smul.u32 160, %s3716_s22  ;;  %v2668_v9 = vld [vmem:[%s3708_s24] ss:$0 sm:$0xff] }
  0x12   : > { %s2646_s19 = scalar_lea.vmem %s3692_s0, %s2424_s15  ;;  %v2443_v49 = vpop.eup %2442  ;;  %s3709_s15 = sshll.u32 %s3716_s22, 4 }
  0x13   : > { %721 = vmatpush.bf16.msra.mxu0 %v2408_v1  ;;  %2417 = vmatpush.bf16.msra.mxu3 %v2408_v1  ;;  %v2398_v2 = vld [vmem:[%s2646_s19] sm:$0xff]  ;;  %v2399_v3 = vld [vmem:[%s2646_s19 + $0x8] sm:$0xff]  ;;  %v2400_v4 = vld [vmem:[%s2646_s19 + $0x10] sm:$0xff]  ;;  %s2675_s30 = scalar_lea.vmem %s3693_s1, %s2425_s21  ;;  %v876_v50 = vmul.f32 32.0, %v2443_v49  ;;  %vm880_vm1 = vweird.f32 %v2443_v49 }
  0x14   : > { %v2401_v5 = vld [vmem:[%s2646_s19 + $0x18] sm:$0xff]  ;;  %v2402_v6 = vld [vmem:[%s2646_s19 + $0x20] sm:$0xff]  ;;  %v2403_v8 = vld [vmem:[%s2646_s19 + $0x28] sm:$0xff] }
  0x15   : > { %v2406_v7 = vld [vmem:[%s2646_s19 + $0x40] sm:$0xff]  ;;  %v2407_v15 = vld [vmem:[%s2646_s19 + $0x48] sm:$0xff]  ;;  %v2404_v19 = vld [vmem:[%s2646_s19 + $0x30] sm:$0xff]  ;;  %v877_v51 = vsub.f32 1.0, %v876_v50 }
  0x16   : > { %2339 = vmatmul.msk.bf16.vlgmr.msra.gmra.mxu0 %vm683_vm0, %v2398_v2  ;;  %2347 = vmatmul.msk.bf16.vlgmr.msra.gmra.mxu3 %vm683_vm0, %v2406_v7  ;;  %v773_v11 = vld [vmem:[%s2675_s30] sm:$0xff]  ;;  %v774_v17 = vld [vmem:[%s2675_s30 + $0x8] sm:$0xff]  ;;  %v775_v23 = vld [vmem:[%s2675_s30 + $0x10] sm:$0xff] }
  0x17   : > { %v2405_v27 = vld [vmem:[%s2646_s19 + $0x38] sm:$0xff]  ;;  %v777_v34 = vld [vmem:[%s2675_s30 + $0x20] sm:$0xff]  ;;  %v778_v39 = vld [vmem:[%s2675_s30 + $0x28] sm:$0xff]  ;;  %v878_v52 = vmul.f32 %v2443_v49, %v877_v51  ;;  %s569_s19 = scalar_lea.vmem %s3698_s6, %s3709_s15 }
  0x18   : > { %v776_v29 = vld [vmem:[%s2675_s30 + $0x18] sm:$0xff]  ;;  %v779_v44 = vld [vmem:[%s2675_s30 + $0x30] sm:$0xff]  ;;  %v781_v7 = vld [vmem:[%s2675_s30 + $0x40] sm:$0xff] }
  0x19   : > { %v879_v54 = vadd.f32 %v2443_v49, %v878_v52  ;;  %v780_v0 = vld [vmem:[%s2675_s30 + $0x38] sm:$0xff] }
  0x1b   : > { %v2719_v55 = vsel %vm880_vm1, %v2443_v49, %v879_v54 }
  0x26   : > { %2340 = vmatmul.msk.bf16.gmra.mxu0 %vm683_vm0, %v2399_v3  ;;  %2348 = vmatmul.msk.bf16.gmra.mxu3 %vm683_vm0, %v2407_v15 }
  0x36   : > { %2341 = vmatmul.msk.bf16.gmra.mxu0 %vm683_vm0, %v2400_v4 }
  0x46   : > { %2342 = vmatmul.msk.bf16.gmra.mxu0 %vm683_vm0, %v2401_v5 }
  0x56   : > { %2343 = vmatmul.msk.bf16.gmra.mxu0 %vm683_vm0, %v2402_v6 }
  0x66   : > { %2344 = vmatmul.msk.bf16.gmra.mxu0 %vm683_vm0, %v2403_v8 }
  0x76   : > { %2345 = vmatmul.msk.bf16.gmra.mxu0 %vm683_vm0, %v2404_v19 }
  0x86   : > { %2346 = vmatmul.msk.bf16.gmra.mxu0 %vm683_vm0, %v2405_v27 }
  0x93   : > { %v723_v10 = vpop.f32.mrf.mxu0 }
  0x94   : > { %v724_v12 = vadd.f32 %v2668_v9, %v723_v10 }
  0x96   : > { %v793_v13 = vadd.f32 %v773_v11, %v724_v12 }
  0x98   : > { %v815_v14 = vsel %vm683_vm0, %v793_v13, 0.0 }
  0x99   : > { %816 = vadd.xlane.f32.xlu0 %v815_v14  ;;  %v763_v19 = vpop.f32.mrf.mxu3 }
  0x9b   : > { %v725_v16 = vpop.f32.mrf.mxu0 }
  0x9c   : > { %v726_v18 = vadd.f32 %v2668_v9, %v725_v16 }
  0x9e   : > { %v794_v20 = vadd.f32 %v774_v17, %v726_v18 }
  0xa0   : > { %v818_v21 = vsel %vm683_vm0, %v794_v20, 0.0 }
  0xa1   : > { %819 = vadd.xlane.f32.xlu0 %v818_v21 }
  0xa3   : > { %v728_v22 = vpop.f32.mrf.mxu0 }
  0xa4   : > { %v729_v24 = vadd.f32 %v2668_v9, %v728_v22 }
  0xa6   : > { %v2689_v25 = vadd.f32 %v775_v23, %v729_v24 }
  0xa8   : > { %v821_v26 = vsel %vm683_vm0, %v2689_v25, 0.0 }
  0xa9   : > { %822 = vadd.xlane.f32.xlu1 %v821_v26 }
  0xab   : > { %v730_v28 = vpop.f32.mrf.mxu0 }
  0xac   : > { %v731_v30 = vadd.f32 %v2668_v9, %v730_v28 }
  0xae   : > { %v2696_v31 = vadd.f32 %v776_v29, %v731_v30  ;;  %v783_v30 = vld [vmem:[%s2675_s30 + $0x50] sm:$0xff] }
  0xb0   : > { %v824_v32 = vsel %vm683_vm0, %v2696_v31, 0.0 }
  0xb1   : > { %825 = vadd.xlane.f32.xlu1 %v824_v32 }
  0xb3   : > { %v733_v33 = vpop.f32.mrf.mxu0 }
  0xb4   : > { %v734_v35 = vadd.f32 %v2668_v9, %v733_v33  ;;  %v765_v33 = vpop.f32.mrf.mxu3 }
  0xb6   : > { %v2703_v36 = vadd.f32 %v777_v34, %v734_v35 }
  0xb8   : > { %v827_v37 = vsel %vm683_vm0, %v2703_v36, 0.0 }
  0xb9   : > { %828 = vadd.xlane.f32.xlu2 %v827_v37 }
  0xbb   : > { %v735_v38 = vpop.f32.mrf.mxu0 }
  0xbc   : > { %v736_v40 = vadd.f32 %v2668_v9, %v735_v38  ;;  %v2785_v50 = vpop.f32.mrf.mxu3 }
  0xbe   : > { %v2709_v41 = vadd.f32 %v778_v39, %v736_v40 }
  0xc0   : > { %v830_v42 = vsel %vm683_vm0, %v2709_v41, 0.0 }
  0xc1   : > { %831 = vadd.xlane.f32.xlu2 %v830_v42  ;;  %v766_v42 = vadd.f32 %v2668_v9, %v765_v33  ;;  %v2410_v33 = vld [vmem:[%s569_s19] sm:$0xff] }
  0xc3   : > { %v738_v43 = vpop.f32.mrf.mxu0 }
  0xc4   : > { %v739_v45 = vadd.f32 %v2668_v9, %v738_v43  ;;  %v784_v43 = vld [vmem:[%s2675_s30 + $0x58] sm:$0xff] }
  0xc6   : > { %v2715_v46 = vadd.f32 %v779_v44, %v739_v45  ;;  %v790_v45 = vld [vmem:[%s2675_s30 + $0x88] sm:$0xff] }
  0xc7   : > { %v2787_v51 = vadd.f32 %v790_v45, %v766_v42 }
  0xc8   : > { %v833_v47 = vsel %vm683_vm0, %v2715_v46, 0.0 }
  0xc9   : > { %834 = vadd.xlane.f32.xlu2 %v833_v47 }
  0xcb   : > { %v740_v53 = vpop.f32.mrf.mxu0 }
  0xcc   : > { %v741_v61 = vadd.f32 %v2668_v9, %v740_v53  ;;  %v764_v53 = vadd.f32 %v2668_v9, %v763_v19 }
  0xce   : > { %v2732_v4 = vadd.f32 %v780_v0, %v741_v61 }
  0xd0   : > { %v836_v8 = vsel %vm683_vm0, %v2732_v4, 0.0 }
  0xd3   : > { %v743_v56 = vpop.f32.mrf.mxu0 }
  0xd4   : > { %v744_v6 = vadd.f32 %v2668_v9, %v743_v56 }
  0xdb   : > { %v745_v2 = vpop.f32.mrf.mxu0 }
  0xdc   : > { %v746_v18 = vadd.f32 %v2668_v9, %v745_v2 }
  0xe3   : > { %v748_v15 = vpop.f32.mrf.mxu0 }
  0xe4   : > { %v749_v28 = vadd.f32 %v2668_v9, %v748_v15  ;;  %v786_v15 = vld [vmem:[%s2675_s30 + $0x68] sm:$0xff] }
  0xe6   : > { %v2768_v35 = vadd.f32 %v783_v30, %v749_v28  ;;  %v2411_v28 = vld [vmem:[%s569_s19 + $0x8] sm:$0xff] }
  0xe7   : > { %1374 = vmatpush.bf16.msra.mxu1 %v2411_v28  ;;  %2418 = vmatpush.bf16.msrb.mxu3 %v2411_v28  ;;  %v2885_v28 = vld [vmem:[%s561_s14] ss:$0 sm:$0xff]  ;;  %s3493_s14 = scalar_lea.vmem %s3704_s12, %s2425_s21 }
  0xe8   : > { %v845_v39 = vsel %vm683_vm0, %v2768_v35, 0.0 }
  0xeb   : > { %v750_v29 = vpop.f32.mrf.mxu0  ;;  %1375 = vmatpush.bf16.msra.mxu1 %v2410_v33  ;;  %2419 = vmatpush.bf16.msrb.mxu3 %v2410_v33 }
  0xec   : > { %v751_v40 = vadd.f32 %v2668_v9, %v750_v29 }
  0xee   : > { %v2783_v49 = vadd.f32 %v784_v43, %v751_v40 }
  0xf0   : > { %v848_v54 = vsel %vm683_vm0, %v2783_v49, 0.0 }
  0xf3   : > { %v753_v47 = vpop.f32.mrf.mxu0 }
 0x10c   : > { %v817_v57 = vpop.xlane.xlu0 %816 }
 0x10d   : > { %v882_v58 = vmul.f32 %v2719_v55, %v817_v57  ;;  %v866_v57 = vsel %vm683_vm0, %v2787_v51, 0.0 }
 0x10f   : > { %v2722_v59 = vsub.f32 %v793_v13, %v882_v58  ;;  %v2742_v13 = vadd.f32 %v781_v7, %v744_v6  ;;  %v754_v58 = vadd.f32 %v2668_v9, %v753_v47  ;;  %v770_v6 = vpop.f32.mrf.mxu3 }
 0x111   : > { %v922_v60 = vmul.f32 %v2722_v59, %v2722_v59  ;;  %v839_v16 = vsel %vm683_vm0, %v2742_v13, 0.0 }
 0x113   : > { %v942_v62 = vsel %vm683_vm0, %v922_v60, 0.0  ;;  %v789_v60 = vld [vmem:[%s2675_s30 + $0x80] sm:$0xff] }
 0x114   : > { %943 = vadd.xlane.f32.xlu0 %v942_v62  ;;  %v820_v63 = vpop.xlane.xlu0 %819  ;;  %v785_v62 = vld [vmem:[%s2675_s30 + $0x60] sm:$0xff]  ;;  %v2804_v0 = vadd.f32 %v789_v60, %v764_v53 }
 0x115   : > { %v883_v1 = vmul.f32 %v2719_v55, %v820_v63  ;;  %v2806_v2 = vadd.f32 %v785_v62, %v754_v58 }
 0x117   : > { %v2730_v3 = vsub.f32 %v794_v20, %v883_v1  ;;  %v782_v20 = vld [vmem:[%s2675_s30 + $0x48] sm:$0xff]  ;;  %v755_v1 = vpop.f32.mrf.mxu0 }
 0x118   : > { %v2755_v24 = vadd.f32 %v782_v20, %v746_v18 }
 0x119   : > { %v923_v5 = vmul.f32 %v2730_v3, %v2730_v3 }
 0x11a   : > { %v842_v27 = vsel %vm683_vm0, %v2755_v24, 0.0 }
 0x11b   : > { %v945_v10 = vsel %vm683_vm0, %v923_v5, 0.0 }
 0x11c   : > { %v823_v11 = vpop.xlane.xlu1 %822  ;;  %837 = vadd.xlane.f32.xlu0 %v836_v8  ;;  %946 = vadd.xlane.f32.xlu1 %v945_v10  ;;  %v863_v8 = vsel %vm683_vm0, %v2804_v0, 0.0  ;;  %v756_v10 = vadd.f32 %v2668_v9, %v755_v1 }
 0x11d   : > { %v884_v12 = vmul.f32 %v2719_v55, %v823_v11  ;;  %v851_v11 = vsel %vm683_vm0, %v2806_v2, 0.0 }
 0x11f   : > { %v2745_v14 = vsub.f32 %v2689_v25, %v884_v12  ;;  %v771_v12 = vadd.f32 %v2668_v9, %v770_v6  ;;  %v758_v19 = vpop.f32.mrf.mxu0 }
 0x121   : > { %v924_v17 = vmul.f32 %v2745_v14, %v2745_v14 }
 0x123   : > { %v948_v21 = vsel %vm683_vm0, %v924_v17, 0.0  ;;  %v2822_v17 = vadd.f32 %v786_v15, %v756_v10 }
 0x124   : > { %v826_v22 = vpop.xlane.xlu1 %825  ;;  %840 = vadd.xlane.f32.xlu0 %v839_v16  ;;  %949 = vadd.xlane.f32.xlu1 %v948_v21 }
 0x125   : > { %v885_v23 = vmul.f32 %v2719_v55, %v826_v22  ;;  %v854_v20 = vsel %vm683_vm0, %v2822_v17, 0.0  ;;  %v759_v22 = vadd.f32 %v2668_v9, %v758_v19 }
 0x127   : > { %v2758_v25 = vsub.f32 %v2696_v31, %v885_v23  ;;  %v787_v23 = vld [vmem:[%s2675_s30 + $0x70] sm:$0xff] }
 0x129   : > { %v925_v26 = vmul.f32 %v2758_v25, %v2758_v25 }
 0x12b   : > { %v951_v32 = vsel %vm683_vm0, %v925_v26, 0.0  ;;  %v2832_v26 = vadd.f32 %v787_v23, %v759_v22 }
 0x12c   : > { %v829_v34 = vpop.xlane.xlu2 %828  ;;  %952 = vadd.xlane.f32.xlu2 %v951_v32  ;;  %843 = vadd.xlane.f32.xlu1 %v842_v27 }
 0x12d   : > { %v886_v31 = vmul.f32 %v2719_v55, %v829_v34  ;;  %v857_v27 = vsel %vm683_vm0, %v2832_v26, 0.0 }
 0x12f   : > { %v2771_v37 = vsub.f32 %v2703_v36, %v886_v31 }
 0x131   : > { %v926_v38 = vmul.f32 %v2771_v37, %v2771_v37 }
 0x133   : > { %v954_v44 = vsel %vm683_vm0, %v926_v38, 0.0 }
 0x134   : > { %v832_v48 = vpop.xlane.xlu2 %831  ;;  %955 = vadd.xlane.f32.xlu2 %v954_v44  ;;  %846 = vadd.xlane.f32.xlu1 %v845_v39 }
 0x135   : > { %v887_v36 = vmul.f32 %v2719_v55, %v832_v48  ;;  %v769_v48 = vadd.f32 %v2668_v9, %v2785_v50 }
 0x137   : > { %v2790_v52 = vsub.f32 %v2709_v41, %v887_v36 }
 0x139   : > { %v927_v56 = vmul.f32 %v2790_v52, %v2790_v52 }
 0x13b   : > { %v957_v61 = vsel %vm683_vm0, %v927_v56, 0.0 }
 0x13c   : > { %v835_v41 = vpop.xlane.xlu2 %834  ;;  %849 = vadd.xlane.f32.xlu2 %v848_v54  ;;  %958 = vadd.xlane.f32.xlu0 %v957_v61  ;;  %v760_v61 = vpop.f32.mrf.mxu0 }
 0x13d   : > { %v888_v63 = vmul.f32 %v2719_v55, %v835_v41  ;;  %867 = vadd.xlane.f32.xlu1 %v866_v57  ;;  %v791_v57 = vld [vmem:[%s2675_s30 + $0x90] sm:$0xff] }
 0x13e   : > { %v2860_v50 = vadd.f32 %v791_v57, %v769_v48 }
 0x13f   : > { %v2809_v5 = vsub.f32 %v2715_v46, %v888_v63  ;;  %v792_v46 = vld [vmem:[%s2675_s30 + $0x98] sm:$0xff] }
 0x140   : > { %v2824_v18 = vadd.f32 %v792_v46, %v771_v12 }
 0x141   : > { %v928_v7 = vmul.f32 %v2809_v5, %v2809_v5 }
 0x142   : > { %v872_v21 = vsel %vm683_vm0, %v2824_v18, 0.0 }
 0x143   : > { %v960_v16 = vsel %vm683_vm0, %v928_v7, 0.0 }
 0x144   : > { %961 = vadd.xlane.f32.xlu2 %v960_v16  ;;  %864 = vadd.xlane.f32.xlu0 %v863_v8  ;;  %v761_v8 = vadd.f32 %v2668_v9, %v760_v61 }
 0x145   : > { %852 = vadd.xlane.f32.xlu1 %v851_v11  ;;  %v788_v11 = vld [vmem:[%s2675_s30 + $0x78] sm:$0xff] }
 0x146   : > { %v2878_v22 = vadd.f32 %v788_v11, %v761_v8 }
 0x14c   : > { %855 = vadd.xlane.f32.xlu2 %v854_v20 }
 0x14d   : > { %873 = vadd.xlane.f32.xlu1 %v872_v21 }
 0x155   : > { %858 = vadd.xlane.f32.xlu1 %v857_v27 }
 0x187   : > { %v944_v29 = vpop.xlane.xlu0 %943 }
 0x188   : > { %v1002_v30 = vmul.f32 %v944_v29, %v2719_v55 }
 0x18a   : > { %v1022_v32 = vadd.f32 1e-05, %v1002_v30 }
 0x18c   : > { %2444 = vrsqrt.f32 %v1022_v32  ;;  %vm1048_vm3 = vweird.f32 %v1022_v32 }
 0x18f   : > { %v947_v34 = vpop.xlane.xlu1 %946  ;;  %v838_v31 = vpop.xlane.xlu0 %837 }
 0x190   : > { %v1003_v38 = vmul.f32 %v947_v34, %v2719_v55  ;;  %v889_v39 = vmul.f32 %v2719_v55, %v838_v31 }
 0x192   : > { %v2445_v40 = vpop.eup %2444  ;;  %v1023_v42 = vadd.f32 1e-05, %v1003_v38  ;;  %v2845_v43 = vsub.f32 %v2732_v4, %v889_v39  ;;  %v860_v38 = vsel %vm683_vm0, %v2878_v22, 0.0 }
 0x193   : > { %v1043_v44 = vmul.f32 %v2445_v40, %v1022_v32  ;;  %vm1049_vm2 = vweird.f32 %v2445_v40 }
 0x194   : > { %2446 = vrsqrt.f32 %v1023_v42  ;;  %v929_v45 = vmul.f32 %v2845_v43, %v2845_v43  ;;  %vm2867_vm4 = vmor %vm1048_vm3, %vm1049_vm2  ;;  %vm1058_vm6 = vweird.f32 %v1023_v42 }
 0x195   : > { %v1044_v47 = vmul.f32 %v2445_v40, %v1043_v44 }
 0x196   : > { %v963_v36 = vsel %vm683_vm0, %v929_v45, 0.0 }
 0x197   : > { %v1045_v53 = vmul.f32 0.5, %v1044_v47  ;;  %v950_v54 = vpop.xlane.xlu1 %949  ;;  %964 = vadd.xlane.f32.xlu0 %v963_v36  ;;  %v841_v56 = vpop.xlane.xlu0 %840 }
 0x198   : > { %v1004_v58 = vmul.f32 %v950_v54, %v2719_v55  ;;  %v890_v4 = vmul.f32 %v2719_v55, %v841_v56 }
 0x199   : > { %v1046_v60 = vsub.f32 1.5, %v1045_v53 }
 0x19a   : > { %v2447_v62 = vpop.eup %2446  ;;  %v2855_v41 = vadd.f32 1e-05, %v1004_v58  ;;  %v2858_v63 = vsub.f32 %v2742_v13, %v890_v4  ;;  %v869_v13 = vsel %vm683_vm0, %v2860_v50, 0.0 }
 0x19b   : > { %v1047_v1 = vmul.f32 %v2445_v40, %v1046_v60  ;;  %v1053_v6 = vmul.f32 %v2447_v62, %v1023_v42  ;;  %vm1059_vm5 = vweird.f32 %v2447_v62 }
 0x19c   : > { %2448 = vrsqrt.f32 %v2855_v41  ;;  %v930_v7 = vmul.f32 %v2858_v63, %v2858_v63  ;;  %vm1060_vm7 = vmor %vm1058_vm6, %vm1059_vm5  ;;  %vm1068_vm9 = vweird.f32 %v2855_v41 }
 0x19d   : > { %v1054_v10 = vmul.f32 %v2447_v62, %v1053_v6  ;;  %v1051_v16 = vsel %vm2867_vm4, %v2445_v40, %v1047_v1 }
 0x19e   : > { %v966_v15 = vsel %vm683_vm0, %v930_v7, 0.0  ;;  %v1242_v29 = vmul.f32 %v1051_v16, %v2722_v59  ;;  %v2901_v59 = vld [vmem:[%s564_s17] ss:$0 sm:$0xff]  ;;  %s2397_s17 = sshll.u32 %s3716_s22, 5 }
 0x19f   : > { %v1055_v46 = vmul.f32 0.5, %v1054_v10  ;;  %v953_v19 = vpop.xlane.xlu2 %952  ;;  %v844_v20 = vpop.xlane.xlu1 %843  ;;  %870 = vadd.xlane.f32.xlu0 %v869_v13  ;;  %967 = vadd.xlane.f32.xlu2 %v966_v15  ;;  %s3014_s30 = scalar_lea.vmem %s3700_s8, %s2397_s17 }
 0x1a0   : > { %v1005_v9 = vmul.f32 %v953_v19, %v2719_v55  ;;  %v891_v21 = vmul.f32 %v2719_v55, %v844_v20  ;;  %v1265_v44 = vmul.f32 %v2885_v28, %v1242_v29 }
 0x1a1   : > { %v1056_v23 = vsub.f32 1.5, %v1055_v46 }
 0x1a2   : > { %v2449_v27 = vpop.eup %2448  ;;  %v1025_v30 = vadd.f32 1e-05, %v1005_v9  ;;  %v2889_v32 = vsub.f32 %v2755_v24, %v891_v21  ;;  %v2915_v4 = vadd.f32 %v2901_v59, %v1265_v44 }
 0x1a3   : > { %v1057_v33 = vmul.f32 %v2447_v62, %v1056_v23  ;;  %v1063_v34 = vmul.f32 %v2449_v27, %v2855_v41  ;;  %vm1069_vm8 = vweird.f32 %v2449_v27 }
 0x1a4   : > { %2450 = vrsqrt.f32 %v1025_v30  ;;  %v931_v31 = vmul.f32 %v2889_v32, %v2889_v32  ;;  %vm1070_vm10 = vmor %vm1068_vm9, %vm1069_vm8  ;;  %vm1078_vm12 = vweird.f32 %v1025_v30 }
 0x1a5   : > { %v1061_v39 = vsel %vm1060_vm7, %v2447_v62, %v1057_v33  ;;  %v1064_v40 = vmul.f32 %v2449_v27, %v1063_v34 }
 0x1a6   : > { %v1243_v24 = vmul.f32 %v1061_v39, %v2730_v3  ;;  %v969_v42 = vsel %vm683_vm0, %v931_v31, 0.0 }
 0x1a7   : > { %v1065_v45 = vmul.f32 0.5, %v1064_v40  ;;  %v956_v47 = vpop.xlane.xlu2 %955  ;;  %v847_v48 = vpop.xlane.xlu1 %846  ;;  %970 = vadd.xlane.f32.xlu0 %v969_v42  ;;  %861 = vadd.xlane.f32.xlu2 %v860_v38 }
 0x1a8   : > { %v1006_v36 = vmul.f32 %v956_v47, %v2719_v55  ;;  %v892_v53 = vmul.f32 %v2719_v55, %v847_v48  ;;  %v1266_v54 = vmul.f32 %v2885_v28, %v1243_v24 }
 0x1a9   : > { %v1066_v56 = vsub.f32 1.5, %v1065_v45 }
 0x1aa   : > { %v2451_v57 = vpop.eup %2450  ;;  %v2909_v58 = vadd.f32 1e-05, %v1006_v36  ;;  %v2912_v3 = vsub.f32 %v2768_v35, %v892_v53  ;;  %v2918_v60 = vadd.f32 %v2901_v59, %v1266_v54 }
 0x1ab   : > { %v1067_v61 = vmul.f32 %v2449_v27, %v1066_v56  ;;  %v1073_v62 = vmul.f32 %v2451_v57, %v1025_v30  ;;  %vm1079_vm11 = vweird.f32 %v2451_v57 }
 0x1ac   : > { %2452 = vrsqrt.f32 %v2909_v58  ;;  %v1308_v1 = vpack.c.bf16 %v2918_v60, %v2915_v4  ;;  %v932_v6 = vmul.f32 %v2912_v3, %v2912_v3  ;;  %vm1080_vm13 = vmor %vm1078_vm12, %vm1079_vm11  ;;  %vm1088_vm15 = vweird.f32 %v2909_v58 }
 0x1ad   : > { %v1074_v35 = vmul.f32 %v2451_v57, %v1073_v62  ;;  %v1071_v8 = vsel %vm1070_vm10, %v2449_v27, %v1067_v61 }
 0x1ae   : > { %2357 = vmatmul.msk.bf16.vlgmr.msra.gmra.mxu1 %vm683_vm0, %v1308_v1  ;;  %v972_v7 = vsel %vm683_vm0, %v932_v6, 0.0  ;;  %v1244_v20 = vmul.f32 %v1071_v8, %v2745_v14 }
 0x1af   : > { %v1075_v10 = vmul.f32 0.5, %v1074_v35  ;;  %v850_v11 = vpop.xlane.xlu2 %849  ;;  %973 = vadd.xlane.f32.xlu0 %v972_v7  ;;  %v959_v12 = vpop.xlane.xlu0 %958 }
 0x1b0   : > { %v893_v13 = vmul.f32 %v2719_v55, %v850_v11  ;;  %v868_v15 = vpop.xlane.xlu1 %867  ;;  %v1007_v16 = vmul.f32 %v959_v12, %v2719_v55  ;;  %v1267_v30 = vmul.f32 %v2885_v28, %v1244_v20 }
 0x1b1   : > { %v1076_v46 = vsub.f32 1.5, %v1075_v10  ;;  %v899_v41 = vmul.f32 %v2719_v55, %v868_v15 }
 0x1b2   : > { %v2453_v19 = vpop.eup %2452  ;;  %v2933_v9 = vsub.f32 %v2783_v49, %v893_v13  ;;  %v1027_v21 = vadd.f32 1e-05, %v1007_v16  ;;  %v2956_v53 = vadd.f32 %v2901_v59, %v1267_v30 }
 0x1b3   : > { %v1077_v23 = vmul.f32 %v2451_v57, %v1076_v46  ;;  %v1083_v27 = vmul.f32 %v2453_v19, %v2909_v58  ;;  %v2937_v29 = vsub.f32 %v2787_v51, %v899_v41  ;;  %vm1089_vm14 = vweird.f32 %v2453_v19 }
 0x1b4   : > { %2454 = vrsqrt.f32 %v1027_v21  ;;  %v933_v33 = vmul.f32 %v2933_v9, %v2933_v9  ;;  %vm1090_vm1 = vmor %vm1088_vm15, %vm1089_vm14  ;;  %vm1098_vm3 = vweird.f32 %v1027_v21 }
 0x1b5   : > { %v1081_v34 = vsel %vm1080_vm13, %v2451_v57, %v1077_v23  ;;  %v1084_v31 = vmul.f32 %v2453_v19, %v1083_v27  ;;  %v939_v14 = vmul.f32 %v2937_v29, %v2937_v29 }
 0x1b6   : > { %v1245_v49 = vmul.f32 %v1081_v34, %v2758_v25  ;;  %v975_v38 = vsel %vm683_vm0, %v933_v33, 0.0 }
 0x1b7   : > { %v1085_v39 = vmul.f32 0.5, %v1084_v31  ;;  %v2946_v40 = vpop.xlane.xlu2 %961  ;;  %976 = vadd.xlane.f32.xlu1 %v975_v38  ;;  %v993_v51 = vsel %vm683_vm0, %v939_v14, 0.0  ;;  %v865_v24 = vpop.xlane.xlu0 %864 }
 0x1b8   : > { %v853_v42 = vpop.xlane.xlu1 %852  ;;  %994 = vadd.xlane.f32.xlu0 %v993_v51  ;;  %v898_v44 = vmul.f32 %v2719_v55, %v865_v24  ;;  %v1268_v45 = vmul.f32 %v2885_v28, %v1245_v49 }
 0x1b9   : > { %v1086_v47 = vsub.f32 1.5, %v1085_v39  ;;  %v894_v25 = vmul.f32 %v2719_v55, %v853_v42  ;;  %v1008_v39 = vmul.f32 %v2946_v40, %v2719_v55 }
 0x1ba   : > { %v2455_v48 = vpop.eup %2454  ;;  %v2953_v36 = vsub.f32 %v2804_v0, %v898_v44  ;;  %v2959_v54 = vadd.f32 %v2901_v59, %v1268_v45  ;;  %v2415_v45 = vld [vmem:[%s3014_s30 + $0x18] sm:$0xff] }
 0x1bb   : > { %v1087_v56 = vmul.f32 %v2453_v19, %v1086_v47  ;;  %v1093_v57 = vmul.f32 %v2455_v48, %v1027_v21  ;;  %v2962_v61 = vsub.f32 %v2806_v2, %v894_v25  ;;  %vm1099_vm2 = vweird.f32 %v2455_v48  ;;  %1528 = vmatpush.bf16.msra.mxu2 %v2415_v45  ;;  %2420 = vmatpush.bf16.msra.mxu3 %v2415_v45 }
 0x1bc   : > { %v1309_v62 = vpack.c.bf16 %v2959_v54, %v2956_v53  ;;  %v938_v1 = vmul.f32 %v2953_v36, %v2953_v36  ;;  %vm1100_vm4 = vmor %vm1098_vm3, %vm1099_vm2  ;;  %v1028_v51 = vadd.f32 1e-05, %v1008_v39  ;;  %vm1493_vm3 = vcmask 523264  }
 0x1bd   : > { %v1094_v0 = vmul.f32 %v2455_v48, %v1093_v57  ;;  %v934_v6 = vmul.f32 %v2962_v61, %v2962_v61  ;;  %v1091_v7 = vsel %vm1090_vm1, %v2453_v19, %v1087_v56 }
 0x1be   : > { %2358 = vmatmul.msk.bf16.gmra.mxu1 %vm683_vm0, %v1309_v62  ;;  %v990_v35 = vsel %vm683_vm0, %v938_v1, 0.0  ;;  %v1246_v15 = vmul.f32 %v1091_v7, %v2771_v37  ;;  %2456 = vrsqrt.f32 %v1028_v51  ;;  %vm1108_vm6 = vweird.f32 %v1028_v51 }
 0x1bf   : > { %v1095_v2 = vmul.f32 0.5, %v1094_v0  ;;  %v856_v8 = vpop.xlane.xlu2 %855  ;;  %v978_v10 = vsel %vm683_vm0, %v934_v6, 0.0  ;;  %991 = vadd.xlane.f32.xlu2 %v990_v35  ;;  %v2413_v6 = vld [vmem:[%s3014_s30 + $0x8] sm:$0xff] }
 0x1c0   : > { %v895_v11 = vmul.f32 %v2719_v55, %v856_v8  ;;  %979 = vadd.xlane.f32.xlu1 %v978_v10  ;;  %v874_v12 = vpop.xlane.xlu1 %873 }
 0x1c1   : > { %v1096_v58 = vsub.f32 1.5, %v1095_v2  ;;  %v901_v13 = vmul.f32 %v2719_v55, %v874_v12 }
 0x1c2   : > { %v2978_v16 = vsub.f32 %v2822_v17, %v895_v11  ;;  %v1269_v17 = vmul.f32 %v2885_v28, %v1246_v15 }
 0x1c3   : > { %v1097_v46 = vmul.f32 %v2455_v48, %v1096_v58  ;;  %v2981_v41 = vsub.f32 %v2824_v18, %v901_v13  ;;  %v2412_v58 = vld [vmem:[%s3014_s30] sm:$0xff] }
 0x1c4   : > { %v935_v19 = vmul.f32 %v2978_v16, %v2978_v16  ;;  %v2994_v31 = vadd.f32 %v2901_v59, %v1269_v17  ;;  %v2457_v24 = vpop.eup %2456 }
 0x1c5   : > { %v1101_v20 = vsel %vm1100_vm4, %v2455_v48, %v1097_v46  ;;  %v941_v23 = vmul.f32 %v2981_v41, %v2981_v41  ;;  %v2414_v48 = vld [vmem:[%s3014_s30 + $0x10] sm:$0xff]  ;;  %vm1109_vm5 = vweird.f32 %v2457_v24 }
 0x1c6   : > { %v1247_v27 = vmul.f32 %v1101_v20, %v2790_v52  ;;  %v981_v37 = vsel %vm683_vm0, %v935_v19, 0.0  ;;  %1529 = vmatpush.bf16.msra.mxu2 %v2414_v48  ;;  %2421 = vmatpush.bf16.msra.mxu3 %v2414_v48  ;;  %vm1110_vm7 = vmor %vm1108_vm6, %vm1109_vm5 }
 0x1c7   : > { %v999_v33 = vsel %vm683_vm0, %v941_v23, 0.0  ;;  %982 = vadd.xlane.f32.xlu2 %v981_v37 }
 0x1c8   : > { %1000 = vadd.xlane.f32.xlu1 %v999_v33  ;;  %v859_v18 = vpop.xlane.xlu1 %858  ;;  %v1270_v21 = vmul.f32 %v2885_v28, %v1247_v27 }
 0x1c9   : > { %v896_v34 = vmul.f32 %v2719_v55, %v859_v18 }
 0x1ca   : > { %v2997_v14 = vadd.f32 %v2901_v59, %v1270_v21  ;;  %1530 = vmatpush.bf16.msra.mxu2 %v2413_v6  ;;  %2422 = vmatpush.bf16.msra.mxu3 %v2413_v6 }
 0x1cb   : > { %v3000_v52 = vsub.f32 %v2832_v26, %v896_v34  ;;  %v1103_v26 = vmul.f32 %v2457_v24, %v1028_v51 }
 0x1cc   : > { %v1310_v49 = vpack.c.bf16 %v2997_v14, %v2994_v31 }
 0x1cd   : > { %v936_v38 = vmul.f32 %v3000_v52, %v3000_v52  ;;  %v1104_v42 = vmul.f32 %v2457_v24, %v1103_v26 }
 0x1ce   : > { %2359 = vmatmul.msk.bf16.gmra.mxu1 %vm683_vm0, %v1310_v49  ;;  %1531 = vmatpush.bf16.msra.mxu2 %v2412_v58 }
 0x1cf   : > { %v984_v30 = vsel %vm683_vm0, %v936_v38, 0.0  ;;  %v1105_v25 = vmul.f32 0.5, %v1104_v42  ;;  %2423 = vmatpush.bf16.msra.mxu3 %v2412_v58 }
 0x1d0   : > { %985 = vadd.xlane.f32.xlu2 %v984_v30 }
 0x1d1   : > { %v1106_v56 = vsub.f32 1.5, %v1105_v25 }
 0x1d3   : > { %v1107_v8 = vmul.f32 %v2457_v24, %v1106_v56 }
 0x1d5   : > { %v1111_v15 = vsel %vm1110_vm7, %v2457_v24, %v1107_v8 }
 0x1d6   : > { %v1248_v17 = vmul.f32 %v1111_v15, %v2809_v5 }
 0x1d8   : > { %v1271_v5 = vmul.f32 %v2885_v28, %v1248_v17 }
 0x20a   : > { %v965_v44 = vpop.xlane.xlu0 %964 }
 0x20b   : > { %v1009_v47 = vmul.f32 %v965_v44, %v2719_v55 }
 0x20d   : > { %v1029_v40 = vadd.f32 1e-05, %v1009_v47 }
 0x20f   : > { %2458 = vrsqrt.f32 %v1029_v40  ;;  %vm1118_vm9 = vweird.f32 %v1029_v40 }
 0x212   : > { %v968_v57 = vpop.xlane.xlu2 %967  ;;  %v871_v62 = vpop.xlane.xlu0 %870 }
 0x213   : > { %v1010_v1 = vmul.f32 %v968_v57, %v2719_v55  ;;  %v900_v0 = vmul.f32 %v2719_v55, %v871_v62 }
 0x215   : > { %v2459_v35 = vpop.eup %2458  ;;  %v1030_v7 = vadd.f32 1e-05, %v1010_v1  ;;  %v3023_v2 = vsub.f32 %v2860_v50, %v900_v0 }
 0x216   : > { %v1113_v10 = vmul.f32 %v2459_v35, %v1029_v40  ;;  %vm1119_vm8 = vweird.f32 %v2459_v35  ;;  %v3045_v40 = vadd.f32 %v2901_v59, %v1271_v5 }
 0x217   : > { %2460 = vrsqrt.f32 %v1030_v7  ;;  %v940_v11 = vmul.f32 %v3023_v2, %v3023_v2  ;;  %vm1120_vm10 = vmor %vm1118_vm9, %vm1119_vm8  ;;  %vm1128_vm12 = vweird.f32 %v1030_v7 }
 0x218   : > { %v1114_v12 = vmul.f32 %v2459_v35, %v1113_v10 }
 0x219   : > { %v996_v13 = vsel %vm683_vm0, %v940_v11, 0.0 }
 0x21a   : > { %v1115_v46 = vmul.f32 0.5, %v1114_v12  ;;  %v862_v19 = vpop.xlane.xlu2 %861  ;;  %997 = vadd.xlane.f32.xlu0 %v996_v13  ;;  %v971_v50 = vpop.xlane.xlu0 %970 }
 0x21b   : > { %v897_v20 = vmul.f32 %v2719_v55, %v862_v19  ;;  %v1011_v23 = vmul.f32 %v971_v50, %v2719_v55  ;;  %v3071_v19 = vld [vmem:[%s572_s20] ss:$0 sm:$0xff] }
 0x21c   : > { %v1116_v27 = vsub.f32 1.5, %v1115_v46 }
 0x21d   : > { %v2461_v37 = vpop.eup %2460  ;;  %v3033_v33 = vsub.f32 %v2878_v22, %v897_v20  ;;  %v1031_v18 = vadd.f32 1e-05, %v1011_v23 }
 0x21e   : > { %v1117_v21 = vmul.f32 %v2459_v35, %v1116_v27  ;;  %v1123_v34 = vmul.f32 %v2461_v37, %v1030_v7  ;;  %vm1129_vm11 = vweird.f32 %v2461_v37 }
 0x21f   : > { %2462 = vrsqrt.f32 %v1031_v18  ;;  %v937_v49 = vmul.f32 %v3033_v33, %v3033_v33  ;;  %vm1130_vm13 = vmor %vm1128_vm12, %vm1129_vm11  ;;  %vm1138_vm15 = vweird.f32 %v1031_v18 }
 0x220   : > { %v1121_v38 = vsel %vm1120_vm10, %v2459_v35, %v1117_v21  ;;  %v1124_v30 = vmul.f32 %v2461_v37, %v1123_v34 }
 0x221   : > { %v1249_v39 = vmul.f32 %v1121_v38, %v2845_v43  ;;  %v987_v51 = vsel %vm683_vm0, %v937_v49, 0.0 }
 0x222   : > { %v1125_v24 = vmul.f32 0.5, %v1124_v30  ;;  %988 = vadd.xlane.f32.xlu0 %v987_v51  ;;  %v974_v22 = vpop.xlane.xlu0 %973 }
 0x223   : > { %v1012_v26 = vmul.f32 %v974_v22, %v2719_v55  ;;  %v1272_v42 = vmul.f32 %v2885_v28, %v1249_v39 }
 0x224   : > { %v1126_v44 = vsub.f32 1.5, %v1125_v24 }
 0x225   : > { %v2463_v45 = vpop.eup %2462  ;;  %v3042_v47 = vadd.f32 1e-05, %v1012_v26  ;;  %v3048_v43 = vadd.f32 %v2901_v59, %v1272_v42 }
 0x226   : > { %v1133_v25 = vmul.f32 %v2463_v45, %v1031_v18  ;;  %v1127_v56 = vmul.f32 %v2461_v37, %v1126_v44  ;;  %vm1139_vm14 = vweird.f32 %v2463_v45 }
 0x227   : > { %2464 = vrsqrt.f32 %v3042_v47  ;;  %v1311_v48 = vpack.c.bf16 %v3048_v43, %v3045_v40  ;;  %vm1140_vm1 = vmor %vm1138_vm15, %vm1139_vm14  ;;  %vm1148_vm4 = vweird.f32 %v3042_v47 }
 0x228   : > { %v1134_v57 = vmul.f32 %v2463_v45, %v1133_v25  ;;  %v1131_v8 = vsel %vm1130_vm13, %v2461_v37, %v1127_v56 }
 0x229   : > { %2360 = vmatmul.msk.bf16.gmra.mxu1 %vm683_vm0, %v1311_v48  ;;  %v1250_v46 = vmul.f32 %v1131_v8, %v2858_v63 }
 0x22a   : > { %v1135_v62 = vmul.f32 0.5, %v1134_v57  ;;  %v977_v1 = vpop.xlane.xlu1 %976 }
 0x22b   : > { %v1013_v0 = vmul.f32 %v977_v1, %v2719_v55  ;;  %v995_v6 = vpop.xlane.xlu0 %994  ;;  %v1377_v35 = vpop.f32.mrf.mxu1  ;;  %v1273_v21 = vmul.f32 %v2885_v28, %v1250_v46 }
 0x22c   : > { %v1136_v10 = vsub.f32 1.5, %v1135_v62  ;;  %v1019_v11 = vmul.f32 %v995_v6, %v2719_v55  ;;  %v1378_v49 = vadd.f32 %v3071_v19, %v1377_v35 }
 0x22d   : > { %v3056_v12 = vpop.eup %2464  ;;  %v3058_v58 = vadd.f32 1e-05, %v1013_v0  ;;  %v3093_v44 = vadd.f32 %v2901_v59, %v1273_v21 }
 0x22e   : > { %v1137_v13 = vmul.f32 %v2463_v45, %v1136_v10  ;;  %v1143_v7 = vmul.f32 %v3056_v12, %v3042_v47  ;;  %v3062_v15 = vadd.f32 1e-05, %v1019_v11  ;;  %vm1149_vm2 = vweird.f32 %v3056_v12 }
 0x22f   : > { %2466 = vrsqrt.f32 %v3058_v58  ;;  %v1427_v25 = vmax.f32 %v1378_v49, 0.0  ;;  %vm3105_vm5 = vmor %vm1148_vm4, %vm1149_vm2  ;;  %vm1158_vm7 = vweird.f32 %v3058_v58 }
 0x230   : > { %v1141_v50 = vsel %vm1140_vm1, %v2463_v45, %v1137_v13  ;;  %v1144_v20 = vmul.f32 %v3056_v12, %v1143_v7  ;;  %2468 = vrsqrt.f32 %v3062_v15  ;;  %vm1218_vm10 = vweird.f32 %v3062_v15 }
 0x231   : > { %v1251_v23 = vmul.f32 %v1141_v50, %v2889_v32 }
 0x232   : > { %v1145_v27 = vmul.f32 0.5, %v1144_v20  ;;  %v992_v37 = vpop.xlane.xlu2 %991 }
 0x233   : > { %v980_v17 = vpop.xlane.xlu1 %979  ;;  %v1018_v63 = vmul.f32 %v992_v37, %v2719_v55  ;;  %v1379_v18 = vpop.f32.mrf.mxu1  ;;  %v1274_v34 = vmul.f32 %v2885_v28, %v1251_v23 }
 0x234   : > { %v1014_v38 = vmul.f32 %v980_v17, %v2719_v55  ;;  %v1146_v39 = vsub.f32 1.5, %v1145_v27  ;;  %v1380_v32 = vadd.f32 %v3071_v19, %v1379_v18 }
 0x235   : > { %v2467_v30 = vpop.eup %2466  ;;  %v3081_v51 = vadd.f32 1e-05, %v1018_v63  ;;  %v3085_v5 = vadd.f32 %v2901_v59, %v1274_v34 }
 0x236   : > { %v2469_v24 = vpop.eup %2468  ;;  %v1153_v22 = vmul.f32 %v2467_v30, %v3058_v58  ;;  %v3088_v26 = vadd.f32 1e-05, %v1014_v38  ;;  %v1147_v48 = vmul.f32 %v3056_v12, %v1146_v39  ;;  %v1428_v57 = vmax.f32 %v1380_v32, 0.0 }
 0x237   : > { %v1213_v42 = vmul.f32 %v2469_v24, %v3062_v15  ;;  %2470 = vrsqrt.f32 %v3081_v51  ;;  %v1312_v62 = vpack.c.bf16 %v3085_v5, %v3093_v44  ;;  %vm1159_vm6 = vweird.f32 %v2467_v30 }
 0x238   : > { %v1154_v45 = vmul.f32 %v2467_v30, %v1153_v22  ;;  %2472 = vrsqrt.f32 %v3088_v26  ;;  %v1447_v35 = vpack.c.bf16 %v1428_v57, %v1427_v25  ;;  %v1151_v47 = vsel %vm3105_vm5, %v3056_v12, %v1147_v48  ;;  %vm1160_vm9 = vmor %vm1158_vm7, %vm1159_vm6 }
 0x239   : > { %v1214_v56 = vmul.f32 %v2469_v24, %v1213_v42  ;;  %2361 = vmatmul.msk.bf16.gmra.mxu1 %vm683_vm0, %v1312_v62  ;;  %vm1219_vm8 = vweird.f32 %v2469_v24  ;;  %v1252_v63 = vmul.f32 %v1151_v47, %v2912_v3  ;;  %vm1208_vm13 = vweird.f32 %v3081_v51 }
 0x23a   : > { %v1155_v1 = vmul.f32 0.5, %v1154_v45  ;;  %v983_v0 = vpop.xlane.xlu2 %982  ;;  %2383 = vmatmul.msk.bf16.vlgmr.msra.gmra.mxu2 %vm1493_vm3, %v1447_v35  ;;  %vm1220_vm11 = vmor %vm1218_vm10, %vm1219_vm8  ;;  %vm1168_vm1 = vweird.f32 %v3088_v26 }
 0x23b   : > { %v1215_v6 = vmul.f32 0.5, %v1214_v56  ;;  %v1015_v8 = vmul.f32 %v983_v0, %v2719_v55  ;;  %v1382_v10 = vpop.f32.mrf.mxu1 }
 0x23c   : > { %v1156_v13 = vsub.f32 1.5, %v1155_v1  ;;  %v1383_v39 = vadd.f32 %v3071_v19, %v1382_v10 }
 0x23d   : > { %v2471_v7 = vpop.eup %2470  ;;  %v1216_v46 = vsub.f32 1.5, %v1215_v6  ;;  %v1035_v50 = vadd.f32 1e-05, %v1015_v8 }
 0x23e   : > { %v2473_v20 = vpop.eup %2472  ;;  %v1157_v23 = vmul.f32 %v2467_v30, %v1156_v13  ;;  %v1203_v27 = vmul.f32 %v2471_v7, %v3081_v51  ;;  %vm1209_vm12 = vweird.f32 %v2471_v7  ;;  %v1429_v57 = vmax.f32 %v1383_v39, 0.0 }
 0x23f   : > { %v1217_v37 = vmul.f32 %v2469_v24, %v1216_v46  ;;  %v1163_v17 = vmul.f32 %v2473_v20, %v3088_v26  ;;  %2474 = vrsqrt.f32 %v1035_v50  ;;  %vm1169_vm14 = vweird.f32 %v2473_v20  ;;  %vm1210_vm15 = vmor %vm1208_vm13, %vm1209_vm12 }
 0x240   : > { %v1161_v18 = vsel %vm1160_vm9, %v2467_v30, %v1157_v23  ;;  %v1204_v12 = vmul.f32 %v2471_v7, %v1203_v27  ;;  %v1275_v30 = vmul.f32 %v2885_v28, %v1252_v63  ;;  %vm1170_vm2 = vmor %vm1168_vm1, %vm1169_vm14  ;;  %vm1178_vm5 = vweird.f32 %v1035_v50 }
 0x241   : > { %v1253_v21 = vmul.f32 %v1161_v18, %v2933_v9  ;;  %v1164_v34 = vmul.f32 %v2473_v20, %v1163_v17  ;;  %v1221_v49 = vsel %vm1220_vm11, %v2469_v24, %v1217_v37 }
 0x242   : > { %v1205_v58 = vmul.f32 0.5, %v1204_v12  ;;  %v1259_v45 = vmul.f32 %v1221_v49, %v2937_v29  ;;  %v3129_v6 = vadd.f32 %v2901_v59, %v1275_v30 }
 0x243   : > { %v1165_v38 = vmul.f32 0.5, %v1164_v34  ;;  %v1384_v32 = vpop.f32.mrf.mxu1  ;;  %v1276_v22 = vmul.f32 %v2885_v28, %v1253_v21 }
 0x244   : > { %v1206_v42 = vsub.f32 1.5, %v1205_v58  ;;  %v1385_v3 = vadd.f32 %v3071_v19, %v1384_v32  ;;  %v1282_v51 = vmul.f32 %v2885_v28, %v1259_v45 }
 0x245   : > { %v2475_v15 = vpop.eup %2474  ;;  %v1166_v9 = vsub.f32 1.5, %v1165_v38  ;;  %v3126_v48 = vadd.f32 %v2901_v59, %v1276_v22  ;;  %v1001_v38 = vpop.xlane.xlu1 %1000 }
 0x246   : > { %v1207_v25 = vmul.f32 %v2471_v7, %v1206_v42  ;;  %v1173_v24 = vmul.f32 %v2475_v15, %v1035_v50  ;;  %v1430_v62 = vmax.f32 %v1385_v3, 0.0  ;;  %vm1179_vm4 = vweird.f32 %v2475_v15  ;;  %v986_v22 = vpop.xlane.xlu2 %985 }
 0x247   : > { %v1167_v56 = vmul.f32 %v2473_v20, %v1166_v9  ;;  %v1313_v10 = vpack.c.bf16 %v3126_v48, %v3129_v6  ;;  %v3143_v26 = vadd.f32 %v2901_v59, %v1282_v51  ;;  %vm1180_vm6 = vmor %vm1178_vm5, %vm1179_vm4  ;;  %v1021_v39 = vmul.f32 %v1001_v38, %v2719_v55 }
 0x248   : > { %v1211_v1 = vsel %vm1210_vm15, %v2471_v7, %v1207_v25  ;;  %v1174_v0 = vmul.f32 %v2475_v15, %v1173_v24  ;;  %v1448_v35 = vpack.c.bf16 %v1430_v62, %v1429_v57  ;;  %v1016_v42 = vmul.f32 %v986_v22, %v2719_v55 }
 0x249   : > { %v1258_v29 = vmul.f32 %v1211_v1, %v2953_v36  ;;  %v1171_v11 = vsel %vm1170_vm2, %v2473_v20, %v1167_v56  ;;  %2362 = vmatmul.msk.bf16.gmra.mxu1 %vm683_vm0, %v1313_v10  ;;  %v1041_v32 = vadd.f32 1e-05, %v1021_v39 }
 0x24a   : > { %v1175_v8 = vmul.f32 0.5, %v1174_v0  ;;  %2384 = vmatmul.msk.bf16.gmra.mxu2 %vm1493_vm3, %v1448_v35  ;;  %v1254_v46 = vmul.f32 %v1171_v11, %v2962_v61  ;;  %v1036_v3 = vadd.f32 1e-05, %v1016_v42 }
 0x24b   : > { %v1387_v13 = vpop.f32.mrf.mxu1  ;;  %v1281_v7 = vmul.f32 %v2885_v28, %v1258_v29  ;;  %2476 = vrsqrt.f32 %v1041_v32  ;;  %vm1238_vm8 = vweird.f32 %v1041_v32 }
 0x24c   : > { %v1176_v47 = vsub.f32 1.5, %v1175_v8  ;;  %v1277_v17 = vmul.f32 %v2885_v28, %v1254_v46  ;;  %v1388_v63 = vadd.f32 %v3071_v19, %v1387_v13  ;;  %2478 = vrsqrt.f32 %v1036_v3 }
 0x24d   : > { %v3140_v36 = vadd.f32 %v2901_v59, %v1281_v7  ;;  %vm1188_vm14 = vweird.f32 %v1036_v3 }
 0x24e   : > { %v1177_v23 = vmul.f32 %v2475_v15, %v1176_v47  ;;  %v3158_v34 = vadd.f32 %v2901_v59, %v1277_v17  ;;  %v1431_v49 = vmax.f32 %v1388_v63, 0.0 }
 0x24f   : > { %v1316_v20 = vpack.c.bf16 %v3143_v26, %v3140_v36 }
 0x250   : > { %v1181_v27 = vsel %vm1180_vm6, %v2475_v15, %v1177_v23 }
 0x251   : > { %v1255_v37 = vmul.f32 %v1181_v27, %v2978_v16  ;;  %2365 = vmatmul.msk.bf16.vlgmr.msrb.gmra.mxu3 %vm683_vm0, %v1316_v20  ;;  %v2477_v30 = vpop.eup %2476 }
 0x252   : > { %v1233_v15 = vmul.f32 %v2477_v30, %v1041_v32  ;;  %v2479_v25 = vpop.eup %2478  ;;  %vm1239_vm7 = vweird.f32 %v2477_v30 }
 0x253   : > { %v1389_v18 = vpop.f32.mrf.mxu1  ;;  %v1278_v12 = vmul.f32 %v2885_v28, %v1255_v37  ;;  %v1183_v62 = vmul.f32 %v2479_v25, %v1036_v3  ;;  %vm1240_vm9 = vmor %vm1238_vm8, %vm1239_vm7  ;;  %vm1189_vm11 = vweird.f32 %v2479_v25 }
 0x254   : > { %v1390_v61 = vadd.f32 %v3071_v19, %v1389_v18  ;;  %v1234_v45 = vmul.f32 %v2477_v30, %v1233_v15  ;;  %vm1190_vm15 = vmor %vm1188_vm14, %vm1189_vm11 }
 0x255   : > { %v3155_v50 = vadd.f32 %v2901_v59, %v1278_v12  ;;  %v1184_v0 = vmul.f32 %v2479_v25, %v1183_v62 }
 0x256   : > { %v1432_v21 = vmax.f32 %v1390_v61, 0.0  ;;  %v1235_v57 = vmul.f32 0.5, %v1234_v45 }
 0x257   : > { %v1314_v16 = vpack.c.bf16 %v3155_v50, %v3158_v34  ;;  %v1185_v11 = vmul.f32 0.5, %v1184_v0 }
 0x258   : > { %v1449_v58 = vpack.c.bf16 %v1432_v21, %v1431_v49  ;;  %v1236_v1 = vsub.f32 1.5, %v1235_v57 }
 0x259   : > { %2363 = vmatmul.msk.bf16.gmra.mxu1 %vm683_vm0, %v1314_v16  ;;  %v1186_v46 = vsub.f32 1.5, %v1185_v11 }
 0x25a   : > { %2385 = vmatmul.msk.bf16.gmra.mxu2 %vm1493_vm3, %v1449_v58  ;;  %v1237_v10 = vmul.f32 %v2477_v30, %v1236_v1 }
 0x25b   : > { %v1187_v17 = vmul.f32 %v2479_v25, %v1186_v46 }
 0x25c   : > { %v1241_v47 = vsel %vm1240_vm9, %v2477_v30, %v1237_v10 }
 0x25d   : > { %v1261_v37 = vmul.f32 %v1241_v47, %v2981_v41  ;;  %v1191_v16 = vsel %vm1190_vm15, %v2479_v25, %v1187_v17 }
 0x25e   : > { %v1256_v32 = vmul.f32 %v1191_v16, %v3000_v52 }
 0x25f   : > { %v1284_v49 = vmul.f32 %v2885_v28, %v1261_v37 }
 0x260   : > { %v1279_v52 = vmul.f32 %v2885_v28, %v1256_v32 }
 0x261   : > { %v3177_v42 = vadd.f32 %v2901_v59, %v1284_v49 }
 0x28d   : > { %v998_v9 = vpop.xlane.xlu0 %997 }
 0x28e   : > { %v1020_v24 = vmul.f32 %v998_v9, %v2719_v55 }
 0x290   : > { %v1040_v56 = vadd.f32 1e-05, %v1020_v24 }
 0x292   : > { %2480 = vrsqrt.f32 %v1040_v56  ;;  %vm1228_vm12 = vweird.f32 %v1040_v56 }
 0x295   : > { %v989_v29 = vpop.xlane.xlu0 %988 }
 0x296   : > { %v1017_v35 = vmul.f32 %v989_v29, %v2719_v55 }
 0x298   : > { %v2481_v51 = vpop.eup %2480  ;;  %v1037_v8 = vadd.f32 1e-05, %v1017_v35 }
 0x299   : > { %v1223_v13 = vmul.f32 %v2481_v51, %v1040_v56  ;;  %vm1229_vm10 = vweird.f32 %v2481_v51  ;;  %v3188_v56 = vadd.f32 %v2901_v59, %v1279_v52 }
 0x29a   : > { %2482 = vrsqrt.f32 %v1037_v8  ;;  %vm1230_vm13 = vmor %vm1228_vm12, %vm1229_vm10  ;;  %vm1198_vm2 = vweird.f32 %v1037_v8 }
 0x29b   : > { %v1224_v7 = vmul.f32 %v2481_v51, %v1223_v13 }
 0x29d   : > { %v1225_v23 = vmul.f32 0.5, %v1224_v7 }
 0x29f   : > { %v1226_v20 = vsub.f32 1.5, %v1225_v23 }
 0x2a0   : > { %v2483_v27 = vpop.eup %2482 }
 0x2a1   : > { %v1227_v63 = vmul.f32 %v2481_v51, %v1226_v20  ;;  %v1193_v18 = vmul.f32 %v2483_v27, %v1037_v8  ;;  %vm1199_vm1 = vweird.f32 %v2483_v27 }
 0x2a2   : > { %vm1200_vm4 = vmor %vm1198_vm2, %vm1199_vm1 }
 0x2a3   : > { %v1231_v12 = vsel %vm1230_vm13, %v2481_v51, %v1227_v63  ;;  %v1194_v61 = vmul.f32 %v2483_v27, %v1193_v18 }
 0x2a4   : > { %v1260_v21 = vmul.f32 %v1231_v12, %v3023_v2 }
 0x2a5   : > { %v1195_v58 = vmul.f32 0.5, %v1194_v61 }
 0x2a6   : > { %v1392_v38 = vpop.f32.mrf.mxu1  ;;  %v1283_v39 = vmul.f32 %v2885_v28, %v1260_v21 }
 0x2a7   : > { %v1196_v41 = vsub.f32 1.5, %v1195_v58  ;;  %v1393_v45 = vadd.f32 %v3071_v19, %v1392_v38 }
 0x2a8   : > { %v3174_v22 = vadd.f32 %v2901_v59, %v1283_v39 }
 0x2a9   : > { %v1197_v3 = vmul.f32 %v2483_v27, %v1196_v41  ;;  %v1433_v62 = vmax.f32 %v1393_v45, 0.0 }
 0x2aa   : > { %v1317_v2 = vpack.c.bf16 %v3177_v42, %v3174_v22 }
 0x2ab   : > { %v1201_v30 = vsel %vm1200_vm4, %v2483_v27, %v1197_v3 }
 0x2ac   : > { %v1257_v15 = vmul.f32 %v1201_v30, %v3033_v33  ;;  %2366 = vmatmul.msk.bf16.gmra.mxu3 %vm683_vm0, %v1317_v2 }
 0x2ae   : > { %v1394_v9 = vpop.f32.mrf.mxu1  ;;  %v1280_v25 = vmul.f32 %v2885_v28, %v1257_v15  ;;  %v3202_v28 = vld [vmem:[%s580_s26] ss:$0 sm:$0xff] }
 0x2af   : > { %v1395_v24 = vadd.f32 %v3071_v19, %v1394_v9 }
 0x2b0   : > { %v3191_v57 = vadd.f32 %v2901_v59, %v1280_v25 }
 0x2b1   : > { %v1434_v33 = vmax.f32 %v1395_v24, 0.0 }
 0x2b2   : > { %v1315_v1 = vpack.c.bf16 %v3191_v57, %v3188_v56 }
 0x2b3   : > { %v1450_v0 = vpack.c.bf16 %v1434_v33, %v1433_v62 }
 0x2b4   : > { %2364 = vmatmul.msk.bf16.gmra.mxu1 %vm683_vm0, %v1315_v1 }
 0x2b5   : > { %2386 = vmatmul.msk.bf16.gmra.mxu2 %vm1493_vm3, %v1450_v0 }
 0x2b6   : > { %v1397_v29 = vpop.f32.mrf.mxu1 }
 0x2b7   : > { %v1398_v59 = vadd.f32 %v3071_v19, %v1397_v29 }
 0x2b9   : > { %v1435_v11 = vmax.f32 %v1398_v59, 0.0 }
 0x2bd   : > { %v1533_v35 = vpop.f32.mrf.mxu2 }
 0x2be   : > { %v1399_v51 = vpop.f32.mrf.mxu1  ;;  %v1534_v8 = vadd.f32 %v3202_v28, %v1533_v35 }
 0x2bf   : > { %v1400_v10 = vadd.f32 %v3071_v19, %v1399_v51 }
 0x2c0   : > { %v3208_v7 = vadd.f32 %v1534_v8, %v2915_v4 }
 0x2c1   : > { %v1436_v13 = vmax.f32 %v1400_v10, 0.0 }
 0x2c2   : > { %v1605_v46 = vsel %vm683_vm0, %v3208_v7, 0.0 }
 0x2c3   : > { %v1451_v47 = vpack.c.bf16 %v1436_v13, %v1435_v11  ;;  %1606 = vadd.xlane.f32.xlu1 %v1605_v46 }
 0x2c5   : > { %2387 = vmatmul.msk.bf16.gmra.mxu2 %vm1493_vm3, %v1451_v47  ;;  %v1535_v23 = vpop.f32.mrf.mxu2 }
 0x2c6   : > { %v1536_v20 = vadd.f32 %v3202_v28, %v1535_v23  ;;  %v1402_v27 = vpop.f32.mrf.mxu1 }
 0x2c7   : > { %v1403_v4 = vadd.f32 %v3071_v19, %v1402_v27 }
 0x2c8   : > { %v3215_v37 = vadd.f32 %v1536_v20, %v2918_v60 }
 0x2c9   : > { %v1437_v49 = vmax.f32 %v1403_v4, 0.0 }
 0x2ca   : > { %v1608_v17 = vsel %vm683_vm0, %v3215_v37, 0.0 }
 0x2cb   : > { %1609 = vadd.xlane.f32.xlu2 %v1608_v17 }
 0x2cd   : > { %v1538_v63 = vpop.f32.mrf.mxu2 }
 0x2ce   : > { %v1539_v18 = vadd.f32 %v3202_v28, %v1538_v63  ;;  %v1404_v12 = vpop.f32.mrf.mxu1 }
 0x2cf   : > { %v1405_v61 = vadd.f32 %v3071_v19, %v1404_v12 }
 0x2d0   : > { %v3223_v21 = vadd.f32 %v1539_v18, %v2956_v53 }
 0x2d1   : > { %v1438_v16 = vmax.f32 %v1405_v61, 0.0 }
 0x2d2   : > { %v1611_v60 = vsel %vm683_vm0, %v3223_v21, 0.0 }
 0x2d3   : > { %v1452_v38 = vpack.c.bf16 %v1438_v16, %v1437_v49  ;;  %1612 = vadd.xlane.f32.xlu0 %v1611_v60 }
 0x2d4   : > { %v1417_v58 = vpop.f32.mrf.mxu3 }
 0x2d5   : > { %v1540_v39 = vpop.f32.mrf.mxu2  ;;  %2388 = vmatmul.msk.bf16.gmra.mxu2 %vm1493_vm3, %v1452_v38  ;;  %v1418_v3 = vadd.f32 %v3071_v19, %v1417_v58 }
 0x2d6   : > { %v1541_v41 = vadd.f32 %v3202_v28, %v1540_v39  ;;  %v1407_v32 = vpop.f32.mrf.mxu1 }
 0x2d7   : > { %v1443_v52 = vmax.f32 %v1418_v3, 0.0  ;;  %v1408_v9 = vadd.f32 %v3071_v19, %v1407_v32 }
 0x2d8   : > { %v3231_v2 = vadd.f32 %v1541_v41, %v2959_v54 }
 0x2d9   : > { %v1439_v33 = vmax.f32 %v1408_v9, 0.0 }
 0x2da   : > { %v1614_v30 = vsel %vm683_vm0, %v3231_v2, 0.0 }
 0x2db   : > { %1615 = vadd.xlane.f32.xlu1 %v1614_v30 }
 0x2dc   : > { %v1419_v53 = vpop.f32.mrf.mxu3 }
 0x2dd   : > { %v1420_v15 = vadd.f32 %v3071_v19, %v1419_v53  ;;  %v1543_v46 = vpop.f32.mrf.mxu2 }
 0x2de   : > { %v1409_v24 = vpop.f32.mrf.mxu1 }
 0x2df   : > { %v1444_v45 = vmax.f32 %v1420_v15, 0.0  ;;  %v1410_v62 = vadd.f32 %v3071_v19, %v1409_v24 }
 0x2e1   : > { %v1455_v25 = vpack.c.bf16 %v1444_v45, %v1443_v52  ;;  %v1440_v54 = vmax.f32 %v1410_v62, 0.0 }
 0x2e3   : > { %2391 = vmatmul.msk.bf16.vlgmr.msra.gmra.mxu3 %vm1493_vm3, %v1455_v25  ;;  %v1453_v1 = vpack.c.bf16 %v1440_v54, %v1439_v33 }
 0x2e5   : > { %2389 = vmatmul.msk.bf16.gmra.mxu2 %vm1493_vm3, %v1453_v1  ;;  %v1545_v4 = vpop.f32.mrf.mxu2 }
 0x2e6   : > { %v1546_v3 = vadd.f32 %v3202_v28, %v1545_v4 }
 0x2e8   : > { %v3266_v15 = vadd.f32 %v1546_v3, %v2997_v14 }
 0x32f   : > { %v1422_v0 = vpop.f32.mrf.mxu3 }
 0x330   : > { %v1423_v59 = vadd.f32 %v3071_v19, %v1422_v0 }
 0x331   : > { %v1412_v29 = vpop.f32.mrf.mxu1 }
 0x332   : > { %v1413_v51 = vadd.f32 %v3071_v19, %v1412_v29  ;;  %v1445_v11 = vmax.f32 %v1423_v59, 0.0 }
 0x334   : > { %v1441_v23 = vmax.f32 %v1413_v51, 0.0 }
 0x336   : > { %v1607_v54 = vpop.xlane.xlu1 %1606 }
 0x337   : > { %v1424_v35 = vpop.f32.mrf.mxu3  ;;  %v1665_v29 = vmul.f32 %v1607_v54, %v2719_v55 }
 0x338   : > { %v1425_v8 = vadd.f32 %v3071_v19, %v1424_v35  ;;  %v1548_v63 = vpop.f32.mrf.mxu2 }
 0x339   : > { %v1414_v10 = vpop.f32.mrf.mxu1 }
 0x33a   : > { %v1446_v13 = vmax.f32 %v1425_v8, 0.0  ;;  %v1415_v47 = vadd.f32 %v3071_v19, %v1414_v10  ;;  %v1544_v19 = vadd.f32 %v3202_v28, %v1543_v46  ;;  %v3295_v10 = vsub.f32 %v3208_v7, %v1665_v29 }
 0x33c   : > { %v1456_v20 = vpack.c.bf16 %v1446_v13, %v1445_v11  ;;  %v1442_v27 = vmax.f32 %v1415_v47, 0.0  ;;  %v3255_v41 = vadd.f32 %v1544_v19, %v2994_v31  ;;  %v1705_v7 = vmul.f32 %v3295_v10, %v3295_v10 }
 0x33e   : > { %v1454_v17 = vpack.c.bf16 %v1442_v27, %v1441_v23  ;;  %2392 = vmatmul.msk.bf16.gmra.mxu3 %vm1493_vm3, %v1456_v20  ;;  %v1617_v53 = vsel %vm683_vm0, %v3255_v41, 0.0 }
 0x340   : > { %2390 = vmatmul.msk.bf16.gmra.mxu2 %vm1493_vm3, %v1454_v17  ;;  %v1550_v18 = vpop.f32.mrf.mxu2 }
 0x341   : > { %v1551_v20 = vadd.f32 %v3202_v28, %v1550_v18 }
 0x348   : > { %v1553_v12 = vpop.f32.mrf.mxu2 }
 0x349   : > { %v1554_v31 = vadd.f32 %v3202_v28, %v1553_v12 }
 0x34b   : > { %v3272_v52 = vadd.f32 %v1554_v31, %v3093_v44 }
 0x34d   : > { %v1629_v25 = vsel %vm683_vm0, %v3272_v52, 0.0 }
 0x34e   : > { %v1616_v13 = vpop.xlane.xlu1 %1615 }
 0x34f   : > { %v1668_v23 = vmul.f32 %v1616_v13, %v2719_v55 }
 0x350   : > { %v1555_v60 = vpop.f32.mrf.mxu2 }
 0x351   : > { %v1556_v27 = vadd.f32 %v3202_v28, %v1555_v60 }
 0x353   : > { %v3323_v18 = vadd.f32 %v1556_v27, %v3085_v5 }
 0x355   : > { %v1632_v19 = vsel %vm683_vm0, %v3323_v18, 0.0 }
 0x358   : > { %v1558_v30 = vpop.f32.mrf.mxu2 }
 0x360   : > { %v1560_v45 = vpop.f32.mrf.mxu2 }
 0x361   : > { %v1561_v9 = vadd.f32 %v3202_v28, %v1560_v45 }
 0x363   : > { %v3278_v24 = vadd.f32 %v1561_v9, %v3126_v48  ;;  %v1549_v48 = vadd.f32 %v3202_v28, %v1548_v63  ;;  %v3320_v63 = vadd.f32 %v1551_v20, %v3048_v43 }
 0x365   : > { %v1638_v14 = vsel %vm683_vm0, %v3278_v24, 0.0  ;;  %v3301_v46 = vadd.f32 %v1549_v48, %v3045_v40  ;;  %v3316_v40 = vsub.f32 %v3231_v2, %v1668_v23  ;;  %v1626_v2 = vsel %vm683_vm0, %v3320_v63, 0.0 }
 0x366   : > { %v1573_v61 = vpop.f32.mrf.mxu3 }
 0x367   : > { %v1574_v49 = vadd.f32 %v3202_v28, %v1573_v61  ;;  %v1623_v4 = vsel %vm683_vm0, %v3301_v46, 0.0  ;;  %v1708_v12 = vmul.f32 %v3316_v40, %v3316_v40  ;;  %v1559_v61 = vadd.f32 %v3202_v28, %v1558_v30  ;;  %v1613_v30 = vpop.xlane.xlu0 %1612 }
 0x368   : > { %v1563_v62 = vpop.f32.mrf.mxu2 }
 0x369   : > { %v3248_v16 = vadd.f32 %v1574_v49, %v3140_v36  ;;  %v1564_v49 = vadd.f32 %v3202_v28, %v1563_v62  ;;  %v1734_v43 = vsel %vm683_vm0, %v1708_v12, 0.0  ;;  %v3335_v5 = vadd.f32 %v1559_v61, %v3129_v6 }
 0x36b   : > { %v1653_v58 = vsel %vm683_vm0, %v3248_v16, 0.0 }
 0x36c   : > { %1654 = vadd.xlane.f32.xlu2 %v1653_v58  ;;  %v3338_v58 = vadd.f32 %v1564_v49, %v3158_v34  ;;  %v1667_v34 = vmul.f32 %v1613_v30, %v2719_v55 }
 0x36e   : > { %v1575_v38 = vpop.f32.mrf.mxu3  ;;  %v3358_v9 = vsub.f32 %v3223_v21, %v1667_v34 }
 0x36f   : > { %v1576_v39 = vadd.f32 %v3202_v28, %v1575_v38  ;;  %v1610_v38 = vpop.xlane.xlu2 %1609 }
 0x370   : > { %v1565_v33 = vpop.f32.mrf.mxu2  ;;  %v1666_v6 = vmul.f32 %v1610_v38, %v2719_v55 }
 0x371   : > { %v3258_v32 = vadd.f32 %v1576_v39, %v3143_v26  ;;  %v1620_v26 = vsel %vm683_vm0, %v3266_v15, 0.0  ;;  %v1566_v39 = vadd.f32 %v3202_v28, %v1565_v33 }
 0x372   : > { %v3355_v45 = vsub.f32 %v3215_v37, %v1666_v6  ;;  %v1707_v37 = vmul.f32 %v3358_v9, %v3358_v9 }
 0x373   : > { %v1656_v36 = vsel %vm683_vm0, %v3258_v32, 0.0  ;;  %v3349_v31 = vadd.f32 %v1566_v39, %v3155_v50 }
 0x374   : > { %1657 = vadd.xlane.f32.xlu0 %v1656_v36  ;;  %1618 = vadd.xlane.f32.xlu2 %v1617_v53  ;;  %v1635_v36 = vsel %vm683_vm0, %v3335_v5, 0.0  ;;  %v1641_v53 = vsel %vm683_vm0, %v3338_v58, 0.0  ;;  %v1731_v54 = vsel %vm683_vm0, %v1707_v37, 0.0 }
 0x37c   : > { %1621 = vadd.xlane.f32.xlu0 %v1620_v26 }
 0x384   : > { %1630 = vadd.xlane.f32.xlu0 %v1629_v25  ;;  %v1644_v25 = vsel %vm683_vm0, %v3349_v31, 0.0 }
 0x38c   : > { %1639 = vadd.xlane.f32.xlu0 %v1638_v14 }
 0x3c1   : > { %v1578_v1 = vpop.f32.mrf.mxu3 }
 0x3c2   : > { %v1579_v44 = vadd.f32 %v3202_v28, %v1578_v1 }
 0x3c3   : > { %v1568_v0 = vpop.f32.mrf.mxu2 }
 0x3c4   : > { %v1569_v59 = vadd.f32 %v3202_v28, %v1568_v0  ;;  %v3286_v35 = vadd.f32 %v1579_v44, %v3174_v22 }
 0x3c6   : > { %v1659_v51 = vsel %vm683_vm0, %v3286_v35, 0.0  ;;  %v3292_v8 = vadd.f32 %v1569_v59, %v3188_v56 }
 0x3c7   : > { %1660 = vadd.xlane.f32.xlu1 %v1659_v51 }
 0x3c8   : > { %v1647_v11 = vsel %vm683_vm0, %v3292_v8, 0.0 }
 0x3c9   : > { %v1580_v47 = vpop.f32.mrf.mxu3  ;;  %1648 = vadd.xlane.f32.xlu0 %v1647_v11 }
 0x3ca   : > { %v1581_v22 = vadd.f32 %v3202_v28, %v1580_v47 }
 0x3cb   : > { %v1570_v60 = vpop.f32.mrf.mxu2 }
 0x3cc   : > { %v3305_v56 = vadd.f32 %v1581_v22, %v3177_v42  ;;  %v1725_v42 = vsel %vm683_vm0, %v1705_v7, 0.0  ;;  %v1571_v3 = vadd.f32 %v3202_v28, %v1570_v60 }
 0x3ce   : > { %v1662_v17 = vsel %vm683_vm0, %v3305_v56, 0.0  ;;  %v3352_v26 = vadd.f32 %v1571_v3, %v3191_v57  ;;  %v1706_v57 = vmul.f32 %v3355_v45, %v3355_v45 }
 0x3cf   : > { %1663 = vadd.xlane.f32.xlu2 %v1662_v17  ;;  %1624 = vadd.xlane.f32.xlu1 %v1623_v4 }
 0x3d0   : > { %v1650_v14 = vsel %vm683_vm0, %v3352_v26, 0.0  ;;  %v1728_v33 = vsel %vm683_vm0, %v1706_v57, 0.0 }
 0x3d1   : > { %1726 = vadd.xlane.f32.xlu0 %v1725_v42 }
 0x3d7   : > { %1627 = vadd.xlane.f32.xlu2 %v1626_v2  ;;  %1633 = vadd.xlane.f32.xlu1 %v1632_v19 }
 0x3d9   : > { %1735 = vadd.xlane.f32.xlu0 %v1734_v43 }
 0x3df   : > { %1636 = vadd.xlane.f32.xlu2 %v1635_v36  ;;  %1642 = vadd.xlane.f32.xlu1 %v1641_v53  ;;  %v1655_v28 = vpop.xlane.xlu2 %1654 }
 0x3e0   : > { %v1681_v62 = vmul.f32 %v1655_v28, %v2719_v55 }
 0x3e2   : > { %v3370_v21 = vsub.f32 %v3248_v16, %v1681_v62 }
 0x3e4   : > { %v1721_v48 = vmul.f32 %v3370_v21, %v3370_v21 }
 0x3e6   : > { %v1773_v11 = vsel %vm683_vm0, %v1721_v48, 0.0 }
 0x3e7   : > { %1645 = vadd.xlane.f32.xlu2 %v1644_v25  ;;  %1651 = vadd.xlane.f32.xlu1 %v1650_v14  ;;  %v1658_v50 = vpop.xlane.xlu0 %1657  ;;  %v1619_v1 = vpop.xlane.xlu2 %1618 }
 0x3e8   : > { %v1669_v29 = vmul.f32 %v1619_v1, %v2719_v55  ;;  %v1682_v2 = vmul.f32 %v1658_v50, %v2719_v55 }
 0x3ea   : > { %v3384_v51 = vsub.f32 %v3255_v41, %v1669_v29  ;;  %v3417_v38 = vsub.f32 %v3258_v32, %v1682_v2 }
 0x3ec   : > { %v1709_v23 = vmul.f32 %v3384_v51, %v3384_v51  ;;  %v1722_v34 = vmul.f32 %v3417_v38, %v3417_v38 }
 0x3ee   : > { %v1737_v41 = vsel %vm683_vm0, %v1709_v23, 0.0  ;;  %v1776_v50 = vsel %vm683_vm0, %v1722_v34, 0.0 }
 0x3ef   : > { %1729 = vadd.xlane.f32.xlu1 %v1728_v33  ;;  %1732 = vadd.xlane.f32.xlu2 %v1731_v54  ;;  %v1622_v44 = vpop.xlane.xlu0 %1621 }
 0x3f0   : > { %v1670_v0 = vmul.f32 %v1622_v44, %v2719_v55 }
 0x3f2   : > { %v3377_v59 = vsub.f32 %v3266_v15, %v1670_v0 }
 0x3f4   : > { %v1710_v16 = vmul.f32 %v3377_v59, %v3377_v59 }
 0x3f6   : > { %v1740_v13 = vsel %vm683_vm0, %v1710_v16, 0.0 }
 0x3f7   : > { %1774 = vadd.xlane.f32.xlu1 %v1773_v11  ;;  %1741 = vadd.xlane.f32.xlu2 %v1740_v13  ;;  %v1631_v47 = vpop.xlane.xlu0 %1630 }
 0x3f8   : > { %v1673_v22 = vmul.f32 %v1631_v47, %v2719_v55 }
 0x3fa   : > { %v3390_v15 = vsub.f32 %v3272_v52, %v1673_v22 }
 0x3fc   : > { %v1713_v7 = vmul.f32 %v3390_v15, %v3390_v15 }
 0x3fe   : > { %v1749_v20 = vsel %vm683_vm0, %v1713_v7, 0.0 }
 0x3ff   : > { %1738 = vadd.xlane.f32.xlu1 %v1737_v41  ;;  %1750 = vadd.xlane.f32.xlu2 %v1749_v20  ;;  %v1640_v27 = vpop.xlane.xlu0 %1639 }
 0x400   : > { %v1676_v17 = vmul.f32 %v1640_v27, %v2719_v55 }
 0x402   : > { %v3400_v4 = vsub.f32 %v3278_v24, %v1676_v17 }
 0x404   : > { %v1716_v52 = vmul.f32 %v3400_v4, %v3400_v4 }
 0x406   : > { %v1758_v42 = vsel %vm683_vm0, %v1716_v52, 0.0 }
 0x407   : > { %1759 = vadd.xlane.f32.xlu2 %v1758_v42 }
 0x43a   : > { %v3405_v12 = vpop.xlane.xlu1 %1660 }
 0x43c   : > { %v1649_v61 = vpop.xlane.xlu0 %1648 }
 0x43d   : > { %v1679_v49 = vmul.f32 %v1649_v61, %v2719_v55 }
 0x43f   : > { %v3410_v19 = vsub.f32 %v3292_v8, %v1679_v49 }
 0x441   : > { %v1719_v24 = vmul.f32 %v3410_v19, %v3410_v19 }
 0x442   : > { %v3414_v43 = vpop.xlane.xlu2 %1663  ;;  %v1625_v60 = vpop.xlane.xlu1 %1624 }
 0x443   : > { %v1671_v39 = vmul.f32 %v1625_v60, %v2719_v55  ;;  %v1767_v3 = vsel %vm683_vm0, %v1719_v24, 0.0  ;;  %v1684_v34 = vmul.f32 %v3414_v43, %v2719_v55 }
 0x444   : > { %1768 = vadd.xlane.f32.xlu2 %v1767_v3  ;;  %v1727_v36 = vpop.xlane.xlu0 %1726 }
 0x445   : > { %v3422_v53 = vsub.f32 %v3301_v46, %v1671_v39  ;;  %v1785_v8 = vmul.f32 %v1727_v36, %v2719_v55  ;;  %v3472_v39 = vld [vmem:[%s586_s13] ss:$0 sm:$0xff] }
 0x447   : > { %v1805_v30 = vadd.f32 1e-05, %v1785_v8  ;;  %v1711_v6 = vmul.f32 %v3422_v53, %v3422_v53 }
 0x449   : > { %2484 = vrsqrt.f32 %v1805_v30  ;;  %v1743_v32 = vsel %vm683_vm0, %v1711_v6, 0.0  ;;  %vm1831_vm5 = vweird.f32 %v1805_v30 }
 0x44a   : > { %v1628_v28 = vpop.xlane.xlu2 %1627  ;;  %v1634_v25 = vpop.xlane.xlu1 %1633  ;;  %1744 = vadd.xlane.f32.xlu0 %v1743_v32 }
 0x44b   : > { %v1672_v14 = vmul.f32 %v1628_v28, %v2719_v55  ;;  %v1674_v46 = vmul.f32 %v1634_v25, %v2719_v55 }
 0x44c   : > { %1777 = vadd.xlane.f32.xlu2 %v1776_v50  ;;  %v1736_v62 = vpop.xlane.xlu0 %1735 }
 0x44d   : > { %v3434_v57 = vsub.f32 %v3320_v63, %v1672_v14  ;;  %v3437_v37 = vsub.f32 %v3323_v18, %v1674_v46  ;;  %v1788_v33 = vmul.f32 %v1736_v62, %v2719_v55  ;;  %v3504_v46 = vsub.f32 %v3305_v56, %v1684_v34 }
 0x44f   : > { %v2485_v54 = vpop.eup %2484  ;;  %v1808_v1 = vadd.f32 1e-05, %v1788_v33  ;;  %v1712_v44 = vmul.f32 %v3434_v57, %v3434_v57  ;;  %v1714_v0 = vmul.f32 %v3437_v37, %v3437_v37 }
 0x450   : > { %v1826_v29 = vmul.f32 %v2485_v54, %v1805_v30  ;;  %vm1832_vm3 = vweird.f32 %v2485_v54  ;;  %v1683_v30 = vmul.f32 %v3405_v12, %v2719_v55 }
 0x451   : > { %2486 = vrsqrt.f32 %v1808_v1  ;;  %v1746_v48 = vsel %vm683_vm0, %v1712_v44, 0.0  ;;  %v1752_v63 = vsel %vm683_vm0, %v1714_v0, 0.0  ;;  %vm1833_vm6 = vmor %vm1831_vm5, %vm1832_vm3  ;;  %vm1861_vm8 = vweird.f32 %v1808_v1 }
 0x452   : > { %v1827_v16 = vmul.f32 %v2485_v54, %v1826_v29  ;;  %v1637_v11 = vpop.xlane.xlu2 %1636  ;;  %v1643_v18 = vpop.xlane.xlu1 %1642  ;;  %1747 = vadd.xlane.f32.xlu1 %v1746_v48  ;;  %1753 = vadd.xlane.f32.xlu0 %v1752_v63 }
 0x453   : > { %v1675_v13 = vmul.f32 %v1637_v11, %v2719_v55  ;;  %v1677_v47 = vmul.f32 %v1643_v18, %v2719_v55 }
 0x454   : > { %v1828_v22 = vmul.f32 0.5, %v1827_v16  ;;  %v1724_v16 = vmul.f32 %v3504_v46, %v3504_v46 }
 0x455   : > { %v3449_v23 = vsub.f32 %v3335_v5, %v1675_v13  ;;  %v3452_v7 = vsub.f32 %v3338_v58, %v1677_v47  ;;  %v3463_v5 = vld [vmem:[%s583_s28] ss:$0 sm:$0xff] }
 0x456   : > { %v1829_v41 = vsub.f32 1.5, %v1828_v22 }
 0x457   : > { %v2487_v20 = vpop.eup %2486  ;;  %v1715_v27 = vmul.f32 %v3449_v23, %v3449_v23  ;;  %v1717_v17 = vmul.f32 %v3452_v7, %v3452_v7 }
 0x458   : > { %v1830_v52 = vmul.f32 %v2485_v54, %v1829_v41  ;;  %v1856_v42 = vmul.f32 %v2487_v20, %v1808_v1  ;;  %vm1862_vm7 = vweird.f32 %v2487_v20 }
 0x459   : > { %v1755_v58 = vsel %vm683_vm0, %v1715_v27, 0.0  ;;  %v1761_v61 = vsel %vm683_vm0, %v1717_v17, 0.0  ;;  %vm1863_vm9 = vmor %vm1861_vm8, %vm1862_vm7 }
 0x45a   : > { %v1834_v49 = vsel %vm1833_vm6, %v2485_v54, %v1830_v52  ;;  %v1857_v2 = vmul.f32 %v2487_v20, %v1856_v42  ;;  %v1646_v24 = vpop.xlane.xlu2 %1645  ;;  %1756 = vadd.xlane.f32.xlu1 %v1755_v58  ;;  %v1652_v60 = vpop.xlane.xlu1 %1651  ;;  %1762 = vadd.xlane.f32.xlu0 %v1761_v61 }
 0x45b   : > { %v2025_v3 = vmul.f32 %v1834_v49, %v3295_v10  ;;  %v1678_v36 = vmul.f32 %v1646_v24, %v2719_v55  ;;  %v1680_v8 = vmul.f32 %v1652_v60, %v2719_v55 }
 0x45c   : > { %v1858_v6 = vmul.f32 0.5, %v1857_v2 }
 0x45d   : > { %v2048_v32 = vmul.f32 %v3463_v5, %v2025_v3  ;;  %v3483_v28 = vsub.f32 %v3349_v31, %v1678_v36  ;;  %v3486_v25 = vsub.f32 %v3352_v26, %v1680_v8  ;;  %v3501_v26 = vsub.f32 %v3286_v35, %v1683_v30 }
 0x45e   : > { %v1859_v10 = vsub.f32 1.5, %v1858_v6 }
 0x45f   : > { %v2071_v12 = vadd.f32 %v3472_v39, %v2048_v32  ;;  %v1718_v43 = vmul.f32 %v3483_v28, %v3483_v28  ;;  %v1720_v31 = vmul.f32 %v3486_v25, %v3486_v25  ;;  %v1723_v0 = vmul.f32 %v3501_v26, %v3501_v26 }
 0x460   : > { %v1860_v14 = vmul.f32 %v2487_v20, %v1859_v10 }
 0x461   : > { %2091 = vst.msk [vmem:[%s3493_s14] sm:$0xff] %vm683_vm0, %v2071_v12  ;;  %v1764_v50 = vsel %vm683_vm0, %v1718_v43, 0.0  ;;  %v1770_v62 = vsel %vm683_vm0, %v1720_v31, 0.0  ;;  %v1779_v18 = vsel %vm683_vm0, %v1723_v0, 0.0 }
 0x462   : > { %v1864_v33 = vsel %vm1863_vm9, %v2487_v20, %v1860_v14  ;;  %1765 = vadd.xlane.f32.xlu1 %v1764_v50  ;;  %v1730_v54 = vpop.xlane.xlu1 %1729  ;;  %1771 = vadd.xlane.f32.xlu0 %v1770_v62  ;;  %v1733_v44 = vpop.xlane.xlu2 %1732 }
 0x463   : > { %v2028_v35 = vmul.f32 %v1864_v33, %v3316_v40  ;;  %v1786_v1 = vmul.f32 %v1730_v54, %v2719_v55  ;;  %v1787_v56 = vmul.f32 %v1733_v44, %v2719_v55  ;;  %v1782_v40 = vsel %vm683_vm0, %v1724_v16, 0.0 }
 0x465   : > { %v2051_v29 = vmul.f32 %v3463_v5, %v2028_v35  ;;  %v1806_v48 = vadd.f32 1e-05, %v1786_v1  ;;  %v1807_v63 = vadd.f32 1e-05, %v1787_v56 }
 0x467   : > { %v2074_v11 = vadd.f32 %v3472_v39, %v2051_v29  ;;  %2488 = vrsqrt.f32 %v1806_v48  ;;  %vm1841_vm12 = vweird.f32 %v1806_v48  ;;  %vm1851_vm14 = vweird.f32 %v1807_v63 }
 0x468   : > { %2490 = vrsqrt.f32 %v1807_v63 }
 0x469   : > { %2094 = vst.msk [vmem:[%s3493_s14 + $0x18] sm:$0xff] %vm683_vm0, %v2074_v11 }
 0x46a   : > { %1783 = vadd.xlane.f32.xlu1 %v1782_v40  ;;  %v1775_v13 = vpop.xlane.xlu1 %1774  ;;  %1780 = vadd.xlane.f32.xlu0 %v1779_v18  ;;  %v1742_v47 = vpop.xlane.xlu2 %1741 }
 0x46b   : > { %v1801_v22 = vmul.f32 %v1775_v13, %v2719_v55  ;;  %v1790_v41 = vmul.f32 %v1742_v47, %v2719_v55 }
 0x46d   : > { %v2489_v20 = vpop.eup %2488  ;;  %v1821_v27 = vadd.f32 1e-05, %v1801_v22  ;;  %v3525_v17 = vadd.f32 1e-05, %v1790_v41 }
 0x46e   : > { %v2491_v52 = vpop.eup %2490  ;;  %v1836_v42 = vmul.f32 %v2489_v20, %v1806_v48  ;;  %vm1842_vm10 = vweird.f32 %v2489_v20 }
 0x46f   : > { %v1846_v58 = vmul.f32 %v2491_v52, %v1807_v63  ;;  %2492 = vrsqrt.f32 %v1821_v27  ;;  %vm1852_vm11 = vweird.f32 %v2491_v52  ;;  %vm1843_vm13 = vmor %vm1841_vm12, %vm1842_vm10  ;;  %vm1991_vm4 = vweird.f32 %v1821_v27 }
 0x470   : > { %v1837_v61 = vmul.f32 %v2489_v20, %v1836_v42  ;;  %2494 = vrsqrt.f32 %v3525_v17  ;;  %vm1853_vm15 = vmor %vm1851_vm14, %vm1852_vm11  ;;  %vm1881_vm5 = vweird.f32 %v3525_v17 }
 0x471   : > { %v1847_v49 = vmul.f32 %v2491_v52, %v1846_v58 }
 0x472   : > { %v1838_v2 = vmul.f32 0.5, %v1837_v61  ;;  %v1739_v24 = vpop.xlane.xlu1 %1738  ;;  %v1751_v60 = vpop.xlane.xlu2 %1750 }
 0x473   : > { %v1848_v3 = vmul.f32 0.5, %v1847_v49  ;;  %v1789_v36 = vmul.f32 %v1739_v24, %v2719_v55  ;;  %v1793_v8 = vmul.f32 %v1751_v60, %v2719_v55 }
 0x474   : > { %v1839_v30 = vsub.f32 1.5, %v1838_v2 }
 0x475   : > { %v2493_v6 = vpop.eup %2492  ;;  %v1849_v34 = vsub.f32 1.5, %v1848_v3  ;;  %v3530_v32 = vadd.f32 1e-05, %v1789_v36  ;;  %v3532_v10 = vadd.f32 1e-05, %v1793_v8 }
 0x476   : > { %v2495_v12 = vpop.eup %2494  ;;  %v1840_v43 = vmul.f32 %v2489_v20, %v1839_v30  ;;  %v1986_v31 = vmul.f32 %v2493_v6, %v1821_v27  ;;  %vm1992_vm1 = vweird.f32 %v2493_v6 }
 0x477   : > { %v1850_v14 = vmul.f32 %v2491_v52, %v1849_v34  ;;  %v1876_v50 = vmul.f32 %v2495_v12, %v3525_v17  ;;  %2496 = vrsqrt.f32 %v3530_v32  ;;  %vm1882_vm2 = vweird.f32 %v2495_v12  ;;  %vm1993_vm3 = vmor %vm1991_vm4, %vm1992_vm1 }
 0x478   : > { %v1844_v62 = vsel %vm1843_vm13, %v2489_v20, %v1840_v43  ;;  %v1987_v33 = vmul.f32 %v2493_v6, %v1986_v31  ;;  %2498 = vrsqrt.f32 %v3532_v10  ;;  %vm1883_vm6 = vmor %vm1881_vm5, %vm1882_vm2  ;;  %vm1871_vm9 = vweird.f32 %v3530_v32 }
 0x479   : > { %v2026_v54 = vmul.f32 %v1844_v62, %v3355_v45  ;;  %v1854_v44 = vsel %vm1853_vm15, %v2491_v52, %v1850_v14  ;;  %v1877_v35 = vmul.f32 %v2495_v12, %v1876_v50  ;;  %vm1911_vm11 = vweird.f32 %v3532_v10 }
 0x47a   : > { %v2027_v1 = vmul.f32 %v1854_v44, %v3358_v9  ;;  %v1988_v56 = vmul.f32 0.5, %v1987_v33  ;;  %v1760_v0 = vpop.xlane.xlu2 %1759 }
 0x47b   : > { %v2049_v29 = vmul.f32 %v3463_v5, %v2026_v54  ;;  %v1878_v48 = vmul.f32 0.5, %v1877_v35  ;;  %v1796_v63 = vmul.f32 %v1760_v0, %v2719_v55 }
 0x47c   : > { %v2050_v16 = vmul.f32 %v3463_v5, %v2027_v1  ;;  %v1989_v11 = vsub.f32 1.5, %v1988_v56 }
 0x47d   : > { %v2497_v40 = vpop.eup %2496  ;;  %v2072_v45 = vadd.f32 %v3472_v39, %v2049_v29  ;;  %v1879_v18 = vsub.f32 1.5, %v1878_v48  ;;  %v1816_v13 = vadd.f32 1e-05, %v1796_v63 }
 0x47e   : > { %v2499_v9 = vpop.eup %2498  ;;  %v2073_v47 = vadd.f32 %v3472_v39, %v2050_v16  ;;  %v1990_v22 = vmul.f32 %v2493_v6, %v1989_v11  ;;  %v1866_v41 = vmul.f32 %v2497_v40, %v3530_v32  ;;  %vm1872_vm7 = vweird.f32 %v2497_v40 }
 0x47f   : > { %2092 = vst.msk [vmem:[%s3493_s14 + $0x8] sm:$0xff] %vm683_vm0, %v2072_v45  ;;  %v1880_v20 = vmul.f32 %v2495_v12, %v1879_v18  ;;  %v1906_v52 = vmul.f32 %v2499_v9, %v3532_v10  ;;  %2500 = vrsqrt.f32 %v1816_v13  ;;  %vm1912_vm8 = vweird.f32 %v2499_v9  ;;  %vm1873_vm10 = vmor %vm1871_vm9, %vm1872_vm7 }
 0x480   : > { %2093 = vst.msk [vmem:[%s3493_s14 + $0x10] sm:$0xff] %vm683_vm0, %v2073_v47  ;;  %v1994_v42 = vsel %vm1993_vm3, %v2493_v6, %v1990_v22  ;;  %v1867_v58 = vmul.f32 %v2497_v40, %v1866_v41  ;;  %vm1913_vm12 = vmor %vm1911_vm11, %vm1912_vm8  ;;  %vm1941_vm14 = vweird.f32 %v1816_v13 }
 0x481   : > { %v2041_v61 = vmul.f32 %v1994_v42, %v3370_v21  ;;  %v1884_v27 = vsel %vm1883_vm6, %v2495_v12, %v1880_v20  ;;  %v1907_v49 = vmul.f32 %v2499_v9, %v1906_v52 }
 0x482   : > { %v2030_v2 = vmul.f32 %v1884_v27, %v3377_v59  ;;  %v1868_v24 = vmul.f32 0.5, %v1867_v58 }
 0x483   : > { %v2064_v60 = vmul.f32 %v3463_v5, %v2041_v61  ;;  %v1908_v17 = vmul.f32 0.5, %v1907_v49 }
 0x484   : > { %v2053_v3 = vmul.f32 %v3463_v5, %v2030_v2  ;;  %v1869_v36 = vsub.f32 1.5, %v1868_v24 }
 0x485   : > { %v2501_v8 = vpop.eup %2500  ;;  %v2087_v30 = vadd.f32 %v3472_v39, %v2064_v60  ;;  %v1909_v6 = vsub.f32 1.5, %v1908_v17 }
 0x486   : > { %v2076_v21 = vadd.f32 %v3472_v39, %v2053_v3  ;;  %v1870_v34 = vmul.f32 %v2497_v40, %v1869_v36  ;;  %v1936_v59 = vmul.f32 %v2501_v8, %v1816_v13  ;;  %vm1942_vm13 = vweird.f32 %v2501_v8 }
 0x487   : > { %2107 = vst.msk [vmem:[%s3493_s14 + $0x80] sm:$0xff] %vm683_vm0, %v2087_v30  ;;  %v1910_v12 = vmul.f32 %v2499_v9, %v1909_v6  ;;  %vm1943_vm15 = vmor %vm1941_vm14, %vm1942_vm13 }
 0x488   : > { %2096 = vst.msk [vmem:[%s3493_s14 + $0x28] sm:$0xff] %vm683_vm0, %v2076_v21  ;;  %v1874_v43 = vsel %vm1873_vm10, %v2497_v40, %v1870_v34  ;;  %v1937_v31 = vmul.f32 %v2501_v8, %v1936_v59 }
 0x489   : > { %v2029_v14 = vmul.f32 %v1874_v43, %v3384_v51  ;;  %v1914_v50 = vsel %vm1913_vm12, %v2499_v9, %v1910_v12 }
 0x48a   : > { %v2033_v62 = vmul.f32 %v1914_v50, %v3390_v15  ;;  %v1938_v32 = vmul.f32 0.5, %v1937_v31 }
 0x48b   : > { %v2052_v33 = vmul.f32 %v3463_v5, %v2029_v14 }
 0x48c   : > { %v2056_v54 = vmul.f32 %v3463_v5, %v2033_v62  ;;  %v1939_v44 = vsub.f32 1.5, %v1938_v32 }
 0x48d   : > { %v2075_v10 = vadd.f32 %v3472_v39, %v2052_v33 }
 0x48e   : > { %v2079_v35 = vadd.f32 %v3472_v39, %v2056_v54  ;;  %v1940_v1 = vmul.f32 %v2501_v8, %v1939_v44 }
 0x48f   : > { %2095 = vst.msk [vmem:[%s3493_s14 + $0x20] sm:$0xff] %vm683_vm0, %v2075_v10 }
 0x490   : > { %2099 = vst.msk [vmem:[%s3493_s14 + $0x40] sm:$0xff] %vm683_vm0, %v2079_v35  ;;  %v1944_v51 = vsel %vm1943_vm15, %v2501_v8, %v1940_v1 }
 0x491   : > { %v2036_v15 = vmul.f32 %v1944_v51, %v3400_v4 }
 0x493   : > { %v2059_v56 = vmul.f32 %v3463_v5, %v2036_v15 }
 0x495   : > { %v2082_v0 = vadd.f32 %v3472_v39, %v2059_v56 }
 0x497   : > { %2102 = vst.msk [vmem:[%s3493_s14 + $0x58] sm:$0xff] %vm683_vm0, %v2082_v0 }
 0x4b7   : > { %v1769_v29 = vpop.xlane.xlu2 %1768 }
 0x4b8   : > { %v1799_v48 = vmul.f32 %v1769_v29, %v2719_v55 }
 0x4ba   : > { %v1819_v63 = vadd.f32 1e-05, %v1799_v48 }
 0x4bc   : > { %2502 = vrsqrt.f32 %v1819_v63  ;;  %vm1971_vm2 = vweird.f32 %v1819_v63 }
 0x4bd   : > { %v1745_v16 = vpop.xlane.xlu0 %1744 }
 0x4be   : > { %v1791_v11 = vmul.f32 %v1745_v16, %v2719_v55 }
 0x4bf   : > { %v1778_v40 = vpop.xlane.xlu2 %1777 }
 0x4c0   : > { %v1811_v45 = vadd.f32 1e-05, %v1791_v11  ;;  %v1802_v18 = vmul.f32 %v1778_v40, %v2719_v55 }
 0x4c2   : > { %v2503_v13 = vpop.eup %2502  ;;  %2504 = vrsqrt.f32 %v1811_v45  ;;  %v1822_v4 = vadd.f32 1e-05, %v1802_v18  ;;  %vm1891_vm5 = vweird.f32 %v1811_v45 }
 0x4c3   : > { %v1966_v9 = vmul.f32 %v2503_v13, %v1819_v63  ;;  %vm1972_vm1 = vweird.f32 %v2503_v13 }
 0x4c4   : > { %2506 = vrsqrt.f32 %v1822_v4  ;;  %vm1973_vm4 = vmor %vm1971_vm2, %vm1972_vm1  ;;  %vm2001_vm8 = vweird.f32 %v1822_v4 }
 0x4c5   : > { %v1967_v47 = vmul.f32 %v2503_v13, %v1966_v9  ;;  %v1748_v22 = vpop.xlane.xlu1 %1747  ;;  %v1754_v41 = vpop.xlane.xlu0 %1753 }
 0x4c6   : > { %v1792_v20 = vmul.f32 %v1748_v22, %v2719_v55  ;;  %v1794_v52 = vmul.f32 %v1754_v41, %v2719_v55 }
 0x4c7   : > { %v1968_v42 = vmul.f32 0.5, %v1967_v47 }
 0x4c8   : > { %v2505_v58 = vpop.eup %2504  ;;  %v3584_v61 = vadd.f32 1e-05, %v1792_v20  ;;  %v3586_v27 = vadd.f32 1e-05, %v1794_v52 }
 0x4c9   : > { %v1969_v49 = vsub.f32 1.5, %v1968_v42  ;;  %v1886_v2 = vmul.f32 %v2505_v58, %v1811_v45  ;;  %vm1892_vm3 = vweird.f32 %v2505_v58 }
 0x4ca   : > { %v2507_v24 = vpop.eup %2506  ;;  %2508 = vrsqrt.f32 %v3584_v61  ;;  %vm1893_vm7 = vmor %vm1891_vm5, %vm1892_vm3  ;;  %vm1901_vm10 = vweird.f32 %v3584_v61  ;;  %vm1921_vm14 = vweird.f32 %v3586_v27 }
 0x4cb   : > { %v1970_v60 = vmul.f32 %v2503_v13, %v1969_v49  ;;  %v1887_v17 = vmul.f32 %v2505_v58, %v1886_v2  ;;  %v1996_v3 = vmul.f32 %v2507_v24, %v1822_v4  ;;  %2510 = vrsqrt.f32 %v3586_v27 }
 0x4cc   : > { %vm2002_vm6 = vweird.f32 %v2507_v24 }
 0x4cd   : > { %v1974_v36 = vsel %vm1973_vm4, %v2503_v13, %v1970_v60  ;;  %v1888_v8 = vmul.f32 0.5, %v1887_v17  ;;  %v1997_v30 = vmul.f32 %v2507_v24, %v1996_v3  ;;  %v1757_v6 = vpop.xlane.xlu1 %1756  ;;  %v1763_v21 = vpop.xlane.xlu0 %1762  ;;  %vm2003_vm9 = vmor %vm2001_vm8, %vm2002_vm6 }
 0x4ce   : > { %v2039_v34 = vmul.f32 %v1974_v36, %v3410_v19  ;;  %v1795_v59 = vmul.f32 %v1757_v6, %v2719_v55  ;;  %v1797_v12 = vmul.f32 %v1763_v21, %v2719_v55 }
 0x4cf   : > { %v1889_v43 = vsub.f32 1.5, %v1888_v8  ;;  %v1998_v31 = vmul.f32 0.5, %v1997_v30 }
 0x4d0   : > { %v2509_v14 = vpop.eup %2508  ;;  %v2062_v50 = vmul.f32 %v3463_v5, %v2039_v34  ;;  %v3594_v62 = vadd.f32 1e-05, %v1795_v59  ;;  %v3596_v32 = vadd.f32 1e-05, %v1797_v12 }
 0x4d1   : > { %v1890_v33 = vmul.f32 %v2505_v58, %v1889_v43  ;;  %v1999_v54 = vsub.f32 1.5, %v1998_v31  ;;  %v1896_v19 = vmul.f32 %v2509_v14, %v3584_v61  ;;  %v2511_v44 = vpop.eup %2510  ;;  %vm1902_vm11 = vweird.f32 %v2509_v14 }
 0x4d2   : > { %v2085_v10 = vadd.f32 %v3472_v39, %v2062_v50  ;;  %2512 = vrsqrt.f32 %v3594_v62  ;;  %v1916_v15 = vmul.f32 %v2511_v44, %v3586_v27  ;;  %vm1922_vm12 = vweird.f32 %v2511_v44  ;;  %vm1903_vm13 = vmor %vm1901_vm10, %vm1902_vm11 }
 0x4d3   : > { %v1894_v35 = vsel %vm1893_vm7, %v2505_v58, %v1890_v33  ;;  %v2000_v1 = vmul.f32 %v2507_v24, %v1999_v54  ;;  %v1897_v51 = vmul.f32 %v2509_v14, %v1896_v19  ;;  %2514 = vrsqrt.f32 %v3596_v32  ;;  %vm1923_vm15 = vmor %vm1921_vm14, %vm1922_vm12 }
 0x4d4   : > { %2105 = vst.msk [vmem:[%s3493_s14 + $0x70] sm:$0xff] %vm683_vm0, %v2085_v10  ;;  %v2031_v56 = vmul.f32 %v1894_v35, %v3422_v53  ;;  %v1917_v48 = vmul.f32 %v2511_v44, %v1916_v15  ;;  %vm1931_vm1 = vweird.f32 %v3594_v62  ;;  %vm1951_vm5 = vweird.f32 %v3596_v32 }
 0x4d5   : > { %v2004_v0 = vsel %vm2003_vm9, %v2507_v24, %v2000_v1  ;;  %v1898_v29 = vmul.f32 0.5, %v1897_v51  ;;  %v1766_v63 = vpop.xlane.xlu1 %1765  ;;  %v1772_v16 = vpop.xlane.xlu0 %1771 }
 0x4d6   : > { %v2054_v11 = vmul.f32 %v3463_v5, %v2031_v56  ;;  %v2042_v40 = vmul.f32 %v2004_v0, %v3417_v38  ;;  %v1798_v45 = vmul.f32 %v1766_v63, %v2719_v55  ;;  %v1800_v18 = vmul.f32 %v1772_v16, %v2719_v55 }
 0x4d7   : > { %v1899_v13 = vsub.f32 1.5, %v1898_v29  ;;  %v1918_v53 = vmul.f32 0.5, %v1917_v48 }
 0x4d8   : > { %v2513_v4 = vpop.eup %2512  ;;  %v2077_v9 = vadd.f32 %v3472_v39, %v2054_v11  ;;  %v2065_v47 = vmul.f32 %v3463_v5, %v2042_v40  ;;  %v3613_v22 = vadd.f32 1e-05, %v1798_v45  ;;  %v3615_v41 = vadd.f32 1e-05, %v1800_v18 }
 0x4d9   : > { %v1900_v38 = vmul.f32 %v2509_v14, %v1899_v13  ;;  %v1919_v20 = vsub.f32 1.5, %v1918_v53  ;;  %v1926_v52 = vmul.f32 %v2513_v4, %v3594_v62  ;;  %v2515_v42 = vpop.eup %2514  ;;  %vm1932_vm2 = vweird.f32 %v2513_v4 }
 0x4da   : > { %2097 = vst.msk [vmem:[%s3493_s14 + $0x30] sm:$0xff] %vm683_vm0, %v2077_v9  ;;  %v2088_v58 = vadd.f32 %v3472_v39, %v2065_v47  ;;  %2516 = vrsqrt.f32 %v3613_v22  ;;  %v1946_v60 = vmul.f32 %v2515_v42, %v3596_v32  ;;  %vm1952_vm4 = vweird.f32 %v2515_v42  ;;  %vm1933_vm3 = vmor %vm1931_vm1, %vm1932_vm2 }
 0x4db   : > { %v1904_v49 = vsel %vm1903_vm13, %v2509_v14, %v1900_v38  ;;  %v1920_v2 = vmul.f32 %v2511_v44, %v1919_v20  ;;  %v1927_v24 = vmul.f32 %v2513_v4, %v1926_v52  ;;  %2518 = vrsqrt.f32 %v3615_v41  ;;  %vm1953_vm6 = vmor %vm1951_vm5, %vm1952_vm4 }
 0x4dc   : > { %2108 = vst.msk [vmem:[%s3493_s14 + $0x88] sm:$0xff] %vm683_vm0, %v2088_v58  ;;  %v2032_v17 = vmul.f32 %v1904_v49, %v3434_v57  ;;  %v1947_v61 = vmul.f32 %v2515_v42, %v1946_v60  ;;  %vm1961_vm8 = vweird.f32 %v3613_v22  ;;  %vm1981_vm11 = vweird.f32 %v3615_v41 }
 0x4dd   : > { %v1924_v3 = vsel %vm1923_vm15, %v2511_v44, %v1920_v2  ;;  %v1928_v36 = vmul.f32 0.5, %v1927_v24  ;;  %v1784_v8 = vpop.xlane.xlu1 %1783  ;;  %v1781_v30 = vpop.xlane.xlu0 %1780 }
 0x4de   : > { %v2055_v27 = vmul.f32 %v3463_v5, %v2032_v17  ;;  %v2034_v6 = vmul.f32 %v1924_v3, %v3437_v37  ;;  %v1804_v21 = vmul.f32 %v1784_v8, %v2719_v55  ;;  %v1803_v34 = vmul.f32 %v1781_v30, %v2719_v55 }
 0x4df   : > { %v1929_v59 = vsub.f32 1.5, %v1928_v36  ;;  %v1948_v57 = vmul.f32 0.5, %v1947_v61 }
 0x4e0   : > { %v2517_v12 = vpop.eup %2516  ;;  %v2078_v43 = vadd.f32 %v3472_v39, %v2055_v27  ;;  %v2057_v31 = vmul.f32 %v3463_v5, %v2034_v6  ;;  %v3637_v14 = vadd.f32 1e-05, %v1804_v21  ;;  %v3639_v50 = vadd.f32 1e-05, %v1803_v34 }
 0x4e1   : > { %v1930_v37 = vmul.f32 %v2513_v4, %v1929_v59  ;;  %v1949_v33 = vsub.f32 1.5, %v1948_v57  ;;  %v1956_v55 = vmul.f32 %v2517_v12, %v3613_v22  ;;  %v2519_v54 = vpop.eup %2518  ;;  %vm1962_vm7 = vweird.f32 %v2517_v12 }
 0x4e2   : > { %2098 = vst.msk [vmem:[%s3493_s14 + $0x38] sm:$0xff] %vm683_vm0, %v2078_v43  ;;  %v2080_v19 = vadd.f32 %v3472_v39, %v2057_v31  ;;  %2520 = vrsqrt.f32 %v3637_v14  ;;  %v1976_v1 = vmul.f32 %v2519_v54, %v3615_v41  ;;  %vm1982_vm9 = vweird.f32 %v2519_v54  ;;  %vm1963_vm10 = vmor %vm1961_vm8, %vm1962_vm7 }
 0x4e3   : > { %v1934_v44 = vsel %vm1933_vm3, %v2513_v4, %v1930_v37  ;;  %v1950_v10 = vmul.f32 %v2515_v42, %v1949_v33  ;;  %v1957_v35 = vmul.f32 %v2517_v12, %v1956_v55  ;;  %2522 = vrsqrt.f32 %v3639_v50  ;;  %vm1983_vm12 = vmor %vm1981_vm11, %vm1982_vm9 }
 0x4e4   : > { %2100 = vst.msk [vmem:[%s3493_s14 + $0x48] sm:$0xff] %vm683_vm0, %v2080_v19  ;;  %v2035_v51 = vmul.f32 %v1934_v44, %v3449_v23  ;;  %v1977_v62 = vmul.f32 %v2519_v54, %v1976_v1  ;;  %vm2021_vm14 = vweird.f32 %v3637_v14  ;;  %vm2011_vm2 = vweird.f32 %v3639_v50 }
 0x4e5   : > { %v1954_v15 = vsel %vm1953_vm6, %v2515_v42, %v1950_v10  ;;  %v1958_v56 = vmul.f32 0.5, %v1957_v35 }
 0x4e6   : > { %v2058_v32 = vmul.f32 %v3463_v5, %v2035_v51  ;;  %v2037_v0 = vmul.f32 %v1954_v15, %v3452_v7  ;;  %v1978_v48 = vmul.f32 0.5, %v1977_v62 }
 0x4e7   : > { %v1959_v29 = vsub.f32 1.5, %v1958_v56 }
 0x4e8   : > { %v2521_v63 = vpop.eup %2520  ;;  %v2081_v16 = vadd.f32 %v3472_v39, %v2058_v32  ;;  %v2060_v23 = vmul.f32 %v3463_v5, %v2037_v0  ;;  %v1979_v40 = vsub.f32 1.5, %v1978_v48 }
 0x4e9   : > { %v1960_v11 = vmul.f32 %v2517_v12, %v1959_v29  ;;  %v2016_v45 = vmul.f32 %v2521_v63, %v3637_v14  ;;  %v2523_v18 = vpop.eup %2522  ;;  %vm2022_vm13 = vweird.f32 %v2521_v63 }
 0x4ea   : > { %2101 = vst.msk [vmem:[%s3493_s14 + $0x50] sm:$0xff] %vm683_vm0, %v2081_v16  ;;  %v2083_v7 = vadd.f32 %v3472_v39, %v2060_v23  ;;  %v1980_v53 = vmul.f32 %v2519_v54, %v1979_v40  ;;  %v2006_v9 = vmul.f32 %v2523_v18, %v3639_v50  ;;  %vm2012_vm15 = vweird.f32 %v2523_v18  ;;  %vm2023_vm1 = vmor %vm2021_vm14, %vm2022_vm13 }
 0x4eb   : > { %v1964_v13 = vsel %vm1963_vm10, %v2517_v12, %v1960_v11  ;;  %v2017_v4 = vmul.f32 %v2521_v63, %v2016_v45  ;;  %vm2013_vm4 = vmor %vm2011_vm2, %vm2012_vm15 }
 0x4ec   : > { %2103 = vst.msk [vmem:[%s3493_s14 + $0x60] sm:$0xff] %vm683_vm0, %v2083_v7  ;;  %v2038_v47 = vmul.f32 %v1964_v13, %v3483_v28  ;;  %v1984_v22 = vsel %vm1983_vm12, %v2519_v54, %v1980_v53  ;;  %v2007_v20 = vmul.f32 %v2523_v18, %v2006_v9 }
 0x4ed   : > { %v2018_v38 = vmul.f32 0.5, %v2017_v4  ;;  %v2040_v42 = vmul.f32 %v1984_v22, %v3486_v25 }
 0x4ee   : > { %v2061_v52 = vmul.f32 %v3463_v5, %v2038_v47  ;;  %v2008_v58 = vmul.f32 0.5, %v2007_v20 }
 0x4ef   : > { %v2019_v41 = vsub.f32 1.5, %v2018_v38  ;;  %v2063_v2 = vmul.f32 %v3463_v5, %v2040_v42 }
 0x4f0   : > { %v2084_v49 = vadd.f32 %v3472_v39, %v2061_v52  ;;  %v2009_v28 = vsub.f32 1.5, %v2008_v58 }
 0x4f1   : > { %v2020_v24 = vmul.f32 %v2521_v63, %v2019_v41  ;;  %v2086_v60 = vadd.f32 %v3472_v39, %v2063_v2 }
 0x4f2   : > { %2104 = vst.msk [vmem:[%s3493_s14 + $0x68] sm:$0xff] %vm683_vm0, %v2084_v49  ;;  %v2010_v17 = vmul.f32 %v2523_v18, %v2009_v28 }
 0x4f3   : > { %v2024_v25 = vsel %vm2023_vm1, %v2521_v63, %v2020_v24  ;;  %2106 = vst.msk [vmem:[%s3493_s14 + $0x78] sm:$0xff] %vm683_vm0, %v2086_v60 }
 0x4f4   : > { %v2044_v3 = vmul.f32 %v2024_v25, %v3504_v46  ;;  %v2014_v36 = vsel %vm2013_vm4, %v2523_v18, %v2010_v17 }
 0x4f5   : > { %v2043_v8 = vmul.f32 %v2014_v36, %v3501_v26 }
 0x4f6   : > { %v2067_v61 = vmul.f32 %v3463_v5, %v2044_v3 }
 0x4f7   : > { %v2066_v27 = vmul.f32 %v3463_v5, %v2043_v8 }
 0x4f8   : > { %v2090_v30 = vadd.f32 %v3472_v39, %v2067_v61 }
 0x4f9   : > { %v2089_v6 = vadd.f32 %v3472_v39, %v2066_v27 }
 0x4fa   : > { %2110 = vst.msk [vmem:[%s3493_s14 + $0x98] sm:$0xff] %vm683_vm0, %v2090_v30 }
 0x4fb   : > { %2109 = vst.msk [vmem:[%s3493_s14 + $0x90] sm:$0xff] %vm683_vm0, %v2089_v6 }
 0x4fc PF: > { %s3714_s22 = sld [smem:[#allocation2_spill]] }
 0x502   : > { %s22_s21 = sadd.s32 1, %s3714_s22  }
 0x503   : > { %p19_p4 = scmp.ge.s32.totalorder %s22_s21, 4  }
 0x505   :  { %21 = sbr.rel (!%p19_p4) target bundleno = 1 (0x1), region = 131 }

// kernel: coattn_forward.11
= control target key start
LH: loop header
LB: loop body
LE: loop exit
PB: predicated region body
PF: predicated region fallthrough
CT: control target
= control target key end

     0   :  { %s2129_s17 = smov 0   ;;  %s3157_s0 = inlined_call_operand.vmem [shape: bf16[2,128,576], index: 0, kind: input, shape index: {}]   ;;  %s3158_s1 = inlined_call_operand.vmem [shape: f32[2,1,576], index: 1, kind: input, shape index: {}]   ;;  %s3159_s2 = inlined_call_operand.vmem [shape: f32[2,1,1], index: 2, kind: input, shape index: {}]   ;;  %s3160_s3 = inlined_call_operand.vmem [shape: f32[128,32], index: 3, kind: input, shape index: {}]   ;;  %s3161_s4 = inlined_call_operand.vmem [shape: f32[2,128,32], index: 4, kind: input, shape index: {}]   ;;  %s3162_s5 = inlined_call_operand.vmem [shape: bf16[2,32,576], index: 5, kind: input, shape index: {}]   ;;  %s3163_s6 = inlined_call_operand.vmem [shape: f32[2,1,576], index: 6, kind: input, shape index: {}]   ;;  %s3164_s7 = inlined_call_operand.vmem [shape: f32[2,1,1], index: 7, kind: input, shape index: {}]   ;;  %s3165_s8 = inlined_call_operand.vmem [shape: f32[32,32], index: 8, kind: input, shape index: {}]   ;;  %s3166_s9 = inlined_call_operand.vmem [shape: f32[2,32,32], index: 9, kind: input, shape index: {}]   ;;  %s3167_s10 = inlined_call_operand.vmem [shape: f32[2,128,32], index: 10, kind: output, shape index: {0}]   ;;  %s3168_s11 = inlined_call_operand.vmem [shape: f32[2,32,32], index: 11, kind: output, shape index: {1}]  }
   0x1 LB: > { %s1942_s18 = sadd.s32 4294967295, %s2066_s17   ;;  %p1946_p0 = scmp.ge.s32.totalorder %s2066_s17, 1  ;;  %s2066_s17 = sphi %s2129_s17, %s22_s17  }
   0x2   : > { %p404_p1 = scmp.lt.s32.totalorder %s2066_s17, 3 }
   0x4   : > { %p405_p2 = pnand %p1946_p0, %p404_p1 }
   0x5   : > { %p478_p3 = scmp.lt.s32.totalorder (!%p405_p2), %s1942_s18, 1 }
   0x6   : > { %408 = sbr.rel (%p405_p2) target bundleno = 434 (0x1b2), region = 60 }
   0xb   : > { %s3204_s18 = smov (!%p478_p3, %s1942_s18), 1  ;;  %vm745_vm0 = vcmask 523264  }
   0xc   : > { %s1963_s19 = smul.u32 320, %s3204_s18  ;;  %s489_s22 = scalar_lea.vmem %s3159_s2, %s3204_s18 }
   0xd   : > { %s1964_s23 = smul.u32 5, %s3204_s18  ;;  %s1959_s27 = sshll.u32 %s3204_s18, 7 }
   0xe   : > { %s2148_s26 = scalar_lea.vmem %s3157_s0, %s1963_s19  ;;  %s1965_s30 = smul.u32 80, %s3204_s18 }
   0xf   : > { %s486_s29 = scalar_lea.vmem %s3158_s1, %s1964_s23  ;;  %v534_v0 = vld [vmem:[%s2148_s26 + $0x50] sm:$0xff]  ;;  %v535_v1 = vld [vmem:[%s2148_s26 + $0x58] sm:$0xff]  ;;  %v536_v2 = vld [vmem:[%s2148_s26 + $0x60] sm:$0xf]  ;;  %s503_s19 = scalar_lea.vmem %s3163_s6, %s1964_s23 }
  0x10   : > { %v590_v3 = vunpack.c.l.bf16 %v534_v0  ;;  %v591_v4 = vunpack.c.h.bf16 %v534_v0  ;;  %v592_v5 = vunpack.c.l.bf16 %v535_v1  ;;  %v593_v6 = vunpack.c.h.bf16 %v535_v1  ;;  %v650_v7 = vld [vmem:[%s486_s29] sm:$0x1f]  ;;  %v528_v8 = vld [vmem:[%s2148_s26 + $0x28] sm:$0xff]  ;;  %v529_v9 = vld [vmem:[%s2148_s26 + $0x30] sm:$0xff]  ;;  %s2300_s14 = scalar_lea.vmem %s3162_s5, %s1965_s30  ;;  %s506_s23 = scalar_lea.vmem %s3164_s7, %s3204_s18 }
  0x11   : > { %v594_v10 = vunpack.c.l.bf16 %v536_v2  ;;  %v2160_v11 = vperm.slane %v650_v7, 0  ;;  %v2162_v12 = vperm.slane %v650_v7, 1  ;;  %v2164_v13 = vperm.slane %v650_v7, 2  ;;  %v530_v14 = vld [vmem:[%s2148_s26 + $0x38] sm:$0xf]  ;;  %v522_v23 = vld [vmem:[%s2148_s26] sm:$0xff]  ;;  %s3007_s30 = scalar_lea.vmem %s3161_s4, %s1959_s27  ;;  %s3018_s16 = scalar_lea.vmem %s3167_s10, %s1959_s27 }
  0x12   : > { %v2167_v15 = vperm.slane %v650_v7, 3  ;;  %v2169_v16 = vperm.slane %v650_v7, 4  ;;  %v580_v17 = vunpack.c.l.bf16 %v528_v8  ;;  %v581_v18 = vunpack.c.h.bf16 %v528_v8  ;;  %v523_v28 = vld [vmem:[%s2148_s26 + $0x8] sm:$0xff]  ;;  %v524_v33 = vld [vmem:[%s2148_s26 + $0x10] sm:$0xf]  ;;  %v531_v61 = vld [vmem:[%s2148_s26 + $0x3c] sm:$0xff] }
  0x13   : > { %v682_v19 = vmul.f32 %v2160_v11, %v590_v3  ;;  %v683_v20 = vmul.f32 %v2162_v12, %v591_v4  ;;  %v684_v21 = vmul.f32 %v2164_v13, %v592_v5  ;;  %v582_v22 = vunpack.c.l.bf16 %v529_v9  ;;  %v537_v42 = vld [vmem:[%s2148_s26 + $0x64] sm:$0xff]  ;;  %v538_v47 = vld [vmem:[%s2148_s26 + $0x6c] sm:$0xff]  ;;  %v539_v52 = vld [vmem:[%s2148_s26 + $0x74] sm:$0xf] }
  0x14   : > { %v685_v24 = vmul.f32 %v2167_v15, %v593_v6  ;;  %v686_v25 = vmul.f32 %v2169_v16, %v594_v10  ;;  %v583_v26 = vunpack.c.h.bf16 %v529_v9  ;;  %v584_v27 = vunpack.c.l.bf16 %v530_v14  ;;  %v532_v2 = vld [vmem:[%s2148_s26 + $0x44] sm:$0xff]  ;;  %v533_v7 = vld [vmem:[%s2148_s26 + $0x4c] sm:$0xf] }
  0x15   : > { %v771_v29 = vadd.f32 %v683_v20, %v682_v19  ;;  %v672_v30 = vmul.f32 %v2160_v11, %v580_v17  ;;  %v673_v31 = vmul.f32 %v2162_v12, %v581_v18  ;;  %v674_v32 = vmul.f32 %v2164_v13, %v582_v22 }
  0x16   : > { %v774_v34 = vsel %vm745_vm0, %v686_v25, 0.0  ;;  %v675_v35 = vmul.f32 %v2167_v15, %v583_v26  ;;  %v676_v36 = vmul.f32 %v2169_v16, %v584_v27  ;;  %v570_v37 = vunpack.c.l.bf16 %v522_v23  ;;  %v526_v26 = vld [vmem:[%s2148_s26 + $0x1c] sm:$0xff]  ;;  %v527_v27 = vld [vmem:[%s2148_s26 + $0x24] sm:$0xf] }
  0x17   : > { %v772_v38 = vadd.f32 %v771_v29, %v684_v21  ;;  %v757_v39 = vadd.f32 %v673_v31, %v672_v30  ;;  %v571_v40 = vunpack.c.h.bf16 %v522_v23  ;;  %v572_v41 = vunpack.c.l.bf16 %v523_v28  ;;  %v525_v21 = vld [vmem:[%s2148_s26 + $0x14] sm:$0xff] }
  0x18   : > { %v760_v43 = vsel %vm745_vm0, %v676_v36, 0.0  ;;  %v573_v44 = vunpack.c.h.bf16 %v523_v28  ;;  %v574_v45 = vunpack.c.l.bf16 %v524_v33  ;;  %v662_v46 = vmul.f32 %v2160_v11, %v570_v37 }
  0x19   : > { %v773_v48 = vadd.f32 %v772_v38, %v685_v24  ;;  %v758_v49 = vadd.f32 %v757_v39, %v674_v32  ;;  %v663_v50 = vmul.f32 %v2162_v12, %v571_v40  ;;  %v664_v51 = vmul.f32 %v2164_v13, %v572_v41  ;;  %v546_v40 = vld [vmem:[%s2148_s26 + $0xa0] sm:$0xff] }
  0x1a   : > { %v665_v53 = vmul.f32 %v2167_v15, %v573_v44  ;;  %v666_v54 = vmul.f32 %v2169_v16, %v574_v45  ;;  %v595_v55 = vunpack.c.l.bf16 %v537_v42  ;;  %v596_v56 = vunpack.c.h.bf16 %v537_v42  ;;  %v547_v45 = vld [vmem:[%s2148_s26 + $0xa8] sm:$0xff] }
  0x1b   : > { %v775_v57 = vadd.f32 %v774_v34, %v773_v48  ;;  %v759_v58 = vadd.f32 %v758_v49, %v675_v35  ;;  %v742_v59 = vadd.f32 %v663_v50, %v662_v46  ;;  %v597_v60 = vunpack.c.l.bf16 %v538_v47  ;;  %v548_v46 = vld [vmem:[%s2148_s26 + $0xb0] sm:$0xf] }
  0x1c   : > { %v746_v62 = vsel %vm745_vm0, %v666_v54, 0.0  ;;  %v598_v63 = vunpack.c.h.bf16 %v538_v47  ;;  %v599_v0 = vunpack.c.l.bf16 %v539_v52  ;;  %v687_v1 = vmul.f32 %v2160_v11, %v595_v55  ;;  %v543_v55 = vld [vmem:[%s2148_s26 + $0x8c] sm:$0xff] }
  0x1d   : > { %776 = vadd.xlane.f32.xlu2 %v775_v57  ;;  %v761_v3 = vadd.f32 %v760_v43, %v759_v58  ;;  %v743_v4 = vadd.f32 %v742_v59, %v664_v51  ;;  %v688_v5 = vmul.f32 %v2162_v12, %v596_v56  ;;  %v689_v6 = vmul.f32 %v2164_v13, %v597_v60  ;;  %v544_v60 = vld [vmem:[%s2148_s26 + $0x94] sm:$0xff] }
  0x1e   : > { %v690_v8 = vmul.f32 %v2167_v15, %v598_v63  ;;  %v691_v9 = vmul.f32 %v2169_v16, %v599_v0  ;;  %v585_v10 = vunpack.c.l.bf16 %v531_v61  ;;  %v586_v14 = vunpack.c.h.bf16 %v531_v61 }
  0x1f   : > { %762 = vadd.xlane.f32.xlu1 %v761_v3  ;;  %v744_v17 = vadd.f32 %v743_v4, %v665_v53  ;;  %v778_v18 = vadd.f32 %v688_v5, %v687_v1  ;;  %v587_v19 = vunpack.c.l.bf16 %v532_v2  ;;  %v588_v20 = vunpack.c.h.bf16 %v532_v2  ;;  %v545_v1 = vld [vmem:[%s2148_s26 + $0x9c] sm:$0xf] }
  0x20   : > { %v781_v22 = vsel %vm745_vm0, %v691_v9, 0.0  ;;  %v589_v23 = vunpack.c.l.bf16 %v533_v7  ;;  %v677_v24 = vmul.f32 %v2160_v11, %v585_v10  ;;  %v678_v25 = vmul.f32 %v2162_v12, %v586_v14  ;;  %v540_v10 = vld [vmem:[%s2148_s26 + $0x78] sm:$0xff] }
  0x21   : > { %v747_v28 = vadd.f32 %v746_v62, %v744_v17  ;;  %v779_v29 = vadd.f32 %v778_v18, %v689_v6  ;;  %v679_v30 = vmul.f32 %v2164_v13, %v587_v19  ;;  %v680_v31 = vmul.f32 %v2167_v15, %v588_v20  ;;  %v541_v20 = vld [vmem:[%s2148_s26 + $0x80] sm:$0xff] }
  0x22   : > { %v681_v32 = vmul.f32 %v2169_v16, %v589_v23  ;;  %v764_v33 = vadd.f32 %v678_v25, %v677_v24  ;;  %v575_v34 = vunpack.c.l.bf16 %v525_v21  ;;  %v576_v35 = vunpack.c.h.bf16 %v525_v21  ;;  %v542_v25 = vld [vmem:[%s2148_s26 + $0x88] sm:$0xf] }
  0x23   : > { %748 = vadd.xlane.f32.xlu0 %v747_v28  ;;  %v780_v36 = vadd.f32 %v779_v29, %v690_v8  ;;  %v577_v37 = vunpack.c.l.bf16 %v526_v26  ;;  %v578_v38 = vunpack.c.h.bf16 %v526_v26  ;;  %v579_v39 = vunpack.c.l.bf16 %v527_v27 }
  0x24   : > { %v765_v41 = vadd.f32 %v764_v33, %v679_v30  ;;  %v767_v42 = vsel %vm745_vm0, %v681_v32, 0.0  ;;  %v667_v43 = vmul.f32 %v2160_v11, %v575_v34  ;;  %v668_v44 = vmul.f32 %v2162_v12, %v576_v35  ;;  %v555_v34 = vld [vmem:[%s2148_s26 + $0xdc] sm:$0xff] }
  0x25   : > { %v782_v47 = vadd.f32 %v781_v22, %v780_v36  ;;  %v669_v48 = vmul.f32 %v2164_v13, %v577_v37  ;;  %v670_v49 = vmul.f32 %v2167_v15, %v578_v38  ;;  %v671_v50 = vmul.f32 %v2169_v16, %v579_v39  ;;  %v556_v39 = vld [vmem:[%s2148_s26 + $0xe4] sm:$0xff] }
  0x26   : > { %v766_v51 = vadd.f32 %v765_v41, %v680_v31  ;;  %v750_v52 = vadd.f32 %v668_v44, %v667_v43  ;;  %v610_v53 = vunpack.c.l.bf16 %v546_v40  ;;  %v611_v54 = vunpack.c.h.bf16 %v546_v40  ;;  %v557_v40 = vld [vmem:[%s2148_s26 + $0xec] sm:$0xf] }
  0x27   : > { %783 = vadd.xlane.f32.xlu2 %v782_v47  ;;  %v753_v56 = vsel %vm745_vm0, %v671_v50, 0.0  ;;  %v612_v57 = vunpack.c.l.bf16 %v547_v45  ;;  %v613_v58 = vunpack.c.h.bf16 %v547_v45  ;;  %v614_v59 = vunpack.c.l.bf16 %v548_v46 }
  0x28   : > { %v768_v61 = vadd.f32 %v767_v42, %v766_v51  ;;  %v751_v62 = vadd.f32 %v750_v52, %v669_v48  ;;  %v702_v63 = vmul.f32 %v2160_v11, %v610_v53  ;;  %v703_v0 = vmul.f32 %v2162_v12, %v611_v54  ;;  %v552_v53 = vld [vmem:[%s2148_s26 + $0xc8] sm:$0xff] }
  0x29   : > { %v704_v2 = vmul.f32 %v2164_v13, %v612_v57  ;;  %v705_v3 = vmul.f32 %v2167_v15, %v613_v58  ;;  %v706_v4 = vmul.f32 %v2169_v16, %v614_v59  ;;  %v605_v5 = vunpack.c.l.bf16 %v543_v55  ;;  %v553_v58 = vld [vmem:[%s2148_s26 + $0xd0] sm:$0xff]  ;;  %v554_v59 = vld [vmem:[%s2148_s26 + $0xd8] sm:$0xf] }
  0x2a   : > { %769 = vadd.xlane.f32.xlu1 %v768_v61  ;;  %v752_v6 = vadd.f32 %v751_v62, %v670_v49  ;;  %v799_v7 = vadd.f32 %v703_v0, %v702_v63  ;;  %v606_v8 = vunpack.c.h.bf16 %v543_v55  ;;  %v607_v9 = vunpack.c.l.bf16 %v544_v60 }
  0x2b   : > { %v802_v14 = vsel %vm745_vm0, %v706_v4, 0.0  ;;  %v608_v17 = vunpack.c.h.bf16 %v544_v60  ;;  %v609_v18 = vunpack.c.l.bf16 %v545_v1  ;;  %v697_v19 = vmul.f32 %v2160_v11, %v605_v5  ;;  %v549_v4 = vld [vmem:[%s2148_s26 + $0xb4] sm:$0xff] }
  0x2c   : > { %v754_v21 = vadd.f32 %v753_v56, %v752_v6  ;;  %v800_v22 = vadd.f32 %v799_v7, %v704_v2  ;;  %v698_v23 = vmul.f32 %v2162_v12, %v606_v8  ;;  %v699_v24 = vmul.f32 %v2164_v13, %v607_v9  ;;  %v550_v9 = vld [vmem:[%s2148_s26 + $0xbc] sm:$0xff] }
  0x2d   : > { %v700_v26 = vmul.f32 %v2167_v15, %v608_v17  ;;  %v701_v27 = vmul.f32 %v2169_v16, %v609_v18  ;;  %v600_v28 = vunpack.c.l.bf16 %v540_v10  ;;  %v601_v29 = vunpack.c.h.bf16 %v540_v10 }
  0x2e   : > { %755 = vadd.xlane.f32.xlu0 %v754_v21  ;;  %v801_v30 = vadd.f32 %v800_v22, %v705_v3  ;;  %v792_v31 = vadd.f32 %v698_v23, %v697_v19  ;;  %v602_v32 = vunpack.c.l.bf16 %v541_v20  ;;  %v603_v33 = vunpack.c.h.bf16 %v541_v20  ;;  %v551_v19 = vld [vmem:[%s2148_s26 + $0xc4] sm:$0xf] }
  0x2f   : > { %v795_v35 = vsel %vm745_vm0, %v701_v27, 0.0  ;;  %v604_v36 = vunpack.c.l.bf16 %v542_v25  ;;  %v692_v37 = vmul.f32 %v2160_v11, %v600_v28  ;;  %v693_v38 = vmul.f32 %v2162_v12, %v601_v29  ;;  %v564_v28 = vld [vmem:[%s2148_s26 + $0x118] sm:$0xff] }
  0x30   : > { %v803_v41 = vadd.f32 %v802_v14, %v801_v30  ;;  %v793_v42 = vadd.f32 %v792_v31, %v699_v24  ;;  %v694_v43 = vmul.f32 %v2164_v13, %v602_v32  ;;  %v695_v44 = vmul.f32 %v2167_v15, %v603_v33  ;;  %v565_v33 = vld [vmem:[%s2148_s26 + $0x120] sm:$0xff] }
  0x31   : > { %v696_v45 = vmul.f32 %v2169_v16, %v604_v36  ;;  %v785_v46 = vadd.f32 %v693_v38, %v692_v37  ;;  %v625_v47 = vunpack.c.l.bf16 %v555_v34  ;;  %v626_v48 = vunpack.c.h.bf16 %v555_v34  ;;  %v566_v38 = vld [vmem:[%s2148_s26 + $0x128] sm:$0xf] }
  0x32   : > { %804 = vadd.xlane.f32.xlu2 %v803_v41  ;;  %v794_v49 = vadd.f32 %v793_v42, %v700_v26  ;;  %v627_v50 = vunpack.c.l.bf16 %v556_v39  ;;  %v628_v51 = vunpack.c.h.bf16 %v556_v39  ;;  %v629_v52 = vunpack.c.l.bf16 %v557_v40 }
  0x33   : > { %v786_v54 = vadd.f32 %v785_v46, %v694_v43  ;;  %v788_v55 = vsel %vm745_vm0, %v696_v45, 0.0  ;;  %v717_v56 = vmul.f32 %v2160_v11, %v625_v47  ;;  %v718_v57 = vmul.f32 %v2162_v12, %v626_v48  ;;  %v561_v47 = vld [vmem:[%s2148_s26 + $0x104] sm:$0xff] }
  0x34   : > { %v796_v60 = vadd.f32 %v795_v35, %v794_v49  ;;  %v719_v61 = vmul.f32 %v2164_v13, %v627_v50  ;;  %v720_v62 = vmul.f32 %v2167_v15, %v628_v51  ;;  %v721_v63 = vmul.f32 %v2169_v16, %v629_v52  ;;  %v562_v52 = vld [vmem:[%s2148_s26 + $0x10c] sm:$0xff] }
  0x35   : > { %v787_v0 = vadd.f32 %v786_v54, %v695_v44  ;;  %v820_v1 = vadd.f32 %v718_v57, %v717_v56  ;;  %v620_v2 = vunpack.c.l.bf16 %v552_v53  ;;  %v621_v3 = vunpack.c.h.bf16 %v552_v53  ;;  %v563_v53 = vld [vmem:[%s2148_s26 + $0x114] sm:$0xf] }
  0x36   : > { %797 = vadd.xlane.f32.xlu1 %v796_v60  ;;  %v823_v5 = vsel %vm745_vm0, %v721_v63, 0.0  ;;  %v622_v6 = vunpack.c.l.bf16 %v553_v58  ;;  %v623_v7 = vunpack.c.h.bf16 %v553_v58  ;;  %v624_v8 = vunpack.c.l.bf16 %v554_v59 }
  0x37   : > { %v789_v10 = vadd.f32 %v788_v55, %v787_v0  ;;  %v821_v14 = vadd.f32 %v820_v1, %v719_v61  ;;  %v712_v17 = vmul.f32 %v2160_v11, %v620_v2  ;;  %v713_v18 = vmul.f32 %v2162_v12, %v621_v3  ;;  %v558_v2 = vld [vmem:[%s2148_s26 + $0xf0] sm:$0xff] }
  0x38   : > { %v714_v20 = vmul.f32 %v2164_v13, %v622_v6  ;;  %v715_v21 = vmul.f32 %v2167_v15, %v623_v7  ;;  %v716_v22 = vmul.f32 %v2169_v16, %v624_v8  ;;  %v615_v23 = vunpack.c.l.bf16 %v549_v4  ;;  %v559_v7 = vld [vmem:[%s2148_s26 + $0xf8] sm:$0xff]  ;;  %v560_v8 = vld [vmem:[%s2148_s26 + $0x100] sm:$0xf] }
  0x39   : > { %790 = vadd.xlane.f32.xlu0 %v789_v10  ;;  %v822_v24 = vadd.f32 %v821_v14, %v720_v62  ;;  %v813_v25 = vadd.f32 %v713_v18, %v712_v17  ;;  %v616_v26 = vunpack.c.h.bf16 %v549_v4  ;;  %v617_v27 = vunpack.c.l.bf16 %v550_v9 }
  0x3a   : > { %v816_v29 = vsel %vm745_vm0, %v716_v22, 0.0  ;;  %v618_v30 = vunpack.c.h.bf16 %v550_v9  ;;  %v619_v31 = vunpack.c.l.bf16 %v551_v19  ;;  %v707_v32 = vmul.f32 %v2160_v11, %v615_v23  ;;  %v567_v22 = vld [vmem:[%s2148_s26 + $0x12c] sm:$0xff] }
  0x3b   : > { %v824_v34 = vadd.f32 %v823_v5, %v822_v24  ;;  %v814_v35 = vadd.f32 %v813_v25, %v714_v20  ;;  %v708_v36 = vmul.f32 %v2162_v12, %v616_v26  ;;  %v709_v37 = vmul.f32 %v2164_v13, %v617_v27  ;;  %v568_v27 = vld [vmem:[%s2148_s26 + $0x134] sm:$0xff] }
  0x3c   : > { %v710_v39 = vmul.f32 %v2167_v15, %v618_v30  ;;  %v711_v40 = vmul.f32 %v2169_v16, %v619_v31  ;;  %v640_v41 = vunpack.c.l.bf16 %v564_v28  ;;  %v641_v42 = vunpack.c.h.bf16 %v564_v28 }
  0x3d   : > { %825 = vadd.xlane.f32.xlu2 %v824_v34  ;;  %v815_v43 = vadd.f32 %v814_v35, %v715_v21  ;;  %v806_v44 = vadd.f32 %v708_v36, %v707_v32  ;;  %v642_v45 = vunpack.c.l.bf16 %v565_v33  ;;  %v643_v46 = vunpack.c.h.bf16 %v565_v33  ;;  %v569_v32 = vld [vmem:[%s2148_s26 + $0x13c] sm:$0xf] }
  0x3e   : > { %v809_v48 = vsel %vm745_vm0, %v711_v40, 0.0  ;;  %v644_v49 = vunpack.c.l.bf16 %v566_v38  ;;  %v732_v50 = vmul.f32 %v2160_v11, %v640_v41  ;;  %v733_v51 = vmul.f32 %v2162_v12, %v641_v42  ;;  %v1516_v41 = vld [vmem:[%s2300_s14] sm:$0xff] }
  0x3f   : > { %v817_v54 = vadd.f32 %v816_v29, %v815_v43  ;;  %v807_v55 = vadd.f32 %v806_v44, %v709_v37  ;;  %v734_v56 = vmul.f32 %v2164_v13, %v642_v45  ;;  %v735_v57 = vmul.f32 %v2167_v15, %v643_v46  ;;  %v1517_v46 = vld [vmem:[%s2300_s14 + $0x8] sm:$0xff] }
  0x40   : > { %v736_v58 = vmul.f32 %v2169_v16, %v644_v49  ;;  %v841_v59 = vadd.f32 %v733_v51, %v732_v50  ;;  %v635_v60 = vunpack.c.l.bf16 %v561_v47  ;;  %v636_v61 = vunpack.c.h.bf16 %v561_v47  ;;  %v1518_v51 = vld [vmem:[%s2300_s14 + $0x10] sm:$0xf] }
  0x41   : > { %818 = vadd.xlane.f32.xlu1 %v817_v54  ;;  %v808_v62 = vadd.f32 %v807_v55, %v710_v39  ;;  %v637_v63 = vunpack.c.l.bf16 %v562_v52  ;;  %v638_v0 = vunpack.c.h.bf16 %v562_v52  ;;  %v639_v1 = vunpack.c.l.bf16 %v563_v53  ;;  %v1548_v52 = vld [vmem:[%s503_s19] sm:$0x1f] }
  0x42   : > { %v842_v3 = vadd.f32 %v841_v59, %v734_v56  ;;  %v844_v4 = vsel %vm745_vm0, %v736_v58, 0.0  ;;  %v727_v5 = vmul.f32 %v2160_v11, %v635_v60  ;;  %v728_v6 = vmul.f32 %v2162_v12, %v636_v61  ;;  %v1525_v60 = vld [vmem:[%s2300_s14 + $0x3c] sm:$0xff] }
  0x43   : > { %v810_v9 = vadd.f32 %v809_v48, %v808_v62  ;;  %v729_v10 = vmul.f32 %v2164_v13, %v637_v63  ;;  %v730_v14 = vmul.f32 %v2167_v15, %v638_v0  ;;  %v731_v17 = vmul.f32 %v2169_v16, %v639_v1 }
  0x44   : > { %v843_v18 = vadd.f32 %v842_v3, %v735_v57  ;;  %v834_v19 = vadd.f32 %v728_v6, %v727_v5  ;;  %v630_v20 = vunpack.c.l.bf16 %v558_v2  ;;  %v631_v21 = vunpack.c.h.bf16 %v558_v2  ;;  %v1527_v5 = vld [vmem:[%s2300_s14 + $0x4c] sm:$0xf] }
  0x45   : > { %811 = vadd.xlane.f32.xlu0 %v810_v9  ;;  %v837_v23 = vsel %vm745_vm0, %v731_v17, 0.0  ;;  %v632_v24 = vunpack.c.l.bf16 %v559_v7  ;;  %v633_v25 = vunpack.c.h.bf16 %v559_v7  ;;  %v634_v26 = vunpack.c.l.bf16 %v560_v8 }
  0x46   : > { %v845_v28 = vadd.f32 %v844_v4, %v843_v18  ;;  %v835_v29 = vadd.f32 %v834_v19, %v729_v10  ;;  %v722_v30 = vmul.f32 %v2160_v11, %v630_v20  ;;  %v723_v31 = vmul.f32 %v2162_v12, %v631_v21  ;;  %v1522_v20 = vld [vmem:[%s2300_s14 + $0x28] sm:$0xff] }
  0x47   : > { %v724_v33 = vmul.f32 %v2164_v13, %v632_v24  ;;  %v725_v34 = vmul.f32 %v2167_v15, %v633_v25  ;;  %v726_v35 = vmul.f32 %v2169_v16, %v634_v26  ;;  %v645_v36 = vunpack.c.l.bf16 %v567_v22  ;;  %v1523_v24 = vld [vmem:[%s2300_s14 + $0x30] sm:$0xff]  ;;  %v1524_v25 = vld [vmem:[%s2300_s14 + $0x38] sm:$0xf] }
  0x48   : > { %846 = vadd.xlane.f32.xlu2 %v845_v28  ;;  %v836_v37 = vadd.f32 %v835_v29, %v730_v14  ;;  %v827_v38 = vadd.f32 %v723_v31, %v722_v30  ;;  %v646_v39 = vunpack.c.h.bf16 %v567_v22  ;;  %v647_v40 = vunpack.c.l.bf16 %v568_v27 }
  0x49   : > { %v830_v42 = vsel %vm745_vm0, %v726_v35, 0.0  ;;  %v648_v43 = vunpack.c.h.bf16 %v568_v27  ;;  %v649_v44 = vunpack.c.l.bf16 %v569_v32  ;;  %v737_v45 = vmul.f32 %v2160_v11, %v645_v36 }
  0x4a   : > { %v838_v47 = vadd.f32 %v837_v23, %v836_v37  ;;  %v828_v48 = vadd.f32 %v827_v38, %v724_v33  ;;  %v738_v49 = vmul.f32 %v2162_v12, %v646_v39  ;;  %v739_v50 = vmul.f32 %v2164_v13, %v647_v40  ;;  %v1519_v38 = vld [vmem:[%s2300_s14 + $0x14] sm:$0xff] }
  0x4b   : > { %v740_v53 = vmul.f32 %v2167_v15, %v648_v43  ;;  %v741_v54 = vmul.f32 %v2169_v16, %v649_v44  ;;  %v1528_v55 = vunpack.c.l.bf16 %v1516_v41  ;;  %v1529_v56 = vunpack.c.h.bf16 %v1516_v41  ;;  %v1526_v16 = vld [vmem:[%s2300_s14 + $0x44] sm:$0xff]  ;;  %v1520_v43 = vld [vmem:[%s2300_s14 + $0x1c] sm:$0xff] }
  0x4c   : > { %839 = vadd.xlane.f32.xlu1 %v838_v47  ;;  %v829_v57 = vadd.f32 %v828_v48, %v725_v34  ;;  %v848_v11 = vadd.f32 %v738_v49, %v737_v45  ;;  %v1530_v58 = vunpack.c.l.bf16 %v1517_v46  ;;  %v1531_v59 = vunpack.c.h.bf16 %v1517_v46  ;;  %v1521_v44 = vld [vmem:[%s2300_s14 + $0x24] sm:$0xf]  ;;  %s1960_s14 = sshll.u32 %s3204_s18, 5 }
  0x4d   : > { %v851_v12 = vsel %vm745_vm0, %v741_v54, 0.0  ;;  %v1532_v61 = vunpack.c.l.bf16 %v1518_v51  ;;  %v1550_v13 = vperm.slane %v1548_v52, 0  ;;  %v1551_v62 = vperm.slane %v1548_v52, 1  ;;  %s3118_s20 = scalar_lea.vmem %s3166_s9, %s1960_s14 }
  0x4e   : > { %v831_v63 = vadd.f32 %v830_v42, %v829_v57  ;;  %v849_v0 = vadd.f32 %v848_v11, %v739_v50  ;;  %v1552_v15 = vperm.slane %v1548_v52, 2  ;;  %v1553_v1 = vperm.slane %v1548_v52, 3 }
  0x4f   : > { %v1554_v2 = vperm.slane %v1548_v52, 4  ;;  %v1560_v3 = vmul.f32 %v1550_v13, %v1528_v55  ;;  %v1561_v4 = vmul.f32 %v1551_v62, %v1529_v56  ;;  %v1543_v6 = vunpack.c.l.bf16 %v1525_v60 }
  0x50   : > { %832 = vadd.xlane.f32.xlu0 %v831_v63  ;;  %v850_v7 = vadd.f32 %v849_v0, %v740_v53  ;;  %v1562_v8 = vmul.f32 %v1552_v15, %v1530_v58  ;;  %v1563_v9 = vmul.f32 %v1553_v1, %v1531_v59  ;;  %v1544_v10 = vunpack.c.h.bf16 %v1525_v60 }
  0x51   : > { %v1564_v14 = vmul.f32 %v1554_v2, %v1532_v61  ;;  %v1580_v17 = vadd.f32 %v1561_v4, %v1560_v3  ;;  %v1545_v18 = vunpack.c.l.bf16 %v1526_v16  ;;  %v1546_v19 = vunpack.c.h.bf16 %v1526_v16 }
  0x52   : > { %v1547_v21 = vunpack.c.l.bf16 %v1527_v5  ;;  %v1575_v22 = vmul.f32 %v1550_v13, %v1543_v6  ;;  %v1576_v23 = vmul.f32 %v1551_v62, %v1544_v10  ;;  %v852_v26 = vadd.f32 %v851_v12, %v850_v7 }
  0x53   : > { %v1581_v27 = vadd.f32 %v1580_v17, %v1562_v8  ;;  %v1583_v28 = vsel %vm745_vm0, %v1564_v14, 0.0  ;;  %v1577_v29 = vmul.f32 %v1552_v15, %v1545_v18  ;;  %v1578_v30 = vmul.f32 %v1553_v1, %v1546_v19 }
  0x54   : > { %v1601_v31 = vadd.f32 %v1576_v23, %v1575_v22  ;;  %v1538_v32 = vunpack.c.l.bf16 %v1522_v20  ;;  %v1539_v33 = vunpack.c.h.bf16 %v1522_v20  ;;  %v1540_v35 = vunpack.c.l.bf16 %v1523_v24 }
  0x55   : > { %v1582_v34 = vadd.f32 %v1581_v27, %v1563_v9  ;;  %v1541_v36 = vunpack.c.h.bf16 %v1523_v24  ;;  %v1542_v37 = vunpack.c.l.bf16 %v1524_v25  ;;  %v1579_v39 = vmul.f32 %v1554_v2, %v1547_v21 }
  0x56   : > { %v1602_v40 = vadd.f32 %v1601_v31, %v1577_v29  ;;  %v1570_v41 = vmul.f32 %v1550_v13, %v1538_v32  ;;  %v1571_v42 = vmul.f32 %v1551_v62, %v1539_v33  ;;  %v1572_v46 = vmul.f32 %v1552_v15, %v1540_v35 }
  0x57   : > { %v1584_v45 = vadd.f32 %v1583_v28, %v1582_v34  ;;  %v1574_v47 = vmul.f32 %v1554_v2, %v1542_v37  ;;  %v1573_v48 = vmul.f32 %v1553_v1, %v1541_v36  ;;  %v1533_v50 = vunpack.c.l.bf16 %v1519_v38 }
  0x58   : > { %853 = vadd.xlane.f32.xlu0 %v852_v26  ;;  %v1594_v49 = vadd.f32 %v1571_v42, %v1570_v41  ;;  %v1534_v51 = vunpack.c.h.bf16 %v1519_v38  ;;  %v1603_v52 = vadd.f32 %v1602_v40, %v1578_v30  ;;  %v1535_v53 = vunpack.c.l.bf16 %v1520_v43 }
  0x59   : > { %1585 = vadd.xlane.f32.xlu2 %v1584_v45  ;;  %v1536_v54 = vunpack.c.h.bf16 %v1520_v43  ;;  %v1537_v55 = vunpack.c.l.bf16 %v1521_v44  ;;  %v1604_v56 = vsel %vm745_vm0, %v1579_v39, 0.0  ;;  %v1565_v11 = vmul.f32 %v1550_v13, %v1533_v50 }
  0x5a   : > { %v1595_v57 = vadd.f32 %v1594_v49, %v1572_v46  ;;  %v1566_v58 = vmul.f32 %v1551_v62, %v1534_v51  ;;  %v1597_v59 = vsel %vm745_vm0, %v1574_v47, 0.0  ;;  %v1567_v60 = vmul.f32 %v1552_v15, %v1535_v53  ;;  %v2345_v15 = vld [vmem:[%s489_s22] ss:$0 sm:$0xff] }
  0x5b   : > { %v1569_v12 = vmul.f32 %v1554_v2, %v1537_v55  ;;  %v1568_v63 = vmul.f32 %v1553_v1, %v1536_v54  ;;  %v1605_v16 = vadd.f32 %v1604_v56, %v1603_v52  ;;  %v2068_v46 = vmov 0  }
  0x5c   : > { %v1596_v61 = vadd.f32 %v1595_v57, %v1573_v48  ;;  %v1587_v0 = vadd.f32 %v1566_v58, %v1565_v11  ;;  %1977 = vset.pattern.permute.xlu0 %v2068_v46  ;;  %1975 = vset.pattern.permute.xlu1 %v2068_v46 }
  0x5d   : > { %v1590_v5 = vsel %vm745_vm0, %v1569_v12, 0.0  ;;  %1976 = vset.pattern.permute.xlu2 %v2068_v46 }
  0x5e   : > { %v1598_v3 = vadd.f32 %v1597_v59, %v1596_v61  ;;  %v1588_v4 = vadd.f32 %v1587_v0, %v1567_v60 }
  0x60   : > { %1599 = vadd.xlane.f32.xlu0 %v1598_v3  ;;  %v1589_v13 = vadd.f32 %v1588_v4, %v1568_v63 }
  0x61   : > { %1606 = vadd.xlane.f32.xlu2 %v1605_v16 }
  0x62   : > { %v1591_v62 = vadd.f32 %v1590_v5, %v1589_v13 }
  0x64   : > { %1592 = vadd.xlane.f32.xlu1 %v1591_v62 }
  0x90   : > { %v777_v1 = vpop.xlane.xlu2 %776 }
  0x91   : > { %v2348_v2 = vadd.f32 %v2345_v15, %v777_v1 }
  0x92   : > { %v763_v6 = vpop.xlane.xlu1 %762 }
  0x93   : > { %v879_v7 = vand.u32 2147483647, %v2348_v2  ;;  %v2352_v8 = vadd.f32 %v2345_v15, %v763_v6  ;;  %vm943_vm15 = vcmp.ge.f32.partialorder %v2348_v2, 0.0 }
  0x95   : > { %v895_v9 = vsub.f32 0.0, %v879_v7  ;;  %v877_v10 = vand.u32 2147483647, %v2352_v8  ;;  %vm941_vm5 = vcmp.ge.f32.partialorder %v2352_v8, 0.0 }
  0x96   : > { %v749_v14 = vpop.xlane.xlu0 %748 }
  0x97   : > { %v915_v17 = vmul.f32 1.442695, %v895_v9  ;;  %v893_v18 = vsub.f32 0.0, %v877_v10  ;;  %v2356_v19 = vadd.f32 %v2345_v15, %v749_v14 }
  0x99   : > { %1980 = vpow2.f32 %v915_v17  ;;  %v911_v20 = vmul.f32 1.442695, %v893_v18  ;;  %v875_v21 = vand.u32 2147483647, %v2356_v19  ;;  %vm939_vm13 = vcmp.ge.f32.partialorder %v2356_v19, 0.0 }
  0x9a   : > { %v784_v23 = vpop.xlane.xlu2 %783 }
  0x9b   : > { %1982 = vpow2.f32 %v911_v20  ;;  %v891_v22 = vsub.f32 0.0, %v875_v21  ;;  %v2368_v29 = vadd.f32 %v2345_v15, %v784_v23 }
  0x9d   : > { %v907_v24 = vmul.f32 1.442695, %v891_v22  ;;  %v770_v25 = vpop.xlane.xlu1 %769  ;;  %v880_v36 = vand.u32 2147483647, %v2368_v29 }
  0x9e   : > { %v2360_v26 = vadd.f32 %v2345_v15, %v770_v25 }
  0x9f   : > { %v2362_v27 = vpop.eup %1980  ;;  %1984 = vpow2.f32 %v907_v24  ;;  %v896_v44 = vsub.f32 0.0, %v880_v36 }
  0xa0   : > { %v2365_v28 = vadd.f32 1.0, %v2362_v27  ;;  %v878_v30 = vand.u32 2147483647, %v2360_v26 }
  0xa1   : > { %v2371_v31 = vpop.eup %1982  ;;  %v756_v32 = vpop.xlane.xlu0 %755  ;;  %v917_v52 = vmul.f32 1.442695, %v896_v44 }
  0xa2   : > { %1986 = vrcp.f32 %v2365_v28  ;;  %v957_v33 = vadd.f32 1.0, %v2371_v31  ;;  %v894_v34 = vsub.f32 0.0, %v878_v30  ;;  %v2376_v35 = vadd.f32 %v2345_v15, %v756_v32 }
  0xa3   : > { %vm1036_vm4 = vweird.f32 %v2365_v28  ;;  %v1040_v30 = vand.u32 2147483647, %v2365_v28  ;;  %v1042_v36 = vand.u32 2147483648, %v2365_v28 }
  0xa4   : > { %1988 = vrcp.f32 %v957_v33  ;;  %v876_v37 = vand.u32 2147483647, %v2376_v35  ;;  %v913_v39 = vmul.f32 1.442695, %v894_v34  ;;  %v1010_v54 = vand.u32 2147483647, %v957_v33 }
  0xa5   : > { %v2380_v38 = vpop.eup %1984  ;;  %v805_v42 = vpop.xlane.xlu2 %804  ;;  %vm1006_vm1 = vweird.f32 %v957_v33  ;;  %v1012_v59 = vand.u32 2147483648, %v957_v33  ;;  %vm1041_vm14 = vcmp.eq.f32.partialorder %v1040_v30, 8.507059e+37 }
  0xa6   : > { %v2383_v40 = vadd.f32 1.0, %v2380_v38  ;;  %v892_v41 = vsub.f32 0.0, %v876_v37  ;;  %v2389_v47 = vadd.f32 %v2345_v15, %v805_v42  ;;  %vm2405_vm3 = vcmp.eq.f32.partialorder %v1010_v54, 8.507059e+37 }
  0xa7   : > { %v1013_v9 = vor.u32 1.1754944e-38, %v1012_v59 }
  0xa8   : > { %v2385_v43 = vpop.eup %1986  ;;  %1990 = vrcp.f32 %v2383_v40  ;;  %v909_v45 = vmul.f32 1.442695, %v892_v41  ;;  %v883_v55 = vand.u32 2147483647, %v2389_v47  ;;  %v982_v14 = vand.u32 2147483648, %v2383_v40 }
  0xa9   : > { %1992 = vpow2.f32 %v913_v39  ;;  %v798_v49 = vpop.xlane.xlu1 %797  ;;  %v1032_v51 = vmul.f32 %v2385_v43, %v2365_v28  ;;  %v980_v25 = vand.u32 2147483647, %v2383_v40  ;;  %vm976_vm8 = vweird.f32 %v2383_v40 }
  0xaa   : > { %v1989_v48 = vpop.eup %1988  ;;  %1994 = vpow2.f32 %v909_v45  ;;  %v2398_v58 = vadd.f32 %v2345_v15, %v798_v49  ;;  %v899_v5 = vsub.f32 0.0, %v883_v55  ;;  %v983_v41 = vor.u32 1.1754944e-38, %v982_v14 }
  0xab   : > { %v1002_v50 = vmul.f32 %v1989_v48, %v957_v33  ;;  %vm1007_vm2 = vweird.f32 %v1989_v48  ;;  %v1033_v63 = vsub.f32 1.0, %v1032_v51  ;;  %1996 = vpow2.f32 %v917_v52 }
  0xac   : > { %v791_v53 = vpop.xlane.xlu0 %790  ;;  %vm2417_vm6 = vmor %vm1006_vm1, %vm1007_vm2  ;;  %v882_v7 = vand.u32 2147483647, %v2398_v58  ;;  %v923_v24 = vmul.f32 1.442695, %v899_v5  ;;  %vm1037_vm10 = vweird.f32 %v2385_v43  ;;  %vm981_vm11 = vcmp.eq.f32.partialorder %v980_v25, 8.507059e+37 }
  0xad   : > { %v2395_v56 = vadd.f32 %v2345_v15, %v791_v53  ;;  %v1003_v57 = vsub.f32 1.0, %v1002_v50  ;;  %v1034_v20 = vmul.f32 %v2385_v43, %v1033_v63  ;;  %vm2466_vm12 = vmor %vm1036_vm4, %vm1037_vm10 }
  0xae   : > { %v1991_v11 = vpop.eup %1990  ;;  %v898_v37 = vsub.f32 0.0, %v882_v7 }
  0xaf   : > { %v2400_v60 = vpop.eup %1992  ;;  %v881_v12 = vand.u32 2147483647, %v2395_v56  ;;  %v1004_v61 = vmul.f32 %v1989_v48, %v1003_v57  ;;  %v972_v3 = vmul.f32 %v1991_v11, %v2383_v40  ;;  %vm977_vm7 = vweird.f32 %v1991_v11 }
  0xb0   : > { %v2403_v0 = vpop.eup %1994  ;;  %v826_v62 = vpop.xlane.xlu2 %825  ;;  %v2424_v17 = vadd.f32 1.0, %v2400_v60  ;;  %vm2441_vm9 = vmor %vm976_vm8, %vm977_vm7  ;;  %v1035_v42 = vadd.f32 %v2385_v43, %v1034_v20  ;;  %v921_v57 = vmul.f32 1.442695, %v898_v37  ;;  %vm942_vm8 = vcmp.ge.f32.partialorder %v2360_v26, 0.0 }
  0xb1   : > { %v2413_v4 = vadd.f32 1.0, %v2403_v0  ;;  %v897_v13 = vsub.f32 0.0, %v881_v12  ;;  %v1005_v1 = vadd.f32 %v1989_v48, %v1004_v61  ;;  %v973_v10 = vsub.f32 1.0, %v972_v3  ;;  %v2435_v32 = vpop.eup %1996 }
  0xb2   : > { %v2429_v21 = vadd.f32 %v2345_v15, %v826_v62  ;;  %v2455_v49 = vadd.f32 1.0, %v2435_v32  ;;  %v1039_v8 = vsel %vm2466_vm12, %v2385_v43, %v1035_v42  ;;  %v1043_v61 = vor.u32 1.1754944e-38, %v1042_v36 }
  0xb3   : > { %1998 = vrcp.f32 %v2413_v4  ;;  %v919_v18 = vmul.f32 1.442695, %v897_v13  ;;  %v1009_v22 = vsel %vm2417_vm6, %v1989_v48, %v1005_v1  ;;  %v974_v23 = vmul.f32 %v1991_v11, %v973_v10 }
  0xb4   : > { %v1014_v33 = vsel %vm2405_vm3, %v1013_v9, %v1009_v22  ;;  %v886_v44 = vand.u32 2147483647, %v2429_v21  ;;  %v819_v50 = vpop.xlane.xlu1 %818  ;;  %v1044_v5 = vsel %vm1041_vm14, %v1043_v61, %v1039_v8  ;;  %v995_v7 = vand.u32 2147483647, %v2413_v4 }
  0xb5   : > { %2000 = vpow2.f32 %v919_v18  ;;  %v975_v34 = vadd.f32 %v1991_v11, %v974_v23  ;;  %v1213_v46 = vmul.f32 %v2371_v31, %v1014_v33  ;;  %v2499_v6 = vadd.f32 %v2345_v15, %v819_v50 }
  0xb6   : > { %2002 = vrcp.f32 %v2424_v17  ;;  %v902_v59 = vsub.f32 0.0, %v886_v44  ;;  %v997_v19 = vand.u32 2147483648, %v2413_v4  ;;  %v1215_v9 = vmul.f32 %v2362_v27, %v1044_v5 }
  0xb7   : > { %v979_v40 = vsel %vm2441_vm9, %v1991_v11, %v975_v34  ;;  %2004 = vpow2.f32 %v923_v24  ;;  %v2462_v52 = vsel %vm941_vm5, %v1014_v33, %v1213_v46  ;;  %vm991_vm1 = vweird.f32 %v2413_v4 }
  0xb8   : > { %v812_v45 = vpop.xlane.xlu0 %811  ;;  %v984_v53 = vsel %vm981_vm11, %v983_v41, %v979_v40  ;;  %1271 = vperm.xlu0 %1977, %v2462_v52   ;;  %2006 = vrcp.f32 %v2455_v49  ;;  %v929_v1 = vmul.f32 1.442695, %v902_v59  ;;  %vm1021_vm3 = vweird.f32 %v2424_v17 }
  0xb9   : > { %v2452_v48 = vpop.eup %1998  ;;  %v2458_v51 = vadd.f32 %v2345_v15, %v812_v45  ;;  %v1211_v12 = vmul.f32 %v2380_v38, %v984_v53  ;;  %v998_v25 = vor.u32 1.1754944e-38, %v997_v19  ;;  %v1025_v33 = vand.u32 2147483647, %v2424_v17 }
  0xba   : > { %v987_v54 = vmul.f32 %v2452_v48, %v2413_v4  ;;  %vm992_vm0 = vweird.f32 %v2452_v48  ;;  %v885_v36 = vand.u32 2147483647, %v2499_v6  ;;  %vm996_vm5 = vcmp.eq.f32.partialorder %v995_v7, 8.507059e+37 }
  0xbb   : > { %v2472_v55 = vpop.eup %2000  ;;  %v884_v11 = vand.u32 2147483647, %v2458_v51  ;;  %v2491_v43 = vsel %vm939_vm13, %v984_v53, %v1211_v12  ;;  %v847_v20 = vpop.xlane.xlu2 %846  ;;  %vm2511_vm2 = vmor %vm991_vm1, %vm992_vm0  ;;  %v2533_v41 = vsel %vm943_vm15, %v1044_v5, %v1215_v9  ;;  %v1027_v45 = vand.u32 2147483648, %v2424_v17 }
  0xbc   : > { %v2481_v28 = vadd.f32 1.0, %v2472_v55  ;;  %v988_v16 = vsub.f32 1.0, %v987_v54  ;;  %v2485_v3 = vpop.eup %2002  ;;  %1261 = vperm.xlu1 %1975, %v2491_v43   ;;  %v2538_v46 = vadd.f32 %v2345_v15, %v847_v20  ;;  %vm2552_vm7 = vcmp.eq.f32.partialorder %v1025_v33, 8.507059e+37 }
  0xbd   : > { %v900_v63 = vsub.f32 0.0, %v884_v11  ;;  %v2493_v13 = vpop.eup %2004  ;;  %v1017_v14 = vmul.f32 %v2485_v3, %v2424_v17  ;;  %vm1022_vm4 = vweird.f32 %v2485_v3  ;;  %v1028_v54 = vor.u32 1.1754944e-38, %v1027_v45 }
  0xbe   : > { %2008 = vrcp.f32 %v2481_v28  ;;  %v989_v62 = vmul.f32 %v2452_v48, %v988_v16  ;;  %v2509_v18 = vadd.f32 1.0, %v2493_v13  ;;  %v2517_v27 = vpop.eup %2006  ;;  %vm2548_vm6 = vmor %vm1021_vm3, %vm1022_vm4  ;;  %vm940_vm9 = vcmp.ge.f32.partialorder %v2376_v35, 0.0 }
  0xbf   : > { %2010 = vpow2.f32 %v921_v57  ;;  %v925_v38 = vmul.f32 1.442695, %v900_v63  ;;  %v840_v23 = vpop.xlane.xlu1 %839  ;;  %v1018_v30 = vsub.f32 1.0, %v1017_v14  ;;  %vm945_vm10 = vcmp.ge.f32.partialorder %v2395_v56, 0.0 }
  0xc0   : > { %v990_v10 = vadd.f32 %v2452_v48, %v989_v62  ;;  %v2541_v40 = vadd.f32 %v2345_v15, %v840_v23  ;;  %v901_v63 = vsub.f32 0.0, %v885_v36  ;;  %v889_v35 = vand.u32 2147483647, %v2538_v46 }
  0xc1   : > { %2012 = vpow2.f32 %v925_v38  ;;  %v1019_v44 = vmul.f32 %v2485_v3, %v1018_v30  ;;  %v1072_v9 = vand.u32 2147483648, %v2481_v28  ;;  %vm1066_vm12 = vweird.f32 %v2481_v28 }
  0xc2   : > { %v994_v24 = vsel %vm2511_vm2, %v2452_v48, %v990_v10  ;;  %2014 = vpow2.f32 %v929_v1  ;;  %v888_v16 = vand.u32 2147483647, %v2541_v40  ;;  %v1070_v1 = vand.u32 2147483647, %v2481_v28 }
  0xc3   : > { %v833_v4 = vpop.xlane.xlu0 %832  ;;  %v999_v42 = vsel %vm996_vm5, %v998_v25, %v994_v24  ;;  %v1020_v31 = vadd.f32 %v2485_v3, %v1019_v44  ;;  %2016 = vrcp.f32 %v2509_v18  ;;  %v1047_v10 = vmul.f32 %v2517_v27, %v2455_v49 }
  0xc4   : > { %v2523_v34 = vpop.eup %2008  ;;  %v2527_v37 = vadd.f32 %v2345_v15, %v833_v4  ;;  %1281 = vperm.xlu1 %1975, %v2533_v41   ;;  %v1212_v53 = vmul.f32 %v2403_v0, %v999_v42  ;;  %v1073_v24 = vor.u32 1.1754944e-38, %v1072_v9  ;;  %vm1071_vm14 = vcmp.eq.f32.partialorder %v1070_v1, 8.507059e+37 }
  0xc5   : > { %v2529_v39 = vpop.eup %2010  ;;  %v1062_v57 = vmul.f32 %v2523_v34, %v2481_v28  ;;  %v1024_v0 = vsel %vm2548_vm6, %v2485_v3, %v1020_v31  ;;  %vm1067_vm11 = vweird.f32 %v2523_v34  ;;  %v905_v30 = vsub.f32 0.0, %v889_v35 }
  0xc6   : > { %v887_v48 = vand.u32 2147483647, %v2527_v37  ;;  %v2567_v8 = vadd.f32 1.0, %v2529_v39  ;;  %v2569_v59 = vsel %vm940_vm9, %v999_v42, %v1212_v53  ;;  %v1029_v5 = vsel %vm2552_vm7, %v1028_v54, %v1024_v0  ;;  %vm1068_vm13 = vmor %vm1066_vm12, %vm1067_vm11 }
  0xc7   : > { %v2561_v11 = vpop.eup %2012  ;;  %v1063_v12 = vsub.f32 1.0, %v1062_v57  ;;  %1266 = vperm.xlu2 %1976, %v2569_v59   ;;  %v1214_v14 = vmul.f32 %v2400_v60, %v1029_v5  ;;  %v1048_v60 = vsub.f32 1.0, %v1047_v10  ;;  %v904_v33 = vsub.f32 0.0, %v888_v16 }
  0xc8   : > { %v903_v17 = vsub.f32 0.0, %v887_v48  ;;  %v2574_v61 = vpop.eup %2014  ;;  %v2583_v38 = vadd.f32 1.0, %v2561_v11  ;;  %2018 = vrcp.f32 %v2567_v8  ;;  %vm1051_vm15 = vweird.f32 %v2455_v49 }
  0xc9   : > { %v1064_v3 = vmul.f32 %v2523_v34, %v1063_v12  ;;  %v2598_v22 = vpop.eup %2016  ;;  %v2601_v23 = vadd.f32 1.0, %v2574_v61  ;;  %v2608_v42 = vsel %vm942_vm8, %v1029_v5, %v1214_v14  ;;  %v1049_v45 = vmul.f32 %v2517_v27, %v1048_v60 }
  0xca   : > { %v931_v7 = vmul.f32 1.442695, %v903_v17  ;;  %2020 = vrcp.f32 %v2583_v38  ;;  %vm1052_vm0 = vweird.f32 %v2517_v27  ;;  %v1057_v48 = vand.u32 2147483648, %v2455_v49 }
  0xcb   : > { %v854_v62 = vpop.xlane.xlu0 %853  ;;  %v1065_v20 = vadd.f32 %v2523_v34, %v1064_v3  ;;  %v935_v50 = vmul.f32 1.442695, %v905_v30  ;;  %v1050_v53 = vadd.f32 %v2517_v27, %v1049_v45  ;;  %v933_v54 = vmul.f32 1.442695, %v904_v33  ;;  %vm1053_vm1 = vmor %vm1051_vm15, %vm1052_vm0 }
  0xcc   : > { %v2589_v19 = vadd.f32 %v2345_v15, %v854_v62  ;;  %v927_v15 = vmul.f32 1.442695, %v901_v63  ;;  %2022 = vpow2.f32 %v931_v7  ;;  %v1058_v17 = vor.u32 1.1754944e-38, %v1057_v48  ;;  %v1586_v45 = vpop.xlane.xlu2 %1585 }
  0xcd   : > { %v1069_v25 = vsel %vm1068_vm13, %v2523_v34, %v1065_v20  ;;  %v1055_v34 = vand.u32 2147483647, %v2455_v49  ;;  %v1054_v12 = vsel %vm1053_vm1, %v2517_v27, %v1050_v53  ;;  %vm1096_vm3 = vweird.f32 %v2509_v18 }
  0xce   : > { %v890_v4 = vand.u32 2147483647, %v2589_v19  ;;  %v1074_v28 = vsel %vm1071_vm14, %v1073_v24, %v1069_v25  ;;  %v2617_v2 = vpop.eup %2018  ;;  %2024 = vpow2.f32 %v927_v15  ;;  %vm1097_vm4 = vweird.f32 %v2598_v22 }
  0xcf   : > { %v1217_v44 = vmul.f32 %v2472_v55, %v1074_v28  ;;  %1276 = vperm.xlu2 %1976, %v2608_v42   ;;  %v1092_v55 = vmul.f32 %v2598_v22, %v2509_v18  ;;  %2026 = vrcp.f32 %v2601_v23  ;;  %vm1056_vm2 = vcmp.eq.f32.partialorder %v1055_v34, 8.507059e+37  ;;  %vm1098_vm6 = vmor %vm1096_vm3, %vm1097_vm4 }
  0xd0   : > { %v906_v36 = vsub.f32 0.0, %v890_v4  ;;  %v2021_v31 = vpop.eup %2020  ;;  %v1059_v63 = vsel %vm1056_vm2, %v1058_v17, %v1054_v12  ;;  %v1100_v16 = vand.u32 2147483647, %v2509_v18  ;;  %v1102_v5 = vand.u32 2147483648, %v2509_v18 }
  0xd1   : > { %v2621_v26 = vsel %vm945_vm10, %v1074_v28, %v1217_v44  ;;  %v1093_v56 = vsub.f32 1.0, %v1092_v55  ;;  %2028 = vpow2.f32 %v935_v50  ;;  %v1216_v49 = vmul.f32 %v2435_v32, %v1059_v63 }
  0xd2   : > { %1291 = vperm.xlu1 %1975, %v2621_v26   ;;  %v937_v57 = vmul.f32 1.442695, %v906_v36  ;;  %v2630_v0 = vpop.eup %2022  ;;  %v1107_v62 = vmul.f32 %v2021_v31, %v2583_v38  ;;  %vm944_vm5 = vcmp.ge.f32.partialorder %v2368_v29, 0.0  ;;  %2030 = vpow2.f32 %v933_v54 }
  0xd3   : > { %v1094_v35 = vmul.f32 %v2598_v22, %v1093_v56  ;;  %v2647_v7 = vadd.f32 1.0, %v2630_v0  ;;  %v2649_v9 = vsel %vm944_vm5, %v1059_v63, %v1216_v49  ;;  %v1103_v32 = vor.u32 1.1754944e-38, %v1102_v5 }
  0xd4   : > { %v2640_v3 = vpop.eup %2024  ;;  %v1108_v10 = vsub.f32 1.0, %v1107_v62  ;;  %2032 = vpow2.f32 %v937_v57  ;;  %vm1101_vm7 = vcmp.eq.f32.partialorder %v1100_v16, 8.507059e+37  ;;  %v1117_v14 = vand.u32 2147483648, %v2583_v38 }
  0xd5   : > { %v1095_v27 = vadd.f32 %v2598_v22, %v1094_v35  ;;  %v2644_v1 = vpop.eup %2026  ;;  %vm1112_vm8 = vweird.f32 %v2021_v31  ;;  %v1115_v4 = vand.u32 2147483647, %v2583_v38  ;;  %vm947_vm9 = vcmp.ge.f32.partialorder %v2389_v47, 0.0 }
  0xd6   : > { %v1109_v15 = vmul.f32 %v2021_v31, %v1108_v10  ;;  %v2664_v18 = vadd.f32 1.0, %v2640_v3  ;;  %vm1111_vm10 = vweird.f32 %v2583_v38  ;;  %2034 = vrcp.f32 %v2647_v7  ;;  %v2685_v38 = vld [vmem:[%s506_s23] ss:$0 sm:$0xff] }
  0xd7   : > { %1286 = vperm.xlu2 %1976, %v2649_v9   ;;  %v1099_v29 = vsel %vm1098_vm6, %v2598_v22, %v1095_v27  ;;  %v2660_v25 = vpop.eup %2028  ;;  %vm1113_vm11 = vmor %vm1111_vm10, %vm1112_vm8  ;;  %v1118_v33 = vor.u32 1.1754944e-38, %v1117_v14  ;;  %vm1116_vm12 = vcmp.eq.f32.partialorder %v1115_v4, 8.507059e+37  ;;  %vm1081_vm13 = vweird.f32 %v2567_v8  ;;  %v1593_v12 = vpop.xlane.xlu1 %1592 }
  0xd8   : > { %v1104_v20 = vsel %vm1101_vm7, %v1103_v32, %v1099_v29  ;;  %v1110_v60 = vadd.f32 %v2021_v31, %v1109_v15  ;;  %v2667_v22 = vpop.eup %2030  ;;  %v2678_v36 = vadd.f32 1.0, %v2660_v25  ;;  %2036 = vrcp.f32 %v2664_v18  ;;  %v1600_v15 = vpop.xlane.xlu0 %1599 }
  0xd9   : > { %v1219_v24 = vmul.f32 %v2493_v13, %v1104_v20  ;;  %v1077_v13 = vmul.f32 %v2617_v2, %v2567_v8  ;;  %vm948_vm14 = vcmp.ge.f32.partialorder %v2458_v51, 0.0  ;;  %v2692_v55 = vadd.f32 1.0, %v2667_v22 }
  0xda   : > { %v1114_v47 = vsel %vm1113_vm11, %v2021_v31, %v1110_v60  ;;  %v2675_v28 = vpop.eup %2032  ;;  %vm1082_vm15 = vweird.f32 %v2617_v2  ;;  %v1085_v50 = vand.u32 2147483647, %v2567_v8  ;;  %v1087_v54 = vand.u32 2147483648, %v2567_v8 }
  0xdb   : > { %v2670_v30 = vsel %vm947_vm9, %v1104_v20, %v1219_v24  ;;  %v1119_v44 = vsel %vm1116_vm12, %v1118_v33, %v1114_v47  ;;  %v1078_v48 = vsub.f32 1.0, %v1077_v13  ;;  %vm946_vm0 = vcmp.ge.f32.partialorder %v2398_v58, 0.0  ;;  %vm2715_vm1 = vmor %vm1081_vm13, %vm1082_vm15 }
  0xdc   : > { %1301 = vperm.xlu1 %1975, %v2670_v30   ;;  %v1220_v34 = vmul.f32 %v2561_v11, %v1119_v44  ;;  %v1137_v11 = vmul.f32 %v2644_v1, %v2601_v23  ;;  %v2702_v57 = vpop.eup %2034  ;;  %2038 = vrcp.f32 %v2678_v36  ;;  %v2707_v51 = vadd.f32 1.0, %v2675_v28 }
  0xdd   : > { %v1079_v31 = vmul.f32 %v2617_v2, %v1078_v48  ;;  %v2710_v17 = vadd.f32 %v2685_v38, %v1586_v45  ;;  %vm2720_vm2 = vcmp.eq.f32.partialorder %v1085_v50, 8.507059e+37  ;;  %v1088_v16 = vor.u32 1.1754944e-38, %v1087_v54 }
  0xde   : > { %v2696_v53 = vsel %vm948_vm14, %v1119_v44, %v1220_v34  ;;  %v1138_v5 = vsub.f32 1.0, %v1137_v11  ;;  %vm950_vm3 = vcmp.ge.f32.partialorder %v2429_v21, 0.0  ;;  %2040 = vrcp.f32 %v2692_v55  ;;  %v2729_v62 = vpop.eup %2036 }
  0xdf   : > { %1306 = vperm.xlu0 %1977, %v2696_v53   ;;  %v1080_v63 = vadd.f32 %v2617_v2, %v1079_v31  ;;  %vm1141_vm4 = vweird.f32 %v2601_v23  ;;  %v1145_v8 = vand.u32 2147483647, %v2601_v23  ;;  %v1147_v49 = vand.u32 2147483648, %v2601_v23 }
  0xe0   : > { %v1139_v32 = vmul.f32 %v2644_v1, %v1138_v5  ;;  %vm1142_vm5 = vweird.f32 %v2644_v1  ;;  %v1152_v10 = vmul.f32 %v2702_v57, %v2647_v7  ;;  %2042 = vrcp.f32 %v2707_v51 }
  0xe1   : > { %v1084_v27 = vsel %vm2715_vm1, %v2617_v2, %v1080_v63  ;;  %v1616_v29 = vand.u32 2147483647, %v2710_v17  ;;  %v2741_v14 = vadd.f32 %v2685_v38, %v1593_v12  ;;  %vm2747_vm6 = vcmp.eq.f32.partialorder %v1145_v8, 8.507059e+37  ;;  %vm1143_vm7 = vmor %vm1141_vm4, %vm1142_vm5  ;;  %v1607_v63 = vpop.xlane.xlu2 %1606 }
  0xe2   : > { %v1089_v20 = vsel %vm2720_vm2, %v1088_v16, %v1084_v27  ;;  %v1140_v4 = vadd.f32 %v2644_v1, %v1139_v32  ;;  %v1153_v60 = vsub.f32 1.0, %v1152_v10  ;;  %v2751_v33 = vpop.eup %2038  ;;  %v1148_v13 = vor.u32 1.1754944e-38, %v1147_v49 }
  0xe3   : > { %v1218_v2 = vmul.f32 %v2529_v39, %v1089_v20  ;;  %vm1157_vm8 = vweird.f32 %v2702_v57  ;;  %v1162_v47 = vand.u32 2147483648, %v2647_v7  ;;  %v1122_v39 = vmul.f32 %v2729_v62, %v2664_v18 }
  0xe4   : > { %v1144_v45 = vsel %vm1143_vm7, %v2644_v1, %v1140_v4  ;;  %v1154_v34 = vmul.f32 %v2702_v57, %v1153_v60  ;;  %v1160_v48 = vand.u32 2147483647, %v2647_v7  ;;  %v2766_v23 = vpop.eup %2040  ;;  %v1620_v50 = vsub.f32 0.0, %v1616_v29 }
  0xe5   : > { %v2761_v44 = vsel %vm946_vm0, %v1089_v20, %v1218_v2  ;;  %v2769_v31 = vadd.f32 %v2685_v38, %v1600_v15  ;;  %v1617_v54 = vand.u32 2147483647, %v2741_v14  ;;  %v1149_v58 = vsel %vm2747_vm6, %v1148_v13, %v1144_v45 }
  0xe6   : > { %1296 = vperm.xlu2 %1976, %v2761_v44   ;;  %vm949_vm9 = vcmp.ge.f32.partialorder %v2499_v6, 0.0  ;;  %v1222_v1 = vmul.f32 %v2574_v61, %v1149_v58  ;;  %v1155_v11 = vadd.f32 %v2702_v57, %v1154_v34  ;;  %vm1156_vm10 = vweird.f32 %v2647_v7  ;;  %v2779_v12 = vpop.eup %2042 }
  0xe7   : > { %v1163_v56 = vor.u32 1.1754944e-38, %v1162_v47  ;;  %vm1158_vm11 = vmor %vm1156_vm10, %vm1157_vm8  ;;  %v1123_v35 = vsub.f32 1.0, %v1122_v39  ;;  %vm1126_vm12 = vweird.f32 %v2664_v18  ;;  %vm1127_vm13 = vweird.f32 %v2729_v62 }
  0xe8   : > { %v1130_v16 = vand.u32 2147483647, %v2664_v18  ;;  %v2788_v61 = vsel %vm950_vm3, %v1149_v58, %v1222_v1  ;;  %v1159_v7 = vsel %vm1158_vm11, %v2702_v57, %v1155_v11  ;;  %vm1161_vm14 = vcmp.eq.f32.partialorder %v1160_v48, 8.507059e+37  ;;  %vm2801_vm0 = vmor %vm1126_vm12, %vm1127_vm13 }
  0xe9   : > { %v1132_v5 = vand.u32 2147483648, %v2664_v18  ;;  %vm951_vm15 = vcmp.ge.f32.partialorder %v2527_v37, 0.0  ;;  %v2793_v8 = vmul.f32 1.442695, %v1620_v50  ;;  %1316 = vperm.xlu1 %1975, %v2788_v61   ;;  %v1164_v49 = vsel %vm1161_vm14, %v1163_v56, %v1159_v7 }
  0xea   : > { %v1124_v27 = vmul.f32 %v2729_v62, %v1123_v35  ;;  %v2798_v32 = vadd.f32 %v2685_v38, %v1607_v63  ;;  %v1223_v21 = vmul.f32 %v2630_v0, %v1164_v49  ;;  %v1182_v37 = vmul.f32 %v2751_v33, %v2678_v36 }
  0xeb   : > { %v1133_v57 = vor.u32 1.1754944e-38, %v1132_v5  ;;  %v1618_v18 = vand.u32 2147483647, %v2769_v31  ;;  %vm1131_vm1 = vcmp.eq.f32.partialorder %v1130_v16, 8.507059e+37  ;;  %v1192_v20 = vand.u32 2147483648, %v2678_v36 }
  0xec   : > { %v1125_v29 = vadd.f32 %v2729_v62, %v1124_v27  ;;  %v1621_v15 = vsub.f32 0.0, %v1617_v54  ;;  %v2810_v38 = vsel %vm951_vm15, %v1164_v49, %v1223_v21  ;;  %v1183_v2 = vsub.f32 1.0, %v1182_v37 }
  0xed   : > { %v1197_v0 = vmul.f32 %v2779_v12, %v2707_v51  ;;  %vm953_vm2 = vcmp.ge.f32.partialorder %v2538_v46, 0.0  ;;  %1321 = vperm.xlu0 %1977, %v2810_v38   ;;  %vm1186_vm3 = vweird.f32 %v2678_v36  ;;  %vm1187_vm4 = vweird.f32 %v2751_v33 }
  0xee   : > { %v1129_v4 = vsel %vm2801_vm0, %v2729_v62, %v1125_v29  ;;  %v1190_v24 = vand.u32 2147483647, %v2678_v36  ;;  %v1184_v13 = vmul.f32 %v2751_v33, %v1183_v2  ;;  %vm1201_vm5 = vweird.f32 %v2707_v51  ;;  %vm1188_vm7 = vmor %vm1186_vm3, %vm1187_vm4 }
  0xef   : > { %v1134_v60 = vsel %vm1131_vm1, %v1133_v57, %v1129_v4  ;;  %v1198_v47 = vsub.f32 1.0, %v1197_v0  ;;  %v1193_v45 = vor.u32 1.1754944e-38, %v1192_v20  ;;  %v1207_v34 = vand.u32 2147483648, %v2707_v51 }
  0xf0   : > { %v1221_v39 = vmul.f32 %v2640_v3, %v1134_v60  ;;  %v1167_v62 = vmul.f32 %v2766_v23, %v2692_v55  ;;  %v1185_v48 = vadd.f32 %v2751_v33, %v1184_v13  ;;  %vm1202_vm6 = vweird.f32 %v2779_v12 }
  0xf1   : > { %v1199_v50 = vmul.f32 %v2779_v12, %v1198_v47  ;;  %v1205_v54 = vand.u32 2147483647, %v2707_v51  ;;  %vm1171_vm8 = vweird.f32 %v2692_v55  ;;  %vm1172_vm10 = vweird.f32 %v2766_v23 }
  0xf2   : > { %v2834_v58 = vsel %vm949_vm9, %v1134_v60, %v1221_v39  ;;  %v1168_v3 = vsub.f32 1.0, %v1167_v62  ;;  %v1189_v1 = vsel %vm1188_vm7, %v2751_v33, %v1185_v48  ;;  %vm1191_vm11 = vcmp.eq.f32.partialorder %v1190_v24, 8.507059e+37  ;;  %vm1203_vm9 = vmor %vm1201_vm5, %vm1202_vm6 }
  0xf3   : > { %1311 = vperm.xlu2 %1976, %v2834_v58   ;;  %v1200_v11 = vadd.f32 %v2779_v12, %v1199_v50  ;;  %v1175_v6 = vand.u32 2147483647, %v2692_v55  ;;  %v1194_v56 = vsel %vm1191_vm11, %v1193_v45, %v1189_v1  ;;  %v1208_v36 = vor.u32 1.1754944e-38, %v1207_v34  ;;  %vm2857_vm13 = vmor %vm1171_vm8, %vm1172_vm10 }
  0xf4   : > { %v1169_v63 = vmul.f32 %v2766_v23, %v1168_v3  ;;  %v1177_v35 = vand.u32 2147483648, %v2692_v55  ;;  %v1619_v16 = vand.u32 2147483647, %v2798_v32  ;;  %v1225_v7 = vmul.f32 %v2660_v25, %v1194_v56 }
  0xf5   : > { %v1204_v33 = vsel %vm1203_vm9, %v2779_v12, %v1200_v11  ;;  %vm1206_vm12 = vcmp.eq.f32.partialorder %v1205_v54, 8.507059e+37  ;;  %vm1176_vm14 = vcmp.eq.f32.partialorder %v1175_v6, 8.507059e+37  ;;  %v1622_v21 = vsub.f32 0.0, %v1618_v18 }
  0xf6   : > { %v1209_v51 = vsel %vm1206_vm12, %v1208_v36, %v1204_v33  ;;  %v1170_v49 = vadd.f32 %v2766_v23, %v1169_v63  ;;  %v1178_v27 = vor.u32 1.1754944e-38, %v1177_v35  ;;  %v2864_v25 = vsel %vm953_vm2, %v1194_v56, %v1225_v7  ;;  %v1246_v35 = vld [vmem:[%s3160_s3 + $0x18] sm:$0xff] }
  0xf7   : > { %v1226_v12 = vmul.f32 %v2675_v28, %v1209_v51  ;;  %vm952_vm15 = vcmp.ge.f32.partialorder %v2541_v40, 0.0  ;;  %vm954_vm0 = vcmp.ge.f32.partialorder %v2589_v19, 0.0  ;;  %v1626_v55 = vmul.f32 1.442695, %v1621_v15  ;;  %1331 = vperm.xlu1 %1975, %v2864_v25  }
  0xf8   : > { %v1174_v10 = vsel %vm2857_vm13, %v2766_v23, %v1170_v49  ;;  %2044 = vpow2.f32 %v2793_v8  ;;  %v1623_v57 = vsub.f32 0.0, %v1619_v16  ;;  %v1628_v40 = vmul.f32 1.442695, %v1622_v21 }
  0xf9   : > { %v2874_v37 = vsel %vm954_vm0, %v1209_v51, %v1226_v12  ;;  %v1179_v46 = vsel %vm1176_vm14, %v1178_v27, %v1174_v10  ;;  %2046 = vpow2.f32 %v1626_v55  ;;  %v1356_v29 = vsub.f32 1.0, %v2569_v59  ;;  %v1377_v27 = vld [vmem:[%s3007_s30 + $0x30] sm:$0xff] }
  0xfa   : > { %1336 = vperm.xlu0 %1977, %v2874_v37   ;;  %v1224_v28 = vmul.f32 %v2667_v22, %v1179_v46  ;;  %v1630_v18 = vmul.f32 1.442695, %v1623_v57  ;;  %2048 = vpow2.f32 %v1628_v40  ;;  %v1357_v8 = vsub.f32 1.0, %v2462_v52 }
  0xfb   : > { %v1355_v15 = vsub.f32 1.0, %v2491_v43  ;;  %v1359_v59 = vsub.f32 1.0, %v2533_v41  ;;  %v1360_v52 = vsub.f32 1.0, %v2649_v9  ;;  %v1358_v60 = vsub.f32 1.0, %v2608_v42 }
  0xfc   : > { %v2878_v19 = vsel %vm952_vm15, %v1179_v46, %v1224_v28  ;;  %2050 = vpow2.f32 %v1630_v18  ;;  %v1362_v41 = vsub.f32 1.0, %v2761_v44  ;;  %v1363_v39 = vsub.f32 1.0, %v2670_v30 }
  0xfd   : > { %1326 = vperm.xlu2 %1976, %v2878_v19   ;;  %v1361_v34 = vsub.f32 1.0, %v2621_v26  ;;  %v1364_v50 = vsub.f32 1.0, %v2696_v53  ;;  %v1366_v1 = vsub.f32 1.0, %v2788_v61  ;;  %v1365_v36 = vsub.f32 1.0, %v2834_v58 }
  0xfe   : > { %v2882_v23 = vpop.eup %2044  ;;  %v1367_v16 = vsub.f32 1.0, %v2810_v38  ;;  %v1368_v21 = vsub.f32 1.0, %v2878_v19  ;;  %v1369_v18 = vsub.f32 1.0, %v2864_v25  ;;  %vm1632_vm0 = vcmp.ge.f32.partialorder %v2710_v17, 0.0 }
  0xff   : > { %1394 = vperm.xlu1 %1975, %v1356_v29   ;;  %v2885_v20 = vpop.eup %2046  ;;  %v1636_v22 = vadd.f32 1.0, %v2882_v23  ;;  %v1370_v25 = vsub.f32 1.0, %v2874_v37 }
 0x100   : > { %v2889_v2 = vpop.eup %2048  ;;  %v2892_v0 = vadd.f32 1.0, %v2885_v20 }
 0x101   : > { %2052 = vrcp.f32 %v1636_v22  ;;  %v2899_v24 = vadd.f32 1.0, %v2889_v2  ;;  %vm1645_vm1 = vweird.f32 %v1636_v22  ;;  %v1649_v11 = vand.u32 2147483647, %v1636_v22 }
 0x102   : > { %1399 = vperm.xlu0 %1977, %v1357_v8   ;;  %v2895_v4 = vpop.eup %2050  ;;  %2054 = vrcp.f32 %v2892_v0  ;;  %v1651_v6 = vand.u32 2147483648, %v1636_v22  ;;  %vm1660_vm4 = vweird.f32 %v2892_v0  ;;  %v1666_v61 = vand.u32 2147483648, %v2892_v0 }
 0x103   : > { %v2903_v43 = vadd.f32 1.0, %v2895_v4  ;;  %2056 = vrcp.f32 %v2899_v24  ;;  %vm2936_vm6 = vcmp.eq.f32.partialorder %v1649_v11, 8.507059e+37  ;;  %v1664_v51 = vand.u32 2147483647, %v2892_v0 }
 0x104   : > { %v1652_v58 = vor.u32 1.1754944e-38, %v1651_v6  ;;  %vm1675_vm8 = vweird.f32 %v2899_v24  ;;  %v1667_v12 = vor.u32 1.1754944e-38, %v1666_v61  ;;  %v1681_v55 = vand.u32 2147483648, %v2899_v24  ;;  %v1374_v61 = vld [vmem:[%s3007_s30 + $0x18] sm:$0xff] }
 0x105   : > { %1389 = vperm.xlu2 %1976, %v1355_v15   ;;  %2058 = vrcp.f32 %v2903_v43  ;;  %vm1690_vm11 = vweird.f32 %v2903_v43  ;;  %v1679_v57 = vand.u32 2147483647, %v2899_v24  ;;  %vm1665_vm12 = vcmp.eq.f32.partialorder %v1664_v51, 8.507059e+37 }
 0x106   : > { %v1696_v40 = vand.u32 2147483648, %v2903_v43  ;;  %v1694_v8 = vand.u32 2147483647, %v2903_v43  ;;  %v1682_v15 = vor.u32 1.1754944e-38, %v1681_v55  ;;  %v1372_v55 = vld [vmem:[%s3007_s30 + $0x8] sm:$0xff] }
 0x107   : > { %1409 = vperm.xlu1 %1975, %v1359_v59   ;;  %v2053_v13 = vpop.eup %2052  ;;  %vm1680_vm15 = vcmp.eq.f32.partialorder %v1679_v57, 8.507059e+37  ;;  %v1245_v57 = vld [vmem:[%s3160_s3 + $0x10] sm:$0xff] }
 0x108   : > { %v2909_v9 = vpop.eup %2054  ;;  %v1641_v47 = vmul.f32 %v2053_v13, %v1636_v22  ;;  %vm1646_vm2 = vweird.f32 %v2053_v13  ;;  %v1253_v22 = vld [vmem:[%s3160_s3 + $0x50] sm:$0xff] }
 0x109   : > { %v2912_v45 = vpop.eup %2056  ;;  %v1656_v42 = vmul.f32 %v2909_v9, %v2892_v0  ;;  %vm2927_vm3 = vmor %vm1645_vm1, %vm1646_vm2  ;;  %vm1661_vm5 = vweird.f32 %v2909_v9  ;;  %vm1695_vm1 = vcmp.eq.f32.partialorder %v1694_v8, 8.507059e+37  ;;  %vm1633_vm2 = vcmp.ge.f32.partialorder %v2741_v14, 0.0 }
 0x10a   : > { %1414 = vperm.xlu0 %1977, %v1360_v52   ;;  %v1642_v62 = vsub.f32 1.0, %v1641_v47  ;;  %v1671_v44 = vmul.f32 %v2912_v45, %v2899_v24  ;;  %vm2944_vm7 = vmor %vm1660_vm4, %vm1661_vm5  ;;  %vm1676_vm10 = vweird.f32 %v2912_v45  ;;  %vm1635_vm4 = vcmp.ge.f32.partialorder %v2798_v32, 0.0 }
 0x10b   : > { %v2917_v48 = vpop.eup %2058  ;;  %v1657_v54 = vsub.f32 1.0, %v1656_v42  ;;  %vm2965_vm13 = vmor %vm1675_vm8, %vm1676_vm10  ;;  %vm1499_vm5 = vcmask 261120  }
 0x10c   : > { %v1643_v30 = vmul.f32 %v2053_v13, %v1642_v62  ;;  %v1686_v3 = vmul.f32 %v2917_v48, %v2903_v43  ;;  %v1672_v26 = vsub.f32 1.0, %v1671_v44  ;;  %vm1691_vm9 = vweird.f32 %v2917_v48 }
 0x10d   : > { %1404 = vperm.xlu2 %1976, %v1358_v60   ;;  %v1658_v56 = vmul.f32 %v2909_v9, %v1657_v54  ;;  %vm2972_vm14 = vmor %vm1690_vm11, %vm1691_vm9  ;;  %v1697_v43 = vor.u32 1.1754944e-38, %v1696_v40  ;;  %v1373_v40 = vld [vmem:[%s3007_s30 + $0x10] sm:$0xff] }
 0x10e   : > { %v1644_v63 = vadd.f32 %v2053_v13, %v1643_v30  ;;  %v1687_v53 = vsub.f32 1.0, %v1686_v3  ;;  %v1673_v7 = vmul.f32 %v2912_v45, %v1672_v26  ;;  %v1371_v26 = vld [vmem:[%s3007_s30] sm:$0xff] }
 0x10f   : > { %1424 = vperm.xlu1 %1975, %v1362_v41   ;;  %v1659_v5 = vadd.f32 %v2909_v9, %v1658_v56 }
 0x110   : > { %v1648_v49 = vsel %vm2927_vm3, %v2053_v13, %v1644_v63  ;;  %v1688_v38 = vmul.f32 %v2917_v48, %v1687_v53  ;;  %v1674_v10 = vadd.f32 %v2912_v45, %v1673_v7  ;;  %vm1634_vm3 = vcmp.ge.f32.partialorder %v2769_v31, 0.0 }
 0x111   : > { %v1653_v46 = vsel %vm2936_vm6, %v1652_v58, %v1648_v49  ;;  %v1663_v28 = vsel %vm2944_vm7, %v2909_v9, %v1659_v5  ;;  %v1249_v49 = vld [vmem:[%s3160_s3 + $0x30] sm:$0xff] }
 0x112   : > { %1429 = vperm.xlu0 %1977, %v1363_v39   ;;  %v1689_v29 = vadd.f32 %v2917_v48, %v1688_v38  ;;  %v1700_v0 = vmul.f32 %v2882_v23, %v1653_v46  ;;  %v1668_v59 = vsel %vm1665_vm12, %v1667_v12, %v1663_v28  ;;  %v1678_v52 = vsel %vm2965_vm13, %v2912_v45, %v1674_v10 }
 0x113   : > { %v1701_v23 = vmul.f32 %v2885_v20, %v1668_v59  ;;  %v1683_v13 = vsel %vm1680_vm15, %v1682_v15, %v1678_v52 }
 0x114   : > { %v1693_v60 = vsel %vm2972_vm14, %v2917_v48, %v1689_v29  ;;  %v1704_v41 = vsel %vm1632_vm0, %v1653_v46, %v1700_v0  ;;  %v1702_v47 = vmul.f32 %v2889_v2, %v1683_v13 }
 0x115   : > { %1419 = vperm.xlu2 %1976, %v1361_v34   ;;  %v1698_v9 = vsel %vm1695_vm1, %v1697_v43, %v1693_v60  ;;  %v1705_v17 = vsel %vm1633_vm2, %v1668_v59, %v1701_v23  ;;  %v1736_v42 = vsub.f32 1.0, %v1704_v41  ;;  %v1381_v59 = vld [vmem:[%s3007_s30 + $0x50] sm:$0xff]  ;;  %v1375_v60 = vld [vmem:[%s3007_s30 + $0x20] sm:$0xff] }
 0x116   : > { %v1703_v37 = vmul.f32 %v2895_v4, %v1698_v9  ;;  %v1706_v39 = vsel %vm1634_vm3, %v1683_v13, %v1702_v47  ;;  %v1737_v14 = vsub.f32 1.0, %v1705_v17  ;;  %v1248_v13 = vld [vmem:[%s3160_s3 + $0x28] sm:$0xff] }
 0x117   : > { %1434 = vperm.xlu1 %1975, %v1364_v50   ;;  %v1738_v34 = vsub.f32 1.0, %v1706_v39  ;;  %v1376_v47 = vld [vmem:[%s3007_s30 + $0x28] sm:$0xff] }
 0x118   : > { %v1707_v20 = vsel %vm1635_vm4, %v1698_v9, %v1703_v37 }
 0x119   : > { %v1739_v31 = vsub.f32 1.0, %v1707_v20 }
 0x11a   : > { %1444 = vperm.xlu0 %1977, %v1366_v1   ;;  %v1243_v1 = vld [vmem:[%s3160_s3] sm:$0xff] }
 0x11d   : > { %1439 = vperm.xlu2 %1976, %v1365_v36  }
 0x11f   : > { %1449 = vperm.xlu1 %1975, %v1367_v16  }
 0x121   : > { %v2980_v24 = vpop.permute.xlu2 %1266 }
 0x122   : > { %1454 = vperm.xlu0 %1977, %v1368_v21   ;;  %v1244_v21 = vld [vmem:[%s3160_s3 + $0x8] sm:$0xff] }
 0x123   : > { %v1340_v19 = vmul.f32 %v2980_v24, %v1244_v21  ;;  %v1247_v24 = vld [vmem:[%s3160_s3 + $0x20] sm:$0xff] }
 0x125   : > { %1459 = vperm.xlu2 %1976, %v1369_v18  }
 0x127   : > { %1464 = vperm.xlu1 %1975, %v1370_v25  }
 0x129   : > { %v1277_v45 = vpop.permute.xlu2 %1276 }
 0x12a   : > { %1714 = vperm.xlu0 %1977, %v1704_v41   ;;  %v1272_v50 = vpop.permute.xlu0 %1271  ;;  %v1342_v7 = vmul.f32 %v1277_v45, %v1246_v35 }
 0x12b   : > { %v1341_v8 = vmul.f32 %v1272_v50, %v1245_v57  ;;  %v1251_v50 = vld [vmem:[%s3160_s3 + $0x40] sm:$0xff] }
 0x12d   : > { %1719 = vperm.xlu2 %1976, %v1705_v17  }
 0x12e   : > { %v1262_v2 = vpop.permute.xlu1 %1261 }
 0x12f   : > { %1724 = vperm.xlu1 %1975, %v1706_v39   ;;  %v1339_v6 = vmul.f32 %v1262_v2, %v1243_v1 }
 0x131   : > { %v2993_v62 = vpop.permute.xlu2 %1286 }
 0x132   : > { %1729 = vperm.xlu0 %1977, %v1707_v20   ;;  %v1344_v45 = vmul.f32 %v2993_v62, %v1248_v13  ;;  %v1257_v20 = vld [vmem:[%s3160_s3 + $0x70] sm:$0xff]  ;;  %v1378_v62 = vld [vmem:[%s3007_s30 + $0x38] sm:$0xff] }
 0x135   : > { %1746 = vperm.xlu2 %1976, %v1736_v42  }
 0x136   : > { %v1282_v4 = vpop.permute.xlu1 %1281 }
 0x137   : > { %1751 = vperm.xlu1 %1975, %v1737_v14   ;;  %v1343_v17 = vmul.f32 %v1282_v4, %v1247_v24  ;;  %v1250_v4 = vld [vmem:[%s3160_s3 + $0x38] sm:$0xff]  ;;  %v1708_v24 = vld [vmem:[%s3165_s8] sm:$0xff] }
 0x13a   : > { %1756 = vperm.xlu0 %1977, %v1738_v34   ;;  %v1385_v34 = vld [vmem:[%s3007_s30 + $0x70] sm:$0xff] }
 0x13d   : > { %1761 = vperm.xlu2 %1976, %v1739_v31  }
 0x140   : > { %v2995_v48 = vpop.permute.xlu2 %1296 }
 0x144   : > { %v1292_v32 = vpop.permute.xlu1 %1291 }
 0x145   : > { %v1345_v12 = vmul.f32 %v1292_v32, %v1249_v49 }
 0x14d   : > { %v1312_v44 = vpop.permute.xlu2 %1311 }
 0x14e   : > { %v2997_v54 = vpop.permute.xlu1 %1301  ;;  %v1349_v43 = vmul.f32 %v1312_v44, %v1253_v22 }
 0x14f   : > { %v1347_v35 = vmul.f32 %v2997_v54, %v1251_v50 }
 0x151   : > { %v3002_v3 = vpop.permute.xlu0 %1306 }
 0x157   : > { %v2999_v30 = vpop.permute.xlu2 %1326 }
 0x15b   : > { %v3013_v36 = vpop.permute.xlu1 %1316 }
 0x15f   : > { %v1390_v11 = vpop.permute.xlu2 %1389  ;;  %v3020_v53 = vpop.permute.xlu0 %1321 }
 0x160   : > { %v1467_v56 = vmul.f32 %v1390_v11, %v1371_v26  ;;  %v1379_v11 = vld [vmem:[%s3007_s30 + $0x40] sm:$0xff] }
 0x162   : > { %v1483_v63 = vadd.f32 %v1467_v56, %v1339_v6  ;;  %v1346_v6 = vmul.f32 %v2995_v48, %v1250_v4  ;;  %v1254_v48 = vld [vmem:[%s3160_s3 + $0x58] sm:$0xff] }
 0x163   : > { %v1350_v21 = vmul.f32 %v3013_v36, %v1254_v48 }
 0x164   : > { %1500 = vst.msk [vmem:[%s3018_s16] sm:$0xff] %vm1499_vm5, %v1483_v63 }
 0x167   : > { %v1405_v16 = vpop.permute.xlu2 %1404 }
 0x168   : > { %v1470_v33 = vmul.f32 %v1405_v16, %v1374_v61 }
 0x169   : > { %v1332_v5 = vpop.permute.xlu1 %1331 }
 0x16a   : > { %v1486_v58 = vadd.f32 %v1470_v33, %v1342_v7  ;;  %v1353_v32 = vmul.f32 %v1332_v5, %v1257_v20  ;;  %v1252_v33 = vld [vmem:[%s3160_s3 + $0x48] sm:$0xff]  ;;  %v1382_v5 = vld [vmem:[%s3007_s30 + $0x58] sm:$0xff] }
 0x16b   : > { %v1348_v49 = vmul.f32 %v3002_v3, %v1252_v33  ;;  %v1256_v3 = vld [vmem:[%s3160_s3 + $0x68] sm:$0xff] }
 0x16c   : > { %1503 = vst.msk [vmem:[%s3018_s16 + $0x18] sm:$0xff] %vm1499_vm5, %v1486_v58  ;;  %v3030_v51 = vpop.permute.xlu0 %1336  ;;  %v1380_v58 = vld [vmem:[%s3007_s30 + $0x48] sm:$0xff] }
 0x16f   : > { %v1420_v38 = vpop.permute.xlu2 %1419 }
 0x170   : > { %v1473_v10 = vmul.f32 %v1420_v38, %v1377_v27 }
 0x171   : > { %v1395_v46 = vpop.permute.xlu1 %1394 }
 0x172   : > { %v1489_v28 = vadd.f32 %v1473_v10, %v1345_v12  ;;  %v1468_v18 = vmul.f32 %v1395_v46, %v1372_v55  ;;  %v1255_v46 = vld [vmem:[%s3160_s3 + $0x60] sm:$0xff] }
 0x174   : > { %1506 = vst.msk [vmem:[%s3018_s16 + $0x30] sm:$0xff] %vm1499_vm5, %v1489_v28  ;;  %v1400_v29 = vpop.permute.xlu0 %1399  ;;  %v1484_v15 = vadd.f32 %v1468_v18, %v1340_v19  ;;  %v1383_v28 = vld [vmem:[%s3007_s30 + $0x60] sm:$0xff]  ;;  %v1351_v19 = vmul.f32 %v3020_v53, %v1255_v46  ;;  %v1258_v53 = vld [vmem:[%s3160_s3 + $0x78] sm:$0xff] }
 0x175   : > { %v1469_v0 = vmul.f32 %v1400_v29, %v1373_v40  ;;  %v1384_v40 = vld [vmem:[%s3007_s30 + $0x68] sm:$0xff] }
 0x176   : > { %1501 = vst.msk [vmem:[%s3018_s16 + $0x8] sm:$0xff] %vm1499_vm5, %v1484_v15 }
 0x177   : > { %v1485_v52 = vadd.f32 %v1469_v0, %v1341_v8  ;;  %v1440_v25 = vpop.permute.xlu2 %1439  ;;  %v1352_v8 = vmul.f32 %v2999_v30, %v1256_v3  ;;  %v1740_v30 = vld [vmem:[%s3118_s20] sm:$0xff] }
 0x178   : > { %v1477_v23 = vmul.f32 %v1440_v25, %v1381_v59 }
 0x179   : > { %1502 = vst.msk [vmem:[%s3018_s16 + $0x10] sm:$0xff] %vm1499_vm5, %v1485_v52  ;;  %v1410_v41 = vpop.permute.xlu1 %1409  ;;  %v1386_v52 = vld [vmem:[%s3007_s30 + $0x78] sm:$0xff]  ;;  %s521_s30 = scalar_lea.vmem %s3168_s11, %s1960_s14 }
 0x17a   : > { %v1493_v9 = vadd.f32 %v1477_v23, %v1349_v43  ;;  %v1471_v37 = vmul.f32 %v1410_v41, %v1375_v60  ;;  %v1354_v43 = vmul.f32 %v3030_v51, %v1258_v53  ;;  %v1711_v51 = vld [vmem:[%s3165_s8 + $0x18] sm:$0xff] }
 0x17c   : > { %1510 = vst.msk [vmem:[%s3018_s16 + $0x50] sm:$0xff] %vm1499_vm5, %v1493_v9  ;;  %v1415_v39 = vpop.permute.xlu0 %1414  ;;  %v1487_v42 = vadd.f32 %v1471_v37, %v1343_v17  ;;  %v1743_v17 = vld [vmem:[%s3118_s20 + $0x18] sm:$0xff] }
 0x17d   : > { %v1472_v14 = vmul.f32 %v1415_v39, %v1376_v47 }
 0x17e   : > { %1504 = vst.msk [vmem:[%s3018_s16 + $0x20] sm:$0xff] %vm1499_vm5, %v1487_v42 }
 0x17f   : > { %v1488_v2 = vadd.f32 %v1472_v14, %v1344_v45  ;;  %v1460_v31 = vpop.permute.xlu2 %1459 }
 0x180   : > { %v1481_v44 = vmul.f32 %v1460_v31, %v1385_v34  ;;  %v1709_v34 = vld [vmem:[%s3165_s8 + $0x8] sm:$0xff]  ;;  %v1710_v31 = vld [vmem:[%s3165_s8 + $0x10] sm:$0xff] }
 0x181   : > { %1505 = vst.msk [vmem:[%s3018_s16 + $0x28] sm:$0xff] %vm1499_vm5, %v1488_v2  ;;  %v1425_v1 = vpop.permute.xlu1 %1424  ;;  %v1741_v2 = vld [vmem:[%s3118_s20 + $0x8] sm:$0xff] }
 0x182   : > { %v1497_v26 = vadd.f32 %v1481_v44, %v1353_v32  ;;  %v1474_v56 = vmul.f32 %v1425_v1, %v1378_v62  ;;  %v1742_v32 = vld [vmem:[%s3118_s20 + $0x10] sm:$0xff] }
 0x184   : > { %1514 = vst.msk [vmem:[%s3018_s16 + $0x70] sm:$0xff] %vm1499_vm5, %v1497_v26  ;;  %v1430_v63 = vpop.permute.xlu0 %1429  ;;  %v1490_v61 = vadd.f32 %v1474_v56, %v1346_v6 }
 0x185   : > { %v1475_v16 = vmul.f32 %v1430_v63, %v1379_v11 }
 0x186   : > { %1507 = vst.msk [vmem:[%s3018_s16 + $0x38] sm:$0xff] %vm1499_vm5, %v1490_v61 }
 0x187   : > { %v1491_v7 = vadd.f32 %v1475_v16, %v1347_v35  ;;  %v1720_v10 = vpop.permute.xlu2 %1719 }
 0x188   : > { %v1733_v62 = vmul.f32 %v1720_v10, %v1709_v34 }
 0x189   : > { %1508 = vst.msk [vmem:[%s3018_s16 + $0x40] sm:$0xff] %vm1499_vm5, %v1491_v7  ;;  %v1435_v54 = vpop.permute.xlu1 %1434 }
 0x18a   : > { %v1476_v27 = vmul.f32 %v1435_v54, %v1380_v58 }
 0x18c   : > { %v1445_v38 = vpop.permute.xlu0 %1444  ;;  %v1492_v12 = vadd.f32 %v1476_v27, %v1348_v49 }
 0x18d   : > { %v1478_v55 = vmul.f32 %v1445_v38, %v1382_v5 }
 0x18e   : > { %1509 = vst.msk [vmem:[%s3018_s16 + $0x48] sm:$0xff] %vm1499_vm5, %v1492_v12 }
 0x18f   : > { %v1494_v57 = vadd.f32 %v1478_v55, %v1350_v21  ;;  %v1747_v59 = vpop.permute.xlu2 %1746 }
 0x190   : > { %v1764_v13 = vmul.f32 %v1747_v59, %v1740_v30 }
 0x191   : > { %1511 = vst.msk [vmem:[%s3018_s16 + $0x58] sm:$0xff] %vm1499_vm5, %v1494_v57  ;;  %v1450_v36 = vpop.permute.xlu1 %1449 }
 0x192   : > { %v1479_v18 = vmul.f32 %v1450_v36, %v1383_v28 }
 0x194   : > { %v1455_v29 = vpop.permute.xlu0 %1454  ;;  %v1495_v22 = vadd.f32 %v1479_v18, %v1351_v19 }
 0x195   : > { %v1480_v15 = vmul.f32 %v1455_v29, %v1384_v40 }
 0x196   : > { %1512 = vst.msk [vmem:[%s3018_s16 + $0x60] sm:$0xff] %vm1499_vm5, %v1495_v22 }
 0x197   : > { %v1496_v0 = vadd.f32 %v1480_v15, %v1352_v8  ;;  %v1762_v37 = vpop.permute.xlu2 %1761 }
 0x198   : > { %v1767_v20 = vmul.f32 %v1762_v37, %v1743_v17 }
 0x199   : > { %1513 = vst.msk [vmem:[%s3018_s16 + $0x68] sm:$0xff] %vm1499_vm5, %v1496_v0  ;;  %v1465_v25 = vpop.permute.xlu1 %1464 }
 0x19a   : > { %v1482_v60 = vmul.f32 %v1465_v25, %v1386_v52 }
 0x19c   : > { %v1715_v23 = vpop.permute.xlu0 %1714  ;;  %v1498_v41 = vadd.f32 %v1482_v60, %v1354_v43 }
 0x19d   : > { %v1732_v9 = vmul.f32 %v1715_v23, %v1708_v24 }
 0x19e   : > { %1515 = vst.msk [vmem:[%s3018_s16 + $0x78] sm:$0xff] %vm1499_vm5, %v1498_v41 }
 0x19f   : > { %v1768_v47 = vadd.f32 %v1764_v13, %v1732_v9 }
 0x1a1   : > { %1772 = vst.msk [vmem:[%s521_s30] sm:$0xff] %vm1499_vm5, %v1768_v47  ;;  %v1725_v39 = vpop.permute.xlu1 %1724 }
 0x1a2   : > { %v1734_v1 = vmul.f32 %v1725_v39, %v1710_v31 }
 0x1a4   : > { %v1730_v45 = vpop.permute.xlu0 %1729 }
 0x1a5   : > { %v1735_v42 = vmul.f32 %v1730_v45, %v1711_v51 }
 0x1a7   : > { %v1771_v14 = vadd.f32 %v1767_v20, %v1735_v42 }
 0x1a9   : > { %1775 = vst.msk [vmem:[%s521_s30 + $0x18] sm:$0xff] %vm1499_vm5, %v1771_v14  ;;  %v1752_v4 = vpop.permute.xlu1 %1751 }
 0x1aa   : > { %v1765_v44 = vmul.f32 %v1752_v4, %v1741_v2 }
 0x1ac   : > { %v1757_v50 = vpop.permute.xlu0 %1756  ;;  %v1769_v26 = vadd.f32 %v1765_v44, %v1733_v62 }
 0x1ad   : > { %v1766_v11 = vmul.f32 %v1757_v50, %v1742_v32 }
 0x1ae   : > { %1773 = vst.msk [vmem:[%s521_s30 + $0x8] sm:$0xff] %vm1499_vm5, %v1769_v26 }
 0x1af   : > { %v1770_v6 = vadd.f32 %v1766_v11, %v1734_v1 }
 0x1b1   : > { %1774 = vst.msk [vmem:[%s521_s30 + $0x10] sm:$0xff] %vm1499_vm5, %v1770_v6 }
 0x1b2 PF: > { %s22_s17 = sadd.s32 1, %s2066_s17  }
 0x1b3   : > { %p19_p4 = scmp.ge.s32.totalorder %s22_s17, 4  }
 0x1b5   :  { %21 = sbr.rel (!%p19_p4) target bundleno = 1 (0x1), region = 123 }

// kernel: coattn_forward.12
= control target key start
LH: loop header
LB: loop body
LE: loop exit
PB: predicated region body
PF: predicated region fallthrough
CT: control target
= control target key end

     0   :  { %s1702_s24 = smov 0   ;;  %s1944_s0 = inlined_call_operand.vmem [shape: bf16[2,128,288], index: 0, kind: input, shape index: {}]   ;;  %s1945_s1 = inlined_call_operand.vmem [shape: bf16[2,288,32], index: 1, kind: input, shape index: {}]   ;;  %s1946_s2 = inlined_call_operand.vmem [shape: f32[2,1,32], index: 2, kind: input, shape index: {}]   ;;  %s1947_s3 = inlined_call_operand.vmem [shape: bf16[2,32,288], index: 3, kind: input, shape index: {}]   ;;  %s1948_s4 = inlined_call_operand.vmem [shape: bf16[2,288,32], index: 4, kind: input, shape index: {}]   ;;  %s1949_s5 = inlined_call_operand.vmem [shape: f32[2,1,32], index: 5, kind: input, shape index: {}]   ;;  %s1950_s6 = inlined_call_operand.vmem [shape: f32[2,128,32], index: 6, kind: output, shape index: {0}]   ;;  %s1951_s7 = inlined_call_operand.vmem [shape: f32[2,32,32], index: 7, kind: output, shape index: {1}]  }
   0x1 LB: > { %s1284_s25 = sadd.s32 4294967295, %s1660_s24   ;;  %p1288_p0 = scmp.ge.s32.totalorder %s1660_s24, 1  ;;  %s1660_s24 = sphi %s1702_s24, %s18_s24  }
   0x2   : > { %p286_p1 = scmp.lt.s32.totalorder %s1660_s24, 3 }
   0x4   : > { %p287_p2 = pnand %p1288_p0, %p286_p1 }
   0x5   : > { %p344_p3 = scmp.lt.s32.totalorder (!%p287_p2), %s1284_s25, 1 }
   0x6   : > { %290 = sbr.rel (%p287_p2) target bundleno = 302 (0x12e), region = 44 }
   0xb   : > { %s1953_s25 = smov (!%p344_p3, %s1284_s25), 1  ;;  %vm681_vm0 = vcmask 261120  }
   0xc   : > { %s1642_s26 = smul.u32 144, %s1953_s25  ;;  %s356_s16 = scalar_lea.vmem %s1946_s2, %s1953_s25 }
   0xd   : > { %s1641_s10 = smul.u32 192, %s1953_s25  ;;  %s369_s23 = scalar_lea.vmem %s1949_s5, %s1953_s25 }
   0xe   : > { %s1716_s29 = scalar_lea.vmem %s1945_s1, %s1642_s26  ;;  %s1721_s9 = scalar_lea.vmem %s1948_s4, %s1642_s26 }
   0xf   : > { %v1606_v0 = vld [vmem:[%s1716_s29 + $0x38] sm:$0xff]  ;;  %v1605_v3 = vld [vmem:[%s1716_s29 + $0x30] sm:$0xff]  ;;  %v1616_v6 = vld [vmem:[%s1716_s29 + $0x88] sm:$0xff]  ;;  %s1734_s13 = scalar_lea.vmem %s1944_s0, %s1641_s10  ;;  %s1643_s17 = smul.u32 48, %s1953_s25 }
  0x10   : > { %v1614_v1 = vld [vmem:[%s1716_s29 + $0x78] sm:$0xff]  ;;  %706 = vmatpush.bf16.msra.mxu0 %v1606_v0  ;;  %v1613_v4 = vld [vmem:[%s1716_s29 + $0x70] sm:$0xff]  ;;  %v1604_v7 = vld [vmem:[%s1716_s29 + $0x28] sm:$0xff]  ;;  %810 = vmatpush.bf16.msra.mxu2 %v1616_v6  ;;  %s1573_s28 = sshll.u32 %s1953_s25, 7  ;;  %s1574_s11 = sshll.u32 %s1953_s25, 5 }
  0x11   : > { %v1630_v2 = vld [vmem:[%s1721_s9 + $0x38] sm:$0xff]  ;;  %755 = vmatpush.bf16.msra.mxu1 %v1614_v1  ;;  %v1629_v5 = vld [vmem:[%s1721_s9 + $0x30] sm:$0xff]  ;;  %v1612_v8 = vld [vmem:[%s1716_s29 + $0x68] sm:$0xff]  ;;  %s1763_s20 = scalar_lea.vmem %s1947_s3, %s1643_s17  ;;  %s1861_s8 = scalar_lea.vmem %s1950_s6, %s1573_s28 }
  0x12   : > { %1077 = vmatpush.bf16.msra.mxu3 %v1630_v2  ;;  %v1628_v9 = vld [vmem:[%s1721_s9 + $0x28] sm:$0xff]  ;;  %v1615_v10 = vld [vmem:[%s1716_s29 + $0x80] sm:$0xff]  ;;  %v1577_v12 = vld [vmem:[%s1734_s13 + $0x10] sm:$0xf0]  ;;  %s1907_s14 = scalar_lea.vmem %s1951_s7, %s1574_s11 }
  0x13   : > { %v1307_v11 = vld [vmem:[%s1734_s13 + $0x8] sm:$0xf]  ;;  %v1603_v13 = vld [vmem:[%s1716_s29 + $0x20] sm:$0xff]  ;;  %v1602_v17 = vld [vmem:[%s1716_s29 + $0x18] sm:$0xff] }
  0x14   : > { %707 = vmatpush.bf16.msra.mxu0 %v1605_v3  ;;  %v1611_v14 = vld [vmem:[%s1716_s29 + $0x60] sm:$0xff]  ;;  %811 = vmatpush.bf16.msra.mxu2 %v1615_v10  ;;  %v1308_v16 = vor.u32 %v1577_v12, %v1307_v11  ;;  %v1610_v18 = vld [vmem:[%s1716_s29 + $0x58] sm:$0xff]  ;;  %v1601_v20 = vld [vmem:[%s1716_s29 + $0x10] sm:$0xff] }
  0x15   : > { %756 = vmatpush.bf16.msra.mxu1 %v1613_v4  ;;  %v1627_v15 = vld [vmem:[%s1721_s9 + $0x20] sm:$0xff]  ;;  %v1626_v19 = vld [vmem:[%s1721_s9 + $0x18] sm:$0xff]  ;;  %v1609_v21 = vld [vmem:[%s1716_s29 + $0x50] sm:$0xff] }
  0x16   : > { %1078 = vmatpush.bf16.msra.mxu3 %v1629_v5  ;;  %v1625_v22 = vld [vmem:[%s1721_s9 + $0x10] sm:$0xff]  ;;  %v1600_v23 = vld [vmem:[%s1716_s29 + $0x8] sm:$0xff]  ;;  %v1319_v26 = vld [vmem:[%s1734_s13 + $0x20] sm:$0xf] }
  0x17   : > { %1465 = vmatmul.msk.bf16.vlgmr.msra.gmra.mxu2 %vm681_vm0, %v1308_v16  ;;  %v1608_v24 = vld [vmem:[%s1716_s29 + $0x48] sm:$0xff]  ;;  %v1599_v28 = vld [vmem:[%s1716_s29] sm:$0xff]  ;;  %v1301_v33 = vld [vmem:[%s1734_s13 + $0xc] sm:$0xf0] }
  0x18   : > { %708 = vmatpush.bf16.msra.mxu0 %v1604_v7  ;;  %v1624_v25 = vld [vmem:[%s1721_s9 + $0x8] sm:$0xff]  ;;  %v1607_v29 = vld [vmem:[%s1716_s29 + $0x40] sm:$0xff]  ;;  %v1638_v38 = vld [vmem:[%s1721_s9 + $0x78] sm:$0xff] }
  0x19   : > { %757 = vmatpush.bf16.msra.mxu1 %v1612_v8  ;;  %v1580_v27 = vld [vmem:[%s1734_s13 + $0x28] sm:$0xf0]  ;;  %v1299_v30 = vld [vmem:[%s1734_s13] sm:$0xf]  ;;  %v1575_v32 = vld [vmem:[%s1734_s13 + $0x4] sm:$0xf] }
  0x1a   : > { %1079 = vmatpush.bf16.msra.mxu3 %v1628_v9  ;;  %v1576_v31 = vld [vmem:[%s1734_s13 + $0x8] sm:$0xf0]  ;;  %v1623_v34 = vld [vmem:[%s1721_s9] sm:$0xff]  ;;  %v1320_v37 = vor.u32 %v1580_v27, %v1319_v26  ;;  %v1304_v40 = vor.u32 %v1575_v32, %v1301_v33  ;;  %v1637_v42 = vld [vmem:[%s1721_s9 + $0x70] sm:$0xff] }
  0x1b   : > { %v1475_v35 = vld [vmem:[%s1763_s20] sm:$0xf]  ;;  %v1618_v36 = vld [vmem:[%s1763_s20 + $0x8] sm:$0xf0]  ;;  %v1300_v39 = vor.u32 %v1576_v31, %v1299_v30  ;;  %v1331_v45 = vld [vmem:[%s1734_s13 + $0x38] sm:$0xf] }
  0x1c   : > { %709 = vmatpush.bf16.msra.mxu0 %v1603_v13  ;;  %v1476_v41 = vor.u32 %v1618_v36, %v1475_v35  ;;  %v1636_v43 = vld [vmem:[%s1721_s9 + $0x68] sm:$0xff]  ;;  %v1635_v44 = vld [vmem:[%s1721_s9 + $0x60] sm:$0xff]  ;;  %v1311_v47 = vld [vmem:[%s1734_s13 + $0x18] sm:$0xf] }
  0x1d   : > { %758 = vmatpush.bf16.msra.mxu1 %v1611_v14  ;;  %v1583_v46 = vld [vmem:[%s1734_s13 + $0x40] sm:$0xf0]  ;;  %v1578_v49 = vld [vmem:[%s1734_s13 + $0x1c] sm:$0xf]  ;;  %v1313_v50 = vld [vmem:[%s1734_s13 + $0x24] sm:$0xf0] }
  0x1e   : > { %1080 = vmatpush.bf16.msra.mxu3 %v1627_v15  ;;  %v1579_v48 = vld [vmem:[%s1734_s13 + $0x20] sm:$0xf0]  ;;  %v1487_v51 = vld [vmem:[%s1763_s20 + $0x18] sm:$0xf]  ;;  %v1332_v53 = vor.u32 %v1583_v46, %v1331_v45  ;;  %v1316_v56 = vor.u32 %v1578_v49, %v1313_v50  ;;  %v1633_v58 = vld [vmem:[%s1721_s9 + $0x50] sm:$0xff] }
  0x1f   : > { %v1621_v52 = vld [vmem:[%s1763_s20 + $0x20] sm:$0xf0]  ;;  %v1634_v54 = vld [vmem:[%s1721_s9 + $0x58] sm:$0xff]  ;;  %v1312_v55 = vor.u32 %v1579_v48, %v1311_v47  ;;  %v1632_v59 = vld [vmem:[%s1721_s9 + $0x48] sm:$0xff] }
  0x20   : > { %710 = vmatpush.bf16.msra.mxu0 %v1602_v17  ;;  %v1488_v57 = vor.u32 %v1621_v52, %v1487_v51  ;;  %v1631_v60 = vld [vmem:[%s1721_s9 + $0x40] sm:$0xff]  ;;  %v1343_v61 = vld [vmem:[%s1734_s13 + $0x50] sm:$0xf]  ;;  %v1586_v62 = vld [vmem:[%s1734_s13 + $0x58] sm:$0xf0] }
  0x21   : > { %759 = vmatpush.bf16.msra.mxu1 %v1610_v18  ;;  %v1323_v63 = vld [vmem:[%s1734_s13 + $0x30] sm:$0xf]  ;;  %v1640_v0 = vld [vmem:[%s1721_s9 + $0x88] sm:$0xff]  ;;  %v1582_v1 = vld [vmem:[%s1734_s13 + $0x38] sm:$0xf0]  ;;  %v1344_v6 = vor.u32 %v1586_v62, %v1343_v61 }
  0x22   : > { %1081 = vmatpush.bf16.msra.mxu3 %v1626_v19  ;;  %v1581_v2 = vld [vmem:[%s1734_s13 + $0x34] sm:$0xf]  ;;  %v1325_v3 = vld [vmem:[%s1734_s13 + $0x3c] sm:$0xf0]  ;;  %v1617_v4 = vld [vmem:[%s1763_s20 + $0x4] sm:$0xf]  ;;  %v1324_v7 = vor.u32 %v1582_v1, %v1323_v63 }
  0x23   : > { %v1477_v5 = vld [vmem:[%s1763_s20 + $0xc] sm:$0xf0]  ;;  %v1328_v8 = vor.u32 %v1581_v2, %v1325_v3  ;;  %v1639_v10 = vld [vmem:[%s1721_s9 + $0x80] sm:$0xff]  ;;  %v1355_v11 = vld [vmem:[%s1734_s13 + $0x68] sm:$0xf] }
  0x24   : > { %711 = vmatpush.bf16.msra.mxu0 %v1601_v20  ;;  %v1480_v9 = vor.u32 %v1617_v4, %v1477_v5  ;;  %v1589_v12 = vld [vmem:[%s1734_s13 + $0x70] sm:$0xf0]  ;;  %v1335_v13 = vld [vmem:[%s1734_s13 + $0x48] sm:$0xf]  ;;  %v1584_v15 = vld [vmem:[%s1734_s13 + $0x4c] sm:$0xf] }
  0x25   : > { %760 = vmatpush.bf16.msra.mxu1 %v1609_v21  ;;  %v1585_v14 = vld [vmem:[%s1734_s13 + $0x50] sm:$0xf0]  ;;  %v1337_v16 = vld [vmem:[%s1734_s13 + $0x54] sm:$0xf0]  ;;  %v1620_v17 = vld [vmem:[%s1763_s20 + $0x1c] sm:$0xf]  ;;  %v1356_v19 = vor.u32 %v1589_v12, %v1355_v11 }
  0x26   : > { %1082 = vmatpush.bf16.msra.mxu3 %v1625_v22  ;;  %v1489_v18 = vld [vmem:[%s1763_s20 + $0x24] sm:$0xf0]  ;;  %v1336_v20 = vor.u32 %v1585_v14, %v1335_v13  ;;  %v1340_v21 = vor.u32 %v1584_v15, %v1337_v16  ;;  %v1588_v26 = vld [vmem:[%s1734_s13 + $0x68] sm:$0xf0]  ;;  %v1587_v27 = vld [vmem:[%s1734_s13 + $0x64] sm:$0xf] }
  0x27   : > { %1466 = vmatmul.msk.bf16.gmra.mxu2 %vm681_vm0, %v1320_v37  ;;  %v1492_v22 = vor.u32 %v1620_v17, %v1489_v18  ;;  %v1619_v30 = vld [vmem:[%s1763_s20 + $0x10] sm:$0xf0]  ;;  %v1379_v35 = vld [vmem:[%s1734_s13 + $0x98] sm:$0xf]  ;;  %v1595_v36 = vld [vmem:[%s1734_s13 + $0xa0] sm:$0xf0] }
  0x28   : > { %712 = vmatpush.bf16.msra.mxu0 %v1600_v23  ;;  %v1367_v23 = vld [vmem:[%s1734_s13 + $0x80] sm:$0xf]  ;;  %v1359_v37 = vld [vmem:[%s1734_s13 + $0x78] sm:$0xf]  ;;  %v1391_v47 = vld [vmem:[%s1734_s13 + $0xb0] sm:$0xf] }
  0x29   : > { %761 = vmatpush.bf16.msra.mxu1 %v1608_v24  ;;  %v1592_v24 = vld [vmem:[%s1734_s13 + $0x88] sm:$0xf0]  ;;  %v1598_v48 = vld [vmem:[%s1734_s13 + $0xb8] sm:$0xf0]  ;;  %v1371_v49 = vld [vmem:[%s1734_s13 + $0x90] sm:$0xf] }
  0x2a   : > { %1083 = vmatpush.bf16.msra.mxu3 %v1624_v25  ;;  %v1347_v25 = vld [vmem:[%s1734_s13 + $0x60] sm:$0xf]  ;;  %v1368_v31 = vor.u32 %v1592_v24, %v1367_v23  ;;  %v1594_v50 = vld [vmem:[%s1734_s13 + $0x98] sm:$0xf0]  ;;  %v1593_v51 = vld [vmem:[%s1734_s13 + $0x94] sm:$0xf] }
  0x2b   : > { %v1348_v32 = vor.u32 %v1588_v26, %v1347_v25  ;;  %v1373_v52 = vld [vmem:[%s1734_s13 + $0x9c] sm:$0xf0] }
  0x2c   : > { %713 = vmatpush.bf16.msra.mxu0 %v1599_v28  ;;  %v1349_v28 = vld [vmem:[%s1734_s13 + $0x6c] sm:$0xf0] }
  0x2d   : > { %762 = vmatpush.bf16.msra.mxu1 %v1607_v29  ;;  %v1483_v29 = vld [vmem:[%s1763_s20 + $0x8] sm:$0xf]  ;;  %v1352_v33 = vor.u32 %v1587_v27, %v1349_v28 }
  0x2e   : > { %1084 = vmatpush.bf16.msra.mxu3 %v1623_v34  ;;  %v1484_v34 = vor.u32 %v1619_v30, %v1483_v29 }
  0x2f   : > { %714 = vmatmul.bf16.vlgmr.msra.gmra.mxu0 %v1300_v39  ;;  %v1590_v39 = vld [vmem:[%s1734_s13 + $0x7c] sm:$0xf] }
  0x30   : > { %763 = vmatmul.bf16.vlgmr.msra.gmra.mxu1 %v1304_v40  ;;  %v1361_v40 = vld [vmem:[%s1734_s13 + $0x84] sm:$0xf0] }
  0x31   : > { %1085 = vmatmul.bf16.vlgmr.msra.gmra.mxu3 %v1476_v41  ;;  %v1495_v41 = vld [vmem:[%s1763_s20 + $0x20] sm:$0xf]  ;;  %v1364_v45 = vor.u32 %v1590_v39, %v1361_v40 }
  0x32   : > { %1096 = vmatpush.bf16.msrb.mxu3 %v1638_v38  ;;  %v1591_v38 = vld [vmem:[%s1734_s13 + $0x80] sm:$0xf0] }
  0x36   : > { %1097 = vmatpush.bf16.msrb.mxu3 %v1637_v42  ;;  %v1622_v42 = vld [vmem:[%s1763_s20 + $0x28] sm:$0xf0] }
  0x37   : > { %1467 = vmatmul.msk.bf16.gmra.mxu2 %vm681_vm0, %v1332_v53  ;;  %v1496_v46 = vor.u32 %v1622_v42, %v1495_v41  ;;  %v1392_v53 = vor.u32 %v1598_v48, %v1391_v47 }
  0x3a   : > { %1098 = vmatpush.bf16.msrb.mxu3 %v1636_v43  ;;  %v1380_v43 = vor.u32 %v1595_v36, %v1379_v35 }
  0x3e   : > { %1099 = vmatpush.bf16.msrb.mxu3 %v1635_v44  ;;  %v1360_v44 = vor.u32 %v1591_v38, %v1359_v37 }
  0x3f   : > { %719 = vmatmul.bf16.gmra.mxu0 %v1312_v55  ;;  %v1376_v55 = vor.u32 %v1593_v51, %v1373_v52 }
  0x40   : > { %768 = vmatmul.bf16.gmra.mxu1 %v1316_v56  ;;  %v1383_v56 = vld [vmem:[%s1734_s13 + $0xa8] sm:$0xf] }
  0x41   : > { %1090 = vmatmul.bf16.gmra.mxu3 %v1488_v57  ;;  %v1597_v57 = vld [vmem:[%s1734_s13 + $0xb0] sm:$0xf0] }
  0x42   : > { %1100 = vmatpush.bf16.msrb.mxu3 %v1634_v54  ;;  %v1372_v54 = vor.u32 %v1594_v50, %v1371_v49 }
  0x46   : > { %1101 = vmatpush.bf16.msrb.mxu3 %v1633_v58  ;;  %v1596_v58 = vld [vmem:[%s1734_s13 + $0xac] sm:$0xf] }
  0x47   : > { %1468 = vmatmul.msk.bf16.gmra.mxu2 %vm681_vm0, %v1344_v6 }
  0x4a   : > { %1102 = vmatpush.bf16.msrb.mxu3 %v1632_v59  ;;  %v1385_v59 = vld [vmem:[%s1734_s13 + $0xb4] sm:$0xf0] }
  0x4b   : > { %v1388_v61 = vor.u32 %v1596_v58, %v1385_v59 }
  0x4e   : > { %1103 = vmatpush.bf16.msrb.mxu3 %v1631_v60  ;;  %v1384_v60 = vor.u32 %v1597_v57, %v1383_v56 }
  0x4f   : > { %724 = vmatmul.bf16.gmra.mxu0 %v1324_v7 }
  0x50   : > { %773 = vmatmul.bf16.gmra.mxu1 %v1328_v8 }
  0x51   : > { %1104 = vmatmul.bf16.vlgmr.msrb.gmra.mxu3 %v1480_v9 }
  0x52   : > { %1121 = vmatpush.bf16.msra.mxu3 %v1640_v0  ;;  %v1854_v0 = vld [vmem:[%s356_s16] ss:$0 sm:$0xff] }
  0x56   : > { %1122 = vmatpush.bf16.msra.mxu3 %v1639_v10 }
  0x57   : > { %1469 = vmatmul.msk.bf16.gmra.mxu2 %vm681_vm0, %v1356_v19 }
  0x5f   : > { %729 = vmatmul.bf16.gmra.mxu0 %v1336_v20 }
  0x60   : > { %778 = vmatmul.bf16.gmra.mxu1 %v1340_v21 }
  0x61   : > { %1109 = vmatmul.bf16.gmra.mxu3 %v1492_v22 }
  0x67   : > { %1470 = vmatmul.msk.bf16.gmra.mxu2 %vm681_vm0, %v1368_v31 }
  0x6f   : > { %734 = vmatmul.bf16.gmra.mxu0 %v1348_v32 }
  0x70   : > { %783 = vmatmul.bf16.gmra.mxu1 %v1352_v33 }
  0x71   : > { %1569 = vmatmul.msk.bf16.vlgmr.msra.gmra.mxu3 %vm681_vm0, %v1484_v34 }
  0x77   : > { %1471 = vmatmul.msk.bf16.gmra.mxu2 %vm681_vm0, %v1380_v43 }
  0x7f   : > { %739 = vmatmul.bf16.gmra.mxu0 %v1360_v44 }
  0x80   : > { %788 = vmatmul.bf16.gmra.mxu1 %v1364_v45 }
  0x81   : > { %1570 = vmatmul.msk.bf16.gmra.mxu3 %vm681_vm0, %v1496_v46 }
  0x87   : > { %1472 = vmatmul.msk.bf16.gmra.mxu2 %vm681_vm0, %v1392_v53 }
  0x8f   : > { %744 = vmatmul.bf16.gmra.mxu0 %v1372_v54 }
  0x90   : > { %793 = vmatmul.bf16.gmra.mxu1 %v1376_v55 }
  0x9a   : > { %v813_v62 = vpop.f32.mrf.mxu2 }
  0x9f   : > { %749 = vmatmul.bf16.gmra.mxu0 %v1384_v60 }
  0xa0   : > { %798 = vmatmul.bf16.gmra.mxu1 %v1388_v61 }
  0xa2   : > { %v815_v63 = vpop.f32.mrf.mxu2 }
  0xaa   : > { %v818_v5 = vpop.f32.mrf.mxu2 }
  0xac   : > { %v715_v1 = vpop.f32.mrf.mxu0 }
  0xad   : > { %v764_v2 = vpop.f32.mrf.mxu1  ;;  %v716_v3 = vadd.f32 %v1854_v0, %v715_v1 }
  0xaf   : > { %v765_v4 = vadd.f32 %v764_v2, %v716_v3 }
  0xb1   : > { %v814_v6 = vadd.f32 %v813_v62, %v765_v4  ;;  %v1653_v62 = vld [vmem:[%s369_s23] ss:$0 sm:$0xff] }
  0xb2   : > { %v820_v13 = vpop.f32.mrf.mxu2 }
  0xb3   : > { %v853_v7 = vmax.f32 %v814_v6, 0.0 }
  0xb4   : > { %v1863_v8 = vpop.f32.mrf.mxu3  ;;  %v717_v9 = vpop.f32.mrf.mxu0 }
  0xb5   : > { %v766_v10 = vpop.f32.mrf.mxu1  ;;  %869 = vst.msk [vmem:[%s1861_s8] sm:$0xff] %vm681_vm0, %v853_v7  ;;  %v718_v11 = vadd.f32 %v1854_v0, %v717_v9  ;;  %v1087_v6 = vadd.f32 %v1653_v62, %v1863_v8 }
  0xb7   : > { %v767_v12 = vadd.f32 %v766_v10, %v718_v11 }
  0xb9   : > { %v816_v14 = vadd.f32 %v815_v63, %v767_v12 }
  0xba   : > { %v823_v21 = vpop.f32.mrf.mxu2 }
  0xbb   : > { %v854_v15 = vmax.f32 %v816_v14, 0.0 }
  0xbc   : > { %v1868_v16 = vpop.f32.mrf.mxu3  ;;  %v720_v17 = vpop.f32.mrf.mxu0 }
  0xbd   : > { %v769_v18 = vpop.f32.mrf.mxu1  ;;  %870 = vst.msk [vmem:[%s1861_s8 + $0x8] sm:$0xff] %vm681_vm0, %v854_v15  ;;  %v721_v19 = vadd.f32 %v1854_v0, %v720_v17 }
  0xbf   : > { %v770_v20 = vadd.f32 %v769_v18, %v721_v19 }
  0xc1   : > { %v819_v22 = vadd.f32 %v818_v5, %v770_v20  ;;  %v1089_v20 = vadd.f32 %v1653_v62, %v1868_v16 }
  0xc2   : > { %v825_v29 = vpop.f32.mrf.mxu2 }
  0xc3   : > { %v855_v23 = vmax.f32 %v819_v22, 0.0 }
  0xc4   : > { %v1873_v24 = vpop.f32.mrf.mxu3  ;;  %v722_v25 = vpop.f32.mrf.mxu0 }
  0xc5   : > { %v771_v26 = vpop.f32.mrf.mxu1  ;;  %871 = vst.msk [vmem:[%s1861_s8 + $0x10] sm:$0xff] %vm681_vm0, %v855_v23  ;;  %v723_v27 = vadd.f32 %v1854_v0, %v722_v25 }
  0xc7   : > { %v772_v28 = vadd.f32 %v771_v26, %v723_v27 }
  0xc9   : > { %v821_v30 = vadd.f32 %v820_v13, %v772_v28 }
  0xca   : > { %v828_v37 = vpop.f32.mrf.mxu2 }
  0xcb   : > { %v856_v31 = vmax.f32 %v821_v30, 0.0  ;;  %v1092_v30 = vadd.f32 %v1653_v62, %v1873_v24 }
  0xcc   : > { %v1878_v32 = vpop.f32.mrf.mxu3  ;;  %v725_v33 = vpop.f32.mrf.mxu0 }
  0xcd   : > { %v774_v34 = vpop.f32.mrf.mxu1  ;;  %872 = vst.msk [vmem:[%s1861_s8 + $0x18] sm:$0xff] %vm681_vm0, %v856_v31  ;;  %v726_v35 = vadd.f32 %v1854_v0, %v725_v33 }
  0xcf   : > { %v775_v36 = vadd.f32 %v774_v34, %v726_v35 }
  0xd1   : > { %v824_v38 = vadd.f32 %v823_v21, %v775_v36 }
  0xd2   : > { %v830_v45 = vpop.f32.mrf.mxu2 }
  0xd3   : > { %v857_v39 = vmax.f32 %v824_v38, 0.0 }
  0xd4   : > { %v1105_v40 = vpop.f32.mrf.mxu3  ;;  %v727_v41 = vpop.f32.mrf.mxu0 }
  0xd5   : > { %v776_v42 = vpop.f32.mrf.mxu1  ;;  %873 = vst.msk [vmem:[%s1861_s8 + $0x20] sm:$0xff] %vm681_vm0, %v857_v39  ;;  %v728_v43 = vadd.f32 %v1854_v0, %v727_v41  ;;  %v1106_v10 = vadd.f32 %v1105_v40, %v1087_v6 }
  0xd7   : > { %v777_v44 = vadd.f32 %v776_v42, %v728_v43  ;;  %v1094_v43 = vadd.f32 %v1653_v62, %v1878_v32 }
  0xd9   : > { %v826_v46 = vadd.f32 %v825_v29, %v777_v44 }
  0xda   : > { %v833_v54 = vpop.f32.mrf.mxu2 }
  0xdb   : > { %v858_v47 = vmax.f32 %v826_v46, 0.0 }
  0xdc   : > { %v1107_v48 = vpop.f32.mrf.mxu3  ;;  %v730_v49 = vpop.f32.mrf.mxu0 }
  0xdd   : > { %v779_v50 = vpop.f32.mrf.mxu1  ;;  %874 = vst.msk [vmem:[%s1861_s8 + $0x28] sm:$0xff] %vm681_vm0, %v858_v47  ;;  %v731_v51 = vadd.f32 %v1854_v0, %v730_v49  ;;  %v1108_v22 = vadd.f32 %v1107_v48, %v1089_v20 }
  0xdf   : > { %v780_v52 = vadd.f32 %v779_v50, %v731_v51 }
  0xe1   : > { %v829_v53 = vadd.f32 %v828_v37, %v780_v52 }
  0xe2   : > { %v835_v2 = vpop.f32.mrf.mxu2 }
  0xe3   : > { %v859_v55 = vmax.f32 %v829_v53, 0.0 }
  0xe4   : > { %v1110_v56 = vpop.f32.mrf.mxu3  ;;  %v732_v57 = vpop.f32.mrf.mxu0 }
  0xe5   : > { %v781_v58 = vpop.f32.mrf.mxu1  ;;  %875 = vst.msk [vmem:[%s1861_s8 + $0x30] sm:$0xff] %vm681_vm0, %v859_v55  ;;  %v733_v59 = vadd.f32 %v1854_v0, %v732_v57  ;;  %v1111_v35 = vadd.f32 %v1110_v56, %v1092_v30 }
  0xe7   : > { %v782_v60 = vadd.f32 %v781_v58, %v733_v59 }
  0xe9   : > { %v831_v61 = vadd.f32 %v830_v45, %v782_v60 }
  0xea   : > { %v838_v17 = vpop.f32.mrf.mxu2 }
  0xeb   : > { %v860_v63 = vmax.f32 %v831_v61, 0.0 }
  0xec   : > { %v1112_v1 = vpop.f32.mrf.mxu3  ;;  %v735_v3 = vpop.f32.mrf.mxu0 }
  0xed   : > { %v784_v4 = vpop.f32.mrf.mxu1  ;;  %876 = vst.msk [vmem:[%s1861_s8 + $0x38] sm:$0xff] %vm681_vm0, %v860_v63  ;;  %v736_v5 = vadd.f32 %v1854_v0, %v735_v3  ;;  %v1113_v46 = vadd.f32 %v1112_v1, %v1094_v43 }
  0xef   : > { %v785_v7 = vadd.f32 %v784_v4, %v736_v5 }
  0xf1   : > { %v834_v9 = vadd.f32 %v833_v54, %v785_v7 }
  0xf2   : > { %v840_v16 = vpop.f32.mrf.mxu2 }
  0xf3   : > { %v861_v11 = vmax.f32 %v834_v9, 0.0 }
  0xf4   : > { %v1124_v12 = vpop.f32.mrf.mxu3  ;;  %v737_v14 = vpop.f32.mrf.mxu0 }
  0xf5   : > { %v1125_v13 = vadd.f32 %v1124_v12, %v1106_v10  ;;  %v786_v15 = vpop.f32.mrf.mxu1  ;;  %877 = vst.msk [vmem:[%s1861_s8 + $0x40] sm:$0xff] %vm681_vm0, %v861_v11  ;;  %v738_v8 = vadd.f32 %v1854_v0, %v737_v14 }
  0xf7   : > { %v1134_v18 = vmax.f32 %v1125_v13, 0.0  ;;  %v787_v19 = vadd.f32 %v786_v15, %v738_v8 }
  0xf9   : > { %1138 = vst.msk [vmem:[%s1907_s14] sm:$0xff] %vm681_vm0, %v1134_v18  ;;  %v836_v21 = vadd.f32 %v835_v2, %v787_v19 }
  0xfa   : > { %v843_v45 = vpop.f32.mrf.mxu2 }
  0xfb   : > { %v862_v23 = vmax.f32 %v836_v21, 0.0 }
  0xfc   : > { %v1126_v25 = vpop.f32.mrf.mxu3  ;;  %v740_v27 = vpop.f32.mrf.mxu0 }
  0xfd   : > { %v1127_v26 = vadd.f32 %v1126_v25, %v1108_v22  ;;  %v789_v28 = vpop.f32.mrf.mxu1  ;;  %878 = vst.msk [vmem:[%s1861_s8 + $0x48] sm:$0xff] %vm681_vm0, %v862_v23  ;;  %v741_v29 = vadd.f32 %v1854_v0, %v740_v27 }
  0xff   : > { %v1135_v31 = vmax.f32 %v1127_v26, 0.0  ;;  %v790_v33 = vadd.f32 %v789_v28, %v741_v29 }
 0x101   : > { %1139 = vst.msk [vmem:[%s1907_s14 + $0x8] sm:$0xff] %vm681_vm0, %v1135_v31  ;;  %v839_v34 = vadd.f32 %v838_v17, %v790_v33 }
 0x102   : > { %v845_v56 = vpop.f32.mrf.mxu2 }
 0x103   : > { %v863_v36 = vmax.f32 %v839_v34, 0.0 }
 0x104   : > { %v1129_v37 = vpop.f32.mrf.mxu3  ;;  %v742_v39 = vpop.f32.mrf.mxu0 }
 0x105   : > { %v1130_v38 = vadd.f32 %v1129_v37, %v1111_v35  ;;  %v791_v40 = vpop.f32.mrf.mxu1  ;;  %879 = vst.msk [vmem:[%s1861_s8 + $0x50] sm:$0xff] %vm681_vm0, %v863_v36  ;;  %v743_v41 = vadd.f32 %v1854_v0, %v742_v39 }
 0x107   : > { %v1136_v42 = vmax.f32 %v1130_v38, 0.0  ;;  %v792_v24 = vadd.f32 %v791_v40, %v743_v41 }
 0x109   : > { %1140 = vst.msk [vmem:[%s1907_s14 + $0x10] sm:$0xff] %vm681_vm0, %v1136_v42  ;;  %v841_v44 = vadd.f32 %v840_v16, %v792_v24 }
 0x10a   : > { %v848_v3 = vpop.f32.mrf.mxu2 }
 0x10b   : > { %v864_v47 = vmax.f32 %v841_v44, 0.0 }
 0x10c   : > { %v1131_v48 = vpop.f32.mrf.mxu3  ;;  %v745_v50 = vpop.f32.mrf.mxu0 }
 0x10d   : > { %v1132_v49 = vadd.f32 %v1131_v48, %v1113_v46  ;;  %v794_v51 = vpop.f32.mrf.mxu1  ;;  %880 = vst.msk [vmem:[%s1861_s8 + $0x58] sm:$0xff] %vm681_vm0, %v864_v47  ;;  %v746_v52 = vadd.f32 %v1854_v0, %v745_v50 }
 0x10f   : > { %v1137_v53 = vmax.f32 %v1132_v49, 0.0  ;;  %v795_v54 = vadd.f32 %v794_v51, %v746_v52 }
 0x111   : > { %1141 = vst.msk [vmem:[%s1907_s14 + $0x18] sm:$0xff] %vm681_vm0, %v1137_v53  ;;  %v844_v32 = vadd.f32 %v843_v45, %v795_v54 }
 0x112   : > { %v850_v12 = vpop.f32.mrf.mxu2 }
 0x113   : > { %v865_v55 = vmax.f32 %v844_v32, 0.0 }
 0x114   : > { %v747_v57 = vpop.f32.mrf.mxu0 }
 0x115   : > { %v796_v58 = vpop.f32.mrf.mxu1  ;;  %881 = vst.msk [vmem:[%s1861_s8 + $0x60] sm:$0xff] %vm681_vm0, %v865_v55  ;;  %v748_v59 = vadd.f32 %v1854_v0, %v747_v57 }
 0x117   : > { %v797_v60 = vadd.f32 %v796_v58, %v748_v59 }
 0x119   : > { %v846_v61 = vadd.f32 %v845_v56, %v797_v60 }
 0x11b   : > { %v866_v62 = vmax.f32 %v846_v61, 0.0 }
 0x11c   : > { %v750_v63 = vpop.f32.mrf.mxu0 }
 0x11d   : > { %v799_v1 = vpop.f32.mrf.mxu1  ;;  %882 = vst.msk [vmem:[%s1861_s8 + $0x68] sm:$0xff] %vm681_vm0, %v866_v62  ;;  %v751_v2 = vadd.f32 %v1854_v0, %v750_v63 }
 0x11f   : > { %v800_v4 = vadd.f32 %v799_v1, %v751_v2 }
 0x121   : > { %v849_v5 = vadd.f32 %v848_v3, %v800_v4 }
 0x123   : > { %v867_v6 = vmax.f32 %v849_v5, 0.0 }
 0x124   : > { %v752_v7 = vpop.f32.mrf.mxu0 }
 0x125   : > { %883 = vst.msk [vmem:[%s1861_s8 + $0x70] sm:$0xff] %vm681_vm0, %v867_v6  ;;  %v753_v9 = vadd.f32 %v1854_v0, %v752_v7  ;;  %v801_v10 = vpop.f32.mrf.mxu1 }
 0x127   : > { %v802_v11 = vadd.f32 %v801_v10, %v753_v9 }
 0x129   : > { %v851_v13 = vadd.f32 %v850_v12, %v802_v11 }
 0x12b   : > { %v868_v14 = vmax.f32 %v851_v13, 0.0 }
 0x12d   : > { %884 = vst.msk [vmem:[%s1861_s8 + $0x78] sm:$0xff] %vm681_vm0, %v868_v14 }
 0x12e PF: > { %s18_s24 = sadd.s32 1, %s1660_s24  }
 0x12f   : > { %p15_p4 = scmp.ge.s32.totalorder %s18_s24, 4  }
 0x131   :  { %17 = sbr.rel (!%p15_p4) target bundleno = 1 (0x1), region = 101 }

// kernel: coattn_forward.13
= control target key start
LH: loop header
LB: loop body
LE: loop exit
PB: predicated region body
PF: predicated region fallthrough
CT: control target
= control target key end

     0   :  { %s2825_s0 = inlined_call_operand.vmem [shape: bf16[1,128,576], index: 0, kind: input, shape index: {}]   ;;  %s2826_s1 = inlined_call_operand.vmem [shape: bf16[1,576,32], index: 1, kind: input, shape index: {}]   ;;  %s2827_s2 = inlined_call_operand.vmem [shape: f32[1,1,32], index: 2, kind: input, shape index: {}]   ;;  %s2828_s3 = inlined_call_operand.vmem [shape: bf16[1,32,576], index: 3, kind: input, shape index: {}]   ;;  %s2829_s4 = inlined_call_operand.vmem [shape: bf16[1,576,32], index: 4, kind: input, shape index: {}]   ;;  %s2830_s5 = inlined_call_operand.vmem [shape: f32[1,1,32], index: 5, kind: input, shape index: {}]   ;;  %s2831_s6 = inlined_call_operand.vmem [shape: f32[1,128,32], index: 6, kind: output, shape index: {0}]   ;;  %s2832_s7 = inlined_call_operand.hbm [shape: f32[1,32,32], index: 7, kind: output, shape index: {1}]  }
   0x1   :  { %v1900_v0 = vld [vmem:[%s2826_s1 + $0x38] sm:$0xff]  ;;  %v1899_v3 = vld [vmem:[%s2826_s1 + $0x30] sm:$0xff]  ;;  %v1898_v6 = vld [vmem:[%s2826_s1 + $0x28] sm:$0xff] }
   0x2   :  { %v1908_v1 = vld [vmem:[%s2826_s1 + $0x78] sm:$0xff]  ;;  %592 = vmatpush.bf16.msra.mxu0 %v1900_v0  ;;  %1975 = vmatpush.bf16.msra.mxu3 %v1900_v0  ;;  %v1907_v4 = vld [vmem:[%s2826_s1 + $0x70] sm:$0xff]  ;;  %v1906_v7 = vld [vmem:[%s2826_s1 + $0x68] sm:$0xff] }
   0x3   :  { %v1916_v2 = vld [vmem:[%s2826_s1 + $0xb8] sm:$0xff]  ;;  %641 = vmatpush.bf16.msra.mxu1 %v1908_v1  ;;  %v1915_v5 = vld [vmem:[%s2826_s1 + $0xb0] sm:$0xff]  ;;  %v1914_v8 = vld [vmem:[%s2826_s1 + $0xa8] sm:$0xff] }
   0x4   :  { %690 = vmatpush.bf16.msra.mxu2 %v1916_v2  ;;  %v1897_v9 = vld [vmem:[%s2826_s1 + $0x20] sm:$0xff] }
   0x5   :  { %v1905_v10 = vld [vmem:[%s2826_s1 + $0x60] sm:$0xff] }
   0x6   :  { %593 = vmatpush.bf16.msra.mxu0 %v1899_v3  ;;  %1976 = vmatpush.bf16.msra.mxu3 %v1899_v3  ;;  %v1913_v11 = vld [vmem:[%s2826_s1 + $0xa0] sm:$0xff] }
   0x7   :  { %642 = vmatpush.bf16.msra.mxu1 %v1907_v4 }
   0x8   :  { %691 = vmatpush.bf16.msra.mxu2 %v1915_v5 }
   0xa   :  { %594 = vmatpush.bf16.msra.mxu0 %v1898_v6  ;;  %1977 = vmatpush.bf16.msra.mxu3 %v1898_v6 }
   0xb   :  { %643 = vmatpush.bf16.msra.mxu1 %v1906_v7 }
   0xc   :  { %692 = vmatpush.bf16.msra.mxu2 %v1914_v8 }
   0xd   :  { %13 = vsyncpa [#allocation3], 0  ;;  %v1896_v12 = vld [vmem:[%s2826_s1 + $0x18] sm:$0xff]  ;;  %v1895_v15 = vld [vmem:[%s2826_s1 + $0x10] sm:$0xff]  ;;  %vm567_vm0 = vcmask 523264   ;;  %vm853_vm1 = vcmask 261120  }
   0xe   :  { %595 = vmatpush.bf16.msra.mxu0 %v1897_v9  ;;  %1978 = vmatpush.bf16.msra.mxu3 %v1897_v9  ;;  %v1904_v13 = vld [vmem:[%s2826_s1 + $0x58] sm:$0xff]  ;;  %v1903_v16 = vld [vmem:[%s2826_s1 + $0x50] sm:$0xff]  ;;  %v1894_v18 = vld [vmem:[%s2826_s1 + $0x8] sm:$0xff]  ;;  %s2014_s16 = smov [#allocation2]   ;;  %s1341_s20 = sshll.u32 %s2832_s7, 4  ;;  %s1342_s20 = int_to_ptr.hbm [resolvable:$true] %s1341_s20 }
   0xf   :  { %644 = vmatpush.bf16.msra.mxu1 %v1905_v10  ;;  %v1912_v14 = vld [vmem:[%s2826_s1 + $0x98] sm:$0xff]  ;;  %v1911_v17 = vld [vmem:[%s2826_s1 + $0x90] sm:$0xff]  ;;  %v1902_v19 = vld [vmem:[%s2826_s1 + $0x48] sm:$0xff]  ;;  %s1339_s17 = sshll.u32 %s2014_s16, 4  ;;  %s2016_s21 = smov 8   ;;  %s1340_s17 = int_to_ptr.vmem [resolvable:$true] %s1339_s17 }
  0x10   :  { %693 = vmatpush.bf16.msra.mxu2 %v1913_v11  ;;  %v1910_v20 = vld [vmem:[%s2826_s1 + $0x88] sm:$0xff]  ;;  %v1893_v21 = vld [vmem:[%s2826_s1] sm:$0xff]  ;;  %v1855_v25 = vld [vmem:[%s2825_s0 + $0x10] sm:$0xf0] }
  0x11   :  { %v1901_v22 = vld [vmem:[%s2826_s1 + $0x40] sm:$0xff]  ;;  %v1457_v26 = vld [vmem:[%s2825_s0 + $0xc8] sm:$0xf]  ;;  %v1880_v27 = vld [vmem:[%s2825_s0 + $0xd8] sm:$0xf0] }
  0x12   :  { %596 = vmatpush.bf16.msra.mxu0 %v1896_v12  ;;  %1979 = vmatpush.bf16.msra.mxu3 %v1896_v12  ;;  %v1909_v23 = vld [vmem:[%s2826_s1 + $0x80] sm:$0xff]  ;;  %v1359_v29 = vld [vmem:[%s2825_s0 + $0x14] sm:$0xf0]  ;;  %v1365_v30 = vld [vmem:[%s2825_s0 + $0x8] sm:$0xf]  ;;  %v1458_v35 = vor.u32 %v1880_v27, %v1457_v26 }
  0x13   :  { %645 = vmatpush.bf16.msra.mxu1 %v1904_v13  ;;  %v1357_v24 = vld [vmem:[%s2825_s0] sm:$0xf]  ;;  %v1853_v28 = vld [vmem:[%s2825_s0 + $0x4] sm:$0xf]  ;;  %v1856_v31 = vld [vmem:[%s2825_s0 + $0x18] sm:$0xf0] }
  0x14   :  { %694 = vmatpush.bf16.msra.mxu2 %v1912_v14  ;;  %v1924_v32 = vld [vmem:[%s2826_s1 + $0xf8] sm:$0xff]  ;;  %v1358_v34 = vor.u32 %v1855_v25, %v1357_v24  ;;  %v1362_v36 = vor.u32 %v1853_v28, %v1359_v29  ;;  %v1366_v37 = vor.u32 %v1856_v31, %v1365_v30  ;;  %v1923_v40 = vld [vmem:[%s2826_s1 + $0xf0] sm:$0xff]  ;;  %v1922_v44 = vld [vmem:[%s2826_s1 + $0xe8] sm:$0xff] }
  0x15   :  { %v1928_v33 = vld [vmem:[%s2826_s1 + $0x118] sm:$0xff]  ;;  %v1927_v41 = vld [vmem:[%s2826_s1 + $0x110] sm:$0xff]  ;;  %v1921_v45 = vld [vmem:[%s2826_s1 + $0xe0] sm:$0xff] }
  0x16   :  { %597 = vmatpush.bf16.msra.mxu0 %v1895_v15  ;;  %1980 = vmatpush.bf16.msra.mxu3 %v1895_v15  ;;  %v1954_v38 = vld [vmem:[%s2829_s4 + $0x78] sm:$0xff]  ;;  %v1953_v42 = vld [vmem:[%s2829_s4 + $0x70] sm:$0xff]  ;;  %v1377_v46 = vld [vmem:[%s2825_s0 + $0x28] sm:$0xf] }
  0x17   :  { %646 = vmatpush.bf16.msra.mxu1 %v1903_v16  ;;  %v1946_v39 = vld [vmem:[%s2829_s4 + $0x38] sm:$0xff]  ;;  %v1945_v43 = vld [vmem:[%s2829_s4 + $0x30] sm:$0xff]  ;;  %v1885_v49 = vld [vmem:[%s2825_s0 + $0x100] sm:$0xf0] }
  0x18   :  { %695 = vmatpush.bf16.msra.mxu2 %v1911_v17  ;;  %v1860_v47 = vld [vmem:[%s2825_s0 + $0x38] sm:$0xf0]  ;;  %v1477_v48 = vld [vmem:[%s2825_s0 + $0xf0] sm:$0xf]  ;;  %v1858_v50 = vld [vmem:[%s2825_s0 + $0x2c] sm:$0xf] }
  0x19   :  { %v1379_v51 = vld [vmem:[%s2825_s0 + $0x3c] sm:$0xf0]  ;;  %v1385_v52 = vld [vmem:[%s2825_s0 + $0x30] sm:$0xf]  ;;  %v1861_v53 = vld [vmem:[%s2825_s0 + $0x40] sm:$0xf0]  ;;  %v1378_v55 = vor.u32 %v1860_v47, %v1377_v46  ;;  %v1478_v56 = vor.u32 %v1885_v49, %v1477_v48 }
  0x1a   :  { %598 = vmatpush.bf16.msra.mxu0 %v1894_v18  ;;  %1981 = vmatpush.bf16.msra.mxu3 %v1894_v18  ;;  %v1920_v54 = vld [vmem:[%s2826_s1 + $0xd8] sm:$0xff]  ;;  %v1382_v57 = vor.u32 %v1858_v50, %v1379_v51  ;;  %v1386_v58 = vor.u32 %v1861_v53, %v1385_v52  ;;  %v1919_v59 = vld [vmem:[%s2826_s1 + $0xd0] sm:$0xff]  ;;  %v1926_v60 = vld [vmem:[%s2826_s1 + $0x108] sm:$0xff] }
  0x1b   :  { %647 = vmatpush.bf16.msra.mxu1 %v1902_v19  ;;  %v1952_v61 = vld [vmem:[%s2829_s4 + $0x68] sm:$0xff]  ;;  %v1917_v0 = vld [vmem:[%s2826_s1 + $0xc0] sm:$0xff]  ;;  %v1397_v1 = vld [vmem:[%s2825_s0 + $0x50] sm:$0xf] }
  0x1c   :  { %696 = vmatpush.bf16.msra.mxu2 %v1910_v20  ;;  %v1944_v62 = vld [vmem:[%s2829_s4 + $0x28] sm:$0xff]  ;;  %v1865_v2 = vld [vmem:[%s2825_s0 + $0x60] sm:$0xf0]  ;;  %v1962_v3 = vld [vmem:[%s2829_s4 + $0xb8] sm:$0xff] }
  0x1d   :  { %v1918_v63 = vld [vmem:[%s2826_s1 + $0xc8] sm:$0xff]  ;;  %v1497_v4 = vld [vmem:[%s2825_s0 + $0x118] sm:$0xf]  ;;  %v1863_v6 = vld [vmem:[%s2825_s0 + $0x54] sm:$0xf]  ;;  %v1398_v10 = vor.u32 %v1865_v2, %v1397_v1 }
  0x1e   :  { %599 = vmatpush.bf16.msra.mxu0 %v1893_v21  ;;  %1982 = vmatpush.bf16.msra.mxu3 %v1893_v21  ;;  %v1890_v5 = vld [vmem:[%s2825_s0 + $0x128] sm:$0xf0]  ;;  %v1399_v7 = vld [vmem:[%s2825_s0 + $0x64] sm:$0xf0]  ;;  %v1405_v8 = vld [vmem:[%s2825_s0 + $0x58] sm:$0xf] }
  0x1f   :  { %648 = vmatpush.bf16.msra.mxu1 %v1901_v22  ;;  %v1866_v9 = vld [vmem:[%s2825_s0 + $0x68] sm:$0xf0]  ;;  %v1498_v11 = vor.u32 %v1890_v5, %v1497_v4  ;;  %v1402_v12 = vor.u32 %v1863_v6, %v1399_v7  ;;  %v1961_v14 = vld [vmem:[%s2829_s4 + $0xb0] sm:$0xff]  ;;  %v1951_v15 = vld [vmem:[%s2829_s4 + $0x60] sm:$0xff] }
  0x20   :  { %697 = vmatpush.bf16.msra.mxu2 %v1909_v23  ;;  %v1406_v13 = vor.u32 %v1866_v9, %v1405_v8  ;;  %v1925_v16 = vld [vmem:[%s2826_s1 + $0x100] sm:$0xff]  ;;  %v1417_v18 = vld [vmem:[%s2825_s0 + $0x78] sm:$0xf]  ;;  %v1870_v19 = vld [vmem:[%s2825_s0 + $0x88] sm:$0xf0] }
  0x21   :  { %600 = vmatmul.bf16.vlgmr.msra.gmra.mxu0 %v1358_v34  ;;  %625 = vmatmul.bf16.vlgmr.msra.gmra.mxu3 %v1458_v35  ;;  %v1943_v17 = vld [vmem:[%s2829_s4 + $0x20] sm:$0xff]  ;;  %v1868_v20 = vld [vmem:[%s2825_s0 + $0x7c] sm:$0xf]  ;;  %v1854_v21 = vld [vmem:[%s2825_s0 + $0xc] sm:$0xf]  ;;  %v1418_v26 = vor.u32 %v1870_v19, %v1417_v18 }
  0x22   :  { %739 = vmatpush.bf16.msrb.mxu3 %v1924_v32  ;;  %792 = vmatpush.bf16.msrb.mxu0 %v1928_v33  ;;  %v1367_v22 = vld [vmem:[%s2825_s0 + $0x1c] sm:$0xf0]  ;;  %v1419_v23 = vld [vmem:[%s2825_s0 + $0x8c] sm:$0xf0]  ;;  %v1871_v25 = vld [vmem:[%s2825_s0 + $0x90] sm:$0xf0] }
  0x23   :  { %649 = vmatmul.bf16.vlgmr.msra.gmra.mxu1 %v1362_v36  ;;  %698 = vmatmul.bf16.vlgmr.msra.gmra.mxu2 %v1366_v37  ;;  %v1425_v24 = vld [vmem:[%s2825_s0 + $0x80] sm:$0xf]  ;;  %v1370_v27 = vor.u32 %v1854_v21, %v1367_v22  ;;  %v1422_v28 = vor.u32 %v1868_v20, %v1419_v23  ;;  %v1960_v30 = vld [vmem:[%s2829_s4 + $0xa8] sm:$0xff]  ;;  %v1950_v31 = vld [vmem:[%s2829_s4 + $0x58] sm:$0xff] }
  0x24   :  { %1249 = vmatpush.bf16.msrb.mxu2 %v1954_v38  ;;  %1230 = vmatpush.bf16.msrb.mxu1 %v1946_v39  ;;  %v1426_v29 = vor.u32 %v1871_v25, %v1425_v24  ;;  %v1942_v32 = vld [vmem:[%s2829_s4 + $0x18] sm:$0xff]  ;;  %v1437_v33 = vld [vmem:[%s2825_s0 + $0xa0] sm:$0xf]  ;;  %v1875_v34 = vld [vmem:[%s2825_s0 + $0xb0] sm:$0xf0] }
  0x25   :  { %v1873_v35 = vld [vmem:[%s2825_s0 + $0xa4] sm:$0xf]  ;;  %v1859_v36 = vld [vmem:[%s2825_s0 + $0x34] sm:$0xf]  ;;  %v1387_v37 = vld [vmem:[%s2825_s0 + $0x44] sm:$0xf0] }
  0x26   :  { %740 = vmatpush.bf16.msrb.mxu3 %v1923_v40  ;;  %793 = vmatpush.bf16.msrb.mxu0 %v1927_v41  ;;  %v1439_v38 = vld [vmem:[%s2825_s0 + $0xb4] sm:$0xf0]  ;;  %v1445_v39 = vld [vmem:[%s2825_s0 + $0xa8] sm:$0xf]  ;;  %v1876_v40 = vld [vmem:[%s2825_s0 + $0xb8] sm:$0xf0]  ;;  %v1438_v41 = vor.u32 %v1875_v34, %v1437_v33 }
  0x27   :  { %v1949_v46 = vld [vmem:[%s2829_s4 + $0x50] sm:$0xff]  ;;  %v1878_v48 = vld [vmem:[%s2825_s0 + $0xcc] sm:$0xf]  ;;  %v1864_v49 = vld [vmem:[%s2825_s0 + $0x5c] sm:$0xf] }
  0x28   :  { %1250 = vmatpush.bf16.msrb.mxu2 %v1953_v42  ;;  %1231 = vmatpush.bf16.msrb.mxu1 %v1945_v43  ;;  %v1390_v42 = vor.u32 %v1859_v36, %v1387_v37  ;;  %v1442_v43 = vor.u32 %v1873_v35, %v1439_v38  ;;  %v1941_v47 = vld [vmem:[%s2829_s4 + $0x10] sm:$0xff]  ;;  %v1857_v52 = vld [vmem:[%s2825_s0 + $0x20] sm:$0xf0]  ;;  %v1459_v53 = vld [vmem:[%s2825_s0 + $0xdc] sm:$0xf0] }
  0x29   :  { %v1407_v50 = vld [vmem:[%s2825_s0 + $0x6c] sm:$0xf0]  ;;  %v1427_v1 = vld [vmem:[%s2825_s0 + $0x94] sm:$0xf0]  ;;  %v1479_v4 = vld [vmem:[%s2825_s0 + $0x104] sm:$0xf0] }
  0x2a   :  { %741 = vmatpush.bf16.msrb.mxu3 %v1922_v44  ;;  %794 = vmatpush.bf16.msrb.mxu0 %v1926_v60  ;;  %v1446_v44 = vor.u32 %v1876_v40, %v1445_v39  ;;  %v1373_v51 = vld [vmem:[%s2825_s0 + $0x10] sm:$0xf]  ;;  %v1958_v60 = vld [vmem:[%s2829_s4 + $0x98] sm:$0xff]  ;;  %v1886_v6 = vld [vmem:[%s2825_s0 + $0x108] sm:$0xf0] }
  0x2b   :  { %v1393_v2 = vld [vmem:[%s2825_s0 + $0x38] sm:$0xf]  ;;  %v1867_v18 = vld [vmem:[%s2825_s0 + $0x70] sm:$0xf0]  ;;  %v1499_v19 = vld [vmem:[%s2825_s0 + $0x12c] sm:$0xf0] }
  0x2c   :  { %1251 = vmatpush.bf16.msrb.mxu2 %v1952_v61  ;;  %1232 = vmatpush.bf16.msrb.mxu1 %v1944_v62  ;;  %v1948_v61 = vld [vmem:[%s2829_s4 + $0x48] sm:$0xff]  ;;  %v1485_v5 = vld [vmem:[%s2825_s0 + $0xf8] sm:$0xf]  ;;  %v1505_v20 = vld [vmem:[%s2825_s0 + $0x120] sm:$0xf] }
  0x2d   :  { %v1940_v62 = vld [vmem:[%s2829_s4 + $0x8] sm:$0xff]  ;;  %v1891_v21 = vld [vmem:[%s2825_s0 + $0x130] sm:$0xf0]  ;;  %v1872_v34 = vld [vmem:[%s2825_s0 + $0x98] sm:$0xf0] }
  0x2e   :  { %742 = vmatpush.bf16.msrb.mxu3 %v1921_v45  ;;  %795 = vmatpush.bf16.msrb.mxu0 %v1925_v16  ;;  %v1959_v45 = vld [vmem:[%s2829_s4 + $0xa0] sm:$0xff]  ;;  %v1506_v25 = vor.u32 %v1891_v21, %v1505_v20  ;;  %v1433_v33 = vld [vmem:[%s2825_s0 + $0x88] sm:$0xf]  ;;  %v1671_v36 = vld [vmem:[%s2828_s3 + $0x14] sm:$0xf0] }
  0x2f   :  { %v1447_v16 = vld [vmem:[%s2825_s0 + $0xbc] sm:$0xf0]  ;;  %v1929_v35 = vld [vmem:[%s2828_s3 + $0x4] sm:$0xf]  ;;  %v1931_v38 = vld [vmem:[%s2828_s3 + $0x10] sm:$0xf0]  ;;  %v1434_v40 = vor.u32 %v1872_v34, %v1433_v33 }
  0x30   :  { %1252 = vmatpush.bf16.msrb.mxu2 %v1951_v15  ;;  %1233 = vmatpush.bf16.msrb.mxu1 %v1943_v17  ;;  %v1939_v15 = vld [vmem:[%s2829_s4] sm:$0xff]  ;;  %v1930_v20 = vld [vmem:[%s2828_s3 + $0xc] sm:$0xf] }
  0x31   :  { %605 = vmatmul.bf16.gmra.mxu0 %v1378_v55  ;;  %630 = vmatmul.bf16.gmra.mxu3 %v1478_v56  ;;  %v1881_v55 = vld [vmem:[%s2825_s0 + $0xe0] sm:$0xf0]  ;;  %v1410_v56 = vor.u32 %v1864_v49, %v1407_v50  ;;  %v1413_v17 = vld [vmem:[%s2825_s0 + $0x60] sm:$0xf] }
  0x32   :  { %743 = vmatpush.bf16.msrb.mxu3 %v1920_v54  ;;  %v1465_v54 = vld [vmem:[%s2825_s0 + $0xd0] sm:$0xf]  ;;  %v1414_v23 = vor.u32 %v1867_v18, %v1413_v17  ;;  %v1669_v37 = vld [vmem:[%s2828_s3] sm:$0xf]  ;;  %v1882_v17 = vld [vmem:[%s2825_s0 + $0xe8] sm:$0xf0] }
  0x33   :  { %654 = vmatmul.bf16.gmra.mxu1 %v1382_v57  ;;  %703 = vmatmul.bf16.gmra.mxu2 %v1386_v58  ;;  %v1374_v57 = vor.u32 %v1857_v52, %v1373_v51  ;;  %v1462_v58 = vor.u32 %v1878_v48, %v1459_v53  ;;  %v1966_v48 = vld [vmem:[%s2829_s4 + $0xd8] sm:$0xff]  ;;  %v1972_v51 = vld [vmem:[%s2829_s4 + $0x108] sm:$0xff]  ;;  %v1965_v52 = vld [vmem:[%s2829_s4 + $0xd0] sm:$0xff] }
  0x34   :  { %1253 = vmatpush.bf16.msrb.mxu2 %v1950_v31  ;;  %1234 = vmatpush.bf16.msrb.mxu1 %v1942_v32  ;;  %v1467_v31 = vld [vmem:[%s2825_s0 + $0xe4] sm:$0xf0]  ;;  %v1685_v18 = vld [vmem:[%s2828_s3 + $0x10] sm:$0xf]  ;;  %v1679_v21 = vld [vmem:[%s2828_s3 + $0x1c] sm:$0xf0] }
  0x35   :  { %v1968_v32 = vld [vmem:[%s2829_s4 + $0xe8] sm:$0xff]  ;;  %v1493_v34 = vld [vmem:[%s2825_s0 + $0x100] sm:$0xf] }
  0x36   :  { %744 = vmatpush.bf16.msrb.mxu3 %v1919_v59  ;;  %v1466_v59 = vor.u32 %v1881_v55, %v1465_v54  ;;  %v1884_v55 = vld [vmem:[%s2825_s0 + $0xfc] sm:$0xf] }
  0x38   :  { %1254 = vmatpush.bf16.msrb.mxu2 %v1949_v46  ;;  %1235 = vmatpush.bf16.msrb.mxu1 %v1941_v47  ;;  %v1955_v47 = vld [vmem:[%s2829_s4 + $0x80] sm:$0xff] }
  0x3a   :  { %745 = vmatpush.bf16.msrb.mxu3 %v1918_v63  ;;  %v1883_v63 = vld [vmem:[%s2825_s0 + $0xf4] sm:$0xf] }
  0x3b   :  { %v1482_v9 = vor.u32 %v1883_v63, %v1479_v4  ;;  %v1689_v63 = vld [vmem:[%s2828_s3 + $0x28] sm:$0xf] }
  0x3c   :  { %1255 = vmatpush.bf16.msrb.mxu2 %v1948_v61  ;;  %1236 = vmatpush.bf16.msrb.mxu1 %v1940_v62  ;;  %v1934_v61 = vld [vmem:[%s2828_s3 + $0x2c] sm:$0xf]  ;;  %v1691_v62 = vld [vmem:[%s2828_s3 + $0x3c] sm:$0xf0] }
  0x3e   :  { %746 = vmatpush.bf16.msrb.mxu3 %v1917_v0  ;;  %v1869_v0 = vld [vmem:[%s2825_s0 + $0x84] sm:$0xf] }
  0x3f   :  { %v1430_v7 = vor.u32 %v1869_v0, %v1427_v1  ;;  %v1936_v0 = vld [vmem:[%s2828_s3 + $0x38] sm:$0xf0] }
  0x40   :  { %1237 = vmatpush.bf16.msrb.mxu1 %v1939_v15  ;;  %v1507_v15 = vld [vmem:[%s2825_s0 + $0x134] sm:$0xf0] }
  0x41   :  { %610 = vmatmul.bf16.gmra.mxu0 %v1398_v10  ;;  %635 = vmatmul.bf16.gmra.mxu3 %v1498_v11  ;;  %v1486_v10 = vor.u32 %v1886_v6, %v1485_v5  ;;  %v1957_v11 = vld [vmem:[%s2829_s4 + $0x90] sm:$0xff]  ;;  %v1963_v5 = vld [vmem:[%s2829_s4 + $0xc0] sm:$0xff] }
  0x42   :  { %1268 = vmatpush.bf16.msra.mxu3 %v1962_v3  ;;  %v1862_v3 = vld [vmem:[%s2825_s0 + $0x48] sm:$0xf0] }
  0x43   :  { %659 = vmatmul.bf16.gmra.mxu1 %v1402_v12  ;;  %708 = vmatmul.bf16.gmra.mxu2 %v1406_v13  ;;  %v1394_v8 = vor.u32 %v1862_v3, %v1393_v2  ;;  %v1947_v12 = vld [vmem:[%s2829_s4 + $0x40] sm:$0xff]  ;;  %v1888_v13 = vld [vmem:[%s2825_s0 + $0x11c] sm:$0xf] }
  0x44   :  { %1256 = vmatpush.bf16.msrb.mxu2 %v1947_v12  ;;  %v1502_v24 = vor.u32 %v1888_v13, %v1499_v19  ;;  %v1933_v19 = vld [vmem:[%s2828_s3 + $0x20] sm:$0xf0] }
  0x46   :  { %1269 = vmatpush.bf16.msra.mxu3 %v1961_v14  ;;  %v1874_v14 = vld [vmem:[%s2825_s0 + $0xac] sm:$0xf] }
  0x47   :  { %v1450_v22 = vor.u32 %v1874_v14, %v1447_v16  ;;  %v1889_v14 = vld [vmem:[%s2825_s0 + $0x124] sm:$0xf]  ;;  %v1473_v16 = vld [vmem:[%s2825_s0 + $0xd8] sm:$0xf] }
  0x4a   :  { %1270 = vmatpush.bf16.msra.mxu3 %v1960_v30  ;;  %v1879_v30 = vld [vmem:[%s2825_s0 + $0xd4] sm:$0xf] }
  0x4b   :  { %v1470_v39 = vor.u32 %v1879_v30, %v1467_v31 }
  0x4e   :  { %1271 = vmatpush.bf16.msra.mxu3 %v1959_v45  ;;  %v1973_v45 = vld [vmem:[%s2829_s4 + $0x110] sm:$0xff] }
  0x51   :  { %615 = vmatmul.bf16.gmra.mxu0 %v1418_v26  ;;  %747 = vmatmul.bf16.vlgmr.msrb.gmra.mxu3 %v1370_v27  ;;  %v1956_v26 = vld [vmem:[%s2829_s4 + $0x88] sm:$0xff]  ;;  %v1970_v27 = vld [vmem:[%s2829_s4 + $0xf8] sm:$0xff] }
  0x52   :  { %1272 = vmatpush.bf16.msra.mxu3 %v1958_v60  ;;  %1287 = vmatpush.bf16.msra.mxu1 %v1970_v27  ;;  %v1877_v60 = vld [vmem:[%s2825_s0 + $0xc0] sm:$0xf0]  ;;  %v1686_v27 = vor.u32 %v1933_v19, %v1685_v18 }
  0x53   :  { %664 = vmatmul.bf16.gmra.mxu1 %v1422_v28  ;;  %713 = vmatmul.bf16.gmra.mxu2 %v1426_v29  ;;  %v1969_v28 = vld [vmem:[%s2829_s4 + $0xf0] sm:$0xff]  ;;  %v1974_v29 = vld [vmem:[%s2829_s4 + $0x118] sm:$0xff] }
  0x54   :  { %1310 = vmatpush.bf16.msra.mxu2 %v1974_v29 }
  0x56   :  { %1273 = vmatpush.bf16.msra.mxu3 %v1957_v11  ;;  %1288 = vmatpush.bf16.msra.mxu1 %v1969_v28  ;;  %v1682_v28 = vor.u32 %v1930_v20, %v1679_v21 }
  0x58   :  { %1311 = vmatpush.bf16.msra.mxu2 %v1973_v45 }
  0x5a   :  { %1274 = vmatpush.bf16.msra.mxu3 %v1956_v26  ;;  %1289 = vmatpush.bf16.msra.mxu1 %v1968_v32 }
  0x5c   :  { %1312 = vmatpush.bf16.msra.mxu2 %v1972_v51 }
  0x5e   :  { %1275 = vmatpush.bf16.msra.mxu3 %v1955_v47 }
  0x61   :  { %620 = vmatmul.bf16.gmra.mxu0 %v1438_v41  ;;  %752 = vmatmul.bf16.gmra.mxu3 %v1390_v42  ;;  %v1967_v41 = vld [vmem:[%s2829_s4 + $0xe0] sm:$0xff] }
  0x62   :  { %1290 = vmatpush.bf16.msra.mxu1 %v1967_v41  ;;  %v1699_v41 = vld [vmem:[%s2828_s3 + $0x44] sm:$0xf0] }
  0x63   :  { %669 = vmatmul.bf16.gmra.mxu1 %v1442_v43  ;;  %718 = vmatmul.bf16.gmra.mxu2 %v1446_v44  ;;  %v1674_v43 = vor.u32 %v1929_v35, %v1671_v36  ;;  %v1670_v44 = vor.u32 %v1931_v38, %v1669_v37  ;;  %v1887_v35 = vld [vmem:[%s2825_s0 + $0x110] sm:$0xf0]  ;;  %v1677_v36 = vld [vmem:[%s2828_s3 + $0x8] sm:$0xf]  ;;  %v1932_v37 = vld [vmem:[%s2828_s3 + $0x18] sm:$0xf0] }
  0x64   :  { %v1705_v38 = vld [vmem:[%s2828_s3 + $0x38] sm:$0xf]  ;;  %v1494_v45 = vor.u32 %v1887_v35, %v1493_v34  ;;  %v1678_v47 = vor.u32 %v1932_v37, %v1677_v36 }
  0x66   :  { %1291 = vmatpush.bf16.msra.mxu1 %v1966_v48 }
  0x6a   :  { %1292 = vmatpush.bf16.msra.mxu1 %v1965_v52 }
  0x71   :  { %757 = vmatmul.bf16.gmra.mxu3 %v1410_v56  ;;  %1659 = vmatmul.msk.bf16.vlgmr.msrb.gmra.mxu0 %vm567_vm0, %v1374_v57  ;;  %v1487_v56 = vld [vmem:[%s2825_s0 + $0x10c] sm:$0xf0]  ;;  %v1964_v57 = vld [vmem:[%s2829_s4 + $0xc8] sm:$0xff] }
  0x72   :  { %1293 = vmatpush.bf16.msra.mxu1 %v1964_v57  ;;  %v1490_v3 = vor.u32 %v1884_v55, %v1487_v56 }
  0x73   :  { %674 = vmatmul.bf16.gmra.mxu1 %v1462_v58  ;;  %723 = vmatmul.bf16.gmra.mxu2 %v1466_v59  ;;  %v1971_v58 = vld [vmem:[%s2829_s4 + $0x100] sm:$0xff]  ;;  %v1453_v59 = vld [vmem:[%s2825_s0 + $0xb0] sm:$0xf] }
  0x74   :  { %1313 = vmatpush.bf16.msra.mxu2 %v1971_v58  ;;  %v1454_v4 = vor.u32 %v1877_v60, %v1453_v59  ;;  %v1513_v60 = vld [vmem:[%s2825_s0 + $0x128] sm:$0xf] }
  0x76   :  { %1294 = vmatpush.bf16.msra.mxu1 %v1963_v5 }
  0x81   :  { %762 = vmatmul.bf16.gmra.mxu3 %v1430_v7  ;;  %1660 = vmatmul.msk.bf16.gmra.mxu0 %vm567_vm0, %v1394_v8  ;;  %v1694_v7 = vor.u32 %v1934_v61, %v1691_v62  ;;  %v1690_v8 = vor.u32 %v1936_v0, %v1689_v63  ;;  %v1892_v61 = vld [vmem:[%s2825_s0 + $0x138] sm:$0xf0]  ;;  %v1697_v62 = vld [vmem:[%s2828_s3 + $0x30] sm:$0xf]  ;;  %v1937_v63 = vld [vmem:[%s2828_s3 + $0x40] sm:$0xf0] }
  0x82   :  { %v1698_v5 = vor.u32 %v1937_v63, %v1697_v62 }
  0x83   :  { %679 = vmatmul.bf16.gmra.mxu1 %v1482_v9  ;;  %728 = vmatmul.bf16.gmra.mxu2 %v1486_v10 }
  0x91   :  { %767 = vmatmul.bf16.gmra.mxu3 %v1450_v22  ;;  %1661 = vmatmul.msk.bf16.gmra.mxu0 %vm567_vm0, %v1414_v23 }
  0x93   :  { %684 = vmatmul.bf16.gmra.mxu1 %v1502_v24  ;;  %733 = vmatmul.bf16.gmra.mxu2 %v1506_v25  ;;  %v1510_v24 = vor.u32 %v1889_v14, %v1507_v15  ;;  %v1474_v25 = vor.u32 %v1882_v17, %v1473_v16  ;;  %v2649_v14 = vld [vmem:[%s2827_s2] ss:$0 sm:$0xff] }
  0x9e   :  { %v2468_v42 = vpop.f32.mrf.mxu0 }
  0x9f   :  { %v602_v15 = vadd.f32 %v2649_v14, %v2468_v42 }
  0xa0   :  { %v2473_v46 = vpop.f32.mrf.mxu1 }
  0xa1   :  { %772 = vmatmul.bf16.gmra.mxu3 %v1470_v39  ;;  %1662 = vmatmul.msk.bf16.gmra.mxu0 %vm567_vm0, %v1434_v40  ;;  %v1938_v39 = vld [vmem:[%s2828_s3 + $0x48] sm:$0xf0]  ;;  %v1935_v40 = vld [vmem:[%s2828_s3 + $0x34] sm:$0xf]  ;;  %v651_v19 = vadd.f32 %v2473_v46, %v602_v15 }
  0xa2   :  { %v1706_v51 = vor.u32 %v1938_v39, %v1705_v38  ;;  %v1702_v52 = vor.u32 %v1935_v40, %v1699_v41 }
  0xa3   :  { %1257 = vmatmul.bf16.vlgmr.msrb.gmra.mxu2 %v1674_v43  ;;  %1238 = vmatmul.bf16.vlgmr.msrb.gmra.mxu1 %v1670_v44 }
  0xa4   :  { %v2482_v49 = vpop.f32.mrf.mxu3 }
  0xa6   :  { %v2484_v50 = vpop.f32.mrf.mxu2  ;;  %v2492_v53 = vpop.f32.mrf.mxu0 }
  0xa7   :  { %v700_v21 = vadd.f32 %v2484_v50, %v651_v19 }
  0xa8   :  { %v2494_v54 = vpop.f32.mrf.mxu1 }
  0xac   :  { %v2526_v1 = vpop.f32.mrf.mxu3 }
  0xae   :  { %v2528_v2 = vpop.f32.mrf.mxu2  ;;  %v2533_v6 = vpop.f32.mrf.mxu0 }
  0xaf   :  { %v607_v50 = vadd.f32 %v2649_v14, %v2533_v6 }
  0xb0   :  { %v2535_v9 = vpop.f32.mrf.mxu1 }
  0xb1   :  { %777 = vmatmul.bf16.gmra.mxu3 %v1490_v3  ;;  %1663 = vmatmul.msk.bf16.gmra.mxu0 %vm567_vm0, %v1454_v4  ;;  %v1514_v4 = vor.u32 %v1892_v61, %v1513_v60  ;;  %v656_v40 = vadd.f32 %v2535_v9, %v607_v50 }
  0xb3   :  { %1262 = vmatmul.bf16.gmra.mxu2 %v1694_v7  ;;  %1243 = vmatmul.bf16.gmra.mxu1 %v1690_v8 }
  0xb4   :  { %v2538_v10 = vpop.f32.mrf.mxu3 }
  0xb6   :  { %v2540_v11 = vpop.f32.mrf.mxu2  ;;  %v2542_v12 = vpop.f32.mrf.mxu0 }
  0xb7   :  { %v609_v6 = vadd.f32 %v2649_v14, %v2542_v12 }
  0xb8   :  { %v2544_v13 = vpop.f32.mrf.mxu1 }
  0xb9   :  { %v658_v9 = vadd.f32 %v2544_v13, %v609_v6 }
  0xbc   :  { %v2570_v22 = vpop.f32.mrf.mxu3 }
  0xbe   :  { %v2572_v23 = vpop.f32.mrf.mxu2  ;;  %v2574_v26 = vpop.f32.mrf.mxu0 }
  0xbf   :  { %v612_v12 = vadd.f32 %v2649_v14, %v2574_v26 }
  0xc0   :  { %v2576_v29 = vpop.f32.mrf.mxu1 }
  0xc1   :  { %782 = vmatmul.bf16.gmra.mxu3 %v1510_v24  ;;  %1664 = vmatmul.msk.bf16.gmra.mxu0 %vm567_vm0, %v1474_v25  ;;  %v604_v24 = vadd.f32 %v2649_v14, %v2492_v53  ;;  %v661_v13 = vadd.f32 %v2576_v29, %v612_v12 }
  0xc3   :  { %1851 = vmatmul.msk.bf16.vlgmr.msra.gmra.mxu2 %vm567_vm0, %v1686_v27  ;;  %1295 = vmatmul.bf16.vlgmr.msra.gmra.mxu1 %v1682_v28  ;;  %v653_v42 = vadd.f32 %v2494_v54, %v604_v24 }
  0xc4   :  { %v2580_v30 = vpop.f32.mrf.mxu3 }
  0xc5   :  { %v702_v46 = vadd.f32 %v2528_v2, %v653_v42  ;;  %v705_v2 = vadd.f32 %v2540_v11, %v656_v40  ;;  %v707_v11 = vadd.f32 %v2572_v23, %v658_v9 }
  0xc6   :  { %v2582_v31 = vpop.f32.mrf.mxu2  ;;  %v2584_v32 = vpop.f32.mrf.mxu0 }
  0xc7   :  { %v614_v23 = vadd.f32 %v2649_v14, %v2584_v32 }
  0xc8   :  { %v2586_v33 = vpop.f32.mrf.mxu1 }
  0xc9   :  { %v663_v29 = vadd.f32 %v2586_v33, %v614_v23 }
  0xcc   :  { %v2612_v43 = vpop.f32.mrf.mxu3 }
  0xce   :  { %v2614_v44 = vpop.f32.mrf.mxu2  ;;  %v2616_v48 = vpop.f32.mrf.mxu0 }
  0xcf   :  { %v617_v32 = vadd.f32 %v2649_v14, %v2616_v48 }
  0xd0   :  { %v2618_v55 = vpop.f32.mrf.mxu1 }
  0xd1   :  { %1665 = vmatmul.msk.bf16.gmra.mxu0 %vm567_vm0, %v1494_v45  ;;  %1276 = vmatmul.bf16.vlgmr.msra.gmra.mxu3 %v1678_v47 }
  0xd3   :  { %1852 = vmatmul.msk.bf16.gmra.mxu2 %vm567_vm0, %v1706_v51  ;;  %1300 = vmatmul.bf16.gmra.mxu1 %v1702_v52 }
  0xd4   :  { %v748_v56 = vpop.f32.mrf.mxu3 }
  0xd5   :  { %v749_v27 = vadd.f32 %v748_v56, %v700_v21  ;;  %v710_v21 = vadd.f32 %v2582_v31, %v661_v13  ;;  %v712_v31 = vadd.f32 %v2614_v44, %v663_v29  ;;  %v627_v29 = vadd.f32 %v2649_v14, %v2482_v49 }
  0xd6   :  { %v2622_v57 = vpop.f32.mrf.mxu2  ;;  %v2624_v58 = vpop.f32.mrf.mxu0 }
  0xd7   :  { %v619_v48 = vadd.f32 %v2649_v14, %v2624_v58 }
  0xd8   :  { %v2626_v59 = vpop.f32.mrf.mxu1 }
  0xd9   :  { %v668_v6 = vadd.f32 %v2626_v59, %v619_v48 }
  0xdc   :  { %v750_v0 = vpop.f32.mrf.mxu3 }
  0xdd   :  { %v751_v38 = vadd.f32 %v750_v0, %v702_v46 }
  0xde   :  { %v2640_v3 = vpop.f32.mrf.mxu2  ;;  %v2642_v7 = vpop.f32.mrf.mxu0 }
  0xdf   :  { %v622_v58 = vadd.f32 %v2649_v14, %v2642_v7 }
  0xe0   :  { %v2644_v8 = vpop.f32.mrf.mxu1 }
  0xe1   :  { %1666 = vmatmul.msk.bf16.gmra.mxu0 %vm567_vm0, %v1514_v4  ;;  %1281 = vmatmul.bf16.gmra.mxu3 %v1698_v5  ;;  %v671_v59 = vadd.f32 %v2644_v8, %v622_v58  ;;  %v634_v58 = vadd.f32 %v2649_v14, %v2570_v22  ;;  %v637_v22 = vadd.f32 %v2649_v14, %v2580_v30 }
  0xe4   :  { %v753_v16 = vpop.f32.mrf.mxu3 }
  0xe5   :  { %v754_v52 = vadd.f32 %v753_v16, %v705_v2 }
  0xe6   :  { %v2654_v17 = vpop.f32.mrf.mxu2  ;;  %v2656_v18 = vpop.f32.mrf.mxu0 }
  0xe8   :  { %v2659_v20 = vpop.f32.mrf.mxu1 }
  0xec   :  { %v755_v25 = vpop.f32.mrf.mxu3 }
  0xed   :  { %v756_v4 = vadd.f32 %v755_v25, %v707_v11 }
  0xee   :  { %v2664_v28 = vpop.f32.mrf.mxu2  ;;  %v797_v34 = vpop.f32.mrf.mxu0 }
  0xef   :  { %v798_v36 = vadd.f32 %v797_v34, %v749_v27 }
  0xf0   :  { %v2667_v35 = vpop.f32.mrf.mxu1 }
  0xf1   :  { %v837_v37 = vmax.f32 %v798_v36, 0.0 }
  0xf3   :  { %854 = vst.msk [vmem:[%s2831_s6] sm:$0xff] %vm853_vm1, %v837_v37 }
  0xf4   :  { %v758_v53 = vpop.f32.mrf.mxu3 }
  0xf5   :  { %v759_v25 = vadd.f32 %v758_v53, %v710_v21 }
  0xf6   :  { %v2676_v39 = vpop.f32.mrf.mxu2  ;;  %v799_v54 = vpop.f32.mrf.mxu0 }
  0xf7   :  { %v800_v41 = vadd.f32 %v799_v54, %v751_v38  ;;  %v666_v38 = vadd.f32 %v2618_v55, %v617_v32 }
  0xf8   :  { %v2679_v45 = vpop.f32.mrf.mxu1 }
  0xf9   :  { %v838_v47 = vmax.f32 %v800_v41, 0.0  ;;  %v715_v44 = vadd.f32 %v2622_v57, %v666_v38  ;;  %v717_v57 = vadd.f32 %v2640_v3, %v668_v6  ;;  %v624_v3 = vadd.f32 %v2649_v14, %v2656_v18 }
  0xfa   :  { %v629_v38 = vadd.f32 %v2649_v14, %v2526_v1 }
  0xfb   :  { %855 = vst.msk [vmem:[%s2831_s6 + $0x8] sm:$0xff] %vm853_vm1, %v838_v47 }
  0xfc   :  { %v760_v51 = vpop.f32.mrf.mxu3 }
  0xfd   :  { %v761_v46 = vadd.f32 %v760_v51, %v712_v31 }
  0xfe   :  { %v2688_v56 = vpop.f32.mrf.mxu2  ;;  %v802_v60 = vpop.f32.mrf.mxu0 }
  0xff   :  { %v803_v61 = vadd.f32 %v802_v60, %v754_v52 }
 0x100   :  { %v2691_v63 = vpop.f32.mrf.mxu1 }
 0x101   :  { %v839_v62 = vmax.f32 %v803_v61, 0.0 }
 0x103   :  { %856 = vst.msk [vmem:[%s2831_s6 + $0x10] sm:$0xff] %vm853_vm1, %v839_v62 }
 0x104   :  { %v763_v0 = vpop.f32.mrf.mxu3 }
 0x105   :  { %v764_v47 = vadd.f32 %v763_v0, %v715_v44 }
 0x106   :  { %v2700_v5 = vpop.f32.mrf.mxu2  ;;  %v804_v15 = vpop.f32.mrf.mxu0 }
 0x107   :  { %v805_v16 = vadd.f32 %v804_v15, %v756_v4  ;;  %v720_v15 = vadd.f32 %v2654_v17, %v671_v59 }
 0x108   :  { %v2710_v26 = vpop.f32.mrf.mxu1 }
 0x109   :  { %v840_v19 = vmax.f32 %v805_v16, 0.0 }
 0x10b   :  { %857 = vst.msk [vmem:[%s2831_s6 + $0x18] sm:$0xff] %vm853_vm1, %v840_v19  ;;  %v673_v19 = vadd.f32 %v2659_v20, %v624_v3  ;;  %v676_v20 = vadd.f32 %v2667_v35, %v627_v29 }
 0x10c   :  { %v765_v24 = vpop.f32.mrf.mxu3 }
 0x10d   :  { %v766_v61 = vadd.f32 %v765_v24, %v717_v57  ;;  %v722_v24 = vadd.f32 %v2664_v28, %v673_v19  ;;  %v725_v31 = vadd.f32 %v2676_v39, %v676_v20 }
 0x10e   :  { %v2712_v27 = vpop.f32.mrf.mxu2  ;;  %v807_v34 = vpop.f32.mrf.mxu0 }
 0x10f   :  { %v808_v42 = vadd.f32 %v807_v34, %v759_v25 }
 0x110   :  { %v2722_v50 = vpop.f32.mrf.mxu1 }
 0x111   :  { %v841_v36 = vmax.f32 %v808_v42, 0.0  ;;  %v686_v19 = vadd.f32 %v2722_v50, %v637_v22  ;;  %v639_v50 = vadd.f32 %v2649_v14, %v2612_v43 }
 0x113   :  { %858 = vst.msk [vmem:[%s2831_s6 + $0x20] sm:$0xff] %vm853_vm1, %v841_v36 }
 0x114   :  { %v768_v37 = vpop.f32.mrf.mxu3 }
 0x115   :  { %v769_v13 = vadd.f32 %v768_v37, %v720_v15 }
 0x116   :  { %v809_v53 = vpop.f32.mrf.mxu0  ;;  %v2725_v54 = vpop.f32.mrf.mxu2 }
 0x117   :  { %v810_v33 = vadd.f32 %v809_v53, %v761_v46 }
 0x118   :  { %v2735_v51 = vpop.f32.mrf.mxu1 }
 0x119   :  { %v842_v40 = vmax.f32 %v810_v33, 0.0  ;;  %v678_v33 = vadd.f32 %v2679_v45, %v629_v38 }
 0x11b   :  { %859 = vst.msk [vmem:[%s2831_s6 + $0x28] sm:$0xff] %vm853_vm1, %v842_v40  ;;  %v727_v40 = vadd.f32 %v2688_v56, %v678_v33 }
 0x11c   :  { %v770_v41 = vpop.f32.mrf.mxu3 }
 0x11d   :  { %v771_v25 = vadd.f32 %v770_v41, %v722_v24 }
 0x11e   :  { %v812_v2 = vpop.f32.mrf.mxu0  ;;  %v2737_v60 = vpop.f32.mrf.mxu2 }
 0x11f   :  { %v813_v55 = vadd.f32 %v812_v2, %v764_v47  ;;  %v632_v47 = vadd.f32 %v2649_v14, %v2538_v10 }
 0x120   :  { %v1239_v12 = vpop.f32.mrf.mxu1 }
 0x121   :  { %v843_v52 = vmax.f32 %v813_v55, 0.0  ;;  %v681_v45 = vadd.f32 %v2691_v63, %v632_v47  ;;  %v1987_v55 = vld [vmem:[%s2830_s5] ss:$0 sm:$0xff] }
 0x123   :  { %860 = vst.msk [vmem:[%s2831_s6 + $0x30] sm:$0xff] %vm853_vm1, %v843_v52  ;;  %v730_v56 = vadd.f32 %v2700_v5, %v681_v45  ;;  %v683_v5 = vadd.f32 %v2710_v26, %v634_v58 }
 0x124   :  { %v773_v9 = vpop.f32.mrf.mxu3 }
 0x125   :  { %v774_v37 = vadd.f32 %v773_v9, %v725_v31  ;;  %v1240_v9 = vadd.f32 %v1987_v55, %v1239_v12 }
 0x126   :  { %v814_v62 = vpop.f32.mrf.mxu0  ;;  %v1258_v4 = vpop.f32.mrf.mxu2 }
 0x127   :  { %v815_v11 = vadd.f32 %v814_v62, %v766_v61 }
 0x128   :  { %v1241_v23 = vpop.f32.mrf.mxu1 }
 0x129   :  { %v844_v0 = vmax.f32 %v815_v11, 0.0  ;;  %v732_v11 = vadd.f32 %v2712_v27, %v683_v5  ;;  %v1242_v12 = vadd.f32 %v1987_v55, %v1241_v23 }
 0x12b   :  { %861 = vst.msk [vmem:[%s2831_s6 + $0x38] sm:$0xff] %vm853_vm1, %v844_v0  ;;  %v1259_v0 = vadd.f32 %v1258_v4, %v1240_v9 }
 0x12c   :  { %v775_v7 = vpop.f32.mrf.mxu3 }
 0x12d   :  { %v776_v44 = vadd.f32 %v775_v7, %v727_v40 }
 0x12e   :  { %v817_v16 = vpop.f32.mrf.mxu0  ;;  %v1260_v18 = vpop.f32.mrf.mxu2 }
 0x12f   :  { %v818_v8 = vadd.f32 %v817_v16, %v769_v13  ;;  %v1261_v24 = vadd.f32 %v1260_v18, %v1242_v12  ;;  %v688_v18 = vadd.f32 %v2735_v51, %v639_v50 }
 0x130   :  { %v1244_v32 = vpop.f32.mrf.mxu1 }
 0x131   :  { %v845_v21 = vmax.f32 %v818_v8, 0.0 }
 0x133   :  { %862 = vst.msk [vmem:[%s2831_s6 + $0x40] sm:$0xff] %vm853_vm1, %v845_v21  ;;  %v735_v21 = vadd.f32 %v2725_v54, %v686_v19 }
 0x134   :  { %v778_v17 = vpop.f32.mrf.mxu3 }
 0x135   :  { %v779_v57 = vadd.f32 %v778_v17, %v730_v56 }
 0x136   :  { %v819_v34 = vpop.f32.mrf.mxu0  ;;  %v1263_v53 = vpop.f32.mrf.mxu2 }
 0x137   :  { %v820_v42 = vadd.f32 %v819_v34, %v771_v25 }
 0x138   :  { %v1246_v41 = vpop.f32.mrf.mxu1 }
 0x139   :  { %v846_v36 = vmax.f32 %v820_v42, 0.0  ;;  %v1245_v42 = vadd.f32 %v1987_v55, %v1244_v32  ;;  %v1247_v51 = vadd.f32 %v1987_v55, %v1246_v41 }
 0x13b   :  { %863 = vst.msk [vmem:[%s2831_s6 + $0x48] sm:$0xff] %vm853_vm1, %v846_v36 }
 0x13c   :  { %v780_v28 = vpop.f32.mrf.mxu3 }
 0x13d   :  { %v781_v3 = vadd.f32 %v780_v28, %v732_v11  ;;  %v737_v28 = vadd.f32 %v2737_v60, %v688_v18 }
 0x13e   :  { %v822_v46 = vpop.f32.mrf.mxu0  ;;  %v2778_v1 = vpop.f32.mrf.mxu2 }
 0x13f   :  { %v823_v49 = vadd.f32 %v822_v46, %v774_v37  ;;  %v1264_v37 = vadd.f32 %v1263_v53, %v1245_v42  ;;  %v1266_v53 = vadd.f32 %v2778_v1, %v1247_v51 }
 0x140   :  { %v1296_v61 = vpop.f32.mrf.mxu1 }
 0x141   :  { %v847_v35 = vmax.f32 %v823_v49, 0.0 }
 0x143   :  { %864 = vst.msk [vmem:[%s2831_s6 + $0x50] sm:$0xff] %vm853_vm1, %v847_v35 }
 0x144   :  { %v783_v39 = vpop.f32.mrf.mxu3 }
 0x145   :  { %v784_v30 = vadd.f32 %v783_v39, %v735_v21 }
 0x146   :  { %v824_v48 = vpop.f32.mrf.mxu0  ;;  %v1315_v59 = vpop.f32.mrf.mxu2 }
 0x147   :  { %v825_v2 = vadd.f32 %v824_v48, %v776_v44 }
 0x148   :  { %v1298_v4 = vpop.f32.mrf.mxu1 }
 0x149   :  { %v848_v6 = vmax.f32 %v825_v2, 0.0 }
 0x14b   :  { %865 = vst.msk [vmem:[%s2831_s6 + $0x58] sm:$0xff] %vm853_vm1, %v848_v6 }
 0x14c   :  { %v785_v52 = vpop.f32.mrf.mxu3 }
 0x14d   :  { %v786_v33 = vadd.f32 %v785_v52, %v737_v28 }
 0x14e   :  { %v827_v10 = vpop.f32.mrf.mxu0  ;;  %v1317_v25 = vpop.f32.mrf.mxu2 }
 0x14f   :  { %v828_v63 = vadd.f32 %v827_v10, %v779_v57 }
 0x150   :  { %v1301_v38 = vpop.f32.mrf.mxu1 }
 0x151   :  { %v849_v62 = vmax.f32 %v828_v63, 0.0 }
 0x153   :  { %866 = vst.msk [vmem:[%s2831_s6 + $0x60] sm:$0xff] %vm853_vm1, %v849_v62 }
 0x154   :  { %v1277_v15 = vpop.f32.mrf.mxu3 }
 0x155   :  { %v1278_v7 = vadd.f32 %v1277_v15, %v1259_v0 }
 0x156   :  { %v829_v13 = vpop.f32.mrf.mxu0  ;;  %v1320_v14 = vpop.f32.mrf.mxu2 }
 0x157   :  { %v1297_v16 = vadd.f32 %v1296_v61, %v1278_v7  ;;  %v830_v26 = vadd.f32 %v829_v13, %v781_v3 }
 0x158   :  { %v1303_v2 = vpop.f32.mrf.mxu1 }
 0x159   :  { %v1316_v8 = vadd.f32 %v1315_v59, %v1297_v16  ;;  %v850_v27 = vmax.f32 %v830_v26, 0.0 }
 0x15b   :  { %v1325_v17 = vmax.f32 %v1316_v8, 0.0  ;;  %867 = vst.msk [vmem:[%s2831_s6 + $0x68] sm:$0xff] %vm853_vm1, %v850_v27 }
 0x15c   :  { %v1279_v34 = vpop.f32.mrf.mxu3 }
 0x15d   :  { %1329 = vst.msk [vmem:[#allocation2] sm:$0xff] %vm853_vm1, %v1325_v17  ;;  %v1280_v23 = vadd.f32 %v1279_v34, %v1261_v24 }
 0x15e   :  { %v832_v29 = vpop.f32.mrf.mxu0  ;;  %v1322_v41 = vpop.f32.mrf.mxu2 }
 0x15f   :  { %v1299_v20 = vadd.f32 %v1298_v4, %v1280_v23  ;;  %v833_v54 = vadd.f32 %v832_v29, %v784_v30 }
 0x161   :  { %v1318_v36 = vadd.f32 %v1317_v25, %v1299_v20  ;;  %v851_v31 = vmax.f32 %v833_v54, 0.0 }
 0x163   :  { %v1326_v46 = vmax.f32 %v1318_v36, 0.0  ;;  %868 = vst.msk [vmem:[%s2831_s6 + $0x70] sm:$0xff] %vm853_vm1, %v851_v31 }
 0x164   :  { %v1282_v49 = vpop.f32.mrf.mxu3 }
 0x165   :  { %1330 = vst.msk [vmem:[#allocation2 + $0x8] sm:$0xff] %vm853_vm1, %v1326_v46  ;;  %v1283_v43 = vadd.f32 %v1282_v49, %v1264_v37 }
 0x166   :  { %v834_v32 = vpop.f32.mrf.mxu0 }
 0x167   :  { %v1302_v35 = vadd.f32 %v1301_v38, %v1283_v43  ;;  %v835_v40 = vadd.f32 %v834_v32, %v786_v33 }
 0x169   :  { %v1321_v39 = vadd.f32 %v1320_v14, %v1302_v35  ;;  %v852_v60 = vmax.f32 %v835_v40, 0.0 }
 0x16b   :  { %v1327_v44 = vmax.f32 %v1321_v39, 0.0  ;;  %869 = vst.msk [vmem:[%s2831_s6 + $0x78] sm:$0xff] %vm853_vm1, %v852_v60  ;;  %s2015_s6 = smov 128  }
 0x16c   :  { %v1284_v48 = vpop.f32.mrf.mxu3 }
 0x16d   :  { %1331 = vst.msk [vmem:[#allocation2 + $0x10] sm:$0xff] %vm853_vm1, %v1327_v44  ;;  %v1285_v47 = vadd.f32 %v1284_v48, %v1266_v53 }
 0x16f   :  { %v1304_v45 = vadd.f32 %v1303_v2, %v1285_v47 }
 0x171   :  { %v1323_v1 = vadd.f32 %v1322_v41, %v1304_v45 }
 0x173   :  { %v1328_v6 = vmax.f32 %v1323_v1, 0.0 }
 0x175   :  { %1332 = vst.msk [vmem:[#allocation2 + $0x18] sm:$0xff] %vm853_vm1, %v1328_v6 }
 0x176   :  { %1347 = dma.vmem_to_hbm [thread:$0]  %s1340_s17, 512, %s1342_s20, [#allocation3], %s2015_s6, %s2015_s6, %s2016_s21  }
 0x177   :  { %2012 = dma.done.wait [#allocation3], 512  }
 0x178   :  { %2013 = vsyncadd [#allocation3], 4294966784 }
 0x179   :  { %1354 = vsyncpa [#allocation3], 1 }

</bundles_post_ra>
